<compile_context>
chip_gen: v6e
topology: v6e:2x2x1
jax: 0.10.0
libtpu: 0.0.40
codegen_flags: <defaults>
</compile_context>

<pallas_src>
import functools

import jax
import jax.numpy as jnp
from jax.experimental import pallas as pl
from jax.experimental.pallas import tpu as pltpu


def _round_up(x, m):
    return (x + m - 1) // m * m


# ---------------------------------------------------------------------------
# Pallas kernel: y = leaky_relu(A @ W + b)  (bias/act applied on last K step)
#   A tile: f32, cast to bf16 in-register; W tile: bf16; acc/out: f32.
# ---------------------------------------------------------------------------
def _fused_linear_kernel(a_ref, w_ref, b_ref, o_ref, acc_ref, *, apply_act, slope):
    k = pl.program_id(2)

    @pl.when(k == 0)
    def _():
        acc_ref[...] = jnp.zeros_like(acc_ref)

    a_bf16 = a_ref[...].astype(jnp.bfloat16)
    acc_ref[...] += jnp.dot(a_bf16, w_ref[...],
                            preferred_element_type=jnp.float32)

    @pl.when(k == pl.num_programs(2) - 1)
    def _():
        y = acc_ref[...] + b_ref[...]
        if apply_act:
            y = jnp.where(y >= 0, y, slope * y)
        o_ref[...] = y.astype(o_ref.dtype)


def fused_linear(a, w, b, *, apply_act=True, slope=0.01):
    """leaky_relu(a @ w + b) with a tiled Pallas matmul (bf16 MXU, f32 acc)."""
    M, K = a.shape
    Kw, N = w.shape
    assert K == Kw and b.shape == (N,)

    # Tile selection: big K/N tiles so fc0 (16384x2048) runs in ~32 grid steps
    # instead of 256.  bf16 W tile = tk*tn*2B <= 2 MiB; total VMEM ~7 MiB,
    # which fits the scoped default on v5e/v6e/v7x (explicit limit set below).
    tm = min(128, _round_up(M, 8))
    tn = min(512, _round_up(N, 128))
    tk = min(2048, _round_up(K, 128))
    Mp, Kp, Np = _round_up(M, tm), _round_up(K, tk), _round_up(N, tn)

    a_p = jnp.pad(a.astype(jnp.float32), ((0, Mp - M), (0, Kp - K)))
    w_p = jnp.pad(w.astype(jnp.bfloat16), ((0, Kp - K), (0, Np - N)))
    b_p = jnp.pad(b.astype(jnp.float32), (0, Np - N)).reshape(1, Np)

    kernel = functools.partial(_fused_linear_kernel,
                               apply_act=apply_act, slope=slope)
    out = pl.pallas_call(
        kernel,
        out_shape=jax.ShapeDtypeStruct((Mp, Np), jnp.float32),
        grid_spec=pltpu.PrefetchScalarGridSpec(
            num_scalar_prefetch=0,
            grid=(Mp // tm, Np // tn, Kp // tk),
            in_specs=[
                pl.BlockSpec((tm, tk), lambda i, j, k: (i, k)),
                pl.BlockSpec((tk, tn), lambda i, j, k: (k, j)),
                pl.BlockSpec((1, tn), lambda i, j, k: (0, j)),
            ],
            out_specs=pl.BlockSpec((tm, tn), lambda i, j, k: (i, j)),
            scratch_shapes=[pltpu.VMEM((tm, tn), jnp.float32)],
        ),
        compiler_params=pltpu.CompilerParams(
            dimension_semantics=("parallel", "parallel", "arbitrary"),
            vmem_limit_bytes=32 * 1024 * 1024),
    )(a_p, w_p, b_p)
    return out[:M, :N]


# ---------------------------------------------------------------------------
# Conv (5x5, stride 2, pad 2) as im2col + Pallas fused matmul
# ---------------------------------------------------------------------------
def _im2col(x_nhwc, ksize, stride, pad):
    N, H, W, C = x_nhwc.shape
    xp = jnp.pad(x_nhwc, ((0, 0), (pad, pad), (pad, pad), (0, 0)))
    Ho = (H + 2 * pad - ksize) // stride + 1
    Wo = (W + 2 * pad - ksize) // stride + 1
    cols = []
    for dh in range(ksize):
        for dw in range(ksize):
            cols.append(xp[:, dh:dh + stride * Ho:stride,
                           dw:dw + stride * Wo:stride, :])
    p = jnp.stack(cols, axis=3)                       # (N, Ho, Wo, k*k, C)
    return p.reshape(N * Ho * Wo, ksize * ksize * C), (N, Ho, Wo)


def conv2d_lrelu(x_nhwc, w2d, b, *, ksize=5, stride=2, pad=2, slope=0.01):
    """w2d is pre-reshaped at init: (kh*kw*Cin, Cout), bf16."""
    patches, (N, Ho, Wo) = _im2col(x_nhwc, ksize, stride, pad)
    y = fused_linear(patches, w2d, b, apply_act=True, slope=slope)
    Cout = w2d.shape[1]
    return y.reshape(N, Ho, Wo, Cout)


# ---------------------------------------------------------------------------
# Parameters (deterministic fan-in uniform init — synthetic weights)
# ---------------------------------------------------------------------------
_ENC_CHANNELS = [32, 64, 256]        # feature extractor ends at 256 channels
_OUT_SPATIAL = 8
_FC_DIMS = [256 * _OUT_SPATIAL * _OUT_SPATIAL, 2048, 256, 1]


def init_params(key, in_channels=3):
    # EncoderCNN: the torch module delegates to a student-defined
    # EncoderCNN(in_channels, 256) mapping HxW -> H/8 x W/8.  Realised here as
    # 3 x [Conv2d(k=5, s=2, p=2) + LeakyReLU] with channels [32, 64, 256].
    # TODO(synk): EncoderCNN source was not provided; this is the assumed arch.
    keys = jax.random.split(key, 2 * (len(_ENC_CHANNELS) + 3))
    params = {}
    cin = in_channels
    for i, cout in enumerate(_ENC_CHANNELS):
        wk, bk = keys[2 * i], keys[2 * i + 1]
        scale = 1.0 / jnp.sqrt(cin * 25.0)
        w_oihw = jax.random.uniform(wk, (cout, cin, 5, 5), jnp.float32,
                                    -scale, scale)
        # (Cout,Cin,kh,kw) -> (kh,kw,Cin,Cout) -> (kh*kw*Cin, Cout): matches
        # the im2col patch flattening (kernel-position major, channel minor).
        params[f"conv{i}_w"] = jnp.transpose(w_oihw, (2, 3, 1, 0)).reshape(
            25 * cin, cout).astype(jnp.bfloat16)
        params[f"conv{i}_b"] = jax.random.uniform(
            bk, (cout,), jnp.float32, -scale, scale)
        cin = cout
    off = 2 * len(_ENC_CHANNELS)
    for i in range(3):
        wk, bk = keys[off + 2 * i], keys[off + 2 * i + 1]
        scale = 1.0 / jnp.sqrt(float(_FC_DIMS[i]))
        w = jax.random.uniform(wk, (_FC_DIMS[i], _FC_DIMS[i + 1]),
                               jnp.float32, -scale, scale)
        if i == 0:
            # Torch's fc0 consumes an NCHW flatten (row order c,h,w).  Permute
            # the rows once so the kernel can consume an NHWC flatten (h,w,c)
            # directly, eliminating the runtime transpose of the feature map.
            C, S = _ENC_CHANNELS[-1], _OUT_SPATIAL
            w = w.reshape(C, S, S, _FC_DIMS[1]).transpose(1, 2, 0, 3).reshape(
                C * S * S, _FC_DIMS[1])
        params[f"fc{i}_w"] = w.astype(jnp.bfloat16)
        params[f"fc{i}_b"] = jax.random.uniform(
            bk, (_FC_DIMS[i + 1],), jnp.float32, -scale, scale)
    return params


# ---------------------------------------------------------------------------
# Forward pass (mirrors Discriminator.forward)
# ---------------------------------------------------------------------------
def discriminator_forward(params, x_nchw):
    x = jnp.transpose(x_nchw, (0, 2, 3, 1))          # NCHW -> NHWC
    for i in range(len(_ENC_CHANNELS)):
        x = conv2d_lrelu(x, params[f"conv{i}_w"], params[f"conv{i}_b"])
    N = x.shape[0]
    feats = x.reshape(N, -1)   # NHWC flatten; fc0_w rows permuted at init
    y = feats
    # The torch classifier appends nn.LeakyReLU() after *every* Linear,
    # including the final 256->1, so the last layer also gets the activation.
    for i in range(3):
        y = fused_linear(y, params[f"fc{i}_w"], params[f"fc{i}_b"],
                         apply_act=True, slope=0.01)
    return y                                         # (N, 1), like the torch code


if __name__ == "__main__":
    key = jax.random.PRNGKey(0)
    pkey, xkey = jax.random.split(key)
    # out_spatial=8 is hard-coded in the torch Discriminator, so H=W=64.
    in_size = (3, 64, 64)
    params = init_params(pkey, in_channels=in_size[0])
    x = jax.random.normal(xkey, (2,) + in_size, jnp.float32)

    y = jax.jit(discriminator_forward)(params, x)
    jax.block_until_ready(y)
    assert y.shape == (2, 1) and y.dtype == jnp.float32
    print("KERNEL_OK")
</pallas_src>

<mosaic_0001>
module attributes {stable_mosaic.version = 11 : i64} {
  func.func @_fused_linear_kernel(%arg0: i32, %arg1: i32, %arg2: i32, %arg3: memref<128x128xf32, #tpu.memory_space<vmem>>, %arg4: memref<128x128xbf16, #tpu.memory_space<vmem>>, %arg5: memref<1x128xf32, #tpu.memory_space<vmem>>, %arg6: memref<128x128xf32, #tpu.memory_space<vmem>>, %arg7: memref<128x128xf32, #tpu.memory_space<vmem>>) attributes {dimension_semantics = [#tpu.dimension_semantics<parallel>, #tpu.dimension_semantics<parallel>, #tpu.dimension_semantics<arbitrary>], iteration_bounds = array<i64: 16, 1, 1>, scalar_prefetch = 0 : i64, scratch_operands = 1 : i64, tpu.core_type = #tpu.core_type<tc>, window_params = [{transform_indices = @transform_0, window_bounds = array<i64: 128, 128>}, {transform_indices = @transform_1, window_bounds = array<i64: 128, 128>}, {transform_indices = @transform_2, window_bounds = array<i64: 1, 128>}, {transform_indices = @transform_3, window_bounds = array<i64: 128, 128>}]} {
    %c0_i32 = arith.constant 0 : i32
    %0 = arith.cmpi eq, %arg2, %c0_i32 : i32
    %1 = arith.extui %0 : i1 to i32
    %c0_i32_0 = arith.constant 0 : i32
    %2 = arith.cmpi ne, %1, %c0_i32_0 : i32
    scf.if %2 {
      %cst_10 = arith.constant 0.000000e+00 : f32
      %13 = vector.broadcast %cst_10 : f32 to vector<128x128xf32>
      %c0_11 = arith.constant 0 : index
      %c0_12 = arith.constant 0 : index
      %14 = vector.load %arg7[%c0_11, %c0_12] : memref<128x128xf32, #tpu.memory_space<vmem>>, vector<128x128xf32>
      tpu.vector_store %arg7[%c0_11, %c0_12], %13 {strides = array<i32>} : memref<128x128xf32, #tpu.memory_space<vmem>>, vector<128x128xf32>,
    } else {
    }
    %c0 = arith.constant 0 : index
    %c0_1 = arith.constant 0 : index
    %3 = vector.load %arg3[%c0, %c0_1] : memref<128x128xf32, #tpu.memory_space<vmem>>, vector<128x128xf32>
    %4 = arith.truncf %3 : vector<128x128xf32> to vector<128x128xbf16>
    %c0_2 = arith.constant 0 : index
    %c0_3 = arith.constant 0 : index
    %5 = vector.load %arg7[%c0_2, %c0_3] : memref<128x128xf32, #tpu.memory_space<vmem>>, vector<128x128xf32>
    %c0_4 = arith.constant 0 : index
    %c0_5 = arith.constant 0 : index
    %6 = vector.load %arg4[%c0_4, %c0_5] : memref<128x128xbf16, #tpu.memory_space<vmem>>, vector<128x128xbf16>
    %cst = arith.constant dense<0.000000e+00> : vector<128x128xf32>
    %7 = tpu.matmul %4, %6, %cst {dimension_numbers = #tpu.dot_dimension_numbers<[1], [0], [0], [1], [0, 0, 1, 1], [], []>} : vector<128x128xbf16>, vector<128x128xbf16>, vector<128x128xf32> -> vector<128x128xf32>
    %8 = arith.addf %5, %7 : vector<128x128xf32>
    %c0_6 = arith.constant 0 : index
    %c0_7 = arith.constant 0 : index
    %9 = vector.load %arg7[%c0_6, %c0_7] : memref<128x128xf32, #tpu.memory_space<vmem>>, vector<128x128xf32>
    tpu.vector_store %arg7[%c0_6, %c0_7], %8 {strides = array<i32>} : memref<128x128xf32, #tpu.memory_space<vmem>>, vector<128x128xf32>,
    %c0_i32_8 = arith.constant 0 : i32
    %10 = arith.cmpi eq, %arg2, %c0_i32_8 : i32
    %11 = arith.extui %10 : i1 to i32
    %c0_i32_9 = arith.constant 0 : i32
    %12 = arith.cmpi ne, %11, %c0_i32_9 : i32
    scf.if %12 {
      %c0_10 = arith.constant 0 : index
      %c0_11 = arith.constant 0 : index
      %13 = vector.load %arg7[%c0_10, %c0_11] : memref<128x128xf32, #tpu.memory_space<vmem>>, vector<128x128xf32>
      %c0_12 = arith.constant 0 : index
      %c0_13 = arith.constant 0 : index
      %14 = vector.load %arg5[%c0_12, %c0_13] : memref<1x128xf32, #tpu.memory_space<vmem>>, vector<1x128xf32>
      %15 = vector.broadcast %14 : vector<1x128xf32> to vector<128x128xf32>
      %16 = arith.addf %13, %15 : vector<128x128xf32>
      %cst_14 = arith.constant 0.000000e+00 : f32
      %17 = vector.broadcast %cst_14 : f32 to vector<128x128xf32>
      %18 = arith.cmpf oge, %16, %17 : vector<128x128xf32>
      %cst_15 = arith.constant 0.00999999977 : f32
      %19 = vector.broadcast %cst_15 : f32 to vector<128x128xf32>
      %20 = arith.mulf %19, %16 : vector<128x128xf32>
      %21 = arith.select %18, %16, %20 : vector<128x128xi1>, vector<128x128xf32>
      %c0_16 = arith.constant 0 : index
      %c0_17 = arith.constant 0 : index
      %22 = vector.load %arg6[%c0_16, %c0_17] : memref<128x128xf32, #tpu.memory_space<vmem>>, vector<128x128xf32>
      tpu.vector_store %arg6[%c0_16, %c0_17], %21 {strides = array<i32>} : memref<128x128xf32, #tpu.memory_space<vmem>>, vector<128x128xf32>,
    } else {
    }
    return
  }
  func.func @transform_0(%arg0: i32, %arg1: i32, %arg2: i32) -> (i32, i32) {
    %c0_i32 = arith.constant 0 : i32
    return %arg0, %arg2 : i32, i32
  }
  func.func @transform_1(%arg0: i32, %arg1: i32, %arg2: i32) -> (i32, i32) {
    %c0_i32 = arith.constant 0 : i32
    return %arg2, %arg1 : i32, i32
  }
  func.func @transform_2(%arg0: i32, %arg1: i32, %arg2: i32) -> (i32, i32) {
    %c0_i32 = arith.constant 0 : i32
    %c0_i32_0 = arith.constant 0 : i32
    return %c0_i32, %arg1 : i32, i32
  }
  func.func @transform_3(%arg0: i32, %arg1: i32, %arg2: i32) -> (i32, i32) {
    %c0_i32 = arith.constant 0 : i32
    return %arg0, %arg1 : i32, i32
  }
}

module attributes {stable_mosaic.version = 11 : i64} {
  func.func @_fused_linear_kernel(%arg0: i32, %arg1: i32, %arg2: i32, %arg3: memref<128x896xf32, #tpu.memory_space<vmem>>, %arg4: memref<896x128xbf16, #tpu.memory_space<vmem>>, %arg5: memref<1x128xf32, #tpu.memory_space<vmem>>, %arg6: memref<128x128xf32, #tpu.memory_space<vmem>>, %arg7: memref<128x128xf32, #tpu.memory_space<vmem>>) attributes {dimension_semantics = [#tpu.dimension_semantics<parallel>, #tpu.dimension_semantics<parallel>, #tpu.dimension_semantics<arbitrary>], iteration_bounds = array<i64: 4, 1, 1>, scalar_prefetch = 0 : i64, scratch_operands = 1 : i64, tpu.core_type = #tpu.core_type<tc>, window_params = [{transform_indices = @transform_0, window_bounds = array<i64: 128, 896>}, {transform_indices = @transform_1, window_bounds = array<i64: 896, 128>}, {transform_indices = @transform_2, window_bounds = array<i64: 1, 128>}, {transform_indices = @transform_3, window_bounds = array<i64: 128, 128>}]} {
    %c0_i32 = arith.constant 0 : i32
    %0 = arith.cmpi eq, %arg2, %c0_i32 : i32
    %1 = arith.extui %0 : i1 to i32
    %c0_i32_0 = arith.constant 0 : i32
    %2 = arith.cmpi ne, %1, %c0_i32_0 : i32
    scf.if %2 {
      %cst_10 = arith.constant 0.000000e+00 : f32
      %13 = vector.broadcast %cst_10 : f32 to vector<128x128xf32>
      %c0_11 = arith.constant 0 : index
      %c0_12 = arith.constant 0 : index
      %14 = vector.load %arg7[%c0_11, %c0_12] : memref<128x128xf32, #tpu.memory_space<vmem>>, vector<128x128xf32>
      tpu.vector_store %arg7[%c0_11, %c0_12], %13 {strides = array<i32>} : memref<128x128xf32, #tpu.memory_space<vmem>>, vector<128x128xf32>,
    } else {
    }
    %c0 = arith.constant 0 : index
    %c0_1 = arith.constant 0 : index
    %3 = vector.load %arg3[%c0, %c0_1] : memref<128x896xf32, #tpu.memory_space<vmem>>, vector<128x896xf32>
    %4 = arith.truncf %3 : vector<128x896xf32> to vector<128x896xbf16>
    %c0_2 = arith.constant 0 : index
    %c0_3 = arith.constant 0 : index
    %5 = vector.load %arg7[%c0_2, %c0_3] : memref<128x128xf32, #tpu.memory_space<vmem>>, vector<128x128xf32>
    %c0_4 = arith.constant 0 : index
    %c0_5 = arith.constant 0 : index
    %6 = vector.load %arg4[%c0_4, %c0_5] : memref<896x128xbf16, #tpu.memory_space<vmem>>, vector<896x128xbf16>
    %cst = arith.constant dense<0.000000e+00> : vector<128x128xf32>
    %7 = tpu.matmul %4, %6, %cst {dimension_numbers = #tpu.dot_dimension_numbers<[1], [0], [0], [1], [0, 0, 1, 1], [], []>} : vector<128x896xbf16>, vector<896x128xbf16>, vector<128x128xf32> -> vector<128x128xf32>
    %8 = arith.addf %5, %7 : vector<128x128xf32>
    %c0_6 = arith.constant 0 : index
    %c0_7 = arith.constant 0 : index
    %9 = vector.load %arg7[%c0_6, %c0_7] : memref<128x128xf32, #tpu.memory_space<vmem>>, vector<128x128xf32>
    tpu.vector_store %arg7[%c0_6, %c0_7], %8 {strides = array<i32>} : memref<128x128xf32, #tpu.memory_space<vmem>>, vector<128x128xf32>,
    %c0_i32_8 = arith.constant 0 : i32
    %10 = arith.cmpi eq, %arg2, %c0_i32_8 : i32
    %11 = arith.extui %10 : i1 to i32
    %c0_i32_9 = arith.constant 0 : i32
    %12 = arith.cmpi ne, %11, %c0_i32_9 : i32
    scf.if %12 {
      %c0_10 = arith.constant 0 : index
      %c0_11 = arith.constant 0 : index
      %13 = vector.load %arg7[%c0_10, %c0_11] : memref<128x128xf32, #tpu.memory_space<vmem>>, vector<128x128xf32>
      %c0_12 = arith.constant 0 : index
      %c0_13 = arith.constant 0 : index
      %14 = vector.load %arg5[%c0_12, %c0_13] : memref<1x128xf32, #tpu.memory_space<vmem>>, vector<1x128xf32>
      %15 = vector.broadcast %14 : vector<1x128xf32> to vector<128x128xf32>
      %16 = arith.addf %13, %15 : vector<128x128xf32>
      %cst_14 = arith.constant 0.000000e+00 : f32
      %17 = vector.broadcast %cst_14 : f32 to vector<128x128xf32>
      %18 = arith.cmpf oge, %16, %17 : vector<128x128xf32>
      %cst_15 = arith.constant 0.00999999977 : f32
      %19 = vector.broadcast %cst_15 : f32 to vector<128x128xf32>
      %20 = arith.mulf %19, %16 : vector<128x128xf32>
      %21 = arith.select %18, %16, %20 : vector<128x128xi1>, vector<128x128xf32>
      %c0_16 = arith.constant 0 : index
      %c0_17 = arith.constant 0 : index
      %22 = vector.load %arg6[%c0_16, %c0_17] : memref<128x128xf32, #tpu.memory_space<vmem>>, vector<128x128xf32>
      tpu.vector_store %arg6[%c0_16, %c0_17], %21 {strides = array<i32>} : memref<128x128xf32, #tpu.memory_space<vmem>>, vector<128x128xf32>,
    } else {
    }
    return
  }
  func.func @transform_0(%arg0: i32, %arg1: i32, %arg2: i32) -> (i32, i32) {
    %c0_i32 = arith.constant 0 : i32
    return %arg0, %arg2 : i32, i32
  }
  func.func @transform_1(%arg0: i32, %arg1: i32, %arg2: i32) -> (i32, i32) {
    %c0_i32 = arith.constant 0 : i32
    return %arg2, %arg1 : i32, i32
  }
  func.func @transform_2(%arg0: i32, %arg1: i32, %arg2: i32) -> (i32, i32) {
    %c0_i32 = arith.constant 0 : i32
    %c0_i32_0 = arith.constant 0 : i32
    return %c0_i32, %arg1 : i32, i32
  }
  func.func @transform_3(%arg0: i32, %arg1: i32, %arg2: i32) -> (i32, i32) {
    %c0_i32 = arith.constant 0 : i32
    return %arg0, %arg1 : i32, i32
  }
}

module attributes {stable_mosaic.version = 11 : i64} {
  func.func @_fused_linear_kernel(%arg0: i32, %arg1: i32, %arg2: i32, %arg3: memref<128x1664xf32, #tpu.memory_space<vmem>>, %arg4: memref<1664x256xbf16, #tpu.memory_space<vmem>>, %arg5: memref<1x256xf32, #tpu.memory_space<vmem>>, %arg6: memref<128x256xf32, #tpu.memory_space<vmem>>, %arg7: memref<128x256xf32, #tpu.memory_space<vmem>>) attributes {dimension_semantics = [#tpu.dimension_semantics<parallel>, #tpu.dimension_semantics<parallel>, #tpu.dimension_semantics<arbitrary>], iteration_bounds = array<i64: 1, 1, 1>, scalar_prefetch = 0 : i64, scratch_operands = 1 : i64, tpu.core_type = #tpu.core_type<tc>, window_params = [{transform_indices = @transform_0, window_bounds = array<i64: 128, 1664>}, {transform_indices = @transform_1, window_bounds = array<i64: 1664, 256>}, {transform_indices = @transform_2, window_bounds = array<i64: 1, 256>}, {transform_indices = @transform_3, window_bounds = array<i64: 128, 256>}]} {
    %c0_i32 = arith.constant 0 : i32
    %0 = arith.cmpi eq, %arg2, %c0_i32 : i32
    %1 = arith.extui %0 : i1 to i32
    %c0_i32_0 = arith.constant 0 : i32
    %2 = arith.cmpi ne, %1, %c0_i32_0 : i32
    scf.if %2 {
      %cst_10 = arith.constant 0.000000e+00 : f32
      %13 = vector.broadcast %cst_10 : f32 to vector<128x256xf32>
      %c0_11 = arith.constant 0 : index
      %c0_12 = arith.constant 0 : index
      %14 = vector.load %arg7[%c0_11, %c0_12] : memref<128x256xf32, #tpu.memory_space<vmem>>, vector<128x256xf32>
      tpu.vector_store %arg7[%c0_11, %c0_12], %13 {strides = array<i32>} : memref<128x256xf32, #tpu.memory_space<vmem>>, vector<128x256xf32>,
    } else {
    }
    %c0 = arith.constant 0 : index
    %c0_1 = arith.constant 0 : index
    %3 = vector.load %arg3[%c0, %c0_1] : memref<128x1664xf32, #tpu.memory_space<vmem>>, vector<128x1664xf32>
    %4 = arith.truncf %3 : vector<128x1664xf32> to vector<128x1664xbf16>
    %c0_2 = arith.constant 0 : index
    %c0_3 = arith.constant 0 : index
    %5 = vector.load %arg7[%c0_2, %c0_3] : memref<128x256xf32, #tpu.memory_space<vmem>>, vector<128x256xf32>
    %c0_4 = arith.constant 0 : index
    %c0_5 = arith.constant 0 : index
    %6 = vector.load %arg4[%c0_4, %c0_5] : memref<1664x256xbf16, #tpu.memory_space<vmem>>, vector<1664x256xbf16>
    %cst = arith.constant dense<0.000000e+00> : vector<128x256xf32>
    %7 = tpu.matmul %4, %6, %cst {dimension_numbers = #tpu.dot_dimension_numbers<[1], [0], [0], [1], [0, 0, 1, 1], [], []>} : vector<128x1664xbf16>, vector<1664x256xbf16>, vector<128x256xf32> -> vector<128x256xf32>
    %8 = arith.addf %5, %7 : vector<128x256xf32>
    %c0_6 = arith.constant 0 : index
    %c0_7 = arith.constant 0 : index
    %9 = vector.load %arg7[%c0_6, %c0_7] : memref<128x256xf32, #tpu.memory_space<vmem>>, vector<128x256xf32>
    tpu.vector_store %arg7[%c0_6, %c0_7], %8 {strides = array<i32>} : memref<128x256xf32, #tpu.memory_space<vmem>>, vector<128x256xf32>,
    %c0_i32_8 = arith.constant 0 : i32
    %10 = arith.cmpi eq, %arg2, %c0_i32_8 : i32
    %11 = arith.extui %10 : i1 to i32
    %c0_i32_9 = arith.constant 0 : i32
    %12 = arith.cmpi ne, %11, %c0_i32_9 : i32
    scf.if %12 {
      %c0_10 = arith.constant 0 : index
      %c0_11 = arith.constant 0 : index
      %13 = vector.load %arg7[%c0_10, %c0_11] : memref<128x256xf32, #tpu.memory_space<vmem>>, vector<128x256xf32>
      %c0_12 = arith.constant 0 : index
      %c0_13 = arith.constant 0 : index
      %14 = vector.load %arg5[%c0_12, %c0_13] : memref<1x256xf32, #tpu.memory_space<vmem>>, vector<1x256xf32>
      %15 = vector.broadcast %14 : vector<1x256xf32> to vector<128x256xf32>
      %16 = arith.addf %13, %15 : vector<128x256xf32>
      %cst_14 = arith.constant 0.000000e+00 : f32
      %17 = vector.broadcast %cst_14 : f32 to vector<128x256xf32>
      %18 = arith.cmpf oge, %16, %17 : vector<128x256xf32>
      %cst_15 = arith.constant 0.00999999977 : f32
      %19 = vector.broadcast %cst_15 : f32 to vector<128x256xf32>
      %20 = arith.mulf %19, %16 : vector<128x256xf32>
      %21 = arith.select %18, %16, %20 : vector<128x256xi1>, vector<128x256xf32>
      %c0_16 = arith.constant 0 : index
      %c0_17 = arith.constant 0 : index
      %22 = vector.load %arg6[%c0_16, %c0_17] : memref<128x256xf32, #tpu.memory_space<vmem>>, vector<128x256xf32>
      tpu.vector_store %arg6[%c0_16, %c0_17], %21 {strides = array<i32>} : memref<128x256xf32, #tpu.memory_space<vmem>>, vector<128x256xf32>,
    } else {
    }
    return
  }
  func.func @transform_0(%arg0: i32, %arg1: i32, %arg2: i32) -> (i32, i32) {
    %c0_i32 = arith.constant 0 : i32
    return %arg0, %arg2 : i32, i32
  }
  func.func @transform_1(%arg0: i32, %arg1: i32, %arg2: i32) -> (i32, i32) {
    %c0_i32 = arith.constant 0 : i32
    return %arg2, %arg1 : i32, i32
  }
  func.func @transform_2(%arg0: i32, %arg1: i32, %arg2: i32) -> (i32, i32) {
    %c0_i32 = arith.constant 0 : i32
    %c0_i32_0 = arith.constant 0 : i32
    return %c0_i32, %arg1 : i32, i32
  }
  func.func @transform_3(%arg0: i32, %arg1: i32, %arg2: i32) -> (i32, i32) {
    %c0_i32 = arith.constant 0 : i32
    return %arg0, %arg1 : i32, i32
  }
}

module attributes {stable_mosaic.version = 11 : i64} {
  func.func @_fused_linear_kernel(%arg0: i32, %arg1: i32, %arg2: i32, %arg3: memref<8x2048xf32, #tpu.memory_space<vmem>>, %arg4: memref<2048x512xbf16, #tpu.memory_space<vmem>>, %arg5: memref<1x512xf32, #tpu.memory_space<vmem>>, %arg6: memref<8x512xf32, #tpu.memory_space<vmem>>, %arg7: memref<8x512xf32, #tpu.memory_space<vmem>>) attributes {dimension_semantics = [#tpu.dimension_semantics<parallel>, #tpu.dimension_semantics<parallel>, #tpu.dimension_semantics<arbitrary>], iteration_bounds = array<i64: 1, 4, 8>, scalar_prefetch = 0 : i64, scratch_operands = 1 : i64, tpu.core_type = #tpu.core_type<tc>, window_params = [{transform_indices = @transform_0, window_bounds = array<i64: 8, 2048>}, {transform_indices = @transform_1, window_bounds = array<i64: 2048, 512>}, {transform_indices = @transform_2, window_bounds = array<i64: 1, 512>}, {transform_indices = @transform_3, window_bounds = array<i64: 8, 512>}]} {
    %c0_i32 = arith.constant 0 : i32
    %0 = arith.cmpi eq, %arg2, %c0_i32 : i32
    %1 = arith.extui %0 : i1 to i32
    %c0_i32_0 = arith.constant 0 : i32
    %2 = arith.cmpi ne, %1, %c0_i32_0 : i32
    scf.if %2 {
      %cst_9 = arith.constant 0.000000e+00 : f32
      %13 = vector.broadcast %cst_9 : f32 to vector<8x512xf32>
      %c0_10 = arith.constant 0 : index
      %c0_11 = arith.constant 0 : index
      %14 = vector.load %arg7[%c0_10, %c0_11] : memref<8x512xf32, #tpu.memory_space<vmem>>, vector<8x512xf32>
      tpu.vector_store %arg7[%c0_10, %c0_11], %13 {strides = array<i32>} : memref<8x512xf32, #tpu.memory_space<vmem>>, vector<8x512xf32>,
    } else {
    }
    %c0 = arith.constant 0 : index
    %c0_1 = arith.constant 0 : index
    %3 = vector.load %arg3[%c0, %c0_1] : memref<8x2048xf32, #tpu.memory_space<vmem>>, vector<8x2048xf32>
    %4 = arith.truncf %3 : vector<8x2048xf32> to vector<8x2048xbf16>
    %c0_2 = arith.constant 0 : index
    %c0_3 = arith.constant 0 : index
    %5 = vector.load %arg7[%c0_2, %c0_3] : memref<8x512xf32, #tpu.memory_space<vmem>>, vector<8x512xf32>
    %c0_4 = arith.constant 0 : index
    %c0_5 = arith.constant 0 : index
    %6 = vector.load %arg4[%c0_4, %c0_5] : memref<2048x512xbf16, #tpu.memory_space<vmem>>, vector<2048x512xbf16>
    %cst = arith.constant dense<0.000000e+00> : vector<8x512xf32>
    %7 = tpu.matmul %4, %6, %cst {dimension_numbers = #tpu.dot_dimension_numbers<[1], [0], [0], [1], [0, 0, 1, 1], [], []>} : vector<8x2048xbf16>, vector<2048x512xbf16>, vector<8x512xf32> -> vector<8x512xf32>
    %8 = arith.addf %5, %7 : vector<8x512xf32>
    %c0_6 = arith.constant 0 : index
    %c0_7 = arith.constant 0 : index
    %9 = vector.load %arg7[%c0_6, %c0_7] : memref<8x512xf32, #tpu.memory_space<vmem>>, vector<8x512xf32>
    tpu.vector_store %arg7[%c0_6, %c0_7], %8 {strides = array<i32>} : memref<8x512xf32, #tpu.memory_space<vmem>>, vector<8x512xf32>,
    %c7_i32 = arith.constant 7 : i32
    %10 = arith.cmpi eq, %arg2, %c7_i32 : i32
    %11 = arith.extui %10 : i1 to i32
    %c0_i32_8 = arith.constant 0 : i32
    %12 = arith.cmpi ne, %11, %c0_i32_8 : i32
    scf.if %12 {
      %c0_9 = arith.constant 0 : index
      %c0_10 = arith.constant 0 : index
      %13 = vector.load %arg7[%c0_9, %c0_10] : memref<8x512xf32, #tpu.memory_space<vmem>>, vector<8x512xf32>
      %c0_11 = arith.constant 0 : index
      %c0_12 = arith.constant 0 : index
      %14 = vector.load %arg5[%c0_11, %c0_12] : memref<1x512xf32, #tpu.memory_space<vmem>>, vector<1x512xf32>
      %15 = vector.broadcast %14 : vector<1x512xf32> to vector<8x512xf32>
      %16 = arith.addf %13, %15 : vector<8x512xf32>
      %cst_13 = arith.constant 0.000000e+00 : f32
      %17 = vector.broadcast %cst_13 : f32 to vector<8x512xf32>
      %18 = arith.cmpf oge, %16, %17 : vector<8x512xf32>
      %cst_14 = arith.constant 0.00999999977 : f32
      %19 = vector.broadcast %cst_14 : f32 to vector<8x512xf32>
      %20 = arith.mulf %19, %16 : vector<8x512xf32>
      %21 = arith.select %18, %16, %20 : vector<8x512xi1>, vector<8x512xf32>
      %c0_15 = arith.constant 0 : index
      %c0_16 = arith.constant 0 : index
      %22 = vector.load %arg6[%c0_15, %c0_16] : memref<8x512xf32, #tpu.memory_space<vmem>>, vector<8x512xf32>
      tpu.vector_store %arg6[%c0_15, %c0_16], %21 {strides = array<i32>} : memref<8x512xf32, #tpu.memory_space<vmem>>, vector<8x512xf32>,
    } else {
    }
    return
  }
  func.func @transform_0(%arg0: i32, %arg1: i32, %arg2: i32) -> (i32, i32) {
    %c0_i32 = arith.constant 0 : i32
    return %arg0, %arg2 : i32, i32
  }
  func.func @transform_1(%arg0: i32, %arg1: i32, %arg2: i32) -> (i32, i32) {
    %c0_i32 = arith.constant 0 : i32
    return %arg2, %arg1 : i32, i32
  }
  func.func @transform_2(%arg0: i32, %arg1: i32, %arg2: i32) -> (i32, i32) {
    %c0_i32 = arith.constant 0 : i32
    %c0_i32_0 = arith.constant 0 : i32
    return %c0_i32, %arg1 : i32, i32
  }
  func.func @transform_3(%arg0: i32, %arg1: i32, %arg2: i32) -> (i32, i32) {
    %c0_i32 = arith.constant 0 : i32
    return %arg0, %arg1 : i32, i32
  }
}

module attributes {stable_mosaic.version = 11 : i64} {
  func.func @_fused_linear_kernel(%arg0: i32, %arg1: i32, %arg2: i32, %arg3: memref<8x2048xf32, #tpu.memory_space<vmem>>, %arg4: memref<2048x256xbf16, #tpu.memory_space<vmem>>, %arg5: memref<1x256xf32, #tpu.memory_space<vmem>>, %arg6: memref<8x256xf32, #tpu.memory_space<vmem>>, %arg7: memref<8x256xf32, #tpu.memory_space<vmem>>) attributes {dimension_semantics = [#tpu.dimension_semantics<parallel>, #tpu.dimension_semantics<parallel>, #tpu.dimension_semantics<arbitrary>], iteration_bounds = array<i64: 1, 1, 1>, scalar_prefetch = 0 : i64, scratch_operands = 1 : i64, tpu.core_type = #tpu.core_type<tc>, window_params = [{transform_indices = @transform_0, window_bounds = array<i64: 8, 2048>}, {transform_indices = @transform_1, window_bounds = array<i64: 2048, 256>}, {transform_indices = @transform_2, window_bounds = array<i64: 1, 256>}, {transform_indices = @transform_3, window_bounds = array<i64: 8, 256>}]} {
    %c0_i32 = arith.constant 0 : i32
    %0 = arith.cmpi eq, %arg2, %c0_i32 : i32
    %1 = arith.extui %0 : i1 to i32
    %c0_i32_0 = arith.constant 0 : i32
    %2 = arith.cmpi ne, %1, %c0_i32_0 : i32
    scf.if %2 {
      %cst_10 = arith.constant 0.000000e+00 : f32
      %13 = vector.broadcast %cst_10 : f32 to vector<8x256xf32>
      %c0_11 = arith.constant 0 : index
      %c0_12 = arith.constant 0 : index
      %14 = vector.load %arg7[%c0_11, %c0_12] : memref<8x256xf32, #tpu.memory_space<vmem>>, vector<8x256xf32>
      tpu.vector_store %arg7[%c0_11, %c0_12], %13 {strides = array<i32>} : memref<8x256xf32, #tpu.memory_space<vmem>>, vector<8x256xf32>,
    } else {
    }
    %c0 = arith.constant 0 : index
    %c0_1 = arith.constant 0 : index
    %3 = vector.load %arg3[%c0, %c0_1] : memref<8x2048xf32, #tpu.memory_space<vmem>>, vector<8x2048xf32>
    %4 = arith.truncf %3 : vector<8x2048xf32> to vector<8x2048xbf16>
    %c0_2 = arith.constant 0 : index
    %c0_3 = arith.constant 0 : index
    %5 = vector.load %arg7[%c0_2, %c0_3] : memref<8x256xf32, #tpu.memory_space<vmem>>, vector<8x256xf32>
    %c0_4 = arith.constant 0 : index
    %c0_5 = arith.constant 0 : index
    %6 = vector.load %arg4[%c0_4, %c0_5] : memref<2048x256xbf16, #tpu.memory_space<vmem>>, vector<2048x256xbf16>
    %cst = arith.constant dense<0.000000e+00> : vector<8x256xf32>
    %7 = tpu.matmul %4, %6, %cst {dimension_numbers = #tpu.dot_dimension_numbers<[1], [0], [0], [1], [0, 0, 1, 1], [], []>} : vector<8x2048xbf16>, vector<2048x256xbf16>, vector<8x256xf32> -> vector<8x256xf32>
    %8 = arith.addf %5, %7 : vector<8x256xf32>
    %c0_6 = arith.constant 0 : index
    %c0_7 = arith.constant 0 : index
    %9 = vector.load %arg7[%c0_6, %c0_7] : memref<8x256xf32, #tpu.memory_space<vmem>>, vector<8x256xf32>
    tpu.vector_store %arg7[%c0_6, %c0_7], %8 {strides = array<i32>} : memref<8x256xf32, #tpu.memory_space<vmem>>, vector<8x256xf32>,
    %c0_i32_8 = arith.constant 0 : i32
    %10 = arith.cmpi eq, %arg2, %c0_i32_8 : i32
    %11 = arith.extui %10 : i1 to i32
    %c0_i32_9 = arith.constant 0 : i32
    %12 = arith.cmpi ne, %11, %c0_i32_9 : i32
    scf.if %12 {
      %c0_10 = arith.constant 0 : index
      %c0_11 = arith.constant 0 : index
      %13 = vector.load %arg7[%c0_10, %c0_11] : memref<8x256xf32, #tpu.memory_space<vmem>>, vector<8x256xf32>
      %c0_12 = arith.constant 0 : index
      %c0_13 = arith.constant 0 : index
      %14 = vector.load %arg5[%c0_12, %c0_13] : memref<1x256xf32, #tpu.memory_space<vmem>>, vector<1x256xf32>
      %15 = vector.broadcast %14 : vector<1x256xf32> to vector<8x256xf32>
      %16 = arith.addf %13, %15 : vector<8x256xf32>
      %cst_14 = arith.constant 0.000000e+00 : f32
      %17 = vector.broadcast %cst_14 : f32 to vector<8x256xf32>
      %18 = arith.cmpf oge, %16, %17 : vector<8x256xf32>
      %cst_15 = arith.constant 0.00999999977 : f32
      %19 = vector.broadcast %cst_15 : f32 to vector<8x256xf32>
      %20 = arith.mulf %19, %16 : vector<8x256xf32>
      %21 = arith.select %18, %16, %20 : vector<8x256xi1>, vector<8x256xf32>
      %c0_16 = arith.constant 0 : index
      %c0_17 = arith.constant 0 : index
      %22 = vector.load %arg6[%c0_16, %c0_17] : memref<8x256xf32, #tpu.memory_space<vmem>>, vector<8x256xf32>
      tpu.vector_store %arg6[%c0_16, %c0_17], %21 {strides = array<i32>} : memref<8x256xf32, #tpu.memory_space<vmem>>, vector<8x256xf32>,
    } else {
    }
    return
  }
  func.func @transform_0(%arg0: i32, %arg1: i32, %arg2: i32) -> (i32, i32) {
    %c0_i32 = arith.constant 0 : i32
    return %arg0, %arg2 : i32, i32
  }
  func.func @transform_1(%arg0: i32, %arg1: i32, %arg2: i32) -> (i32, i32) {
    %c0_i32 = arith.constant 0 : i32
    return %arg2, %arg1 : i32, i32
  }
  func.func @transform_2(%arg0: i32, %arg1: i32, %arg2: i32) -> (i32, i32) {
    %c0_i32 = arith.constant 0 : i32
    %c0_i32_0 = arith.constant 0 : i32
    return %c0_i32, %arg1 : i32, i32
  }
  func.func @transform_3(%arg0: i32, %arg1: i32, %arg2: i32) -> (i32, i32) {
    %c0_i32 = arith.constant 0 : i32
    return %arg0, %arg1 : i32, i32
  }
}

module attributes {stable_mosaic.version = 11 : i64} {
  func.func @_fused_linear_kernel(%arg0: i32, %arg1: i32, %arg2: i32, %arg3: memref<8x256xf32, #tpu.memory_space<vmem>>, %arg4: memref<256x128xbf16, #tpu.memory_space<vmem>>, %arg5: memref<1x128xf32, #tpu.memory_space<vmem>>, %arg6: memref<8x128xf32, #tpu.memory_space<vmem>>, %arg7: memref<8x128xf32, #tpu.memory_space<vmem>>) attributes {dimension_semantics = [#tpu.dimension_semantics<parallel>, #tpu.dimension_semantics<parallel>, #tpu.dimension_semantics<arbitrary>], iteration_bounds = array<i64: 1, 1, 1>, scalar_prefetch = 0 : i64, scratch_operands = 1 : i64, tpu.core_type = #tpu.core_type<tc>, window_params = [{transform_indices = @transform_0, window_bounds = array<i64: 8, 256>}, {transform_indices = @transform_1, window_bounds = array<i64: 256, 128>}, {transform_indices = @transform_2, window_bounds = array<i64: 1, 128>}, {transform_indices = @transform_3, window_bounds = array<i64: 8, 128>}]} {
    %c0_i32 = arith.constant 0 : i32
    %0 = arith.cmpi eq, %arg2, %c0_i32 : i32
    %1 = arith.extui %0 : i1 to i32
    %c0_i32_0 = arith.constant 0 : i32
    %2 = arith.cmpi ne, %1, %c0_i32_0 : i32
    scf.if %2 {
      %cst_10 = arith.constant 0.000000e+00 : f32
      %13 = vector.broadcast %cst_10 : f32 to vector<8x128xf32>
      %c0_11 = arith.constant 0 : index
      %c0_12 = arith.constant 0 : index
      %14 = vector.load %arg7[%c0_11, %c0_12] : memref<8x128xf32, #tpu.memory_space<vmem>>, vector<8x128xf32>
      tpu.vector_store %arg7[%c0_11, %c0_12], %13 {strides = array<i32>} : memref<8x128xf32, #tpu.memory_space<vmem>>, vector<8x128xf32>,
    } else {
    }
    %c0 = arith.constant 0 : index
    %c0_1 = arith.constant 0 : index
    %3 = vector.load %arg3[%c0, %c0_1] : memref<8x256xf32, #tpu.memory_space<vmem>>, vector<8x256xf32>
    %4 = arith.truncf %3 : vector<8x256xf32> to vector<8x256xbf16>
    %c0_2 = arith.constant 0 : index
    %c0_3 = arith.constant 0 : index
    %5 = vector.load %arg7[%c0_2, %c0_3] : memref<8x128xf32, #tpu.memory_space<vmem>>, vector<8x128xf32>
    %c0_4 = arith.constant 0 : index
    %c0_5 = arith.constant 0 : index
    %6 = vector.load %arg4[%c0_4, %c0_5] : memref<256x128xbf16, #tpu.memory_space<vmem>>, vector<256x128xbf16>
    %cst = arith.constant dense<0.000000e+00> : vector<8x128xf32>
    %7 = tpu.matmul %4, %6, %cst {dimension_numbers = #tpu.dot_dimension_numbers<[1], [0], [0], [1], [0, 0, 1, 1], [], []>} : vector<8x256xbf16>, vector<256x128xbf16>, vector<8x128xf32> -> vector<8x128xf32>
    %8 = arith.addf %5, %7 : vector<8x128xf32>
    %c0_6 = arith.constant 0 : index
    %c0_7 = arith.constant 0 : index
    %9 = vector.load %arg7[%c0_6, %c0_7] : memref<8x128xf32, #tpu.memory_space<vmem>>, vector<8x128xf32>
    tpu.vector_store %arg7[%c0_6, %c0_7], %8 {strides = array<i32>} : memref<8x128xf32, #tpu.memory_space<vmem>>, vector<8x128xf32>,
    %c0_i32_8 = arith.constant 0 : i32
    %10 = arith.cmpi eq, %arg2, %c0_i32_8 : i32
    %11 = arith.extui %10 : i1 to i32
    %c0_i32_9 = arith.constant 0 : i32
    %12 = arith.cmpi ne, %11, %c0_i32_9 : i32
    scf.if %12 {
      %c0_10 = arith.constant 0 : index
      %c0_11 = arith.constant 0 : index
      %13 = vector.load %arg7[%c0_10, %c0_11] : memref<8x128xf32, #tpu.memory_space<vmem>>, vector<8x128xf32>
      %c0_12 = arith.constant 0 : index
      %c0_13 = arith.constant 0 : index
      %14 = vector.load %arg5[%c0_12, %c0_13] : memref<1x128xf32, #tpu.memory_space<vmem>>, vector<1x128xf32>
      %15 = vector.broadcast %14 : vector<1x128xf32> to vector<8x128xf32>
      %16 = arith.addf %13, %15 : vector<8x128xf32>
      %cst_14 = arith.constant 0.000000e+00 : f32
      %17 = vector.broadcast %cst_14 : f32 to vector<8x128xf32>
      %18 = arith.cmpf oge, %16, %17 : vector<8x128xf32>
      %cst_15 = arith.constant 0.00999999977 : f32
      %19 = vector.broadcast %cst_15 : f32 to vector<8x128xf32>
      %20 = arith.mulf %19, %16 : vector<8x128xf32>
      %21 = arith.select %18, %16, %20 : vector<8x128xi1>, vector<8x128xf32>
      %c0_16 = arith.constant 0 : index
      %c0_17 = arith.constant 0 : index
      %22 = vector.load %arg6[%c0_16, %c0_17] : memref<8x128xf32, #tpu.memory_space<vmem>>, vector<8x128xf32>
      tpu.vector_store %arg6[%c0_16, %c0_17], %21 {strides = array<i32>} : memref<8x128xf32, #tpu.memory_space<vmem>>, vector<8x128xf32>,
    } else {
    }
    return
  }
  func.func @transform_0(%arg0: i32, %arg1: i32, %arg2: i32) -> (i32, i32) {
    %c0_i32 = arith.constant 0 : i32
    return %arg0, %arg2 : i32, i32
  }
  func.func @transform_1(%arg0: i32, %arg1: i32, %arg2: i32) -> (i32, i32) {
    %c0_i32 = arith.constant 0 : i32
    return %arg2, %arg1 : i32, i32
  }
  func.func @transform_2(%arg0: i32, %arg1: i32, %arg2: i32) -> (i32, i32) {
    %c0_i32 = arith.constant 0 : i32
    %c0_i32_0 = arith.constant 0 : i32
    return %c0_i32, %arg1 : i32, i32
  }
  func.func @transform_3(%arg0: i32, %arg1: i32, %arg2: i32) -> (i32, i32) {
    %c0_i32 = arith.constant 0 : i32
    return %arg0, %arg1 : i32, i32
  }
}

</mosaic_0001>

<bundles_post_ra>
// kernel: discriminator_forward.6
= control target key start
LH: loop header
LB: loop body
LE: loop exit
PB: predicated region body
PF: predicated region fallthrough
CT: control target
= control target key end

     0   :  { %s892_s12 = smov 0   ;;  %s894_s13 = smov 0   ;;  %s1013_s0 = inlined_call_operand.vmem [shape: f32[2048,128], index: 0, kind: input, shape index: {}]   ;;  %s1014_s1 = inlined_call_operand.vmem [shape: bf16[128,128], index: 1, kind: input, shape index: {}]   ;;  %s1015_s2 = inlined_call_operand.vmem [shape: f32[1,128], index: 2, kind: input, shape index: {}]   ;;  %s1016_s3 = inlined_call_operand.vmem [shape: f32[2048,128], index: 3, kind: output, shape index: {}]  }
   0x1   :  { %s896_s14 = smov 0  }
   0x2 LB: > { %s32_s15 = sadd.s32 1, %s866_s13  ;;  %p736_p0 = scmp.ge.s32.totalorder %s870_s14, 1  ;;  %s870_s14 = sphi %s896_s14, %s13_s14   ;;  %s866_s13 = sphi %s894_s13, %s1018_s13   ;;  %s862_s12 = sphi %s892_s12, %s1017_s12  }
   0x3   : > { %p34_p1 = scmp.ge.s32.totalorder %s32_s15, 16  ;;  %p188_p2 = scmp.lt.s32.totalorder %s870_s14, 17 }
   0x5   : > { %s1020_s15 = smov (%p34_p1, %s32_s15), 0  ;;  %p189_p3 = pnand %p736_p0, %p188_p2 }
   0x6   : > { %s737_s18 = sshll.u32 (!%p189_p3), %s862_s12, 4 }
   0x7   : > { %192 = sbr.rel (%p189_p3) target bundleno = 259 (0x103), region = 32  ;;  %p230_p4 = scmp.lt.s32.totalorder (!%p189_p3), %s737_s18, 255 }
   0xc   : > { %v840_v0 = vld [vmem:[%s1014_s1 + $0x38] sm:$0xff]   ;;  %v841_v1 = vld [vmem:[%s1014_s1 + $0x30] sm:$0xff]   ;;  %s1022_s18 = smov (!%p230_p4, %s737_s18), 255  ;;  %v842_v2 = vld [vmem:[%s1014_s1 + $0x28] sm:$0xff]  }
   0xd   : > { %768 = vmatprep.subr.bf16.mxu0 %v840_v0  ;;  %800 = vmatprep.subr.bf16.mxu1 %v840_v0  ;;  %s738_s23 = sshll.u32 %s1022_s18, 3  ;;  %v843_v3 = vld [vmem:[%s1014_s1 + $0x20] sm:$0xff]   ;;  %v844_v10 = vld [vmem:[%s1014_s1 + $0x18] sm:$0xff]   ;;  %v845_v11 = vld [vmem:[%s1014_s1 + $0x10] sm:$0xff]  }
   0xe   : > { %769 = vmatpush3.bf16.msra.mxu0 %v840_v0  ;;  %808 = vmatpush3.bf16.msra.mxu1 %v840_v0  ;;  %s927_s26 = scalar_lea.vmem %s1013_s0, %s738_s23  ;;  %v846_v12 = vld [vmem:[%s1014_s1 + $0x8] sm:$0xff]   ;;  %v847_v13 = vld [vmem:[%s1014_s1] sm:$0xff]   ;;  %s972_s17 = scalar_lea.vmem %s1016_s3, %s738_s23 }
   0xf   : > { %770 = vmatprep.subr.bf16.mxu0 %v841_v1  ;;  %801 = vmatprep.subr.bf16.mxu1 %v841_v1  ;;  %v280_v4 = vld [vmem:[%s927_s26] sm:$0xff]  ;;  %v281_v5 = vld [vmem:[%s927_s26 + $0x8] sm:$0xff]  ;;  %v282_v14 = vld [vmem:[%s927_s26 + $0x10] sm:$0xff] }
  0x10   : > { %v288_v6 = vld [vmem:[%s927_s26 + $0x40] sm:$0xff]  ;;  %v296_v7 = vpack.c.bf16 %v281_v5, %v280_v4  ;;  %v289_v8 = vld [vmem:[%s927_s26 + $0x48] sm:$0xff]  ;;  %v283_v15 = vld [vmem:[%s927_s26 + $0x18] sm:$0xff] }
  0x11   : > { %v300_v9 = vpack.c.bf16 %v289_v8, %v288_v6  ;;  %v290_v16 = vld [vmem:[%s927_s26 + $0x50] sm:$0xff]  ;;  %v291_v17 = vld [vmem:[%s927_s26 + $0x58] sm:$0xff]  ;;  %v284_v18 = vld [vmem:[%s927_s26 + $0x20] sm:$0xff]  ;;  %v297_v22 = vpack.c.bf16 %v283_v15, %v282_v14 }
  0x12   : > { %771 = vmatpush3.bf16.msra.mxu0 %v841_v1  ;;  %809 = vmatpush3.bf16.msra.mxu1 %v841_v1  ;;  %v285_v19 = vld [vmem:[%s927_s26 + $0x28] sm:$0xff]  ;;  %v292_v20 = vld [vmem:[%s927_s26 + $0x60] sm:$0xff]  ;;  %v301_v23 = vpack.c.bf16 %v291_v17, %v290_v16  ;;  %v286_v26 = vld [vmem:[%s927_s26 + $0x30] sm:$0xff] }
  0x13   : > { %772 = vmatprep.subr.bf16.mxu0 %v842_v2  ;;  %802 = vmatprep.subr.bf16.mxu1 %v842_v2  ;;  %v293_v21 = vld [vmem:[%s927_s26 + $0x68] sm:$0xff]  ;;  %v298_v24 = vpack.c.bf16 %v285_v19, %v284_v18  ;;  %v287_v27 = vld [vmem:[%s927_s26 + $0x38] sm:$0xff]  ;;  %v294_v28 = vld [vmem:[%s927_s26 + $0x70] sm:$0xff] }
  0x14   : > { %784 = vmatprep.mubr.bf16.mxu0 %v296_v7  ;;  %792 = vmatprep.mubr.bf16.mxu1 %v300_v9  ;;  %v302_v25 = vpack.c.bf16 %v293_v21, %v292_v20  ;;  %v295_v29 = vld [vmem:[%s927_s26 + $0x78] sm:$0xff]  ;;  %v299_v30 = vpack.c.bf16 %v287_v27, %v286_v26  ;;  %v963_v32 = vld [vmem:[%s1015_s2] ss:$0 sm:$0xff] }
  0x15   : > { %v303_v31 = vpack.c.bf16 %v295_v29, %v294_v28 }
  0x16   : > { %773 = vmatpush3.bf16.msra.mxu0 %v842_v2  ;;  %810 = vmatpush3.bf16.msra.mxu1 %v842_v2 }
  0x17   : > { %774 = vmatprep.subr.bf16.mxu0 %v843_v3  ;;  %803 = vmatprep.subr.bf16.mxu1 %v843_v3 }
  0x1a   : > { %775 = vmatpush3.bf16.msra.mxu0 %v843_v3  ;;  %811 = vmatpush3.bf16.msra.mxu1 %v843_v3 }
  0x1b   : > { %776 = vmatprep.subr.bf16.mxu0 %v844_v10  ;;  %804 = vmatprep.subr.bf16.mxu1 %v844_v10 }
  0x1e   : > { %777 = vmatpush3.bf16.msra.mxu0 %v844_v10  ;;  %812 = vmatpush3.bf16.msra.mxu1 %v844_v10 }
  0x1f   : > { %778 = vmatprep.subr.bf16.mxu0 %v845_v11  ;;  %805 = vmatprep.subr.bf16.mxu1 %v845_v11 }
  0x22   : > { %779 = vmatpush3.bf16.msra.mxu0 %v845_v11  ;;  %813 = vmatpush3.bf16.msra.mxu1 %v845_v11 }
  0x23   : > { %780 = vmatprep.subr.bf16.mxu0 %v846_v12  ;;  %806 = vmatprep.subr.bf16.mxu1 %v846_v12 }
  0x26   : > { %781 = vmatpush3.bf16.msra.mxu0 %v846_v12  ;;  %814 = vmatpush3.bf16.msra.mxu1 %v846_v12 }
  0x27   : > { %782 = vmatprep.subr.bf16.mxu0 %v847_v13  ;;  %807 = vmatprep.subr.bf16.mxu1 %v847_v13 }
  0x2a   : > { %783 = vmatpush3.bf16.msra.mxu0 %v847_v13  ;;  %815 = vmatpush3.bf16.msra.mxu1 %v847_v13 }
  0x2d   : > { %785 = vmatmul.mubr.bf16.vlgmr.msra.gmra.mxu0 %v297_v22  ;;  %793 = vmatmul.mubr.bf16.vlgmr.msra.gmra.mxu1 %v301_v23 }
  0x2e   : > { %788 = vmatprep.mubr.bf16.mxu0 %v298_v24  ;;  %796 = vmatprep.mubr.bf16.mxu1 %v302_v25 }
  0x35   : > { %789 = vmatmul.mubr.bf16.gmra.mxu0 %v299_v30  ;;  %797 = vmatmul.mubr.bf16.gmra.mxu1 %v303_v31 }
  0xed   : > { %v786_v33 = vpop.f32.mrf.mxu0  ;;  %v794_v34 = vpop.f32.mrf.mxu1 }
  0xee   : > { %v541_v35 = vadd.f32 %v786_v33, %v963_v32  ;;  %v549_v36 = vadd.f32 %v794_v34, %v963_v32 }
  0xef   : > { %v418_v37 = vpop.f32.mrf.mxu0  ;;  %v450_v38 = vpop.f32.mrf.mxu1 }
  0xf0   : > { %vm557_vm0 = vcmp.ge.f32.partialorder %v541_v35, 0.0  ;;  %v573_v39 = vmul.f32 0.01, %v541_v35  ;;  %vm565_vm1 = vcmp.ge.f32.partialorder %v549_v36, 0.0  ;;  %v581_v40 = vmul.f32 0.01, %v549_v36 }
  0xf1   : > { %v539_v41 = vadd.f32 %v963_v32, %v418_v37  ;;  %v547_v42 = vadd.f32 %v963_v32, %v450_v38  ;;  %v787_v43 = vpop.f32.mrf.mxu0  ;;  %v795_v44 = vpop.f32.mrf.mxu1 }
  0xf2   : > { %v589_v45 = vsel %vm557_vm0, %v541_v35, %v573_v39  ;;  %v597_v46 = vsel %vm565_vm1, %v549_v36, %v581_v40  ;;  %v542_v47 = vadd.f32 %v787_v43, %v963_v32  ;;  %v550_v48 = vadd.f32 %v795_v44, %v963_v32 }
  0xf3   : > { %605 = vst [vmem:[%s972_s17 + $0x10] sm:$0xff] %v589_v45  ;;  %613 = vst [vmem:[%s972_s17 + $0x50] sm:$0xff] %v597_v46  ;;  %vm555_vm2 = vcmp.ge.f32.partialorder %v539_v41, 0.0  ;;  %v571_v49 = vmul.f32 0.01, %v539_v41  ;;  %vm563_vm3 = vcmp.ge.f32.partialorder %v547_v42, 0.0  ;;  %v421_v51 = vpop.f32.mrf.mxu0  ;;  %v453_v52 = vpop.f32.mrf.mxu1 }
  0xf4   : > { %v579_v50 = vmul.f32 0.01, %v547_v42  ;;  %vm558_vm4 = vcmp.ge.f32.partialorder %v542_v47, 0.0  ;;  %v574_v53 = vmul.f32 0.01, %v542_v47  ;;  %vm566_vm5 = vcmp.ge.f32.partialorder %v550_v48, 0.0 }
  0xf5   : > { %v582_v54 = vmul.f32 0.01, %v550_v48  ;;  %v587_v55 = vsel %vm555_vm2, %v539_v41, %v571_v49  ;;  %v540_v57 = vadd.f32 %v963_v32, %v421_v51  ;;  %v548_v58 = vadd.f32 %v963_v32, %v453_v52  ;;  %v790_v59 = vpop.f32.mrf.mxu0  ;;  %v798_v60 = vpop.f32.mrf.mxu1 }
  0xf6   : > { %v595_v56 = vsel %vm563_vm3, %v547_v42, %v579_v50  ;;  %603 = vst [vmem:[%s972_s17] sm:$0xff] %v587_v55  ;;  %v590_v61 = vsel %vm558_vm4, %v542_v47, %v574_v53  ;;  %v545_v63 = vadd.f32 %v790_v59, %v963_v32  ;;  %v553_v0 = vadd.f32 %v798_v60, %v963_v32 }
  0xf7   : > { %611 = vst [vmem:[%s972_s17 + $0x40] sm:$0xff] %v595_v56  ;;  %v598_v62 = vsel %vm566_vm5, %v550_v48, %v582_v54  ;;  %606 = vst [vmem:[%s972_s17 + $0x18] sm:$0xff] %v590_v61  ;;  %vm556_vm6 = vcmp.ge.f32.partialorder %v540_v57, 0.0  ;;  %v572_v1 = vmul.f32 0.01, %v540_v57  ;;  %vm564_vm7 = vcmp.ge.f32.partialorder %v548_v58, 0.0  ;;  %v434_v3 = vpop.f32.mrf.mxu0  ;;  %v466_v4 = vpop.f32.mrf.mxu1 }
  0xf8   : > { %614 = vst [vmem:[%s972_s17 + $0x58] sm:$0xff] %v598_v62  ;;  %v580_v2 = vmul.f32 0.01, %v548_v58  ;;  %vm561_vm8 = vcmp.ge.f32.partialorder %v545_v63, 0.0  ;;  %v577_v5 = vmul.f32 0.01, %v545_v63  ;;  %v543_v9 = vadd.f32 %v963_v32, %v434_v3 }
  0xf9   : > { %vm569_vm9 = vcmp.ge.f32.partialorder %v553_v0, 0.0  ;;  %v585_v6 = vmul.f32 0.01, %v553_v0  ;;  %v588_v7 = vsel %vm556_vm6, %v540_v57, %v572_v1  ;;  %v551_v10 = vadd.f32 %v963_v32, %v466_v4  ;;  %v791_v11 = vpop.f32.mrf.mxu0  ;;  %v799_v12 = vpop.f32.mrf.mxu1 }
  0xfa   : > { %v596_v8 = vsel %vm564_vm7, %v548_v58, %v580_v2  ;;  %604 = vst [vmem:[%s972_s17 + $0x8] sm:$0xff] %v588_v7  ;;  %v593_v13 = vsel %vm561_vm8, %v545_v63, %v577_v5  ;;  %v546_v15 = vadd.f32 %v791_v11, %v963_v32  ;;  %v554_v16 = vadd.f32 %v799_v12, %v963_v32 }
  0xfb   : > { %612 = vst [vmem:[%s972_s17 + $0x48] sm:$0xff] %v596_v8  ;;  %v601_v14 = vsel %vm569_vm9, %v553_v0, %v585_v6  ;;  %609 = vst [vmem:[%s972_s17 + $0x30] sm:$0xff] %v593_v13  ;;  %vm559_vm10 = vcmp.ge.f32.partialorder %v543_v9, 0.0  ;;  %v575_v17 = vmul.f32 0.01, %v543_v9  ;;  %vm567_vm11 = vcmp.ge.f32.partialorder %v551_v10, 0.0  ;;  %v437_v19 = vpop.f32.mrf.mxu0  ;;  %v469_v20 = vpop.f32.mrf.mxu1 }
  0xfc   : > { %617 = vst [vmem:[%s972_s17 + $0x70] sm:$0xff] %v601_v14  ;;  %v583_v18 = vmul.f32 0.01, %v551_v10  ;;  %vm562_vm12 = vcmp.ge.f32.partialorder %v546_v15, 0.0  ;;  %v578_v21 = vmul.f32 0.01, %v546_v15  ;;  %v544_v25 = vadd.f32 %v963_v32, %v437_v19 }
  0xfd   : > { %vm570_vm13 = vcmp.ge.f32.partialorder %v554_v16, 0.0  ;;  %v586_v22 = vmul.f32 0.01, %v554_v16  ;;  %v591_v23 = vsel %vm559_vm10, %v543_v9, %v575_v17  ;;  %v552_v26 = vadd.f32 %v963_v32, %v469_v20 }
  0xfe   : > { %v599_v24 = vsel %vm567_vm11, %v551_v10, %v583_v18  ;;  %607 = vst [vmem:[%s972_s17 + $0x20] sm:$0xff] %v591_v23  ;;  %v594_v27 = vsel %vm562_vm12, %v546_v15, %v578_v21  ;;  %vm560_vm14 = vcmp.ge.f32.partialorder %v544_v25, 0.0  ;;  %v576_v29 = vmul.f32 0.01, %v544_v25 }
  0xff   : > { %615 = vst [vmem:[%s972_s17 + $0x60] sm:$0xff] %v599_v24  ;;  %v602_v28 = vsel %vm570_vm13, %v554_v16, %v586_v22  ;;  %610 = vst [vmem:[%s972_s17 + $0x38] sm:$0xff] %v594_v27  ;;  %vm568_vm15 = vcmp.ge.f32.partialorder %v552_v26, 0.0  ;;  %v584_v30 = vmul.f32 0.01, %v552_v26 }
 0x100   : > { %618 = vst [vmem:[%s972_s17 + $0x78] sm:$0xff] %v602_v28  ;;  %v592_v31 = vsel %vm560_vm14, %v544_v25, %v576_v29 }
 0x101   : > { %v600_v33 = vsel %vm568_vm15, %v552_v26, %v584_v30  ;;  %608 = vst [vmem:[%s972_s17 + $0x28] sm:$0xff] %v592_v31 }
 0x102   : > { %616 = vst [vmem:[%s972_s17 + $0x68] sm:$0xff] %v600_v33 }
 0x103 PF: > { %s13_s14 = sadd.s32 1, %s870_s14   ;;  %s1017_s12 = smov %s866_s13 }
 0x104   : > { %p10_p5 = scmp.ge.s32.totalorder %s13_s14, 18   ;;  %s1018_s13 = smov %s1020_s15 }
 0x106   :  { %12 = sbr.rel (!%p10_p5) target bundleno = 2 (0x2), region = 76 }

// kernel: discriminator_forward.7
= control target key start
LH: loop header
LB: loop body
LE: loop exit
PB: predicated region body
PF: predicated region fallthrough
CT: control target
= control target key end

     0   :  { %s1995_s12 = smov 0   ;;  %s1997_s13 = smov 0   ;;  %s2548_s0 = inlined_call_operand.vmem [shape: f32[512,896], index: 0, kind: input, shape index: {}]   ;;  %s2549_s1 = inlined_call_operand.vmem [shape: bf16[896,128], index: 1, kind: input, shape index: {}]   ;;  %s2550_s2 = inlined_call_operand.vmem [shape: f32[1,128], index: 2, kind: input, shape index: {}]   ;;  %s2551_s3 = inlined_call_operand.vmem [shape: f32[512,128], index: 3, kind: output, shape index: {}]  }
   0x1   :  { %s1999_s14 = smov 0  }
   0x2 LB: > { %s32_s15 = sadd.s32 1, %s1969_s13  ;;  %p1566_p0 = scmp.ge.s32.totalorder %s1973_s14, 1  ;;  %s1973_s14 = sphi %s1999_s14, %s13_s14   ;;  %s1969_s13 = sphi %s1997_s13, %s2577_s13   ;;  %s1965_s12 = sphi %s1995_s12, %s2576_s12  }
   0x3   : > { %p34_p1 = scmp.ge.s32.totalorder %s32_s15, 4  ;;  %p191_p2 = scmp.lt.s32.totalorder %s1973_s14, 5 }
   0x5   : > { %s2579_s15 = smov (%p34_p1, %s32_s15), 0  ;;  %p192_p3 = pnand %p1566_p0, %p191_p2 }
   0x7   : > { %195 = sbr.rel (%p192_p3) target bundleno = 377 (0x179), region = 32 }
   0xc   : > { %v1895_v0 = vld [vmem:[%s2549_s1 + $0x78] sm:$0xff]   ;;  %v1899_v4 = vld [vmem:[%s2549_s1 + $0x70] sm:$0xff]   ;;  %v1903_v8 = vld [vmem:[%s2549_s1 + $0x68] sm:$0xff]   ;;  %s1567_s23 = sshll.u32 %s1965_s12, 4 }
   0xd   : > { %v1896_v1 = vld [vmem:[%s2549_s1 + $0xf8] sm:$0xff]   ;;  %1630 = vmatprep.subr.bf16.mxu0 %v1895_v0  ;;  %v1900_v5 = vld [vmem:[%s2549_s1 + $0xf0] sm:$0xff]   ;;  %v1904_v9 = vld [vmem:[%s2549_s1 + $0xe8] sm:$0xff]   ;;  %p236_p4 = scmp.lt.s32.totalorder %s1567_s23, 63 }
   0xe   : > { %v1897_v2 = vld [vmem:[%s2549_s1 + $0x38] sm:$0xff]   ;;  %1694 = vmatprep.subr.bf16.mxu1 %v1896_v1  ;;  %v1901_v6 = vld [vmem:[%s2549_s1 + $0x30] sm:$0xff]   ;;  %v1905_v10 = vld [vmem:[%s2549_s1 + $0x28] sm:$0xff]  }
   0xf   : > { %v1898_v3 = vld [vmem:[%s2549_s1 + $0xb8] sm:$0xff]   ;;  %1631 = vmatpush3.bf16.msra.mxu0 %v1897_v2  ;;  %v1902_v7 = vld [vmem:[%s2549_s1 + $0xb0] sm:$0xff]   ;;  %v1906_v11 = vld [vmem:[%s2549_s1 + $0xa8] sm:$0xff]   ;;  %s2581_s23 = smov (!%p236_p4, %s1567_s23), 63 }
  0x10   : > { %1695 = vmatpush3.bf16.msra.mxu1 %v1898_v3  ;;  %1632 = vmatprep.subr.bf16.mxu0 %v1899_v4  ;;  %v1907_v12 = vld [vmem:[%s2549_s1 + $0x60] sm:$0xff]   ;;  %v1911_v16 = vld [vmem:[%s2549_s1 + $0x58] sm:$0xff]   ;;  %v1915_v20 = vld [vmem:[%s2549_s1 + $0x50] sm:$0xff]   ;;  %s1870_s22 = smul.u32 56, %s2581_s23  ;;  %s1570_s20 = sshll.u32 %s2581_s23, 3 }
  0x11   : > { %1696 = vmatprep.subr.bf16.mxu1 %v1900_v5  ;;  %v1908_v13 = vld [vmem:[%s2549_s1 + $0xe0] sm:$0xff]   ;;  %v1912_v17 = vld [vmem:[%s2549_s1 + $0xd8] sm:$0xff]   ;;  %v1916_v21 = vld [vmem:[%s2549_s1 + $0xd0] sm:$0xff]   ;;  %s2452_s24 = scalar_lea.vmem %s2551_s3, %s1570_s20 }
  0x12   : > { %v1909_v14 = vld [vmem:[%s2549_s1 + $0x20] sm:$0xff]   ;;  %v1913_v18 = vld [vmem:[%s2549_s1 + $0x18] sm:$0xff]   ;;  %v1917_v22 = vld [vmem:[%s2549_s1 + $0x10] sm:$0xff]   ;;  %s2112_s6 = scalar_lea.vmem %s2548_s0, %s1870_s22 }
  0x13   : > { %1633 = vmatpush3.bf16.msra.mxu0 %v1901_v6  ;;  %v1910_v15 = vld [vmem:[%s2549_s1 + $0xa0] sm:$0xff]   ;;  %v1914_v19 = vld [vmem:[%s2549_s1 + $0x98] sm:$0xff]   ;;  %v1918_v23 = vld [vmem:[%s2549_s1 + $0x90] sm:$0xff]  }
  0x14   : > { %1697 = vmatpush3.bf16.msra.mxu1 %v1902_v7  ;;  %1634 = vmatprep.subr.bf16.mxu0 %v1903_v8  ;;  %v1919_v24 = vld [vmem:[%s2549_s1 + $0x48] sm:$0xff]   ;;  %v1923_v28 = vld [vmem:[%s2549_s1 + $0x40] sm:$0xff]   ;;  %v291_v34 = vld [vmem:[%s2112_s6 + $0x18] sm:$0xff] }
  0x15   : > { %1698 = vmatprep.subr.bf16.mxu1 %v1904_v9  ;;  %v1920_v25 = vld [vmem:[%s2549_s1 + $0xc8] sm:$0xff]   ;;  %v1924_v29 = vld [vmem:[%s2549_s1 + $0xc0] sm:$0xff]   ;;  %v298_v36 = vld [vmem:[%s2112_s6 + $0x50] sm:$0xff] }
  0x16   : > { %v1921_v26 = vld [vmem:[%s2549_s1 + $0x8] sm:$0xff]   ;;  %v1925_v30 = vld [vmem:[%s2549_s1] sm:$0xff]   ;;  %v295_v38 = vld [vmem:[%s2112_s6 + $0x38] sm:$0xff]  ;;  %v403_v39 = vpack.c.bf16 %v298_v36, %v291_v34 }
  0x17   : > { %1635 = vmatpush3.bf16.msra.mxu0 %v1905_v10  ;;  %v1922_v27 = vld [vmem:[%s2549_s1 + $0x88] sm:$0xff]   ;;  %v1926_v31 = vld [vmem:[%s2549_s1 + $0x80] sm:$0xff]   ;;  %v290_v41 = vld [vmem:[%s2112_s6 + $0x10] sm:$0xff] }
  0x18   : > { %1699 = vmatpush3.bf16.msra.mxu1 %v1906_v11  ;;  %1636 = vmatprep.subr.bf16.mxu0 %v1907_v12  ;;  %v289_v32 = vld [vmem:[%s2112_s6 + $0x8] sm:$0xff]  ;;  %v296_v33 = vld [vmem:[%s2112_s6 + $0x40] sm:$0xff]  ;;  %v1927_v44 = vld [vmem:[%s2549_s1 + $0x178] sm:$0xff]  }
  0x19   : > { %1700 = vmatprep.subr.bf16.mxu1 %v1908_v13  ;;  %v401_v35 = vpack.c.bf16 %v296_v33, %v289_v32  ;;  %v288_v37 = vld [vmem:[%s2112_s6] sm:$0xff]  ;;  %v297_v42 = vld [vmem:[%s2112_s6 + $0x48] sm:$0xff]  ;;  %1049 = vmatprep.mubr.bf16.mxu1 %v403_v39  ;;  %v1928_v45 = vld [vmem:[%s2549_s1 + $0x138] sm:$0xff]  }
  0x1a   : > { %v400_v40 = vpack.c.bf16 %v295_v38, %v288_v37  ;;  %v402_v43 = vpack.c.bf16 %v297_v42, %v290_v41  ;;  %v303_v46 = vld [vmem:[%s2112_s6 + $0x78] sm:$0xff]  ;;  %v310_v47 = vld [vmem:[%s2112_s6 + $0xb0] sm:$0xff]  ;;  %v305_v48 = vld [vmem:[%s2112_s6 + $0x88] sm:$0xff] }
  0x1b   : > { %1637 = vmatpush3.bf16.msra.mxu0 %v1909_v14  ;;  %952 = vmatprep.mubr.bf16.mxu0 %v401_v35  ;;  %v312_v49 = vld [vmem:[%s2112_s6 + $0xc0] sm:$0xff]  ;;  %v408_v50 = vpack.c.bf16 %v310_v47, %v303_v46  ;;  %v302_v52 = vld [vmem:[%s2112_s6 + $0x70] sm:$0xff]  ;;  %v309_v53 = vld [vmem:[%s2112_s6 + $0xa8] sm:$0xff] }
  0x1c   : > { %1701 = vmatpush3.bf16.msra.mxu1 %v1910_v15  ;;  %1638 = vmatprep.subr.bf16.mxu0 %v1911_v16  ;;  %v410_v51 = vpack.c.bf16 %v312_v49, %v305_v48  ;;  %v304_v54 = vld [vmem:[%s2112_s6 + $0x80] sm:$0xff]  ;;  %v311_v55 = vld [vmem:[%s2112_s6 + $0xb8] sm:$0xff]  ;;  %v407_v56 = vpack.c.bf16 %v309_v53, %v302_v52  ;;  %v1929_v57 = vld [vmem:[%s2549_s1 + $0x170] sm:$0xff]  }
  0x1d   : > { %1702 = vmatprep.subr.bf16.mxu1 %v1912_v17  ;;  %v409_v58 = vpack.c.bf16 %v311_v55, %v304_v54  ;;  %v1930_v59 = vld [vmem:[%s2549_s1 + $0x130] sm:$0xff]   ;;  %v317_v60 = vld [vmem:[%s2112_s6 + $0xe8] sm:$0xff]  ;;  %v324_v61 = vld [vmem:[%s2112_s6 + $0x120] sm:$0xff] }
  0x1e   : > { %v415_v62 = vpack.c.bf16 %v324_v61, %v317_v60  ;;  %v319_v63 = vld [vmem:[%s2112_s6 + $0xf8] sm:$0xff]  ;;  %v326_v0 = vld [vmem:[%s2112_s6 + $0x130] sm:$0xff]  ;;  %v316_v2 = vld [vmem:[%s2112_s6 + $0xe0] sm:$0xff] }
  0x1f   : > { %1639 = vmatpush3.bf16.msra.mxu0 %v1913_v18  ;;  %v417_v1 = vpack.c.bf16 %v326_v0, %v319_v63  ;;  %v323_v3 = vld [vmem:[%s2112_s6 + $0x118] sm:$0xff]  ;;  %v318_v4 = vld [vmem:[%s2112_s6 + $0xf0] sm:$0xff]  ;;  %v1931_v5 = vld [vmem:[%s2549_s1 + $0x168] sm:$0xff]  }
  0x20   : > { %1703 = vmatpush3.bf16.msra.mxu1 %v1914_v19  ;;  %1640 = vmatprep.subr.bf16.mxu0 %v1915_v20  ;;  %v1932_v6 = vld [vmem:[%s2549_s1 + $0x128] sm:$0xff]   ;;  %v331_v8 = vld [vmem:[%s2112_s6 + $0x158] sm:$0xff]  ;;  %v338_v9 = vld [vmem:[%s2112_s6 + $0x190] sm:$0xff]  ;;  %v414_v12 = vpack.c.bf16 %v323_v3, %v316_v2 }
  0x21   : > { %1704 = vmatprep.subr.bf16.mxu1 %v1916_v21  ;;  %v325_v7 = vld [vmem:[%s2112_s6 + $0x128] sm:$0xff]  ;;  %v340_v11 = vld [vmem:[%s2112_s6 + $0x1a0] sm:$0xff]  ;;  %v422_v14 = vpack.c.bf16 %v338_v9, %v331_v8  ;;  %v330_v18 = vld [vmem:[%s2112_s6 + $0x150] sm:$0xff] }
  0x22   : > { %v333_v10 = vld [vmem:[%s2112_s6 + $0x168] sm:$0xff]  ;;  %v416_v13 = vpack.c.bf16 %v325_v7, %v318_v4  ;;  %v1933_v15 = vld [vmem:[%s2549_s1 + $0x160] sm:$0xff]   ;;  %v339_v21 = vld [vmem:[%s2112_s6 + $0x198] sm:$0xff] }
  0x23   : > { %1641 = vmatpush3.bf16.msra.mxu0 %v1917_v22  ;;  %v424_v16 = vpack.c.bf16 %v340_v11, %v333_v10  ;;  %v1934_v17 = vld [vmem:[%s2549_s1 + $0x120] sm:$0xff]   ;;  %v337_v19 = vld [vmem:[%s2112_s6 + $0x188] sm:$0xff]  ;;  %v351_v34 = vld [vmem:[%s2112_s6 + $0x1f8] sm:$0xff] }
  0x24   : > { %1705 = vmatpush3.bf16.msra.mxu1 %v1918_v23  ;;  %1642 = vmatprep.subr.bf16.mxu0 %v1919_v24  ;;  %v332_v20 = vld [vmem:[%s2112_s6 + $0x160] sm:$0xff]  ;;  %v345_v22 = vld [vmem:[%s2112_s6 + $0x1c8] sm:$0xff]  ;;  %v347_v24 = vld [vmem:[%s2112_s6 + $0x1d8] sm:$0xff] }
  0x25   : > { %1706 = vmatprep.subr.bf16.mxu1 %v1920_v25  ;;  %v352_v23 = vld [vmem:[%s2112_s6 + $0x200] sm:$0xff]  ;;  %v354_v25 = vld [vmem:[%s2112_s6 + $0x210] sm:$0xff]  ;;  %v353_v37 = vld [vmem:[%s2112_s6 + $0x208] sm:$0xff] }
  0x26   : > { %v431_v32 = vpack.c.bf16 %v354_v25, %v347_v24  ;;  %v344_v33 = vld [vmem:[%s2112_s6 + $0x1c0] sm:$0xff]  ;;  %v1938_v35 = vld [vmem:[%s2549_s1 + $0x150] sm:$0xff]   ;;  %v359_v38 = vld [vmem:[%s2112_s6 + $0x238] sm:$0xff] }
  0x27   : > { %1643 = vmatpush3.bf16.msra.mxu0 %v1921_v26  ;;  %v1935_v26 = vld [vmem:[%s2549_s1 + $0x158] sm:$0xff]   ;;  %v346_v36 = vld [vmem:[%s2112_s6 + $0x1d0] sm:$0xff]  ;;  %v1941_v42 = vld [vmem:[%s2549_s1 + $0x1a8] sm:$0xff]  }
  0x28   : > { %1707 = vmatpush3.bf16.msra.mxu1 %v1922_v27  ;;  %1644 = vmatprep.subr.bf16.mxu0 %v1923_v28  ;;  %v1936_v27 = vld [vmem:[%s2549_s1 + $0x118] sm:$0xff]   ;;  %v421_v28 = vpack.c.bf16 %v337_v19, %v330_v18  ;;  %v366_v39 = vld [vmem:[%s2112_s6 + $0x270] sm:$0xff]  ;;  %v430_v46 = vpack.c.bf16 %v353_v37, %v346_v36  ;;  %v1942_v49 = vld [vmem:[%s2549_s1 + $0x148] sm:$0xff]  }
  0x29   : > { %1708 = vmatprep.subr.bf16.mxu1 %v1924_v29  ;;  %v1937_v29 = vld [vmem:[%s2549_s1 + $0x1b8] sm:$0xff]   ;;  %v1940_v41 = vld [vmem:[%s2549_s1 + $0x110] sm:$0xff]   ;;  %v436_v47 = vpack.c.bf16 %v366_v39, %v359_v38  ;;  %v1943_v52 = vld [vmem:[%s2549_s1 + $0x1a0] sm:$0xff]  }
  0x2a   : > { %v1944_v53 = vld [vmem:[%s2549_s1 + $0x108] sm:$0xff]   ;;  %v360_v54 = vld [vmem:[%s2112_s6 + $0x240] sm:$0xff]  ;;  %v1945_v55 = vld [vmem:[%s2549_s1 + $0x198] sm:$0xff]  }
  0x2b   : > { %1645 = vmatpush3.bf16.msra.mxu0 %v1925_v30  ;;  %v423_v30 = vpack.c.bf16 %v339_v21, %v332_v20  ;;  %v382_v60 = vld [vmem:[%s2112_s6 + $0x2f0] sm:$0xff]  ;;  %v1946_v0 = vld [vmem:[%s2549_s1 + $0x140] sm:$0xff]   ;;  %v381_v7 = vld [vmem:[%s2112_s6 + $0x2e8] sm:$0xff] }
  0x2c   : > { %1709 = vmatpush3.bf16.msra.mxu1 %v1926_v31  ;;  %1758 = vmatprep.subr.bf16.mxu0 %v1927_v44  ;;  %v429_v31 = vpack.c.bf16 %v352_v23, %v345_v22  ;;  %v368_v44 = vld [vmem:[%s2112_s6 + $0x280] sm:$0xff]  ;;  %v1947_v2 = vld [vmem:[%s2549_s1 + $0x190] sm:$0xff]   ;;  %v1949_v8 = vld [vmem:[%s2549_s1 + $0x188] sm:$0xff]  }
  0x2d   : > { %1838 = vmatprep.subr.bf16.mxu1 %v1937_v29  ;;  %v1948_v3 = vld [vmem:[%s2549_s1 + $0x100] sm:$0xff]   ;;  %v387_v9 = vld [vmem:[%s2112_s6 + $0x318] sm:$0xff]  ;;  %v394_v10 = vld [vmem:[%s2112_s6 + $0x350] sm:$0xff] }
  0x2e   : > { %953 = vmatmul.mubr.bf16.vlgmr.msra.gmra.mxu0 %v400_v40  ;;  %v1939_v40 = vld [vmem:[%s2549_s1 + $0x1b0] sm:$0xff]   ;;  %v372_v4 = vld [vmem:[%s2112_s6 + $0x2a0] sm:$0xff]  ;;  %v389_v11 = vld [vmem:[%s2112_s6 + $0x328] sm:$0xff] }
  0x2f   : > { %1050 = vmatmul.mubr.bf16.vlgmr.msra.gmra.mxu1 %v402_v43  ;;  %1759 = vmatpush3.bf16.msra.mxu0 %v1928_v45  ;;  %v361_v43 = vld [vmem:[%s2112_s6 + $0x248] sm:$0xff]  ;;  %v428_v45 = vpack.c.bf16 %v351_v34, %v344_v33  ;;  %v386_v18 = vld [vmem:[%s2112_s6 + $0x310] sm:$0xff]  ;;  %v388_v20 = vld [vmem:[%s2112_s6 + $0x320] sm:$0xff] }
  0x30   : > { %960 = vmatprep.mubr.bf16.mxu0 %v408_v50  ;;  %1057 = vmatprep.mubr.bf16.mxu1 %v410_v51  ;;  %v438_v48 = vpack.c.bf16 %v368_v44, %v361_v43  ;;  %v358_v50 = vld [vmem:[%s2112_s6 + $0x230] sm:$0xff]  ;;  %v365_v51 = vld [vmem:[%s2112_s6 + $0x268] sm:$0xff]  ;;  %v395_v21 = vld [vmem:[%s2112_s6 + $0x358] sm:$0xff] }
  0x31   : > { %1760 = vmatprep.subr.bf16.mxu0 %v1929_v57  ;;  %1839 = vmatpush3.bf16.msra.mxu1 %v1937_v29  ;;  %v373_v57 = vld [vmem:[%s2112_s6 + $0x2a8] sm:$0xff]  ;;  %v435_v61 = vpack.c.bf16 %v365_v51, %v358_v50  ;;  %v300_v23 = vld [vmem:[%s2112_s6 + $0x60] sm:$0xff]  ;;  %v294_v24 = vld [vmem:[%s2112_s6 + $0x30] sm:$0xff] }
  0x32   : > { %1840 = vmatprep.subr.bf16.mxu1 %v1939_v40  ;;  %v393_v19 = vld [vmem:[%s2112_s6 + $0x348] sm:$0xff]  ;;  %v315_v33 = vld [vmem:[%s2112_s6 + $0xd8] sm:$0xff]  ;;  %v322_v36 = vld [vmem:[%s2112_s6 + $0x110] sm:$0xff] }
  0x33   : > { %1761 = vmatpush3.bf16.msra.mxu0 %v1930_v59  ;;  %v375_v59 = vld [vmem:[%s2112_s6 + $0x2b8] sm:$0xff]  ;;  %v293_v22 = vld [vmem:[%s2112_s6 + $0x28] sm:$0xff] }
  0x34   : > { %1762 = vmatprep.subr.bf16.mxu0 %v1931_v5  ;;  %v379_v5 = vld [vmem:[%s2112_s6 + $0x2d8] sm:$0xff]  ;;  %v301_v25 = vld [vmem:[%s2112_s6 + $0x68] sm:$0xff] }
  0x35   : > { %1841 = vmatpush3.bf16.msra.mxu1 %v1939_v40  ;;  %v406_v29 = vpack.c.bf16 %v301_v25, %v294_v24  ;;  %v307_v34 = vld [vmem:[%s2112_s6 + $0x98] sm:$0xff]  ;;  %v329_v37 = vld [vmem:[%s2112_s6 + $0x148] sm:$0xff] }
  0x36   : > { %961 = vmatmul.mubr.bf16.gmra.mxu0 %v407_v56  ;;  %1842 = vmatprep.subr.bf16.mxu1 %v1941_v42  ;;  %v367_v56 = vld [vmem:[%s2112_s6 + $0x278] sm:$0xff]  ;;  %v313_v43 = vld [vmem:[%s2112_s6 + $0xc8] sm:$0xff] }
  0x37   : > { %1058 = vmatmul.mubr.bf16.gmra.mxu1 %v409_v58  ;;  %968 = vmatprep.mubr.bf16.mxu0 %v415_v62  ;;  %v380_v58 = vld [vmem:[%s2112_s6 + $0x2e0] sm:$0xff]  ;;  %v437_v62 = vpack.c.bf16 %v367_v56, %v360_v54  ;;  %v321_v44 = vld [vmem:[%s2112_s6 + $0x108] sm:$0xff]  ;;  %v335_v56 = vld [vmem:[%s2112_s6 + $0x178] sm:$0xff] }
  0x38   : > { %1065 = vmatprep.mubr.bf16.mxu1 %v417_v1  ;;  %1763 = vmatpush3.bf16.msra.mxu0 %v1932_v6  ;;  %v443_v63 = vpack.c.bf16 %v380_v58, %v373_v57  ;;  %v445_v1 = vpack.c.bf16 %v382_v60, %v375_v59  ;;  %v374_v6 = vld [vmem:[%s2112_s6 + $0x2b0] sm:$0xff]  ;;  %v320_v54 = vld [vmem:[%s2112_s6 + $0x100] sm:$0xff]  ;;  %v371_v59 = vld [vmem:[%s2112_s6 + $0x298] sm:$0xff] }
  0x39   : > { %1764 = vmatprep.subr.bf16.mxu0 %v1933_v15  ;;  %1843 = vmatpush3.bf16.msra.mxu1 %v1941_v42  ;;  %v450_v15 = vpack.c.bf16 %v394_v10, %v387_v9  ;;  %v306_v42 = vld [vmem:[%s2112_s6 + $0x90] sm:$0xff]  ;;  %v364_v58 = vld [vmem:[%s2112_s6 + $0x260] sm:$0xff]  ;;  %v383_v24 = vld [vmem:[%s2112_s6 + $0x2f8] sm:$0xff] }
  0x3a   : > { %1844 = vmatprep.subr.bf16.mxu1 %v1943_v52  ;;  %v411_v50 = vpack.c.bf16 %v313_v43, %v306_v42  ;;  %v342_v57 = vld [vmem:[%s2112_s6 + $0x1b0] sm:$0xff]  ;;  %v391_v25 = vld [vmem:[%s2112_s6 + $0x338] sm:$0xff] }
  0x3b   : > { %v378_v60 = vld [vmem:[%s2112_s6 + $0x2d0] sm:$0xff] }
  0x3c   : > { %1765 = vmatpush3.bf16.msra.mxu0 %v1934_v17  ;;  %v1950_v17 = vld [vmem:[%s2549_s1 + $0x180] sm:$0xff]  }
  0x3d   : > { %1766 = vmatprep.subr.bf16.mxu0 %v1935_v26  ;;  %1845 = vmatpush3.bf16.msra.mxu1 %v1943_v52  ;;  %v449_v26 = vpack.c.bf16 %v393_v19, %v386_v18  ;;  %v369_v18 = vld [vmem:[%s2112_s6 + $0x288] sm:$0xff] }
  0x3e   : > { %969 = vmatmul.mubr.bf16.gmra.mxu0 %v414_v12  ;;  %1846 = vmatprep.subr.bf16.mxu1 %v1945_v55  ;;  %v396_v12 = vld [vmem:[%s2112_s6 + $0x360] sm:$0xff]  ;;  %v377_v19 = vld [vmem:[%s2112_s6 + $0x2c8] sm:$0xff] }
  0x3f   : > { %1066 = vmatmul.mubr.bf16.gmra.mxu1 %v416_v13  ;;  %976 = vmatprep.mubr.bf16.mxu0 %v422_v14  ;;  %v442_v13 = vpack.c.bf16 %v379_v5, %v372_v4  ;;  %v444_v14 = vpack.c.bf16 %v381_v7, %v374_v6  ;;  %v349_v4 = vld [vmem:[%s2112_s6 + $0x1e8] sm:$0xff]  ;;  %v356_v5 = vld [vmem:[%s2112_s6 + $0x220] sm:$0xff]  ;;  %v399_v7 = vld [vmem:[%s2112_s6 + $0x378] sm:$0xff] }
  0x40   : > { %1073 = vmatprep.mubr.bf16.mxu1 %v424_v16  ;;  %1767 = vmatpush3.bf16.msra.mxu0 %v1936_v27  ;;  %v452_v16 = vpack.c.bf16 %v396_v12, %v389_v11  ;;  %v451_v27 = vpack.c.bf16 %v395_v21, %v388_v20  ;;  %v392_v6 = vld [vmem:[%s2112_s6 + $0x340] sm:$0xff]  ;;  %v433_v9 = vpack.c.bf16 %v356_v5, %v349_v4  ;;  %v355_v12 = vld [vmem:[%s2112_s6 + $0x218] sm:$0xff] }
  0x41   : > { %1768 = vmatprep.subr.bf16.mxu0 %v1938_v35  ;;  %1847 = vmatpush3.bf16.msra.mxu1 %v1945_v55  ;;  %v314_v35 = vld [vmem:[%s2112_s6 + $0xd0] sm:$0xff]  ;;  %v327_v55 = vld [vmem:[%s2112_s6 + $0x138] sm:$0xff]  ;;  %v455_v10 = vpack.c.bf16 %v399_v7, %v392_v6  ;;  %v348_v11 = vld [vmem:[%s2112_s6 + $0x1e0] sm:$0xff] }
  0x42   : > { %1848 = vmatprep.subr.bf16.mxu1 %v1947_v2  ;;  %v412_v40 = vpack.c.bf16 %v314_v35, %v307_v34  ;;  %v384_v20 = vld [vmem:[%s2112_s6 + $0x300] sm:$0xff] }
  0x44   : > { %1769 = vmatpush3.bf16.msra.mxu0 %v1940_v41  ;;  %v420_v41 = vpack.c.bf16 %v329_v37, %v322_v36 }
  0x45   : > { %1770 = vmatprep.subr.bf16.mxu0 %v1942_v49  ;;  %1849 = vmatpush3.bf16.msra.mxu1 %v1947_v2  ;;  %v357_v49 = vld [vmem:[%s2112_s6 + $0x228] sm:$0xff]  ;;  %v334_v2 = vld [vmem:[%s2112_s6 + $0x170] sm:$0xff] }
  0x46   : > { %977 = vmatmul.mubr.bf16.gmra.mxu0 %v421_v28  ;;  %1850 = vmatprep.subr.bf16.mxu1 %v1949_v8  ;;  %v405_v28 = vpack.c.bf16 %v300_v23, %v293_v22  ;;  %v447_v22 = vpack.c.bf16 %v384_v20, %v377_v19  ;;  %v376_v23 = vld [vmem:[%s2112_s6 + $0x2c0] sm:$0xff] }
  0x47   : > { %1074 = vmatmul.mubr.bf16.gmra.mxu1 %v423_v30  ;;  %984 = vmatprep.mubr.bf16.mxu0 %v429_v31  ;;  %v292_v30 = vld [vmem:[%s2112_s6 + $0x20] sm:$0xff]  ;;  %v299_v31 = vld [vmem:[%s2112_s6 + $0x58] sm:$0xff] }
  0x48   : > { %1081 = vmatprep.mubr.bf16.mxu1 %v431_v32  ;;  %1771 = vmatpush3.bf16.msra.mxu0 %v1944_v53  ;;  %v308_v32 = vld [vmem:[%s2112_s6 + $0xa0] sm:$0xff]  ;;  %v404_v38 = vpack.c.bf16 %v299_v31, %v292_v30  ;;  %v397_v30 = vld [vmem:[%s2112_s6 + $0x368] sm:$0xff] }
  0x49   : > { %1772 = vmatprep.subr.bf16.mxu0 %v1946_v0  ;;  %1851 = vmatpush3.bf16.msra.mxu1 %v1949_v8  ;;  %v413_v39 = vpack.c.bf16 %v315_v33, %v308_v32  ;;  %v441_v0 = vpack.c.bf16 %v371_v59, %v364_v58 }
  0x4a   : > { %1852 = vmatprep.subr.bf16.mxu1 %v1950_v17 }
  0x4c   : > { %1773 = vmatpush3.bf16.msra.mxu0 %v1948_v3  ;;  %v341_v3 = vld [vmem:[%s2112_s6 + $0x1a8] sm:$0xff] }
  0x4d   : > { %1853 = vmatpush3.bf16.msra.mxu1 %v1950_v17  ;;  %v425_v8 = vpack.c.bf16 %v341_v3, %v334_v2  ;;  %v362_v17 = vld [vmem:[%s2112_s6 + $0x250] sm:$0xff] }
  0x4e   : > { %985 = vmatmul.mubr.bf16.gmra.mxu0 %v428_v45  ;;  %v328_v45 = vld [vmem:[%s2112_s6 + $0x140] sm:$0xff]  ;;  %v439_v21 = vpack.c.bf16 %v369_v18, %v362_v17 }
  0x4f   : > { %1082 = vmatmul.mubr.bf16.gmra.mxu1 %v430_v46  ;;  %992 = vmatprep.mubr.bf16.mxu0 %v436_v47  ;;  %v336_v46 = vld [vmem:[%s2112_s6 + $0x180] sm:$0xff]  ;;  %v343_v47 = vld [vmem:[%s2112_s6 + $0x1b8] sm:$0xff]  ;;  %v419_v51 = vpack.c.bf16 %v328_v45, %v321_v44 }
  0x50   : > { %1089 = vmatprep.mubr.bf16.mxu1 %v438_v48  ;;  %v350_v48 = vld [vmem:[%s2112_s6 + $0x1f0] sm:$0xff]  ;;  %v427_v52 = vpack.c.bf16 %v343_v47, %v336_v46 }
  0x51   : > { %v434_v53 = vpack.c.bf16 %v357_v49, %v350_v48 }
  0x56   : > { %993 = vmatmul.mubr.bf16.gmra.mxu0 %v435_v61  ;;  %v385_v61 = vld [vmem:[%s2112_s6 + $0x308] sm:$0xff] }
  0x57   : > { %1090 = vmatmul.mubr.bf16.gmra.mxu1 %v437_v62  ;;  %1000 = vmatprep.mubr.bf16.mxu0 %v443_v63  ;;  %v418_v62 = vpack.c.bf16 %v327_v55, %v320_v54  ;;  %v426_v63 = vpack.c.bf16 %v342_v57, %v335_v56 }
  0x58   : > { %1097 = vmatprep.mubr.bf16.mxu1 %v445_v1  ;;  %v448_v1 = vpack.c.bf16 %v385_v61, %v378_v60 }
  0x5e   : > { %1001 = vmatmul.mubr.bf16.gmra.mxu0 %v442_v13  ;;  %v363_v13 = vld [vmem:[%s2112_s6 + $0x258] sm:$0xff] }
  0x5f   : > { %1098 = vmatmul.mubr.bf16.gmra.mxu1 %v444_v14  ;;  %1008 = vmatprep.mubr.bf16.mxu0 %v450_v15  ;;  %v370_v14 = vld [vmem:[%s2112_s6 + $0x290] sm:$0xff]  ;;  %v432_v15 = vpack.c.bf16 %v355_v12, %v348_v11 }
  0x60   : > { %1105 = vmatprep.mubr.bf16.mxu1 %v452_v16  ;;  %v440_v16 = vpack.c.bf16 %v370_v14, %v363_v13 }
  0x66   : > { %1009 = vmatmul.mubr.bf16.gmra.mxu0 %v449_v26  ;;  %v398_v26 = vld [vmem:[%s2112_s6 + $0x370] sm:$0xff] }
  0x67   : > { %1106 = vmatmul.mubr.bf16.gmra.mxu1 %v451_v27  ;;  %1146 = vmatprep.mubr.bf16.mxu0 %v405_v28  ;;  %v446_v27 = vpack.c.bf16 %v383_v24, %v376_v23  ;;  %v454_v28 = vpack.c.bf16 %v398_v26, %v391_v25 }
  0x68   : > { %1854 = vmatprep.mubr.bf16.mxu1 %v406_v29  ;;  %v390_v29 = vld [vmem:[%s2112_s6 + $0x330] sm:$0xff] }
  0x69   : > { %v453_v31 = vpack.c.bf16 %v397_v30, %v390_v29 }
  0x6e   : > { %1147 = vmatmul.mubr.bf16.vlgmr.msra.gmra.mxu0 %v404_v38 }
  0x6f   : > { %1855 = vmatmul.mubr.bf16.vlgmr.msra.gmra.mxu1 %v413_v39  ;;  %1154 = vmatprep.mubr.bf16.mxu0 %v412_v40 }
  0x70   : > { %1858 = vmatprep.mubr.bf16.mxu1 %v420_v41 }
  0x76   : > { %1155 = vmatmul.mubr.bf16.gmra.mxu0 %v411_v50 }
  0x77   : > { %1162 = vmatprep.mubr.bf16.mxu0 %v419_v51  ;;  %1859 = vmatmul.mubr.bf16.gmra.mxu1 %v427_v52 }
  0x78   : > { %1862 = vmatprep.mubr.bf16.mxu1 %v434_v53 }
  0x7e   : > { %1163 = vmatmul.mubr.bf16.gmra.mxu0 %v418_v62 }
  0x7f   : > { %1170 = vmatprep.mubr.bf16.mxu0 %v426_v63  ;;  %1863 = vmatmul.mubr.bf16.gmra.mxu1 %v441_v0 }
  0x80   : > { %1866 = vmatprep.mubr.bf16.mxu1 %v448_v1 }
  0x86   : > { %1171 = vmatmul.mubr.bf16.gmra.mxu0 %v425_v8 }
  0x87   : > { %1178 = vmatprep.mubr.bf16.mxu0 %v433_v9  ;;  %1867 = vmatmul.mubr.bf16.gmra.mxu1 %v455_v10 }
  0x8e   : > { %1179 = vmatmul.mubr.bf16.gmra.mxu0 %v432_v15 }
  0x8f   : > { %1186 = vmatprep.mubr.bf16.mxu0 %v440_v16 }
  0x96   : > { %1187 = vmatmul.mubr.bf16.gmra.mxu0 %v439_v21 }
  0x97   : > { %1194 = vmatprep.mubr.bf16.mxu0 %v447_v22 }
  0x9e   : > { %1195 = vmatmul.mubr.bf16.gmra.mxu0 %v446_v27 }
  0x9f   : > { %1202 = vmatprep.mubr.bf16.mxu0 %v454_v28 }
  0xa6   : > { %1203 = vmatmul.mubr.bf16.gmra.mxu0 %v453_v31 }
  0xee   : > { %v2304_v32 = vpop.f32.mrf.mxu0 }
  0xef   : > { %v2306_v33 = vpop.f32.mrf.mxu1 }
  0xf0   : > { %v1647_v34 = vpop.f32.mrf.mxu0 }
  0xf1   : > { %v1711_v35 = vpop.f32.mrf.mxu1  ;;  %v1648_v31 = vadd.f32 %v1647_v34, %v2304_v32 }
  0xf2   : > { %v2308_v36 = vpop.f32.mrf.mxu0 }
  0xf3   : > { %v2310_v37 = vpop.f32.mrf.mxu1 }
  0xf4   : > { %v2312_v38 = vpop.f32.mrf.mxu0 }
  0xf5   : > { %v2314_v39 = vpop.f32.mrf.mxu1 }
  0xf6   : > { %v2316_v40 = vpop.f32.mrf.mxu0 }
  0xf7   : > { %v2318_v41 = vpop.f32.mrf.mxu1 }
  0xf8   : > { %v2320_v42 = vpop.f32.mrf.mxu0 }
  0xf9   : > { %v2322_v43 = vpop.f32.mrf.mxu1 }
  0xfa   : > { %v2324_v44 = vpop.f32.mrf.mxu0  ;;  %v1718_v34 = vadd.f32 %v2322_v43, %v2318_v41 }
  0xfb   : > { %v2326_v45 = vpop.f32.mrf.mxu1 }
  0xfc   : > { %v2328_v46 = vpop.f32.mrf.mxu0 }
  0xfd   : > { %v2330_v47 = vpop.f32.mrf.mxu1 }
  0xfe   : > { %v2332_v48 = vpop.f32.mrf.mxu0  ;;  %v1721_v41 = vadd.f32 %v2330_v47, %v2326_v45 }
  0xff   : > { %v2334_v49 = vpop.f32.mrf.mxu1 }
 0x100   : > { %v2336_v50 = vpop.f32.mrf.mxu0 }
 0x101   : > { %v2338_v51 = vpop.f32.mrf.mxu1  ;;  %v1660_v45 = vadd.f32 %v2336_v50, %v2332_v48 }
 0x102   : > { %v2340_v52 = vpop.f32.mrf.mxu0  ;;  %v1724_v47 = vadd.f32 %v2338_v51, %v2334_v49 }
 0x103   : > { %v2342_v53 = vpop.f32.mrf.mxu1 }
 0x104   : > { %v2344_v54 = vpop.f32.mrf.mxu0 }
 0x105   : > { %v2346_v55 = vpop.f32.mrf.mxu1  ;;  %v1663_v48 = vadd.f32 %v2344_v54, %v2340_v52 }
 0x106   : > { %v2348_v56 = vpop.f32.mrf.mxu0  ;;  %v1727_v49 = vadd.f32 %v2346_v55, %v2342_v53 }
 0x107   : > { %v2350_v57 = vpop.f32.mrf.mxu1 }
 0x108   : > { %v2352_v58 = vpop.f32.mrf.mxu0 }
 0x109   : > { %v2354_v59 = vpop.f32.mrf.mxu1  ;;  %v1666_v52 = vadd.f32 %v2352_v58, %v2348_v56 }
 0x10a   : > { %v2356_v60 = vpop.f32.mrf.mxu0  ;;  %v1730_v53 = vadd.f32 %v2354_v59, %v2350_v57 }
 0x10b   : > { %v2358_v61 = vpop.f32.mrf.mxu1 }
 0x10c   : > { %v2360_v62 = vpop.f32.mrf.mxu0 }
 0x10d   : > { %v2362_v63 = vpop.f32.mrf.mxu1  ;;  %v1669_v56 = vadd.f32 %v2360_v62, %v2356_v60 }
 0x10e   : > { %v2364_v0 = vpop.f32.mrf.mxu0  ;;  %v1733_v57 = vadd.f32 %v2362_v63, %v2358_v61 }
 0x10f   : > { %v2366_v1 = vpop.f32.mrf.mxu1 }
 0x110   : > { %v2368_v2 = vpop.f32.mrf.mxu0 }
 0x111   : > { %v2370_v3 = vpop.f32.mrf.mxu1  ;;  %v1672_v60 = vadd.f32 %v2368_v2, %v2364_v0 }
 0x112   : > { %v2372_v4 = vpop.f32.mrf.mxu0  ;;  %v1736_v61 = vadd.f32 %v2370_v3, %v2366_v1 }
 0x113   : > { %v2374_v5 = vpop.f32.mrf.mxu1 }
 0x114   : > { %v2376_v6 = vpop.f32.mrf.mxu0 }
 0x115   : > { %v2378_v7 = vpop.f32.mrf.mxu1  ;;  %v1675_v0 = vadd.f32 %v2376_v6, %v2372_v4 }
 0x116   : > { %v2380_v8 = vpop.f32.mrf.mxu0  ;;  %v1739_v1 = vadd.f32 %v2378_v7, %v2374_v5 }
 0x117   : > { %v2382_v9 = vpop.f32.mrf.mxu1 }
 0x118   : > { %v2384_v10 = vpop.f32.mrf.mxu0 }
 0x119   : > { %v2386_v11 = vpop.f32.mrf.mxu1  ;;  %v1678_v4 = vadd.f32 %v2384_v10, %v2380_v8 }
 0x11a   : > { %v2388_v12 = vpop.f32.mrf.mxu0  ;;  %v1742_v5 = vadd.f32 %v2386_v11, %v2382_v9 }
 0x11b   : > { %v2390_v13 = vpop.f32.mrf.mxu1 }
 0x11c   : > { %v2392_v14 = vpop.f32.mrf.mxu0 }
 0x11d   : > { %v2394_v15 = vpop.f32.mrf.mxu1  ;;  %v1681_v8 = vadd.f32 %v2392_v14, %v2388_v12 }
 0x11e   : > { %v2396_v16 = vpop.f32.mrf.mxu0  ;;  %v1745_v9 = vadd.f32 %v2394_v15, %v2390_v13 }
 0x11f   : > { %v2398_v17 = vpop.f32.mrf.mxu1 }
 0x120   : > { %v2400_v18 = vpop.f32.mrf.mxu0 }
 0x121   : > { %v2402_v19 = vpop.f32.mrf.mxu1  ;;  %v1684_v12 = vadd.f32 %v2400_v18, %v2396_v16 }
 0x122   : > { %2552 = vst [vmem:[#allocation3_spill] sm:$0xff] %v2402_v19  ;;  %v2404_v20 = vpop.f32.mrf.mxu0 }
 0x123   : > { %2553 = vst [vmem:[#allocation4_spill] sm:$0xff] %v2404_v20  ;;  %v2406_v21 = vpop.f32.mrf.mxu1 }
 0x124   : > { %2554 = vst [vmem:[#allocation5_spill] sm:$0xff] %v2406_v21  ;;  %v2408_v22 = vpop.f32.mrf.mxu0  ;;  %v1712_v21 = vadd.f32 %v1711_v35, %v2306_v33  ;;  %v1654_v33 = vadd.f32 %v2320_v42, %v2316_v40  ;;  %v1657_v40 = vadd.f32 %v2328_v46, %v2324_v44 }
 0x125   : > { %2555 = vst [vmem:[#allocation6_spill] sm:$0xff] %v2408_v22  ;;  %v2410_v23 = vpop.f32.mrf.mxu1 }
 0x126   : > { %2556 = vst [vmem:[#allocation7_spill] sm:$0xff] %v2410_v23  ;;  %v2412_v24 = vpop.f32.mrf.mxu0  ;;  %v1063_v46 = vadd.f32 %v1721_v41, %v1657_v40 }
 0x127   : > { %2557 = vst [vmem:[#allocation8_spill] sm:$0xff] %v2412_v24  ;;  %v2414_v25 = vpop.f32.mrf.mxu1 }
 0x128   : > { %2558 = vst [vmem:[#allocation9_spill] sm:$0xff] %v2414_v25  ;;  %v2416_v26 = vpop.f32.mrf.mxu0  ;;  %v1052_v25 = vadd.f32 %v1712_v21, %v1648_v31  ;;  %v2441_v21 = vld [vmem:[%s2550_s2] ss:$0 sm:$0xff] }
 0x129   : > { %2559 = vst [vmem:[#allocation10_spill] sm:$0xff] %v2416_v26  ;;  %v2418_v27 = vpop.f32.mrf.mxu1  ;;  %v2564_v14 = vld [vmem:[#allocation3_spill] sm:$0xff] }
 0x12a   : > { %2560 = vst [vmem:[#allocation11_spill] sm:$0xff] %v2418_v27  ;;  %v2420_v28 = vpop.f32.mrf.mxu0  ;;  %v1651_v27 = vadd.f32 %v2312_v38, %v2308_v36  ;;  %v1748_v13 = vadd.f32 %v2564_v14, %v2398_v17 }
 0x12b   : > { %2561 = vst [vmem:[#allocation12_spill] sm:$0xff] %v2420_v28  ;;  %v2422_v29 = vpop.f32.mrf.mxu1  ;;  %v1715_v28 = vadd.f32 %v2314_v39, %v2310_v37 }
 0x12c   : > { %2562 = vst [vmem:[#allocation13_spill] sm:$0xff] %v2422_v29  ;;  %v2424_v30 = vpop.f32.mrf.mxu0  ;;  %v2566_v16 = vld [vmem:[#allocation6_spill] sm:$0xff] }
 0x12d   : > { %2563 = vst [vmem:[#allocation14_spill] sm:$0xff] %v2424_v30  ;;  %v2428_v22 = vpop.f32.mrf.mxu1  ;;  %v1055_v36 = vadd.f32 %v1715_v28, %v1651_v27 }
 0x12e   : > { %v1774_v23 = vpop.f32.mrf.mxu0 }
 0x12f   : > { %v1856_v24 = vpop.f32.mrf.mxu1 }
 0x130   : > { %v1775_v20 = vpop.f32.mrf.mxu0 }
 0x131   : > { %v1776_v29 = vadd.f32 %v1775_v20, %v1774_v23  ;;  %v1245_v26 = vpop.f32.mrf.mxu1 }
 0x132   : > { %v1777_v30 = vpop.f32.mrf.mxu0 }
 0x133   : > { %v1149_v19 = vadd.f32 %v1776_v29, %v1052_v25  ;;  %v1857_v32 = vpop.f32.mrf.mxu1  ;;  %v1060_v29 = vadd.f32 %v1718_v34, %v1654_v33 }
 0x134   : > { %v1778_v35 = vpop.f32.mrf.mxu0 }
 0x135   : > { %v1779_v38 = vadd.f32 %v1778_v35, %v1777_v30  ;;  %v1246_v37 = vadd.f32 %v1245_v26, %v1149_v19  ;;  %v1248_v20 = vpop.f32.mrf.mxu1 }
 0x136   : > { %v1780_v39 = vpop.f32.mrf.mxu0 }
 0x137   : > { %v1366_v23 = vadd.f32 %v2441_v21, %v1246_v37  ;;  %v1152_v25 = vadd.f32 %v1779_v38, %v1055_v36  ;;  %v2454_v28 = vpop.f32.mrf.mxu1 }
 0x138   : > { %v1781_v42 = vpop.f32.mrf.mxu0 }
 0x139   : > { %vm1382_vm0 = vcmp.ge.f32.partialorder %v1366_v23, 0.0  ;;  %v1398_v43 = vmul.f32 0.01, %v1366_v23  ;;  %v1782_v19 = vadd.f32 %v1781_v42, %v1780_v39  ;;  %v1249_v26 = vadd.f32 %v1248_v20, %v1152_v25  ;;  %v1261_v37 = vpop.f32.mrf.mxu1 }
 0x13a   : > { %v1783_v27 = vpop.f32.mrf.mxu0  ;;  %v1068_v25 = vadd.f32 %v1724_v47, %v1660_v45  ;;  %v1076_v47 = vadd.f32 %v1730_v53, %v1666_v52  ;;  %v1087_v53 = vadd.f32 %v1739_v1, %v1675_v0 }
 0x13b   : > { %v1414_v30 = vsel %vm1382_vm0, %v1366_v23, %v1398_v43  ;;  %v1157_v31 = vadd.f32 %v1782_v19, %v1060_v29  ;;  %v1367_v44 = vadd.f32 %v2441_v21, %v1249_v26  ;;  %v1861_v41 = vpop.f32.mrf.mxu1  ;;  %v1071_v26 = vadd.f32 %v1727_v49, %v1663_v48 }
 0x13c   : > { %1430 = vst [vmem:[%s2452_s24] sm:$0xff] %v1414_v30  ;;  %v1784_v33 = vpop.f32.mrf.mxu0 }
 0x13d   : > { %v1254_v34 = vadd.f32 %v1856_v24, %v1157_v31  ;;  %vm1383_vm1 = vcmp.ge.f32.partialorder %v1367_v44, 0.0  ;;  %v1399_v35 = vmul.f32 0.01, %v1367_v44  ;;  %v1785_v36 = vadd.f32 %v1784_v33, %v1783_v27  ;;  %v1264_v31 = vpop.f32.mrf.mxu1 }
 0x13e   : > { %v1786_v38 = vpop.f32.mrf.mxu0 }
 0x13f   : > { %v1368_v39 = vadd.f32 %v2441_v21, %v1254_v34  ;;  %v1415_v20 = vsel %vm1383_vm1, %v1367_v44, %v1399_v35  ;;  %v1160_v23 = vadd.f32 %v1785_v36, %v1063_v46  ;;  %v2480_v36 = vpop.f32.mrf.mxu1 }
 0x140   : > { %1431 = vst [vmem:[%s2452_s24 + $0x8] sm:$0xff] %v1415_v20  ;;  %v1787_v50 = vpop.f32.mrf.mxu0  ;;  %v1079_v20 = vadd.f32 %v1733_v57, %v1669_v56 }
 0x141   : > { %vm1384_vm2 = vcmp.ge.f32.partialorder %v1368_v39, 0.0  ;;  %v1400_v51 = vmul.f32 0.01, %v1368_v39  ;;  %v1257_v24 = vadd.f32 %v1857_v32, %v1160_v23  ;;  %v1788_v29 = vadd.f32 %v1787_v50, %v1786_v38  ;;  %v1277_v49 = vpop.f32.mrf.mxu1 }
 0x142   : > { %v1789_v40 = vpop.f32.mrf.mxu0 }
 0x143   : > { %v1416_v42 = vsel %vm1384_vm2, %v1368_v39, %v1400_v51  ;;  %v1369_v43 = vadd.f32 %v2441_v21, %v1257_v24  ;;  %v1165_v19 = vadd.f32 %v1788_v29, %v1068_v25  ;;  %v1084_v29 = vadd.f32 %v1736_v61, %v1672_v60 }
 0x144   : > { %1432 = vst [vmem:[%s2452_s24 + $0x10] sm:$0xff] %v1416_v42  ;;  %v1790_v54 = vpop.f32.mrf.mxu0 }
 0x145   : > { %vm1385_vm3 = vcmp.ge.f32.partialorder %v1369_v43, 0.0  ;;  %v1401_v55 = vmul.f32 0.01, %v1369_v43  ;;  %v1791_v32 = vadd.f32 %v1790_v54, %v1789_v40  ;;  %v1262_v27 = vadd.f32 %v1261_v37, %v1165_v19 }
 0x146   : > { %v1792_v30 = vpop.f32.mrf.mxu0 }
 0x147   : > { %v1417_v44 = vsel %vm1385_vm3, %v1369_v43, %v1401_v55  ;;  %v1370_v46 = vadd.f32 %v2441_v21, %v1262_v27  ;;  %v1168_v45 = vadd.f32 %v1791_v32, %v1071_v26  ;;  %v1865_v43 = vpop.f32.mrf.mxu1 }
 0x148   : > { %1433 = vst [vmem:[%s2452_s24 + $0x18] sm:$0xff] %v1417_v44  ;;  %v1793_v58 = vpop.f32.mrf.mxu0  ;;  %v1092_v44 = vadd.f32 %v1742_v5, %v1678_v4 }
 0x149   : > { %vm1386_vm4 = vcmp.ge.f32.partialorder %v1370_v46, 0.0  ;;  %v1402_v59 = vmul.f32 0.01, %v1370_v46  ;;  %v1794_v33 = vadd.f32 %v1793_v58, %v1792_v30  ;;  %v1265_v34 = vadd.f32 %v1264_v31, %v1168_v45  ;;  %v1280_v32 = vpop.f32.mrf.mxu1 }
 0x14a   : > { %v1795_v35 = vpop.f32.mrf.mxu0 }
 0x14b   : > { %v1418_v38 = vsel %vm1386_vm4, %v1370_v46, %v1402_v59  ;;  %v1173_v37 = vadd.f32 %v1794_v33, %v1076_v47  ;;  %v1371_v39 = vadd.f32 %v2441_v21, %v1265_v34  ;;  %v1868_v56 = vpop.f32.mrf.mxu1  ;;  %v1095_v33 = vadd.f32 %v1745_v9, %v1681_v8 }
 0x14c   : > { %1434 = vst [vmem:[%s2452_s24 + $0x20] sm:$0xff] %v1418_v38  ;;  %v1796_v62 = vpop.f32.mrf.mxu0 }
 0x14d   : > { %v1270_v63 = vadd.f32 %v2454_v28, %v1173_v37  ;;  %vm1387_vm5 = vcmp.ge.f32.partialorder %v1371_v39, 0.0  ;;  %v1403_v23 = vmul.f32 0.01, %v1371_v39  ;;  %v1797_v25 = vadd.f32 %v1796_v62, %v1795_v35 }
 0x14e   : > { %v1798_v48 = vpop.f32.mrf.mxu0  ;;  %v1100_v62 = vadd.f32 %v1748_v13, %v1684_v12 }
 0x14f   : > { %v1372_v50 = vadd.f32 %v2441_v21, %v1270_v63  ;;  %v1419_v51 = vsel %vm1387_vm5, %v1371_v39, %v1403_v23  ;;  %v1176_v24 = vadd.f32 %v1797_v25, %v1079_v20  ;;  %v1293_v39 = vpop.f32.mrf.mxu1  ;;  %v2565_v63 = vld [vmem:[#allocation4_spill] sm:$0xff]  ;;  %v2567_v23 = vld [vmem:[#allocation5_spill] sm:$0xff]  ;;  %v2568_v25 = vld [vmem:[#allocation7_spill] sm:$0xff] }
 0x150   : > { %1435 = vst [vmem:[%s2452_s24 + $0x28] sm:$0xff] %v1419_v51  ;;  %v1799_v2 = vpop.f32.mrf.mxu0  ;;  %v1687_v18 = vadd.f32 %v2566_v16, %v2565_v63  ;;  %v1751_v17 = vadd.f32 %v2568_v25, %v2567_v23 }
 0x151   : > { %vm1388_vm6 = vcmp.ge.f32.partialorder %v1372_v50, 0.0  ;;  %v1404_v3 = vmul.f32 0.01, %v1372_v50  ;;  %v1273_v28 = vadd.f32 %v1861_v41, %v1176_v24  ;;  %v1800_v40 = vadd.f32 %v1799_v2, %v1798_v48  ;;  %v1869_v24 = vpop.f32.mrf.mxu1 }
 0x152   : > { %v1801_v42 = vpop.f32.mrf.mxu0  ;;  %v1103_v2 = vadd.f32 %v1751_v17, %v1687_v18 }
 0x153   : > { %v1420_v19 = vsel %vm1388_vm6, %v1372_v50, %v1404_v3  ;;  %v1373_v26 = vadd.f32 %v2441_v21, %v1273_v28  ;;  %v1181_v52 = vadd.f32 %v1800_v40, %v1084_v29  ;;  %v2569_v3 = vld [vmem:[#allocation8_spill] sm:$0xff]  ;;  %v2570_v28 = vld [vmem:[#allocation10_spill] sm:$0xff] }
 0x154   : > { %1436 = vst [vmem:[%s2452_s24 + $0x30] sm:$0xff] %v1420_v19  ;;  %v1802_v6 = vpop.f32.mrf.mxu0  ;;  %v1690_v40 = vadd.f32 %v2570_v28, %v2569_v3  ;;  %v2572_v19 = vld [vmem:[#allocation11_spill] sm:$0xff] }
 0x155   : > { %vm1389_vm7 = vcmp.ge.f32.partialorder %v1373_v26, 0.0  ;;  %v1405_v7 = vmul.f32 0.01, %v1373_v26  ;;  %v1803_v41 = vadd.f32 %v1802_v6, %v1801_v42  ;;  %v1278_v54 = vadd.f32 %v1277_v49, %v1181_v52  ;;  %v2571_v42 = vld [vmem:[#allocation9_spill] sm:$0xff]  ;;  %v1296_v6 = vpop.f32.mrf.mxu1 }
 0x156   : > { %v1804_v55 = vpop.f32.mrf.mxu0 }
 0x157   : > { %v1421_v27 = vsel %vm1389_vm7, %v1373_v26, %v1405_v7  ;;  %v1374_v30 = vadd.f32 %v2441_v21, %v1278_v54  ;;  %v1184_v31 = vadd.f32 %v1803_v41, %v1087_v53  ;;  %v1754_v26 = vadd.f32 %v2572_v19, %v2571_v42 }
 0x158   : > { %1437 = vst [vmem:[%s2452_s24 + $0x38] sm:$0xff] %v1421_v27  ;;  %v1805_v10 = vpop.f32.mrf.mxu0  ;;  %v2574_v27 = vld [vmem:[#allocation14_spill] sm:$0xff] }
 0x159   : > { %vm1390_vm8 = vcmp.ge.f32.partialorder %v1374_v30, 0.0  ;;  %v1406_v11 = vmul.f32 0.01, %v1374_v30  ;;  %v1806_v46 = vadd.f32 %v1805_v10, %v1804_v55  ;;  %v1281_v45 = vadd.f32 %v1280_v32, %v1184_v31  ;;  %v2573_v32 = vld [vmem:[#allocation12_spill] sm:$0xff]  ;;  %v2575_v31 = vld [vmem:[#allocation13_spill] sm:$0xff] }
 0x15a   : > { %v1807_v47 = vpop.f32.mrf.mxu0  ;;  %v1108_v55 = vadd.f32 %v1754_v26, %v1690_v40 }
 0x15b   : > { %v1422_v57 = vsel %vm1390_vm8, %v1374_v30, %v1406_v11  ;;  %v1189_v58 = vadd.f32 %v1806_v46, %v1092_v44  ;;  %v1375_v59 = vadd.f32 %v2441_v21, %v1281_v45  ;;  %v1693_v30 = vadd.f32 %v2574_v27, %v2573_v32 }
 0x15c   : > { %1438 = vst [vmem:[%s2452_s24 + $0x40] sm:$0xff] %v1422_v57  ;;  %v1808_v15 = vpop.f32.mrf.mxu0  ;;  %v1757_v44 = vadd.f32 %v2428_v22, %v2575_v31 }
 0x15d   : > { %v1286_v34 = vadd.f32 %v2480_v36, %v1189_v58  ;;  %vm1391_vm9 = vcmp.ge.f32.partialorder %v1375_v59, 0.0  ;;  %v1407_v35 = vmul.f32 0.01, %v1375_v59  ;;  %v1809_v38 = vadd.f32 %v1808_v15, %v1807_v47 }
 0x15e   : > { %v1810_v37 = vpop.f32.mrf.mxu0  ;;  %v1111_v58 = vadd.f32 %v1757_v44, %v1693_v30 }
 0x15f   : > { %v1376_v20 = vadd.f32 %v2441_v21, %v1286_v34  ;;  %v1423_v60 = vsel %vm1391_vm9, %v1375_v59, %v1407_v35  ;;  %v1192_v61 = vadd.f32 %v1809_v38, %v1095_v33 }
 0x160   : > { %1439 = vst [vmem:[%s2452_s24 + $0x48] sm:$0xff] %v1423_v60  ;;  %v1811_v48 = vpop.f32.mrf.mxu0 }
 0x161   : > { %vm1392_vm10 = vcmp.ge.f32.partialorder %v1376_v20, 0.0  ;;  %v1408_v36 = vmul.f32 0.01, %v1376_v20  ;;  %v1289_v49 = vadd.f32 %v1865_v43, %v1192_v61  ;;  %v1812_v50 = vadd.f32 %v1811_v48, %v1810_v37 }
 0x162   : > { %v1813_v51 = vpop.f32.mrf.mxu0 }
 0x163   : > { %v1424_v29 = vsel %vm1392_vm10, %v1376_v20, %v1408_v36  ;;  %v1377_v0 = vadd.f32 %v2441_v21, %v1289_v49  ;;  %v1197_v1 = vadd.f32 %v1812_v50, %v1100_v62 }
 0x164   : > { %1440 = vst [vmem:[%s2452_s24 + $0x50] sm:$0xff] %v1424_v29  ;;  %v1814_v52 = vpop.f32.mrf.mxu0 }
 0x165   : > { %vm1393_vm11 = vcmp.ge.f32.partialorder %v1377_v0, 0.0  ;;  %v1409_v53 = vmul.f32 0.01, %v1377_v0  ;;  %v1815_v43 = vadd.f32 %v1814_v52, %v1813_v51  ;;  %v1294_v4 = vadd.f32 %v1293_v39, %v1197_v1 }
 0x166   : > { %v1816_v5 = vpop.f32.mrf.mxu0 }
 0x167   : > { %v1425_v7 = vsel %vm1393_vm11, %v1377_v0, %v1409_v53  ;;  %v1378_v41 = vadd.f32 %v2441_v21, %v1294_v4  ;;  %v1200_v54 = vadd.f32 %v1815_v43, %v1103_v2 }
 0x168   : > { %1441 = vst [vmem:[%s2452_s24 + $0x58] sm:$0xff] %v1425_v7  ;;  %v1817_v8 = vpop.f32.mrf.mxu0 }
 0x169   : > { %vm1394_vm12 = vcmp.ge.f32.partialorder %v1378_v41, 0.0  ;;  %v1410_v9 = vmul.f32 0.01, %v1378_v41  ;;  %v1818_v10 = vadd.f32 %v1817_v8, %v1816_v5  ;;  %v1297_v11 = vadd.f32 %v1296_v6, %v1200_v54 }
 0x16a   : > { %v1819_v46 = vpop.f32.mrf.mxu0 }
 0x16b   : > { %v1426_v45 = vsel %vm1394_vm12, %v1378_v41, %v1410_v9  ;;  %v1205_v47 = vadd.f32 %v1818_v10, %v1108_v55  ;;  %v1379_v57 = vadd.f32 %v2441_v21, %v1297_v11 }
 0x16c   : > { %1442 = vst [vmem:[%s2452_s24 + $0x60] sm:$0xff] %v1426_v45  ;;  %v1820_v59 = vpop.f32.mrf.mxu0 }
 0x16d   : > { %v1302_v33 = vadd.f32 %v1868_v56, %v1205_v47  ;;  %vm1395_vm13 = vcmp.ge.f32.partialorder %v1379_v57, 0.0  ;;  %v1411_v22 = vmul.f32 0.01, %v1379_v57  ;;  %v1821_v12 = vadd.f32 %v1820_v59, %v1819_v46 }
 0x16f   : > { %v1380_v14 = vadd.f32 %v2441_v21, %v1302_v33  ;;  %v1427_v13 = vsel %vm1395_vm13, %v1379_v57, %v1411_v22  ;;  %v1208_v15 = vadd.f32 %v1821_v12, %v1111_v58 }
 0x170   : > { %1443 = vst [vmem:[%s2452_s24 + $0x68] sm:$0xff] %v1427_v13 }
 0x171   : > { %vm1396_vm14 = vcmp.ge.f32.partialorder %v1380_v14, 0.0  ;;  %v1412_v34 = vmul.f32 0.01, %v1380_v14  ;;  %v1305_v35 = vadd.f32 %v1869_v24, %v1208_v15 }
 0x173   : > { %v1428_v38 = vsel %vm1396_vm14, %v1380_v14, %v1412_v34  ;;  %v1381_v37 = vadd.f32 %v2441_v21, %v1305_v35 }
 0x174   : > { %1444 = vst [vmem:[%s2452_s24 + $0x70] sm:$0xff] %v1428_v38 }
 0x175   : > { %vm1397_vm15 = vcmp.ge.f32.partialorder %v1381_v37, 0.0  ;;  %v1413_v39 = vmul.f32 0.01, %v1381_v37 }
 0x177   : > { %v1429_v20 = vsel %vm1397_vm15, %v1381_v37, %v1413_v39 }
 0x178   : > { %1445 = vst [vmem:[%s2452_s24 + $0x78] sm:$0xff] %v1429_v20 }
 0x179 PF: > { %s13_s14 = sadd.s32 1, %s1973_s14   ;;  %s2576_s12 = smov %s1969_s13 }
 0x17a   : > { %p10_p5 = scmp.ge.s32.totalorder %s13_s14, 6   ;;  %s2577_s13 = smov %s2579_s15 }
 0x17c   :  { %12 = sbr.rel (!%p10_p5) target bundleno = 2 (0x2), region = 76 }

// kernel: discriminator_forward.8
= control target key start
LH: loop header
LB: loop body
LE: loop exit
PB: predicated region body
PF: predicated region fallthrough
CT: control target
= control target key end

     0   :  { %s4932_s1 = inlined_call_operand.vmem [shape: bf16[1664,256], index: 1, kind: input, shape index: {}]   ;;  %s4933_s0 = inlined_call_operand.vmem [shape: f32[128,1664], index: 0, kind: input, shape index: {}]   ;;  %s4934_s2 = inlined_call_operand.vmem [shape: f32[1,256], index: 2, kind: input, shape index: {}]   ;;  %s4935_s3 = inlined_call_operand.vmem [shape: f32[128,256], index: 3, kind: output, shape index: {}]  }
   0x1   :  { %v2934_v0 = vld [vmem:[%s4932_s1 + $0x74] ss:$8 sps:$4 sm:$0xff]   ;;  %v2938_v2 = vld [vmem:[%s4932_s1 + $0x70] ss:$8 sps:$4 sm:$0xff]   ;;  %v2940_v4 = vld [vmem:[%s4932_s1 + $0x64] ss:$8 sps:$4 sm:$0xff]  }
   0x2   :  { %v2936_v1 = vld [vmem:[%s4932_s1 + $0x174] ss:$8 sps:$4 sm:$0xff]   ;;  %1643 = vmatprep.subr.bf16.mxu0 %v2934_v0  ;;  %v2939_v3 = vld [vmem:[%s4932_s1 + $0x170] ss:$8 sps:$4 sm:$0xff]   ;;  %v2942_v5 = vld [vmem:[%s4932_s1 + $0x164] ss:$8 sps:$4 sm:$0xff]  }
   0x3   :  { %1756 = vmatprep.subr.bf16.mxu1 %v2936_v1  ;;  %1644 = vmatpush1.bf16.msra.mxu0 %v2938_v2  ;;  %v2944_v6 = vld [vmem:[%s4932_s1 + $0x60] ss:$8 sps:$4 sm:$0xff]   ;;  %v2946_v8 = vld [vmem:[%s4932_s1 + $0x54] ss:$8 sps:$4 sm:$0xff]   ;;  %v2950_v10 = vld [vmem:[%s4932_s1 + $0x50] ss:$8 sps:$4 sm:$0xff]  }
   0x4   :  { %1757 = vmatpush1.bf16.msra.mxu1 %v2939_v3  ;;  %1645 = vmatprep.subr.bf16.mxu0 %v2940_v4  ;;  %v2945_v7 = vld [vmem:[%s4932_s1 + $0x160] ss:$8 sps:$4 sm:$0xff]   ;;  %v2948_v9 = vld [vmem:[%s4932_s1 + $0x154] ss:$8 sps:$4 sm:$0xff]   ;;  %v2951_v11 = vld [vmem:[%s4932_s1 + $0x150] ss:$8 sps:$4 sm:$0xff]  }
   0x5   :  { %1758 = vmatprep.subr.bf16.mxu1 %v2942_v5  ;;  %v2952_v12 = vld [vmem:[%s4932_s1 + $0x44] ss:$8 sps:$4 sm:$0xff]   ;;  %v2956_v14 = vld [vmem:[%s4932_s1 + $0x40] ss:$8 sps:$4 sm:$0xff]   ;;  %v2958_v16 = vld [vmem:[%s4932_s1 + $0x34] ss:$8 sps:$4 sm:$0xff]  }
   0x6   :  { %v2954_v13 = vld [vmem:[%s4932_s1 + $0x144] ss:$8 sps:$4 sm:$0xff]   ;;  %v2957_v15 = vld [vmem:[%s4932_s1 + $0x140] ss:$8 sps:$4 sm:$0xff]   ;;  %v2960_v17 = vld [vmem:[%s4932_s1 + $0x134] ss:$8 sps:$4 sm:$0xff]  }
   0x7   :  { %1646 = vmatpush1.bf16.msra.mxu0 %v2944_v6  ;;  %v2962_v18 = vld [vmem:[%s4932_s1 + $0x30] ss:$8 sps:$4 sm:$0xff]   ;;  %v2964_v20 = vld [vmem:[%s4932_s1 + $0x24] ss:$8 sps:$4 sm:$0xff]   ;;  %v2968_v22 = vld [vmem:[%s4932_s1 + $0x20] ss:$8 sps:$4 sm:$0xff]  }
   0x8   :  { %1759 = vmatpush1.bf16.msra.mxu1 %v2945_v7  ;;  %1647 = vmatprep.subr.bf16.mxu0 %v2946_v8  ;;  %v2963_v19 = vld [vmem:[%s4932_s1 + $0x130] ss:$8 sps:$4 sm:$0xff]   ;;  %v2966_v21 = vld [vmem:[%s4932_s1 + $0x124] ss:$8 sps:$4 sm:$0xff]   ;;  %v2969_v23 = vld [vmem:[%s4932_s1 + $0x120] ss:$8 sps:$4 sm:$0xff]  }
   0x9   :  { %1760 = vmatprep.subr.bf16.mxu1 %v2948_v9  ;;  %v2970_v24 = vld [vmem:[%s4932_s1 + $0x14] ss:$8 sps:$4 sm:$0xff]   ;;  %v2974_v26 = vld [vmem:[%s4932_s1 + $0x10] ss:$8 sps:$4 sm:$0xff]   ;;  %v2976_v28 = vld [vmem:[%s4932_s1 + $0x4] ss:$8 sps:$4 sm:$0xff]  }
   0xa   :  { %v2972_v25 = vld [vmem:[%s4932_s1 + $0x114] ss:$8 sps:$4 sm:$0xff]   ;;  %v2975_v27 = vld [vmem:[%s4932_s1 + $0x110] ss:$8 sps:$4 sm:$0xff]   ;;  %v2978_v29 = vld [vmem:[%s4932_s1 + $0x104] ss:$8 sps:$4 sm:$0xff]  }
   0xb   :  { %1648 = vmatpush1.bf16.msra.mxu0 %v2950_v10  ;;  %v2980_v30 = vld [vmem:[%s4932_s1] ss:$8 sps:$4 sm:$0xff]   ;;  %v2982_v32 = vld [vmem:[%s4932_s1 + $0xf4] ss:$8 sps:$4 sm:$0xff]   ;;  %v2986_v34 = vld [vmem:[%s4932_s1 + $0xf0] ss:$8 sps:$4 sm:$0xff]  }
   0xc   :  { %1761 = vmatpush1.bf16.msra.mxu1 %v2951_v11  ;;  %1649 = vmatprep.subr.bf16.mxu0 %v2952_v12  ;;  %v2981_v31 = vld [vmem:[%s4932_s1 + $0x100] ss:$8 sps:$4 sm:$0xff]   ;;  %v2984_v33 = vld [vmem:[%s4932_s1 + $0x1f4] ss:$8 sps:$4 sm:$0xff]   ;;  %v2987_v35 = vld [vmem:[%s4932_s1 + $0x1f0] ss:$8 sps:$4 sm:$0xff]  }
   0xd   :  { %1762 = vmatprep.subr.bf16.mxu1 %v2954_v13  ;;  %v2988_v36 = vld [vmem:[%s4932_s1 + $0xe4] ss:$8 sps:$4 sm:$0xff]   ;;  %v2992_v38 = vld [vmem:[%s4932_s1 + $0xe0] ss:$8 sps:$4 sm:$0xff]   ;;  %v2994_v40 = vld [vmem:[%s4932_s1 + $0xd4] ss:$8 sps:$4 sm:$0xff]  }
   0xe   :  { %v2990_v37 = vld [vmem:[%s4932_s1 + $0x1e4] ss:$8 sps:$4 sm:$0xff]   ;;  %v2993_v39 = vld [vmem:[%s4932_s1 + $0x1e0] ss:$8 sps:$4 sm:$0xff]   ;;  %v2996_v41 = vld [vmem:[%s4932_s1 + $0x1d4] ss:$8 sps:$4 sm:$0xff]  }
   0xf   :  { %1650 = vmatpush1.bf16.msra.mxu0 %v2956_v14  ;;  %v2998_v42 = vld [vmem:[%s4932_s1 + $0xd0] ss:$8 sps:$4 sm:$0xff]   ;;  %v3000_v44 = vld [vmem:[%s4932_s1 + $0xc4] ss:$8 sps:$4 sm:$0xff]   ;;  %v3004_v50 = vld [vmem:[%s4932_s1 + $0xc0] ss:$8 sps:$4 sm:$0xff]  }
  0x10   :  { %1763 = vmatpush1.bf16.msra.mxu1 %v2957_v15  ;;  %1651 = vmatprep.subr.bf16.mxu0 %v2958_v16  ;;  %v2999_v43 = vld [vmem:[%s4932_s1 + $0x1d0] ss:$8 sps:$4 sm:$0xff]   ;;  %v3002_v45 = vld [vmem:[%s4932_s1 + $0x1c4] ss:$8 sps:$4 sm:$0xff]   ;;  %v3005_v51 = vld [vmem:[%s4932_s1 + $0x1c0] ss:$8 sps:$4 sm:$0xff]  }
  0x11   :  { %1764 = vmatprep.subr.bf16.mxu1 %v2960_v17  ;;  %v52_v46 = vld [vmem:[%s4933_s0 + $0x8] sm:$0xff]  ;;  %v65_v47 = vld [vmem:[%s4933_s0 + $0x70] sm:$0xff]  ;;  %v54_v48 = vld [vmem:[%s4933_s0 + $0x18] sm:$0xff] }
  0x12   :  { %v67_v49 = vld [vmem:[%s4933_s0 + $0x80] sm:$0xff]  ;;  %v3006_v52 = vld [vmem:[%s4932_s1 + $0xb4] ss:$8 sps:$4 sm:$0xff]   ;;  %v260_v53 = vpack.c.bf16 %v65_v47, %v52_v46  ;;  %v3010_v56 = vld [vmem:[%s4932_s1 + $0xb0] ss:$8 sps:$4 sm:$0xff]  }
  0x13   :  { %1652 = vmatpush1.bf16.msra.mxu0 %v2962_v18  ;;  %v262_v54 = vpack.c.bf16 %v67_v49, %v54_v48  ;;  %v3008_v55 = vld [vmem:[%s4932_s1 + $0x1b4] ss:$8 sps:$4 sm:$0xff]   ;;  %v3011_v57 = vld [vmem:[%s4932_s1 + $0x1b0] ss:$8 sps:$4 sm:$0xff]   ;;  %v3012_v58 = vld [vmem:[%s4932_s1 + $0xa4] ss:$8 sps:$4 sm:$0xff]  }
  0x14   :  { %1765 = vmatpush1.bf16.msra.mxu1 %v2963_v19  ;;  %1653 = vmatprep.subr.bf16.mxu0 %v2964_v20  ;;  %v3014_v59 = vld [vmem:[%s4932_s1 + $0x1a4] ss:$8 sps:$4 sm:$0xff]   ;;  %v3016_v60 = vld [vmem:[%s4932_s1 + $0xa0] ss:$8 sps:$4 sm:$0xff]   ;;  %v3018_v62 = vld [vmem:[%s4932_s1 + $0x94] ss:$8 sps:$4 sm:$0xff]  }
  0x15   :  { %1766 = vmatprep.subr.bf16.mxu1 %v2966_v21  ;;  %1675 = vmatprep.mubr.bf16.mxu0 %v260_v53  ;;  %v3017_v61 = vld [vmem:[%s4932_s1 + $0x1a0] ss:$8 sps:$4 sm:$0xff]   ;;  %v3020_v63 = vld [vmem:[%s4932_s1 + $0x194] ss:$8 sps:$4 sm:$0xff]   ;;  %v3022_v0 = vld [vmem:[%s4932_s1 + $0x90] ss:$8 sps:$4 sm:$0xff]  }
  0x16   :  { %1788 = vmatprep.mubr.bf16.mxu1 %v262_v54  ;;  %v3023_v1 = vld [vmem:[%s4932_s1 + $0x190] ss:$8 sps:$4 sm:$0xff]   ;;  %v3024_v2 = vld [vmem:[%s4932_s1 + $0x84] ss:$8 sps:$4 sm:$0xff]   ;;  %v3028_v4 = vld [vmem:[%s4932_s1 + $0x80] ss:$8 sps:$4 sm:$0xff]  }
  0x17   :  { %1654 = vmatpush1.bf16.msra.mxu0 %v2968_v22  ;;  %v3026_v3 = vld [vmem:[%s4932_s1 + $0x184] ss:$8 sps:$4 sm:$0xff]   ;;  %v3029_v5 = vld [vmem:[%s4932_s1 + $0x180] ss:$8 sps:$4 sm:$0xff]   ;;  %v53_v8 = vld [vmem:[%s4933_s0 + $0x10] sm:$0xff] }
  0x18   :  { %1767 = vmatpush1.bf16.msra.mxu1 %v2969_v23  ;;  %1655 = vmatprep.subr.bf16.mxu0 %v2970_v24  ;;  %v51_v6 = vld [vmem:[%s4933_s0] sm:$0xff]  ;;  %v64_v7 = vld [vmem:[%s4933_s0 + $0x68] sm:$0xff]  ;;  %v66_v9 = vld [vmem:[%s4933_s0 + $0x78] sm:$0xff] }
  0x19   :  { %1768 = vmatprep.subr.bf16.mxu1 %v2972_v25  ;;  %v3032_v10 = vld [vmem:[%s4932_s1 + $0x274] ss:$8 sps:$4 sm:$0xff]   ;;  %v3030_v12 = vld [vmem:[%s4932_s1 + $0x270] ss:$8 sps:$4 sm:$0xff]   ;;  %v91_v15 = vld [vmem:[%s4933_s0 + $0x140] sm:$0xff]  ;;  %v259_v16 = vpack.c.bf16 %v64_v7, %v51_v6  ;;  %v261_v17 = vpack.c.bf16 %v66_v9, %v53_v8 }
  0x1a   :  { %v3035_v11 = vld [vmem:[%s4932_s1 + $0x374] ss:$8 sps:$4 sm:$0xff]   ;;  %v3033_v13 = vld [vmem:[%s4932_s1 + $0x370] ss:$8 sps:$4 sm:$0xff]   ;;  %v80_v18 = vld [vmem:[%s4933_s0 + $0xe8] sm:$0xff] }
  0x1b   :  { %1656 = vmatpush1.bf16.msra.mxu0 %v2974_v26  ;;  %v78_v14 = vld [vmem:[%s4933_s0 + $0xd8] sm:$0xff]  ;;  %v93_v19 = vld [vmem:[%s4933_s0 + $0x150] sm:$0xff]  ;;  %v3038_v20 = vld [vmem:[%s4932_s1 + $0x264] ss:$8 sps:$4 sm:$0xff]  }
  0x1c   :  { %1769 = vmatpush1.bf16.msra.mxu1 %v2975_v27  ;;  %1657 = vmatprep.subr.bf16.mxu0 %v2976_v28  ;;  %v3041_v21 = vld [vmem:[%s4932_s1 + $0x364] ss:$8 sps:$4 sm:$0xff]   ;;  %v3036_v22 = vld [vmem:[%s4932_s1 + $0x260] ss:$8 sps:$4 sm:$0xff]   ;;  %v273_v23 = vpack.c.bf16 %v91_v15, %v78_v14  ;;  %v275_v24 = vpack.c.bf16 %v93_v19, %v80_v18  ;;  %v77_v26 = vld [vmem:[%s4933_s0 + $0xd0] sm:$0xff] }
  0x1d   :  { %1770 = vmatprep.subr.bf16.mxu1 %v2978_v29  ;;  %v3039_v25 = vld [vmem:[%s4932_s1 + $0x360] ss:$8 sps:$4 sm:$0xff]   ;;  %v90_v27 = vld [vmem:[%s4933_s0 + $0x138] sm:$0xff]  ;;  %v105_v48 = vld [vmem:[%s4933_s0 + $0x1b0] sm:$0xff] }
  0x1e   :  { %v79_v28 = vld [vmem:[%s4933_s0 + $0xe0] sm:$0xff]  ;;  %v92_v29 = vld [vmem:[%s4933_s0 + $0x148] sm:$0xff]  ;;  %v118_v49 = vld [vmem:[%s4933_s0 + $0x218] sm:$0xff] }
  0x1f   :  { %1658 = vmatpush1.bf16.msra.mxu0 %v2980_v30  ;;  %v3044_v30 = vld [vmem:[%s4932_s1 + $0x254] ss:$8 sps:$4 sm:$0xff]   ;;  %v103_v46 = vld [vmem:[%s4933_s0 + $0x1a0] sm:$0xff]  ;;  %v116_v47 = vld [vmem:[%s4933_s0 + $0x208] sm:$0xff] }
  0x20   :  { %1771 = vmatpush1.bf16.msra.mxu1 %v2981_v31  ;;  %1659 = vmatprep.subr.bf16.mxu0 %v2982_v32  ;;  %v3047_v31 = vld [vmem:[%s4932_s1 + $0x354] ss:$8 sps:$4 sm:$0xff]   ;;  %v3042_v32 = vld [vmem:[%s4932_s1 + $0x250] ss:$8 sps:$4 sm:$0xff]   ;;  %v171_v15 = vld [vmem:[%s4933_s0 + $0x3c0] sm:$0xff] }
  0x21   :  { %1772 = vmatprep.subr.bf16.mxu1 %v2984_v33  ;;  %v3045_v33 = vld [vmem:[%s4932_s1 + $0x350] ss:$8 sps:$4 sm:$0xff]   ;;  %v3068_v6 = vld [vmem:[%s4932_s1 + $0x214] ss:$8 sps:$4 sm:$0xff]   ;;  %v3072_v18 = vld [vmem:[%s4932_s1 + $0x200] ss:$8 sps:$4 sm:$0xff]  }
  0x22   :  { %v3057_v53 = vld [vmem:[%s4932_s1 + $0x330] ss:$8 sps:$4 sm:$0xff]   ;;  %v3071_v7 = vld [vmem:[%s4932_s1 + $0x314] ss:$8 sps:$4 sm:$0xff]  }
  0x23   :  { %1660 = vmatpush2.bf16.msra.mxu0 %v2986_v34  ;;  %v104_v34 = vld [vmem:[%s4933_s0 + $0x1a8] sm:$0xff]  ;;  %v130_v54 = vld [vmem:[%s4933_s0 + $0x278] sm:$0xff] }
  0x24   :  { %1773 = vmatpush2.bf16.msra.mxu1 %v2987_v35  ;;  %1661 = vmatprep.subr.bf16.mxu0 %v2988_v36  ;;  %v117_v35 = vld [vmem:[%s4933_s0 + $0x210] sm:$0xff]  ;;  %v272_v36 = vpack.c.bf16 %v90_v27, %v77_v26  ;;  %v158_v14 = vld [vmem:[%s4933_s0 + $0x358] sm:$0xff] }
  0x25   :  { %1774 = vmatprep.subr.bf16.mxu1 %v2990_v37  ;;  %v274_v37 = vpack.c.bf16 %v92_v29, %v79_v28  ;;  %v3066_v8 = vld [vmem:[%s4932_s1 + $0x210] ss:$8 sps:$4 sm:$0xff]   ;;  %v3080_v26 = vld [vmem:[%s4932_s1 + $0x2f4] ss:$8 sps:$4 sm:$0xff]  }
  0x26   :  { %v3069_v9 = vld [vmem:[%s4932_s1 + $0x310] ss:$8 sps:$4 sm:$0xff]   ;;  %v3083_v27 = vld [vmem:[%s4932_s1 + $0x3f4] ss:$8 sps:$4 sm:$0xff]  }
  0x27   :  { %1662 = vmatpush2.bf16.msra.mxu0 %v2992_v38  ;;  %v106_v38 = vld [vmem:[%s4933_s0 + $0x1b8] sm:$0xff] }
  0x28   :  { %1775 = vmatpush2.bf16.msra.mxu1 %v2993_v39  ;;  %1663 = vmatprep.subr.bf16.mxu0 %v2994_v40  ;;  %v119_v39 = vld [vmem:[%s4933_s0 + $0x220] sm:$0xff]  ;;  %v3078_v28 = vld [vmem:[%s4932_s1 + $0x2f0] ss:$8 sps:$4 sm:$0xff]  }
  0x29   :  { %1776 = vmatprep.subr.bf16.mxu1 %v2996_v41  ;;  %v3050_v40 = vld [vmem:[%s4932_s1 + $0x244] ss:$8 sps:$4 sm:$0xff]   ;;  %v3081_v29 = vld [vmem:[%s4932_s1 + $0x3f0] ss:$8 sps:$4 sm:$0xff]  }
  0x2a   :  { %v3053_v41 = vld [vmem:[%s4932_s1 + $0x344] ss:$8 sps:$4 sm:$0xff]  }
  0x2b   :  { %1664 = vmatpush2.bf16.msra.mxu0 %v2998_v42  ;;  %v3048_v42 = vld [vmem:[%s4932_s1 + $0x240] ss:$8 sps:$4 sm:$0xff]  }
  0x2c   :  { %1777 = vmatpush2.bf16.msra.mxu1 %v2999_v43  ;;  %1665 = vmatprep.subr.bf16.mxu0 %v3000_v44  ;;  %v286_v43 = vpack.c.bf16 %v117_v35, %v104_v34  ;;  %v288_v44 = vpack.c.bf16 %v119_v39, %v106_v38  ;;  %v184_v34 = vld [vmem:[%s4933_s0 + $0x428] sm:$0xff]  ;;  %v197_v35 = vld [vmem:[%s4933_s0 + $0x490] sm:$0xff] }
  0x2d   :  { %1778 = vmatprep.subr.bf16.mxu1 %v3002_v45  ;;  %v3051_v45 = vld [vmem:[%s4932_s1 + $0x340] ss:$8 sps:$4 sm:$0xff]  }
  0x2e   :  { %v3084_v38 = vld [vmem:[%s4932_s1 + $0x2e0] ss:$8 sps:$4 sm:$0xff]  }
  0x2f   :  { %1666 = vmatpush2.bf16.msra.mxu0 %v3004_v50  ;;  %v3056_v50 = vld [vmem:[%s4932_s1 + $0x234] ss:$8 sps:$4 sm:$0xff]  }
  0x30   :  { %1779 = vmatpush2.bf16.msra.mxu1 %v3005_v51  ;;  %1667 = vmatprep.subr.bf16.mxu0 %v3006_v52  ;;  %v3059_v51 = vld [vmem:[%s4932_s1 + $0x334] ss:$8 sps:$4 sm:$0xff]   ;;  %v3054_v52 = vld [vmem:[%s4932_s1 + $0x230] ss:$8 sps:$4 sm:$0xff]  }
  0x31   :  { %1780 = vmatprep.subr.bf16.mxu1 %v3008_v55  ;;  %v143_v55 = vld [vmem:[%s4933_s0 + $0x2e0] sm:$0xff] }
  0x33   :  { %1668 = vmatpush2.bf16.msra.mxu0 %v3010_v56  ;;  %v285_v56 = vpack.c.bf16 %v116_v47, %v103_v46  ;;  %v3092_v46 = vld [vmem:[%s4932_s1 + $0x2d4] ss:$8 sps:$4 sm:$0xff]  }
  0x34   :  { %1781 = vmatpush2.bf16.msra.mxu1 %v3011_v57  ;;  %1669 = vmatprep.subr.bf16.mxu0 %v3012_v58  ;;  %v287_v57 = vpack.c.bf16 %v118_v49, %v105_v48  ;;  %v132_v58 = vld [vmem:[%s4933_s0 + $0x288] sm:$0xff]  ;;  %v3095_v47 = vld [vmem:[%s4932_s1 + $0x3d4] ss:$8 sps:$4 sm:$0xff]   ;;  %v3090_v48 = vld [vmem:[%s4932_s1 + $0x2d0] ss:$8 sps:$4 sm:$0xff]  }
  0x35   :  { %1782 = vmatprep.subr.bf16.mxu1 %v3014_v59  ;;  %v145_v59 = vld [vmem:[%s4933_s0 + $0x2f0] sm:$0xff] }
  0x36   :  { %v3093_v49 = vld [vmem:[%s4932_s1 + $0x3d0] ss:$8 sps:$4 sm:$0xff]  }
  0x37   :  { %1670 = vmatpush2.bf16.msra.mxu0 %v3016_v60  ;;  %v3062_v60 = vld [vmem:[%s4932_s1 + $0x224] ss:$8 sps:$4 sm:$0xff]  }
  0x38   :  { %1783 = vmatpush2.bf16.msra.mxu1 %v3017_v61  ;;  %1671 = vmatprep.subr.bf16.mxu0 %v3018_v62  ;;  %v3065_v61 = vld [vmem:[%s4932_s1 + $0x324] ss:$8 sps:$4 sm:$0xff]   ;;  %v3060_v62 = vld [vmem:[%s4932_s1 + $0x220] ss:$8 sps:$4 sm:$0xff]  }
  0x39   :  { %1784 = vmatprep.subr.bf16.mxu1 %v3020_v63  ;;  %v299_v63 = vpack.c.bf16 %v143_v55, %v130_v54  ;;  %v210_v54 = vld [vmem:[%s4933_s0 + $0x4f8] sm:$0xff]  ;;  %v223_v55 = vld [vmem:[%s4933_s0 + $0x560] sm:$0xff] }
  0x3b   :  { %1672 = vmatpush2.bf16.msra.mxu0 %v3022_v0  ;;  %v301_v0 = vpack.c.bf16 %v145_v59, %v132_v58  ;;  %v3096_v58 = vld [vmem:[%s4932_s1 + $0x2c0] ss:$8 sps:$4 sm:$0xff]  }
  0x3c   :  { %1785 = vmatpush2.bf16.msra.mxu1 %v3023_v1  ;;  %1673 = vmatprep.subr.bf16.mxu0 %v3024_v2  ;;  %v3063_v1 = vld [vmem:[%s4932_s1 + $0x320] ss:$8 sps:$4 sm:$0xff]   ;;  %v129_v2 = vld [vmem:[%s4933_s0 + $0x270] sm:$0xff] }
  0x3d   :  { %1786 = vmatprep.subr.bf16.mxu1 %v3026_v3  ;;  %v142_v3 = vld [vmem:[%s4933_s0 + $0x2d8] sm:$0xff] }
  0x3f   :  { %1674 = vmatpush2.bf16.msra.mxu0 %v3028_v4  ;;  %v131_v4 = vld [vmem:[%s4933_s0 + $0x280] sm:$0xff] }
  0x40   :  { %1787 = vmatpush2.bf16.msra.mxu1 %v3029_v5  ;;  %1869 = vmatprep.subr.bf16.mxu0 %v3032_v10  ;;  %v144_v5 = vld [vmem:[%s4933_s0 + $0x2e8] sm:$0xff] }
  0x41   :  { %1982 = vmatprep.subr.bf16.mxu1 %v3035_v11  ;;  %v156_v10 = vld [vmem:[%s4933_s0 + $0x348] sm:$0xff]  ;;  %v169_v11 = vld [vmem:[%s4933_s0 + $0x3b0] sm:$0xff] }
  0x42   :  { %1676 = vmatmul.mubr.bf16.vlgmr.msra.gmra.mxu0 %v259_v16  ;;  %v3074_v16 = vld [vmem:[%s4932_s1 + $0x204] ss:$8 sps:$4 sm:$0xff]   ;;  %v312_v19 = vpack.c.bf16 %v169_v11, %v156_v10  ;;  %v249_v11 = vld [vmem:[%s4933_s0 + $0x630] sm:$0xff] }
  0x43   :  { %1789 = vmatmul.mubr.bf16.vlgmr.msra.gmra.mxu1 %v261_v17  ;;  %1870 = vmatpush1.bf16.msra.mxu0 %v3030_v12  ;;  %v298_v12 = vpack.c.bf16 %v142_v3, %v129_v2  ;;  %v3077_v17 = vld [vmem:[%s4932_s1 + $0x304] ss:$8 sps:$4 sm:$0xff]   ;;  %v3104_v2 = vld [vmem:[%s4932_s1 + $0x2b4] ss:$8 sps:$4 sm:$0xff]  }
  0x44   :  { %1983 = vmatpush1.bf16.msra.mxu1 %v3033_v13  ;;  %1871 = vmatprep.subr.bf16.mxu0 %v3038_v20  ;;  %v300_v13 = vpack.c.bf16 %v144_v5, %v131_v4  ;;  %v314_v20 = vpack.c.bf16 %v171_v15, %v158_v14  ;;  %v3107_v3 = vld [vmem:[%s4932_s1 + $0x3b4] ss:$8 sps:$4 sm:$0xff]   ;;  %v3102_v4 = vld [vmem:[%s4932_s1 + $0x2b0] ss:$8 sps:$4 sm:$0xff]   ;;  %v236_v10 = vld [vmem:[%s4933_s0 + $0x5c8] sm:$0xff] }
  0x45   :  { %1984 = vmatprep.subr.bf16.mxu1 %v3041_v21  ;;  %1685 = vmatprep.mubr.bf16.mxu0 %v273_v23  ;;  %v3075_v21 = vld [vmem:[%s4932_s1 + $0x300] ss:$8 sps:$4 sm:$0xff]   ;;  %v3105_v5 = vld [vmem:[%s4932_s1 + $0x3b0] ss:$8 sps:$4 sm:$0xff]  }
  0x46   :  { %1798 = vmatprep.mubr.bf16.mxu1 %v275_v24  ;;  %v168_v23 = vld [vmem:[%s4933_s0 + $0x3a8] sm:$0xff]  ;;  %v157_v24 = vld [vmem:[%s4933_s0 + $0x350] sm:$0xff] }
  0x47   :  { %1872 = vmatpush1.bf16.msra.mxu0 %v3036_v22  ;;  %v155_v22 = vld [vmem:[%s4933_s0 + $0x340] sm:$0xff] }
  0x48   :  { %1985 = vmatpush1.bf16.msra.mxu1 %v3039_v25  ;;  %1873 = vmatprep.subr.bf16.mxu0 %v3044_v30  ;;  %v170_v25 = vld [vmem:[%s4933_s0 + $0x3b8] sm:$0xff]  ;;  %v3108_v14 = vld [vmem:[%s4932_s1 + $0x2a0] ss:$8 sps:$4 sm:$0xff]  }
  0x49   :  { %1986 = vmatprep.subr.bf16.mxu1 %v3047_v31  ;;  %v182_v30 = vld [vmem:[%s4933_s0 + $0x418] sm:$0xff]  ;;  %v195_v31 = vld [vmem:[%s4933_s0 + $0x480] sm:$0xff] }
  0x4a   :  { %1686 = vmatmul.mubr.bf16.gmra.mxu0 %v272_v36  ;;  %v3086_v36 = vld [vmem:[%s4932_s1 + $0x2e4] ss:$8 sps:$4 sm:$0xff]   ;;  %v325_v39 = vpack.c.bf16 %v195_v31, %v182_v30  ;;  %v58_v30 = vld [vmem:[%s4933_s0 + $0x38] sm:$0xff] }
  0x4b   :  { %1799 = vmatmul.mubr.bf16.gmra.mxu1 %v274_v37  ;;  %1874 = vmatpush1.bf16.msra.mxu0 %v3042_v32  ;;  %v311_v32 = vpack.c.bf16 %v168_v23, %v155_v22  ;;  %v3089_v37 = vld [vmem:[%s4932_s1 + $0x3e4] ss:$8 sps:$4 sm:$0xff]   ;;  %v3116_v22 = vld [vmem:[%s4932_s1 + $0x294] ss:$8 sps:$4 sm:$0xff]  }
  0x4c   :  { %1987 = vmatpush1.bf16.msra.mxu1 %v3045_v33  ;;  %1875 = vmatprep.subr.bf16.mxu0 %v3050_v40  ;;  %v313_v33 = vpack.c.bf16 %v170_v25, %v157_v24  ;;  %v327_v40 = vpack.c.bf16 %v197_v35, %v184_v34  ;;  %v3119_v23 = vld [vmem:[%s4932_s1 + $0x394] ss:$8 sps:$4 sm:$0xff]   ;;  %v3114_v24 = vld [vmem:[%s4932_s1 + $0x290] ss:$8 sps:$4 sm:$0xff]   ;;  %v71_v31 = vld [vmem:[%s4933_s0 + $0xa0] sm:$0xff] }
  0x4d   :  { %1988 = vmatprep.subr.bf16.mxu1 %v3053_v41  ;;  %1695 = vmatprep.mubr.bf16.mxu0 %v286_v43  ;;  %v3087_v41 = vld [vmem:[%s4932_s1 + $0x3e0] ss:$8 sps:$4 sm:$0xff]   ;;  %v194_v43 = vld [vmem:[%s4933_s0 + $0x478] sm:$0xff] }
  0x4e   :  { %1808 = vmatprep.mubr.bf16.mxu1 %v288_v44  ;;  %v183_v44 = vld [vmem:[%s4933_s0 + $0x420] sm:$0xff]  ;;  %v3117_v25 = vld [vmem:[%s4932_s1 + $0x390] ss:$8 sps:$4 sm:$0xff]  }
  0x4f   :  { %1876 = vmatpush1.bf16.msra.mxu0 %v3048_v42  ;;  %v181_v42 = vld [vmem:[%s4933_s0 + $0x410] sm:$0xff]  ;;  %v3120_v34 = vld [vmem:[%s4932_s1 + $0x280] ss:$8 sps:$4 sm:$0xff]  }
  0x50   :  { %1989 = vmatpush1.bf16.msra.mxu1 %v3051_v45  ;;  %1877 = vmatprep.subr.bf16.mxu0 %v3056_v50  ;;  %v196_v45 = vld [vmem:[%s4933_s0 + $0x488] sm:$0xff] }
  0x51   :  { %1990 = vmatprep.subr.bf16.mxu1 %v3059_v51  ;;  %v208_v50 = vld [vmem:[%s4933_s0 + $0x4e8] sm:$0xff]  ;;  %v221_v51 = vld [vmem:[%s4933_s0 + $0x550] sm:$0xff] }
  0x52   :  { %1696 = vmatmul.mubr.bf16.gmra.mxu0 %v285_v56  ;;  %v3098_v56 = vld [vmem:[%s4932_s1 + $0x2c4] ss:$8 sps:$4 sm:$0xff]   ;;  %v338_v59 = vpack.c.bf16 %v221_v51, %v208_v50  ;;  %v97_v51 = vld [vmem:[%s4933_s0 + $0x170] sm:$0xff] }
  0x53   :  { %1809 = vmatmul.mubr.bf16.gmra.mxu1 %v287_v57  ;;  %1878 = vmatpush1.bf16.msra.mxu0 %v3054_v52  ;;  %v324_v52 = vpack.c.bf16 %v194_v43, %v181_v42  ;;  %v3101_v57 = vld [vmem:[%s4932_s1 + $0x3c4] ss:$8 sps:$4 sm:$0xff]   ;;  %v3128_v42 = vld [vmem:[%s4932_s1 + $0x474] ss:$8 sps:$4 sm:$0xff]  }
  0x54   :  { %1991 = vmatpush1.bf16.msra.mxu1 %v3057_v53  ;;  %1879 = vmatprep.subr.bf16.mxu0 %v3062_v60  ;;  %v326_v53 = vpack.c.bf16 %v196_v45, %v183_v44  ;;  %v340_v60 = vpack.c.bf16 %v223_v55, %v210_v54  ;;  %v3131_v43 = vld [vmem:[%s4932_s1 + $0x574] ss:$8 sps:$4 sm:$0xff]   ;;  %v3126_v44 = vld [vmem:[%s4932_s1 + $0x470] ss:$8 sps:$4 sm:$0xff]   ;;  %v84_v50 = vld [vmem:[%s4933_s0 + $0x108] sm:$0xff] }
  0x55   :  { %1992 = vmatprep.subr.bf16.mxu1 %v3065_v61  ;;  %1705 = vmatprep.mubr.bf16.mxu0 %v299_v63  ;;  %v3099_v61 = vld [vmem:[%s4932_s1 + $0x3c0] ss:$8 sps:$4 sm:$0xff]   ;;  %v3129_v45 = vld [vmem:[%s4932_s1 + $0x570] ss:$8 sps:$4 sm:$0xff]  }
  0x56   :  { %1818 = vmatprep.mubr.bf16.mxu1 %v301_v0  ;;  %v220_v63 = vld [vmem:[%s4933_s0 + $0x548] sm:$0xff]  ;;  %v209_v0 = vld [vmem:[%s4933_s0 + $0x4f0] sm:$0xff] }
  0x57   :  { %1880 = vmatpush1.bf16.msra.mxu0 %v3060_v62  ;;  %v207_v62 = vld [vmem:[%s4933_s0 + $0x4e0] sm:$0xff] }
  0x58   :  { %1993 = vmatpush1.bf16.msra.mxu1 %v3063_v1  ;;  %1881 = vmatprep.subr.bf16.mxu0 %v3068_v6  ;;  %v222_v1 = vld [vmem:[%s4933_s0 + $0x558] sm:$0xff]  ;;  %v3132_v54 = vld [vmem:[%s4932_s1 + $0x460] ss:$8 sps:$4 sm:$0xff]  }
  0x59   :  { %1994 = vmatprep.subr.bf16.mxu1 %v3071_v7  ;;  %v234_v6 = vld [vmem:[%s4933_s0 + $0x5b8] sm:$0xff]  ;;  %v247_v7 = vld [vmem:[%s4933_s0 + $0x620] sm:$0xff] }
  0x5a   :  { %1706 = vmatmul.mubr.bf16.gmra.mxu0 %v298_v12  ;;  %v3110_v12 = vld [vmem:[%s4932_s1 + $0x2a4] ss:$8 sps:$4 sm:$0xff]   ;;  %v351_v15 = vpack.c.bf16 %v247_v7, %v234_v6  ;;  %v110_v6 = vld [vmem:[%s4933_s0 + $0x1d8] sm:$0xff] }
  0x5b   :  { %1819 = vmatmul.mubr.bf16.gmra.mxu1 %v300_v13  ;;  %1882 = vmatpush1.bf16.msra.mxu0 %v3066_v8  ;;  %v337_v8 = vpack.c.bf16 %v220_v63, %v207_v62  ;;  %v3113_v13 = vld [vmem:[%s4932_s1 + $0x3a4] ss:$8 sps:$4 sm:$0xff]   ;;  %v3140_v62 = vld [vmem:[%s4932_s1 + $0x454] ss:$8 sps:$4 sm:$0xff]  }
  0x5c   :  { %1995 = vmatpush1.bf16.msra.mxu1 %v3069_v9  ;;  %1883 = vmatprep.subr.bf16.mxu0 %v3074_v16  ;;  %v339_v9 = vpack.c.bf16 %v222_v1, %v209_v0  ;;  %v353_v16 = vpack.c.bf16 %v249_v11, %v236_v10  ;;  %v3143_v63 = vld [vmem:[%s4932_s1 + $0x554] ss:$8 sps:$4 sm:$0xff]   ;;  %v3138_v0 = vld [vmem:[%s4932_s1 + $0x450] ss:$8 sps:$4 sm:$0xff]   ;;  %v123_v7 = vld [vmem:[%s4933_s0 + $0x240] sm:$0xff] }
  0x5d   :  { %1996 = vmatprep.subr.bf16.mxu1 %v3077_v17  ;;  %1715 = vmatprep.mubr.bf16.mxu0 %v312_v19  ;;  %v3111_v17 = vld [vmem:[%s4932_s1 + $0x3a0] ss:$8 sps:$4 sm:$0xff]   ;;  %v246_v19 = vld [vmem:[%s4933_s0 + $0x618] sm:$0xff] }
  0x5e   :  { %1828 = vmatprep.mubr.bf16.mxu1 %v314_v20  ;;  %v235_v20 = vld [vmem:[%s4933_s0 + $0x5c0] sm:$0xff]  ;;  %v3141_v1 = vld [vmem:[%s4932_s1 + $0x550] ss:$8 sps:$4 sm:$0xff]  }
  0x5f   :  { %1884 = vmatpush1.bf16.msra.mxu0 %v3072_v18  ;;  %v233_v18 = vld [vmem:[%s4933_s0 + $0x5b0] sm:$0xff]  ;;  %v3144_v10 = vld [vmem:[%s4932_s1 + $0x440] ss:$8 sps:$4 sm:$0xff]  }
  0x60   :  { %1997 = vmatpush1.bf16.msra.mxu1 %v3075_v21  ;;  %1885 = vmatprep.subr.bf16.mxu0 %v3080_v26  ;;  %v248_v21 = vld [vmem:[%s4933_s0 + $0x628] sm:$0xff] }
  0x61   :  { %1998 = vmatprep.subr.bf16.mxu1 %v3083_v27  ;;  %v56_v26 = vld [vmem:[%s4933_s0 + $0x28] sm:$0xff]  ;;  %v69_v27 = vld [vmem:[%s4933_s0 + $0x90] sm:$0xff] }
  0x62   :  { %1716 = vmatmul.mubr.bf16.gmra.mxu0 %v311_v32  ;;  %v3122_v32 = vld [vmem:[%s4932_s1 + $0x284] ss:$8 sps:$4 sm:$0xff]   ;;  %v264_v35 = vpack.c.bf16 %v69_v27, %v56_v26  ;;  %v149_v27 = vld [vmem:[%s4933_s0 + $0x310] sm:$0xff] }
  0x63   :  { %1829 = vmatmul.mubr.bf16.gmra.mxu1 %v313_v33  ;;  %1886 = vmatpush2.bf16.msra.mxu0 %v3078_v28  ;;  %v350_v28 = vpack.c.bf16 %v246_v19, %v233_v18  ;;  %v3125_v33 = vld [vmem:[%s4932_s1 + $0x384] ss:$8 sps:$4 sm:$0xff]   ;;  %v3152_v18 = vld [vmem:[%s4932_s1 + $0x434] ss:$8 sps:$4 sm:$0xff]  }
  0x64   :  { %1999 = vmatpush2.bf16.msra.mxu1 %v3081_v29  ;;  %1887 = vmatprep.subr.bf16.mxu0 %v3086_v36  ;;  %v352_v29 = vpack.c.bf16 %v248_v21, %v235_v20  ;;  %v266_v36 = vpack.c.bf16 %v71_v31, %v58_v30  ;;  %v3155_v19 = vld [vmem:[%s4932_s1 + $0x534] ss:$8 sps:$4 sm:$0xff]   ;;  %v3150_v20 = vld [vmem:[%s4932_s1 + $0x430] ss:$8 sps:$4 sm:$0xff]   ;;  %v136_v26 = vld [vmem:[%s4933_s0 + $0x2a8] sm:$0xff] }
  0x65   :  { %2000 = vmatprep.subr.bf16.mxu1 %v3089_v37  ;;  %1725 = vmatprep.mubr.bf16.mxu0 %v325_v39  ;;  %v3123_v37 = vld [vmem:[%s4932_s1 + $0x380] ss:$8 sps:$4 sm:$0xff]   ;;  %v3153_v21 = vld [vmem:[%s4932_s1 + $0x530] ss:$8 sps:$4 sm:$0xff]  }
  0x66   :  { %1838 = vmatprep.mubr.bf16.mxu1 %v327_v40  ;;  %v68_v39 = vld [vmem:[%s4933_s0 + $0x88] sm:$0xff]  ;;  %v57_v40 = vld [vmem:[%s4933_s0 + $0x30] sm:$0xff] }
  0x67   :  { %1888 = vmatpush2.bf16.msra.mxu0 %v3084_v38  ;;  %v55_v38 = vld [vmem:[%s4933_s0 + $0x20] sm:$0xff] }
  0x68   :  { %2001 = vmatpush2.bf16.msra.mxu1 %v3087_v41  ;;  %1889 = vmatprep.subr.bf16.mxu0 %v3092_v46  ;;  %v70_v41 = vld [vmem:[%s4933_s0 + $0x98] sm:$0xff]  ;;  %v3156_v30 = vld [vmem:[%s4932_s1 + $0x420] ss:$8 sps:$4 sm:$0xff]  }
  0x69   :  { %2002 = vmatprep.subr.bf16.mxu1 %v3095_v47  ;;  %v82_v46 = vld [vmem:[%s4933_s0 + $0xf8] sm:$0xff]  ;;  %v95_v47 = vld [vmem:[%s4933_s0 + $0x160] sm:$0xff] }
  0x6a   :  { %1726 = vmatmul.mubr.bf16.gmra.mxu0 %v324_v52  ;;  %v3134_v52 = vld [vmem:[%s4932_s1 + $0x464] ss:$8 sps:$4 sm:$0xff]   ;;  %v277_v55 = vpack.c.bf16 %v95_v47, %v82_v46  ;;  %v162_v46 = vld [vmem:[%s4933_s0 + $0x378] sm:$0xff] }
  0x6b   :  { %1839 = vmatmul.mubr.bf16.gmra.mxu1 %v326_v53  ;;  %1890 = vmatpush2.bf16.msra.mxu0 %v3090_v48  ;;  %v263_v48 = vpack.c.bf16 %v68_v39, %v55_v38  ;;  %v3137_v53 = vld [vmem:[%s4932_s1 + $0x564] ss:$8 sps:$4 sm:$0xff]   ;;  %v3164_v38 = vld [vmem:[%s4932_s1 + $0x414] ss:$8 sps:$4 sm:$0xff]  }
  0x6c   :  { %2003 = vmatpush2.bf16.msra.mxu1 %v3093_v49  ;;  %1891 = vmatprep.subr.bf16.mxu0 %v3098_v56  ;;  %v265_v49 = vpack.c.bf16 %v70_v41, %v57_v40  ;;  %v279_v56 = vpack.c.bf16 %v97_v51, %v84_v50  ;;  %v3167_v39 = vld [vmem:[%s4932_s1 + $0x514] ss:$8 sps:$4 sm:$0xff]   ;;  %v3162_v40 = vld [vmem:[%s4932_s1 + $0x410] ss:$8 sps:$4 sm:$0xff]   ;;  %v175_v47 = vld [vmem:[%s4933_s0 + $0x3e0] sm:$0xff] }
  0x6d   :  { %2004 = vmatprep.subr.bf16.mxu1 %v3101_v57  ;;  %1735 = vmatprep.mubr.bf16.mxu0 %v338_v59  ;;  %v3135_v57 = vld [vmem:[%s4932_s1 + $0x560] ss:$8 sps:$4 sm:$0xff]   ;;  %v94_v59 = vld [vmem:[%s4933_s0 + $0x158] sm:$0xff] }
  0x6e   :  { %1848 = vmatprep.mubr.bf16.mxu1 %v340_v60  ;;  %v83_v60 = vld [vmem:[%s4933_s0 + $0x100] sm:$0xff]  ;;  %v3165_v41 = vld [vmem:[%s4932_s1 + $0x510] ss:$8 sps:$4 sm:$0xff]  }
  0x6f   :  { %1892 = vmatpush2.bf16.msra.mxu0 %v3096_v58  ;;  %v81_v58 = vld [vmem:[%s4933_s0 + $0xf0] sm:$0xff]  ;;  %v3168_v50 = vld [vmem:[%s4932_s1 + $0x400] ss:$8 sps:$4 sm:$0xff]  }
  0x70   :  { %2005 = vmatpush2.bf16.msra.mxu1 %v3099_v61  ;;  %1893 = vmatprep.subr.bf16.mxu0 %v3104_v2  ;;  %v96_v61 = vld [vmem:[%s4933_s0 + $0x168] sm:$0xff] }
  0x71   :  { %2006 = vmatprep.subr.bf16.mxu1 %v3107_v3  ;;  %v108_v2 = vld [vmem:[%s4933_s0 + $0x1c8] sm:$0xff]  ;;  %v121_v3 = vld [vmem:[%s4933_s0 + $0x230] sm:$0xff] }
  0x72   :  { %1736 = vmatmul.mubr.bf16.gmra.mxu0 %v337_v8  ;;  %v3146_v8 = vld [vmem:[%s4932_s1 + $0x444] ss:$8 sps:$4 sm:$0xff]   ;;  %v290_v11 = vpack.c.bf16 %v121_v3, %v108_v2  ;;  %v201_v3 = vld [vmem:[%s4933_s0 + $0x4b0] sm:$0xff] }
  0x73   :  { %1849 = vmatmul.mubr.bf16.gmra.mxu1 %v339_v9  ;;  %1894 = vmatpush2.bf16.msra.mxu0 %v3102_v4  ;;  %v276_v4 = vpack.c.bf16 %v94_v59, %v81_v58  ;;  %v3149_v9 = vld [vmem:[%s4932_s1 + $0x544] ss:$8 sps:$4 sm:$0xff]   ;;  %v3176_v58 = vld [vmem:[%s4932_s1 + $0x4f4] ss:$8 sps:$4 sm:$0xff]  }
  0x74   :  { %2007 = vmatpush2.bf16.msra.mxu1 %v3105_v5  ;;  %1895 = vmatprep.subr.bf16.mxu0 %v3110_v12  ;;  %v278_v5 = vpack.c.bf16 %v96_v61, %v83_v60  ;;  %v292_v12 = vpack.c.bf16 %v123_v7, %v110_v6  ;;  %v3179_v59 = vld [vmem:[%s4932_s1 + $0x5f4] ss:$8 sps:$4 sm:$0xff]   ;;  %v3174_v60 = vld [vmem:[%s4932_s1 + $0x4f0] ss:$8 sps:$4 sm:$0xff]   ;;  %v188_v2 = vld [vmem:[%s4933_s0 + $0x448] sm:$0xff] }
  0x75   :  { %2008 = vmatprep.subr.bf16.mxu1 %v3113_v13  ;;  %1745 = vmatprep.mubr.bf16.mxu0 %v351_v15  ;;  %v3147_v13 = vld [vmem:[%s4932_s1 + $0x540] ss:$8 sps:$4 sm:$0xff]   ;;  %v3177_v61 = vld [vmem:[%s4932_s1 + $0x5f0] ss:$8 sps:$4 sm:$0xff]  }
  0x76   :  { %1858 = vmatprep.mubr.bf16.mxu1 %v353_v16  ;;  %v120_v15 = vld [vmem:[%s4933_s0 + $0x228] sm:$0xff]  ;;  %v109_v16 = vld [vmem:[%s4933_s0 + $0x1d0] sm:$0xff] }
  0x77   :  { %1896 = vmatpush2.bf16.msra.mxu0 %v3108_v14  ;;  %v107_v14 = vld [vmem:[%s4933_s0 + $0x1c0] sm:$0xff] }
  0x78   :  { %2009 = vmatpush2.bf16.msra.mxu1 %v3111_v17  ;;  %1897 = vmatprep.subr.bf16.mxu0 %v3116_v22  ;;  %v122_v17 = vld [vmem:[%s4933_s0 + $0x238] sm:$0xff]  ;;  %v3180_v6 = vld [vmem:[%s4932_s1 + $0x4e0] ss:$8 sps:$4 sm:$0xff]  }
  0x79   :  { %2010 = vmatprep.subr.bf16.mxu1 %v3119_v23  ;;  %v134_v22 = vld [vmem:[%s4933_s0 + $0x298] sm:$0xff]  ;;  %v147_v23 = vld [vmem:[%s4933_s0 + $0x300] sm:$0xff] }
  0x7a   :  { %1746 = vmatmul.mubr.bf16.gmra.mxu0 %v350_v28  ;;  %v3158_v28 = vld [vmem:[%s4932_s1 + $0x424] ss:$8 sps:$4 sm:$0xff]   ;;  %v303_v31 = vpack.c.bf16 %v147_v23, %v134_v22  ;;  %v214_v22 = vld [vmem:[%s4933_s0 + $0x518] sm:$0xff] }
  0x7b   :  { %1859 = vmatmul.mubr.bf16.gmra.mxu1 %v352_v29  ;;  %1898 = vmatpush2.bf16.msra.mxu0 %v3114_v24  ;;  %v289_v24 = vpack.c.bf16 %v120_v15, %v107_v14  ;;  %v3161_v29 = vld [vmem:[%s4932_s1 + $0x524] ss:$8 sps:$4 sm:$0xff]   ;;  %v3188_v14 = vld [vmem:[%s4932_s1 + $0x4d4] ss:$8 sps:$4 sm:$0xff]  }
  0x7c   :  { %2011 = vmatpush2.bf16.msra.mxu1 %v3117_v25  ;;  %1899 = vmatprep.subr.bf16.mxu0 %v3122_v32  ;;  %v291_v25 = vpack.c.bf16 %v122_v17, %v109_v16  ;;  %v305_v32 = vpack.c.bf16 %v149_v27, %v136_v26  ;;  %v3191_v15 = vld [vmem:[%s4932_s1 + $0x5d4] ss:$8 sps:$4 sm:$0xff]   ;;  %v3186_v16 = vld [vmem:[%s4932_s1 + $0x4d0] ss:$8 sps:$4 sm:$0xff]   ;;  %v227_v23 = vld [vmem:[%s4933_s0 + $0x580] sm:$0xff] }
  0x7d   :  { %2012 = vmatprep.subr.bf16.mxu1 %v3125_v33  ;;  %1901 = vmatprep.mubr.bf16.mxu0 %v264_v35  ;;  %v3159_v33 = vld [vmem:[%s4932_s1 + $0x520] ss:$8 sps:$4 sm:$0xff]   ;;  %v146_v35 = vld [vmem:[%s4933_s0 + $0x2f8] sm:$0xff] }
  0x7e   :  { %2014 = vmatprep.mubr.bf16.mxu1 %v266_v36  ;;  %v135_v36 = vld [vmem:[%s4933_s0 + $0x2a0] sm:$0xff]  ;;  %v3189_v17 = vld [vmem:[%s4932_s1 + $0x5d0] ss:$8 sps:$4 sm:$0xff]  }
  0x7f   :  { %1900 = vmatpush2.bf16.msra.mxu0 %v3120_v34  ;;  %v133_v34 = vld [vmem:[%s4933_s0 + $0x290] sm:$0xff]  ;;  %v3192_v26 = vld [vmem:[%s4932_s1 + $0x4c0] ss:$8 sps:$4 sm:$0xff]  }
  0x80   :  { %2013 = vmatpush2.bf16.msra.mxu1 %v3123_v37  ;;  %2095 = vmatprep.subr.bf16.mxu0 %v3128_v42  ;;  %v148_v37 = vld [vmem:[%s4933_s0 + $0x308] sm:$0xff] }
  0x81   :  { %2208 = vmatprep.subr.bf16.mxu1 %v3131_v43  ;;  %v160_v42 = vld [vmem:[%s4933_s0 + $0x368] sm:$0xff]  ;;  %v173_v43 = vld [vmem:[%s4933_s0 + $0x3d0] sm:$0xff] }
  0x82   :  { %1902 = vmatmul.mubr.bf16.vlgmr.msra.gmra.mxu0 %v263_v48  ;;  %v3170_v48 = vld [vmem:[%s4932_s1 + $0x404] ss:$8 sps:$4 sm:$0xff]   ;;  %v316_v51 = vpack.c.bf16 %v173_v43, %v160_v42  ;;  %v3198_v42 = vld [vmem:[%s4932_s1 + $0x4b0] ss:$8 sps:$4 sm:$0xff]  }
  0x83   :  { %2015 = vmatmul.mubr.bf16.vlgmr.msra.gmra.mxu1 %v265_v49  ;;  %2096 = vmatpush1.bf16.msra.mxu0 %v3126_v44  ;;  %v302_v44 = vpack.c.bf16 %v146_v35, %v133_v34  ;;  %v3173_v49 = vld [vmem:[%s4932_s1 + $0x504] ss:$8 sps:$4 sm:$0xff]   ;;  %v3200_v34 = vld [vmem:[%s4932_s1 + $0x4b4] ss:$8 sps:$4 sm:$0xff]   ;;  %v3201_v43 = vld [vmem:[%s4932_s1 + $0x5b0] ss:$8 sps:$4 sm:$0xff]  }
  0x84   :  { %2209 = vmatpush1.bf16.msra.mxu1 %v3129_v45  ;;  %2097 = vmatprep.subr.bf16.mxu0 %v3134_v52  ;;  %v304_v45 = vpack.c.bf16 %v148_v37, %v135_v36  ;;  %v318_v52 = vpack.c.bf16 %v175_v47, %v162_v46  ;;  %v3203_v35 = vld [vmem:[%s4932_s1 + $0x5b4] ss:$8 sps:$4 sm:$0xff]   ;;  %v3204_v46 = vld [vmem:[%s4932_s1 + $0x4a0] ss:$8 sps:$4 sm:$0xff]  }
  0x85   :  { %2210 = vmatprep.subr.bf16.mxu1 %v3137_v53  ;;  %1911 = vmatprep.mubr.bf16.mxu0 %v277_v55  ;;  %v3171_v53 = vld [vmem:[%s4932_s1 + $0x500] ss:$8 sps:$4 sm:$0xff]   ;;  %v238_v36 = vld [vmem:[%s4933_s0 + $0x5d8] sm:$0xff] }
  0x86   :  { %2024 = vmatprep.mubr.bf16.mxu1 %v279_v56  ;;  %v172_v55 = vld [vmem:[%s4933_s0 + $0x3c8] sm:$0xff]  ;;  %v161_v56 = vld [vmem:[%s4933_s0 + $0x370] sm:$0xff] }
  0x87   :  { %2098 = vmatpush1.bf16.msra.mxu0 %v3132_v54  ;;  %v159_v54 = vld [vmem:[%s4933_s0 + $0x360] sm:$0xff] }
  0x88   :  { %2211 = vmatpush1.bf16.msra.mxu1 %v3135_v57  ;;  %2099 = vmatprep.subr.bf16.mxu0 %v3140_v62  ;;  %v174_v57 = vld [vmem:[%s4933_s0 + $0x3d8] sm:$0xff] }
  0x89   :  { %2212 = vmatprep.subr.bf16.mxu1 %v3143_v63  ;;  %v186_v62 = vld [vmem:[%s4933_s0 + $0x438] sm:$0xff]  ;;  %v199_v63 = vld [vmem:[%s4933_s0 + $0x4a0] sm:$0xff] }
  0x8a   :  { %1912 = vmatmul.mubr.bf16.gmra.mxu0 %v276_v4  ;;  %v3182_v4 = vld [vmem:[%s4932_s1 + $0x4e4] ss:$8 sps:$4 sm:$0xff]   ;;  %v329_v7 = vpack.c.bf16 %v199_v63, %v186_v62  ;;  %v3210_v62 = vld [vmem:[%s4932_s1 + $0x490] ss:$8 sps:$4 sm:$0xff]  }
  0x8b   :  { %2025 = vmatmul.mubr.bf16.gmra.mxu1 %v278_v5  ;;  %2100 = vmatpush1.bf16.msra.mxu0 %v3138_v0  ;;  %v315_v0 = vpack.c.bf16 %v172_v55, %v159_v54  ;;  %v3185_v5 = vld [vmem:[%s4932_s1 + $0x5e4] ss:$8 sps:$4 sm:$0xff]   ;;  %v3212_v54 = vld [vmem:[%s4932_s1 + $0x494] ss:$8 sps:$4 sm:$0xff]   ;;  %v3213_v63 = vld [vmem:[%s4932_s1 + $0x590] ss:$8 sps:$4 sm:$0xff]  }
  0x8c   :  { %2213 = vmatpush1.bf16.msra.mxu1 %v3141_v1  ;;  %2101 = vmatprep.subr.bf16.mxu0 %v3146_v8  ;;  %v317_v1 = vpack.c.bf16 %v174_v57, %v161_v56  ;;  %v331_v8 = vpack.c.bf16 %v201_v3, %v188_v2  ;;  %v3215_v55 = vld [vmem:[%s4932_s1 + $0x594] ss:$8 sps:$4 sm:$0xff]   ;;  %v60_v56 = vld [vmem:[%s4933_s0 + $0x48] sm:$0xff] }
  0x8d   :  { %2214 = vmatprep.subr.bf16.mxu1 %v3149_v9  ;;  %1921 = vmatprep.mubr.bf16.mxu0 %v290_v11  ;;  %v3183_v9 = vld [vmem:[%s4932_s1 + $0x5e0] ss:$8 sps:$4 sm:$0xff]   ;;  %v198_v11 = vld [vmem:[%s4933_s0 + $0x498] sm:$0xff] }
  0x8e   :  { %2034 = vmatprep.mubr.bf16.mxu1 %v292_v12  ;;  %v187_v12 = vld [vmem:[%s4933_s0 + $0x440] sm:$0xff] }
  0x8f   :  { %2102 = vmatpush1.bf16.msra.mxu0 %v3144_v10  ;;  %v185_v10 = vld [vmem:[%s4933_s0 + $0x430] sm:$0xff]  ;;  %v3216_v2 = vld [vmem:[%s4932_s1 + $0x480] ss:$8 sps:$4 sm:$0xff]  }
  0x90   :  { %2215 = vmatpush1.bf16.msra.mxu1 %v3147_v13  ;;  %2103 = vmatprep.subr.bf16.mxu0 %v3152_v18  ;;  %v200_v13 = vld [vmem:[%s4933_s0 + $0x4a8] sm:$0xff] }
  0x91   :  { %2216 = vmatprep.subr.bf16.mxu1 %v3155_v19  ;;  %v212_v18 = vld [vmem:[%s4933_s0 + $0x508] sm:$0xff]  ;;  %v225_v19 = vld [vmem:[%s4933_s0 + $0x570] sm:$0xff] }
  0x92   :  { %1922 = vmatmul.mubr.bf16.gmra.mxu0 %v289_v24  ;;  %v3194_v24 = vld [vmem:[%s4932_s1 + $0x4c4] ss:$8 sps:$4 sm:$0xff]   ;;  %v342_v27 = vpack.c.bf16 %v225_v19, %v212_v18 }
  0x93   :  { %2035 = vmatmul.mubr.bf16.gmra.mxu1 %v291_v25  ;;  %2104 = vmatpush1.bf16.msra.mxu0 %v3150_v20  ;;  %v328_v20 = vpack.c.bf16 %v198_v11, %v185_v10  ;;  %v3197_v25 = vld [vmem:[%s4932_s1 + $0x5c4] ss:$8 sps:$4 sm:$0xff]   ;;  %v3224_v10 = vld [vmem:[%s4932_s1 + $0x674] ss:$8 sps:$4 sm:$0xff]  }
  0x94   :  { %2217 = vmatpush1.bf16.msra.mxu1 %v3153_v21  ;;  %2105 = vmatprep.subr.bf16.mxu0 %v3158_v28  ;;  %v330_v21 = vpack.c.bf16 %v200_v13, %v187_v12  ;;  %v344_v28 = vpack.c.bf16 %v227_v23, %v214_v22  ;;  %v86_v11 = vld [vmem:[%s4933_s0 + $0x118] sm:$0xff]  ;;  %v99_v12 = vld [vmem:[%s4933_s0 + $0x180] sm:$0xff]  ;;  %v88_v13 = vld [vmem:[%s4933_s0 + $0x128] sm:$0xff] }
  0x95   :  { %2218 = vmatprep.subr.bf16.mxu1 %v3161_v29  ;;  %1931 = vmatprep.mubr.bf16.mxu0 %v303_v31  ;;  %v3195_v29 = vld [vmem:[%s4932_s1 + $0x5c0] ss:$8 sps:$4 sm:$0xff]   ;;  %v281_v18 = vpack.c.bf16 %v99_v12, %v86_v11  ;;  %v3227_v23 = vld [vmem:[%s4932_s1 + $0x664] ss:$8 sps:$4 sm:$0xff]   ;;  %v205_v12 = vld [vmem:[%s4933_s0 + $0x4d0] sm:$0xff] }
  0x96   :  { %2044 = vmatprep.mubr.bf16.mxu1 %v305_v32  ;;  %v224_v31 = vld [vmem:[%s4933_s0 + $0x568] sm:$0xff]  ;;  %v213_v32 = vld [vmem:[%s4933_s0 + $0x510] sm:$0xff]  ;;  %v87_v22 = vld [vmem:[%s4933_s0 + $0x120] sm:$0xff] }
  0x97   :  { %2106 = vmatpush1.bf16.msra.mxu0 %v3156_v30  ;;  %v211_v30 = vld [vmem:[%s4933_s0 + $0x500] sm:$0xff]  ;;  %v192_v11 = vld [vmem:[%s4933_s0 + $0x468] sm:$0xff] }
  0x98   :  { %2219 = vmatpush1.bf16.msra.mxu1 %v3159_v33  ;;  %2107 = vmatprep.subr.bf16.mxu0 %v3164_v38  ;;  %v226_v33 = vld [vmem:[%s4933_s0 + $0x578] sm:$0xff]  ;;  %v341_v37 = vpack.c.bf16 %v224_v31, %v211_v30 }
  0x99   :  { %2220 = vmatprep.subr.bf16.mxu1 %v3167_v39  ;;  %v343_v38 = vpack.c.bf16 %v226_v33, %v213_v32  ;;  %v251_v39 = vld [vmem:[%s4933_s0 + $0x640] sm:$0xff]  ;;  %v3230_v30 = vld [vmem:[%s4932_s1 + $0x654] ss:$8 sps:$4 sm:$0xff]  }
  0x9a   :  { %1932 = vmatmul.mubr.bf16.gmra.mxu0 %v302_v44  ;;  %v3206_v44 = vld [vmem:[%s4932_s1 + $0x4a4] ss:$8 sps:$4 sm:$0xff]   ;;  %v355_v47 = vpack.c.bf16 %v251_v39, %v238_v36  ;;  %v113_v39 = vld [vmem:[%s4933_s0 + $0x1f0] sm:$0xff] }
  0x9b   :  { %2045 = vmatmul.mubr.bf16.gmra.mxu1 %v304_v45  ;;  %2108 = vmatpush1.bf16.msra.mxu0 %v3162_v40  ;;  %v240_v40 = vld [vmem:[%s4933_s0 + $0x5e8] sm:$0xff] }
  0x9c   :  { %2221 = vmatpush1.bf16.msra.mxu1 %v3165_v41  ;;  %2109 = vmatprep.subr.bf16.mxu0 %v3170_v48  ;;  %v253_v41 = vld [vmem:[%s4933_s0 + $0x650] sm:$0xff]  ;;  %v3209_v45 = vld [vmem:[%s4932_s1 + $0x5a4] ss:$8 sps:$4 sm:$0xff]  }
  0x9d   :  { %2222 = vmatprep.subr.bf16.mxu1 %v3173_v49  ;;  %1941 = vmatprep.mubr.bf16.mxu0 %v316_v51  ;;  %v357_v48 = vpack.c.bf16 %v253_v41, %v240_v40  ;;  %v3207_v49 = vld [vmem:[%s4932_s1 + $0x5a0] ss:$8 sps:$4 sm:$0xff]   ;;  %v250_v51 = vld [vmem:[%s4933_s0 + $0x638] sm:$0xff]  ;;  %v3233_v36 = vld [vmem:[%s4932_s1 + $0x644] ss:$8 sps:$4 sm:$0xff]  }
  0x9e   :  { %2054 = vmatprep.mubr.bf16.mxu1 %v318_v52  ;;  %v239_v52 = vld [vmem:[%s4933_s0 + $0x5e0] sm:$0xff]  ;;  %v126_v40 = vld [vmem:[%s4933_s0 + $0x258] sm:$0xff] }
  0x9f   :  { %2110 = vmatpush1.bf16.msra.mxu0 %v3168_v50  ;;  %v237_v50 = vld [vmem:[%s4933_s0 + $0x5d0] sm:$0xff]  ;;  %v138_v41 = vld [vmem:[%s4933_s0 + $0x2b8] sm:$0xff] }
  0xa0   :  { %2223 = vmatpush1.bf16.msra.mxu1 %v3171_v53  ;;  %2111 = vmatprep.subr.bf16.mxu0 %v3176_v58  ;;  %v252_v53 = vld [vmem:[%s4933_s0 + $0x648] sm:$0xff]  ;;  %v354_v57 = vpack.c.bf16 %v250_v51, %v237_v50  ;;  %v3234_v51 = vld [vmem:[%s4932_s1 + $0x630] ss:$8 sps:$4 sm:$0xff]  }
  0xa1   :  { %2224 = vmatprep.subr.bf16.mxu1 %v3179_v59  ;;  %v356_v58 = vpack.c.bf16 %v252_v53, %v239_v52  ;;  %v73_v59 = vld [vmem:[%s4933_s0 + $0xb0] sm:$0xff]  ;;  %v3239_v52 = vld [vmem:[%s4932_s1 + $0x624] ss:$8 sps:$4 sm:$0xff]  }
  0xa2   :  { %1942 = vmatmul.mubr.bf16.gmra.mxu0 %v315_v0  ;;  %v3218_v0 = vld [vmem:[%s4932_s1 + $0x484] ss:$8 sps:$4 sm:$0xff]   ;;  %v268_v3 = vpack.c.bf16 %v73_v59, %v60_v56  ;;  %v137_v53 = vld [vmem:[%s4933_s0 + $0x2b0] sm:$0xff]  ;;  %v166_v59 = vld [vmem:[%s4933_s0 + $0x398] sm:$0xff] }
  0xa3   :  { %2055 = vmatmul.mubr.bf16.gmra.mxu1 %v317_v1  ;;  %2112 = vmatpush2.bf16.msra.mxu0 %v3174_v60  ;;  %v62_v60 = vld [vmem:[%s4933_s0 + $0x58] sm:$0xff]  ;;  %v3221_v1 = vld [vmem:[%s4932_s1 + $0x584] ss:$8 sps:$4 sm:$0xff]  }
  0xa4   :  { %2225 = vmatpush2.bf16.msra.mxu1 %v3177_v61  ;;  %2113 = vmatprep.subr.bf16.mxu0 %v3182_v4  ;;  %v75_v61 = vld [vmem:[%s4933_s0 + $0xc0] sm:$0xff]  ;;  %v152_v56 = vld [vmem:[%s4933_s0 + $0x328] sm:$0xff] }
  0xa5   :  { %2226 = vmatprep.subr.bf16.mxu1 %v3185_v5  ;;  %1951 = vmatprep.mubr.bf16.mxu0 %v329_v7  ;;  %v270_v4 = vpack.c.bf16 %v75_v61, %v62_v60  ;;  %v3219_v5 = vld [vmem:[%s4932_s1 + $0x580] ss:$8 sps:$4 sm:$0xff]  }
  0xa6   :  { %2064 = vmatprep.mubr.bf16.mxu1 %v331_v8  ;;  %v72_v7 = vld [vmem:[%s4933_s0 + $0xa8] sm:$0xff]  ;;  %v61_v8 = vld [vmem:[%s4933_s0 + $0x50] sm:$0xff]  ;;  %v179_v60 = vld [vmem:[%s4933_s0 + $0x400] sm:$0xff] }
  0xa7   :  { %2114 = vmatpush2.bf16.msra.mxu0 %v3180_v6  ;;  %v59_v6 = vld [vmem:[%s4933_s0 + $0x40] sm:$0xff] }
  0xa8   :  { %2227 = vmatpush2.bf16.msra.mxu1 %v3183_v9  ;;  %2115 = vmatprep.subr.bf16.mxu0 %v3188_v14  ;;  %v74_v9 = vld [vmem:[%s4933_s0 + $0xb8] sm:$0xff]  ;;  %v101_v14 = vld [vmem:[%s4933_s0 + $0x190] sm:$0xff]  ;;  %v3237_v61 = vld [vmem:[%s4932_s1 + $0x620] ss:$8 sps:$4 sm:$0xff]  }
  0xa9   :  { %2228 = vmatprep.subr.bf16.mxu1 %v3191_v15  ;;  %v267_v15 = vpack.c.bf16 %v72_v7, %v59_v6  ;;  %v283_v19 = vpack.c.bf16 %v101_v14, %v88_v13  ;;  %v176_v6 = vld [vmem:[%s4933_s0 + $0x3e8] sm:$0xff]  ;;  %v165_v7 = vld [vmem:[%s4933_s0 + $0x390] sm:$0xff] }
  0xaa   :  { %1952 = vmatmul.mubr.bf16.gmra.mxu0 %v328_v20  ;;  %v85_v20 = vld [vmem:[%s4933_s0 + $0x110] sm:$0xff]  ;;  %v3243_v13 = vld [vmem:[%s4932_s1 + $0x600] ss:$8 sps:$4 sm:$0xff]  }
  0xab   :  { %2065 = vmatmul.mubr.bf16.gmra.mxu1 %v330_v21  ;;  %2116 = vmatpush2.bf16.msra.mxu0 %v3186_v16  ;;  %v269_v16 = vpack.c.bf16 %v74_v9, %v61_v8  ;;  %v98_v21 = vld [vmem:[%s4933_s0 + $0x178] sm:$0xff] }
  0xac   :  { %2229 = vmatpush2.bf16.msra.mxu1 %v3189_v17  ;;  %2117 = vmatprep.subr.bf16.mxu0 %v3194_v24  ;;  %v3222_v17 = vld [vmem:[%s4932_s1 + $0x670] ss:$8 sps:$4 sm:$0xff]   ;;  %v100_v24 = vld [vmem:[%s4933_s0 + $0x188] sm:$0xff]  ;;  %v280_v31 = vpack.c.bf16 %v98_v21, %v85_v20  ;;  %v191_v20 = vld [vmem:[%s4933_s0 + $0x460] sm:$0xff] }
  0xad   :  { %2230 = vmatprep.subr.bf16.mxu1 %v3197_v25  ;;  %1961 = vmatprep.mubr.bf16.mxu0 %v342_v27  ;;  %v3225_v25 = vld [vmem:[%s4932_s1 + $0x660] ss:$8 sps:$4 sm:$0xff]   ;;  %v125_v27 = vld [vmem:[%s4933_s0 + $0x250] sm:$0xff]  ;;  %v282_v32 = vpack.c.bf16 %v100_v24, %v87_v22  ;;  %v178_v8 = vld [vmem:[%s4933_s0 + $0x3f8] sm:$0xff] }
  0xae   :  { %2074 = vmatprep.mubr.bf16.mxu1 %v344_v28  ;;  %v114_v28 = vld [vmem:[%s4933_s0 + $0x1f8] sm:$0xff]  ;;  %v204_v21 = vld [vmem:[%s4933_s0 + $0x4c8] sm:$0xff] }
  0xaf   :  { %2118 = vmatpush2.bf16.msra.mxu0 %v3192_v26  ;;  %v112_v26 = vld [vmem:[%s4933_s0 + $0x1e8] sm:$0xff]  ;;  %v190_v9 = vld [vmem:[%s4933_s0 + $0x458] sm:$0xff] }
  0xb0   :  { %2231 = vmatpush2.bf16.msra.mxu1 %v3195_v29  ;;  %2119 = vmatprep.subr.bf16.mxu0 %v3200_v34  ;;  %v127_v29 = vld [vmem:[%s4933_s0 + $0x260] sm:$0xff]  ;;  %v294_v33 = vpack.c.bf16 %v125_v27, %v112_v26  ;;  %v216_v22 = vld [vmem:[%s4933_s0 + $0x528] sm:$0xff]  ;;  %v218_v24 = vld [vmem:[%s4933_s0 + $0x538] sm:$0xff]  ;;  %v334_v27 = vpack.c.bf16 %v204_v21, %v191_v20 }
  0xb1   :  { %2232 = vmatprep.subr.bf16.mxu1 %v3203_v35  ;;  %v296_v34 = vpack.c.bf16 %v127_v29, %v114_v28  ;;  %v3228_v35 = vld [vmem:[%s4932_s1 + $0x650] ss:$8 sps:$4 sm:$0xff]  }
  0xb2   :  { %1962 = vmatmul.mubr.bf16.gmra.mxu0 %v341_v37  ;;  %v111_v37 = vld [vmem:[%s4933_s0 + $0x1e0] sm:$0xff] }
  0xb3   :  { %2075 = vmatmul.mubr.bf16.gmra.mxu1 %v343_v38  ;;  %2120 = vmatpush2.bf16.msra.mxu0 %v3198_v42  ;;  %v124_v38 = vld [vmem:[%s4933_s0 + $0x248] sm:$0xff]  ;;  %v151_v42 = vld [vmem:[%s4933_s0 + $0x320] sm:$0xff] }
  0xb4   :  { %2233 = vmatpush2.bf16.msra.mxu1 %v3201_v43  ;;  %2121 = vmatprep.subr.bf16.mxu0 %v3206_v44  ;;  %v140_v43 = vld [vmem:[%s4933_s0 + $0x2c8] sm:$0xff]  ;;  %v153_v44 = vld [vmem:[%s4933_s0 + $0x330] sm:$0xff] }
  0xb5   :  { %2234 = vmatprep.subr.bf16.mxu1 %v3209_v45  ;;  %1971 = vmatprep.mubr.bf16.mxu0 %v355_v47  ;;  %v3231_v45 = vld [vmem:[%s4932_s1 + $0x640] ss:$8 sps:$4 sm:$0xff]   ;;  %v293_v47 = vpack.c.bf16 %v124_v38, %v111_v37  ;;  %v309_v50 = vpack.c.bf16 %v153_v44, %v140_v43  ;;  %v257_v37 = vld [vmem:[%s4933_s0 + $0x670] sm:$0xff]  ;;  %v254_v43 = vld [vmem:[%s4933_s0 + $0x658] sm:$0xff] }
  0xb6   :  { %2084 = vmatprep.mubr.bf16.mxu1 %v357_v48  ;;  %v295_v48 = vpack.c.bf16 %v126_v40, %v113_v39  ;;  %v243_v44 = vld [vmem:[%s4933_s0 + $0x600] sm:$0xff] }
  0xb7   :  { %2122 = vmatpush2.bf16.msra.mxu0 %v3204_v46  ;;  %v3236_v46 = vld [vmem:[%s4932_s1 + $0x634] ss:$8 sps:$4 sm:$0xff]  }
  0xb8   :  { %2235 = vmatpush2.bf16.msra.mxu1 %v3207_v49  ;;  %2123 = vmatprep.subr.bf16.mxu0 %v3212_v54  ;;  %v307_v49 = vpack.c.bf16 %v151_v42, %v138_v41  ;;  %v150_v54 = vld [vmem:[%s4933_s0 + $0x318] sm:$0xff]  ;;  %v241_v42 = vld [vmem:[%s4933_s0 + $0x5f0] sm:$0xff] }
  0xb9   :  { %2236 = vmatprep.subr.bf16.mxu1 %v3215_v55  ;;  %v139_v55 = vld [vmem:[%s4933_s0 + $0x2c0] sm:$0xff] }
  0xba   :  { %1972 = vmatmul.mubr.bf16.gmra.mxu0 %v354_v57  ;;  %v164_v57 = vld [vmem:[%s4933_s0 + $0x388] sm:$0xff] }
  0xbb   :  { %2085 = vmatmul.mubr.bf16.gmra.mxu1 %v356_v58  ;;  %2124 = vmatpush2.bf16.msra.mxu0 %v3210_v62  ;;  %v177_v58 = vld [vmem:[%s4933_s0 + $0x3f0] sm:$0xff] }
  0xbc   :  { %2237 = vmatpush2.bf16.msra.mxu1 %v3213_v63  ;;  %2125 = vmatprep.subr.bf16.mxu0 %v3218_v0  ;;  %v3242_v62 = vld [vmem:[%s4932_s1 + $0x614] ss:$8 sps:$4 sm:$0xff]   ;;  %v306_v63 = vpack.c.bf16 %v150_v54, %v137_v53  ;;  %v308_v0 = vpack.c.bf16 %v152_v56, %v139_v55 }
  0xbd   :  { %2238 = vmatprep.subr.bf16.mxu1 %v3221_v1  ;;  %2127 = vmatprep.mubr.bf16.mxu0 %v268_v3  ;;  %v320_v1 = vpack.c.bf16 %v177_v58, %v164_v57  ;;  %v3240_v3 = vld [vmem:[%s4932_s1 + $0x610] ss:$8 sps:$4 sm:$0xff]  }
  0xbe   :  { %2240 = vmatprep.mubr.bf16.mxu1 %v270_v4  ;;  %v3245_v4 = vld [vmem:[%s4932_s1 + $0x604] ss:$8 sps:$4 sm:$0xff]   ;;  %v89_v57 = vld [vmem:[%s4933_s0 + $0x130] sm:$0xff] }
  0xbf   :  { %2126 = vmatpush2.bf16.msra.mxu0 %v3216_v2  ;;  %v322_v2 = vpack.c.bf16 %v179_v60, %v166_v59  ;;  %v102_v59 = vld [vmem:[%s4933_s0 + $0x198] sm:$0xff]  ;;  %v193_v60 = vld [vmem:[%s4933_s0 + $0x470] sm:$0xff] }
  0xc0   :  { %2239 = vmatpush2.bf16.msra.mxu1 %v3219_v5  ;;  %2321 = vmatprep.subr.bf16.mxu0 %v3224_v10  ;;  %v163_v5 = vld [vmem:[%s4933_s0 + $0x380] sm:$0xff] }
  0xc1   :  { %2917 = vmatprep.subr.bf16.mxu1 %v3224_v10  ;;  %v203_v10 = vld [vmem:[%s4933_s0 + $0x4c0] sm:$0xff]  ;;  %v319_v14 = vpack.c.bf16 %v176_v6, %v163_v5 }
  0xc2   :  { %2128 = vmatmul.mubr.bf16.vlgmr.msra.gmra.mxu0 %v267_v15  ;;  %v321_v15 = vpack.c.bf16 %v178_v8, %v165_v7 }
  0xc3   :  { %2241 = vmatmul.mubr.bf16.vlgmr.msra.gmra.mxu1 %v269_v16  ;;  %2322 = vmatpush1.bf16.msra.mxu0 %v3222_v17  ;;  %v333_v16 = vpack.c.bf16 %v203_v10, %v190_v9 }
  0xc4   :  { %2925 = vmatpush1.bf16.msra.mxu1 %v3222_v17  ;;  %2137 = vmatprep.mubr.bf16.mxu0 %v281_v18  ;;  %v335_v17 = vpack.c.bf16 %v205_v12, %v192_v11  ;;  %v189_v18 = vld [vmem:[%s4933_s0 + $0x450] sm:$0xff]  ;;  %v115_v11 = vld [vmem:[%s4933_s0 + $0x200] sm:$0xff] }
  0xc5   :  { %2250 = vmatprep.mubr.bf16.mxu1 %v283_v19  ;;  %2323 = vmatprep.subr.bf16.mxu0 %v3227_v23  ;;  %v202_v19 = vld [vmem:[%s4933_s0 + $0x4b8] sm:$0xff] }
  0xc6   :  { %2918 = vmatprep.subr.bf16.mxu1 %v3227_v23  ;;  %v229_v23 = vld [vmem:[%s4933_s0 + $0x590] sm:$0xff]  ;;  %v332_v26 = vpack.c.bf16 %v202_v19, %v189_v18 }
  0xc7   :  { %2324 = vmatpush1.bf16.msra.mxu0 %v3225_v25  ;;  %v346_v28 = vpack.c.bf16 %v229_v23, %v216_v22 }
  0xc8   :  { %2926 = vmatpush1.bf16.msra.mxu1 %v3225_v25  ;;  %2325 = vmatprep.subr.bf16.mxu0 %v3230_v30  ;;  %v231_v25 = vld [vmem:[%s4933_s0 + $0x5a0] sm:$0xff] }
  0xc9   :  { %2919 = vmatprep.subr.bf16.mxu1 %v3230_v30  ;;  %v348_v29 = vpack.c.bf16 %v231_v25, %v218_v24  ;;  %v215_v30 = vld [vmem:[%s4933_s0 + $0x520] sm:$0xff] }
  0xca   :  { %2138 = vmatmul.mubr.bf16.gmra.mxu0 %v280_v31  ;;  %v228_v31 = vld [vmem:[%s4933_s0 + $0x588] sm:$0xff] }
  0xcb   :  { %2251 = vmatmul.mubr.bf16.gmra.mxu1 %v282_v32  ;;  %2147 = vmatprep.mubr.bf16.mxu0 %v294_v33  ;;  %v217_v32 = vld [vmem:[%s4933_s0 + $0x530] sm:$0xff]  ;;  %v230_v33 = vld [vmem:[%s4933_s0 + $0x598] sm:$0xff]  ;;  %v345_v38 = vpack.c.bf16 %v228_v31, %v215_v30 }
  0xcc   :  { %2260 = vmatprep.mubr.bf16.mxu1 %v296_v34  ;;  %2326 = vmatpush1.bf16.msra.mxu0 %v3228_v35  ;;  %v242_v34 = vld [vmem:[%s4933_s0 + $0x5f8] sm:$0xff]  ;;  %v347_v39 = vpack.c.bf16 %v230_v33, %v217_v32  ;;  %v245_v32 = vld [vmem:[%s4933_s0 + $0x610] sm:$0xff] }
  0xcd   :  { %2927 = vmatpush1.bf16.msra.mxu1 %v3228_v35  ;;  %2327 = vmatprep.subr.bf16.mxu0 %v3233_v36  ;;  %v255_v35 = vld [vmem:[%s4933_s0 + $0x660] sm:$0xff]  ;;  %v154_v31 = vld [vmem:[%s4933_s0 + $0x338] sm:$0xff] }
  0xce   :  { %2920 = vmatprep.subr.bf16.mxu1 %v3233_v36  ;;  %v244_v36 = vld [vmem:[%s4933_s0 + $0x608] sm:$0xff]  ;;  %v359_v40 = vpack.c.bf16 %v255_v35, %v242_v34  ;;  %v258_v33 = vld [vmem:[%s4933_s0 + $0x678] sm:$0xff] }
  0xcf   :  { %v361_v41 = vpack.c.bf16 %v257_v37, %v244_v36 }
  0xd0   :  { %2328 = vmatpush1.bf16.msra.mxu0 %v3231_v45 }
  0xd1   :  { %2928 = vmatpush1.bf16.msra.mxu1 %v3231_v45  ;;  %2329 = vmatprep.subr.bf16.mxu0 %v3236_v46  ;;  %v256_v45 = vld [vmem:[%s4933_s0 + $0x668] sm:$0xff] }
  0xd2   :  { %2921 = vmatprep.subr.bf16.mxu1 %v3236_v46  ;;  %2148 = vmatmul.mubr.bf16.gmra.mxu0 %v293_v47  ;;  %v358_v46 = vpack.c.bf16 %v254_v43, %v241_v42  ;;  %v360_v47 = vpack.c.bf16 %v256_v45, %v243_v44 }
  0xd3   :  { %2261 = vmatmul.mubr.bf16.gmra.mxu1 %v295_v48  ;;  %2157 = vmatprep.mubr.bf16.mxu0 %v307_v49  ;;  %v63_v48 = vld [vmem:[%s4933_s0 + $0x60] sm:$0xff]  ;;  %v3246_v49 = vmov 0  }
  0xd4   :  { %2270 = vmatprep.mubr.bf16.mxu1 %v309_v50  ;;  %2330 = vmatpush1.bf16.msra.mxu0 %v3234_v51  ;;  %v76_v50 = vld [vmem:[%s4933_s0 + $0xc8] sm:$0xff] }
  0xd5   :  { %2929 = vmatpush1.bf16.msra.mxu1 %v3234_v51  ;;  %2331 = vmatprep.subr.bf16.mxu0 %v3239_v52  ;;  %v167_v51 = vld [vmem:[%s4933_s0 + $0x3a0] sm:$0xff]  ;;  %v271_v53 = vpack.c.bf16 %v76_v50, %v63_v48 }
  0xd6   :  { %2922 = vmatprep.subr.bf16.mxu1 %v3239_v52  ;;  %v180_v52 = vld [vmem:[%s4933_s0 + $0x408] sm:$0xff] }
  0xd7   :  { %v323_v54 = vpack.c.bf16 %v180_v52, %v167_v51 }
  0xd8   :  { %2332 = vmatpush1.bf16.msra.mxu0 %v3237_v61 }
  0xd9   :  { %2930 = vmatpush1.bf16.msra.mxu1 %v3237_v61  ;;  %2333 = vmatprep.subr.bf16.mxu0 %v3242_v62  ;;  %v206_v61 = vld [vmem:[%s4933_s0 + $0x4d8] sm:$0xff] }
  0xda   :  { %2923 = vmatprep.subr.bf16.mxu1 %v3242_v62  ;;  %2158 = vmatmul.mubr.bf16.gmra.mxu0 %v306_v63 }
  0xdb   :  { %2271 = vmatmul.mubr.bf16.gmra.mxu1 %v308_v0  ;;  %2167 = vmatprep.mubr.bf16.mxu0 %v320_v1 }
  0xdc   :  { %2280 = vmatprep.mubr.bf16.mxu1 %v322_v2  ;;  %2334 = vmatpush1.bf16.msra.mxu0 %v3240_v3 }
  0xdd   :  { %2931 = vmatpush1.bf16.msra.mxu1 %v3240_v3  ;;  %2335 = vmatprep.subr.bf16.mxu0 %v3245_v4  ;;  %v284_v3 = vpack.c.bf16 %v102_v59, %v89_v57 }
  0xde   :  { %2924 = vmatprep.subr.bf16.mxu1 %v3245_v4  ;;  %v336_v4 = vpack.c.bf16 %v206_v61, %v193_v60 }
  0xe0   :  { %2336 = vmatpush1.bf16.msra.mxu0 %v3243_v13 }
  0xe1   :  { %2932 = vmatpush1.bf16.msra.mxu1 %v3243_v13  ;;  %v128_v13 = vld [vmem:[%s4933_s0 + $0x268] sm:$0xff] }
  0xe2   :  { %2168 = vmatmul.mubr.bf16.gmra.mxu0 %v319_v14  ;;  %v219_v14 = vld [vmem:[%s4933_s0 + $0x540] sm:$0xff]  ;;  %v297_v21 = vpack.c.bf16 %v128_v13, %v115_v11 }
  0xe3   :  { %2281 = vmatmul.mubr.bf16.gmra.mxu1 %v321_v15  ;;  %2177 = vmatprep.mubr.bf16.mxu0 %v333_v16  ;;  %v232_v15 = vld [vmem:[%s4933_s0 + $0x5a8] sm:$0xff] }
  0xe4   :  { %2290 = vmatprep.mubr.bf16.mxu1 %v335_v17  ;;  %v349_v22 = vpack.c.bf16 %v232_v15, %v219_v14 }
  0xea   :  { %2178 = vmatmul.mubr.bf16.gmra.mxu0 %v332_v26 }
  0xeb   :  { %2291 = vmatmul.mubr.bf16.gmra.mxu1 %v334_v27  ;;  %2187 = vmatprep.mubr.bf16.mxu0 %v346_v28 }
  0xec   :  { %2300 = vmatprep.mubr.bf16.mxu1 %v348_v29  ;;  %v141_v29 = vld [vmem:[%s4933_s0 + $0x2d0] sm:$0xff] }
  0xf2   :  { %2188 = vmatmul.mubr.bf16.gmra.mxu0 %v345_v38 }
  0xf3   :  { %2301 = vmatmul.mubr.bf16.gmra.mxu1 %v347_v39  ;;  %2197 = vmatprep.mubr.bf16.mxu0 %v359_v40  ;;  %v310_v39 = vpack.c.bf16 %v154_v31, %v141_v29  ;;  %v362_v40 = vpack.c.bf16 %v258_v33, %v245_v32 }
  0xf4   :  { %2310 = vmatprep.mubr.bf16.mxu1 %v361_v41 }
  0xfa   :  { %2198 = vmatmul.mubr.bf16.gmra.mxu0 %v358_v46 }
  0xfb   :  { %2311 = vmatmul.mubr.bf16.gmra.mxu1 %v360_v47  ;;  %2353 = vmatprep.mubr.bf16.mxu0 %v3246_v49 }
  0xfc   :  { %2393 = vmatprep.mubr.bf16.mxu1 %v3246_v49 }
 0x102   :  { %v1677_v55 = vpop.f32.mrf.mxu0  ;;  %2354 = vmatmul.mubr.bf16.vlgmr.msra.gmra.mxu0 %v271_v53 }
 0x103   :  { %v1790_v56 = vpop.f32.mrf.mxu1  ;;  %2394 = vmatmul.mubr.bf16.vlgmr.msra.gmra.mxu1 %v323_v54  ;;  %2363 = vmatprep.mubr.bf16.mxu0 %v3246_v49 }
 0x104   :  { %v4482_v58 = vadd.f32 %v1790_v56, %v1677_v55  ;;  %2403 = vmatprep.mubr.bf16.mxu1 %v3246_v49  ;;  %v1679_v62 = vpop.f32.mrf.mxu0 }
 0x105   :  { %v1792_v63 = vpop.f32.mrf.mxu1 }
 0x106   :  { %v4493_v0 = vadd.f32 %v1792_v63, %v1679_v62  ;;  %v1681_v1 = vpop.f32.mrf.mxu0 }
 0x107   :  { %v1794_v2 = vpop.f32.mrf.mxu1 }
 0x108   :  { %v4495_v5 = vadd.f32 %v1794_v2, %v1681_v1  ;;  %v1683_v6 = vpop.f32.mrf.mxu0 }
 0x109   :  { %v1796_v7 = vpop.f32.mrf.mxu1 }
 0x10a   :  { %v4497_v8 = vadd.f32 %v1796_v7, %v1683_v6  ;;  %v1687_v9 = vpop.f32.mrf.mxu0  ;;  %2364 = vmatmul.mubr.bf16.gmra.mxu0 %v284_v3 }
 0x10b   :  { %v1800_v10 = vpop.f32.mrf.mxu1  ;;  %2404 = vmatmul.mubr.bf16.gmra.mxu1 %v336_v4  ;;  %2373 = vmatprep.mubr.bf16.mxu0 %v3246_v49 }
 0x10c   :  { %v4502_v12 = vadd.f32 %v1800_v10, %v1687_v9  ;;  %2413 = vmatprep.mubr.bf16.mxu1 %v3246_v49  ;;  %v1689_v16 = vpop.f32.mrf.mxu0 }
 0x10d   :  { %v1802_v17 = vpop.f32.mrf.mxu1 }
 0x10e   :  { %v4513_v18 = vadd.f32 %v1802_v17, %v1689_v16  ;;  %v1691_v19 = vpop.f32.mrf.mxu0 }
 0x10f   :  { %v1804_v20 = vpop.f32.mrf.mxu1 }
 0x110   :  { %v4515_v23 = vadd.f32 %v1804_v20, %v1691_v19  ;;  %v1693_v24 = vpop.f32.mrf.mxu0 }
 0x111   :  { %v1806_v25 = vpop.f32.mrf.mxu1 }
 0x112   :  { %v4517_v26 = vadd.f32 %v1806_v25, %v1693_v24  ;;  %v1697_v27 = vpop.f32.mrf.mxu0  ;;  %2374 = vmatmul.mubr.bf16.gmra.mxu0 %v297_v21 }
 0x113   :  { %v1810_v28 = vpop.f32.mrf.mxu1  ;;  %2414 = vmatmul.mubr.bf16.gmra.mxu1 %v349_v22  ;;  %2383 = vmatprep.mubr.bf16.mxu0 %v3246_v49 }
 0x114   :  { %v4522_v30 = vadd.f32 %v1810_v28, %v1697_v27  ;;  %2423 = vmatprep.mubr.bf16.mxu1 %v3246_v49  ;;  %v1699_v34 = vpop.f32.mrf.mxu0 }
 0x115   :  { %v1812_v35 = vpop.f32.mrf.mxu1 }
 0x116   :  { %v4533_v36 = vadd.f32 %v1812_v35, %v1699_v34  ;;  %v1701_v37 = vpop.f32.mrf.mxu0 }
 0x117   :  { %v1814_v38 = vpop.f32.mrf.mxu1 }
 0x118   :  { %v4535_v41 = vadd.f32 %v1814_v38, %v1701_v37  ;;  %v1703_v42 = vpop.f32.mrf.mxu0 }
 0x119   :  { %v1816_v43 = vpop.f32.mrf.mxu1 }
 0x11a   :  { %v4537_v44 = vadd.f32 %v1816_v43, %v1703_v42  ;;  %v1707_v45 = vpop.f32.mrf.mxu0  ;;  %2384 = vmatmul.mubr.bf16.gmra.mxu0 %v310_v39 }
 0x11b   :  { %v1820_v46 = vpop.f32.mrf.mxu1  ;;  %2424 = vmatmul.mubr.bf16.gmra.mxu1 %v362_v40 }
 0x11c   :  { %v4539_v47 = vadd.f32 %v1820_v46, %v1707_v45  ;;  %v1709_v48 = vpop.f32.mrf.mxu0 }
 0x11d   :  { %v1822_v49 = vpop.f32.mrf.mxu1 }
 0x11e   :  { %v4541_v50 = vadd.f32 %v1822_v49, %v1709_v48  ;;  %v1711_v51 = vpop.f32.mrf.mxu0 }
 0x11f   :  { %v1824_v52 = vpop.f32.mrf.mxu1 }
 0x120   :  { %v4543_v53 = vadd.f32 %v1824_v52, %v1711_v51  ;;  %v1713_v54 = vpop.f32.mrf.mxu0 }
 0x121   :  { %v1826_v55 = vpop.f32.mrf.mxu1 }
 0x122   :  { %v4545_v56 = vadd.f32 %v1826_v55, %v1713_v54  ;;  %v1717_v57 = vpop.f32.mrf.mxu0 }
 0x123   :  { %v1830_v59 = vpop.f32.mrf.mxu1 }
 0x124   :  { %v4547_v60 = vadd.f32 %v1830_v59, %v1717_v57  ;;  %v1719_v61 = vpop.f32.mrf.mxu0 }
 0x125   :  { %v1832_v62 = vpop.f32.mrf.mxu1 }
 0x126   :  { %v4549_v63 = vadd.f32 %v1832_v62, %v1719_v61  ;;  %v1721_v1 = vpop.f32.mrf.mxu0 }
 0x127   :  { %v1834_v2 = vpop.f32.mrf.mxu1 }
 0x128   :  { %v4551_v3 = vadd.f32 %v1834_v2, %v1721_v1  ;;  %v1723_v4 = vpop.f32.mrf.mxu0 }
 0x129   :  { %v1836_v6 = vpop.f32.mrf.mxu1 }
 0x12a   :  { %v4553_v7 = vadd.f32 %v1836_v6, %v1723_v4  ;;  %v1727_v9 = vpop.f32.mrf.mxu0 }
 0x12b   :  { %v1840_v10 = vpop.f32.mrf.mxu1 }
 0x12c   :  { %v4555_v11 = vadd.f32 %v1840_v10, %v1727_v9  ;;  %v1729_v13 = vpop.f32.mrf.mxu0 }
 0x12d   :  { %v1842_v14 = vpop.f32.mrf.mxu1 }
 0x12e   :  { %v4557_v15 = vadd.f32 %v1842_v14, %v1729_v13  ;;  %v1731_v16 = vpop.f32.mrf.mxu0 }
 0x12f   :  { %v1844_v17 = vpop.f32.mrf.mxu1 }
 0x130   :  { %v4559_v19 = vadd.f32 %v1844_v17, %v1731_v16  ;;  %v1733_v20 = vpop.f32.mrf.mxu0 }
 0x131   :  { %v1846_v21 = vpop.f32.mrf.mxu1 }
 0x132   :  { %v4561_v22 = vadd.f32 %v1846_v21, %v1733_v20  ;;  %v1737_v24 = vpop.f32.mrf.mxu0 }
 0x133   :  { %v1850_v25 = vpop.f32.mrf.mxu1 }
 0x134   :  { %v4563_v27 = vadd.f32 %v1850_v25, %v1737_v24  ;;  %v1739_v28 = vpop.f32.mrf.mxu0 }
 0x135   :  { %v1852_v29 = vpop.f32.mrf.mxu1 }
 0x136   :  { %v4565_v31 = vadd.f32 %v1852_v29, %v1739_v28  ;;  %v1741_v32 = vpop.f32.mrf.mxu0 }
 0x137   :  { %v1854_v33 = vpop.f32.mrf.mxu1 }
 0x138   :  { %v4567_v34 = vadd.f32 %v1854_v33, %v1741_v32  ;;  %v1743_v35 = vpop.f32.mrf.mxu0 }
 0x139   :  { %v1856_v37 = vpop.f32.mrf.mxu1 }
 0x13a   :  { %v4569_v38 = vadd.f32 %v1856_v37, %v1743_v35  ;;  %v1747_v39 = vpop.f32.mrf.mxu0 }
 0x13b   :  { %v1860_v40 = vpop.f32.mrf.mxu1 }
 0x13c   :  { %v4571_v42 = vadd.f32 %v1860_v40, %v1747_v39  ;;  %v1749_v43 = vpop.f32.mrf.mxu0 }
 0x13d   :  { %v1862_v45 = vpop.f32.mrf.mxu1 }
 0x13e   :  { %v4573_v46 = vadd.f32 %v1862_v45, %v1749_v43  ;;  %v1751_v48 = vpop.f32.mrf.mxu0 }
 0x13f   :  { %v1864_v49 = vpop.f32.mrf.mxu1 }
 0x140   :  { %v4575_v51 = vadd.f32 %v1864_v49, %v1751_v48  ;;  %v1753_v52 = vpop.f32.mrf.mxu0 }
 0x141   :  { %v1866_v54 = vpop.f32.mrf.mxu1 }
 0x142   :  { %v4577_v55 = vadd.f32 %v1866_v54, %v1753_v52  ;;  %v1903_v57 = vpop.f32.mrf.mxu0 }
 0x143   :  { %v2016_v59 = vpop.f32.mrf.mxu1  ;;  %v1904_v61 = vadd.f32 %v1903_v57, %v4482_v58 }
 0x144   :  { %v1905_v62 = vpop.f32.mrf.mxu0 }
 0x145   :  { %v2018_v1 = vpop.f32.mrf.mxu1  ;;  %v4580_v2 = vadd.f32 %v2016_v59, %v1904_v61  ;;  %v1906_v4 = vadd.f32 %v1905_v62, %v4493_v0 }
 0x146   :  { %v1907_v6 = vpop.f32.mrf.mxu0 }
 0x147   :  { %v2020_v9 = vpop.f32.mrf.mxu1  ;;  %v4583_v10 = vadd.f32 %v2018_v1, %v1906_v4  ;;  %v1908_v13 = vadd.f32 %v1907_v6, %v4495_v5 }
 0x148   :  { %v1909_v14 = vpop.f32.mrf.mxu0 }
 0x149   :  { %v2022_v16 = vpop.f32.mrf.mxu1  ;;  %v4586_v17 = vadd.f32 %v2020_v9, %v1908_v13  ;;  %v1910_v20 = vadd.f32 %v1909_v14, %v4497_v8 }
 0x14a   :  { %v1913_v21 = vpop.f32.mrf.mxu0 }
 0x14b   :  { %v2026_v58 = vpop.f32.mrf.mxu1  ;;  %v4589_v24 = vadd.f32 %v2022_v16, %v1910_v20  ;;  %v1914_v25 = vadd.f32 %v1913_v21, %v4502_v12 }
 0x14c   :  { %v1915_v28 = vpop.f32.mrf.mxu0 }
 0x14d   :  { %v2028_v0 = vpop.f32.mrf.mxu1  ;;  %v4592_v29 = vadd.f32 %v2026_v58, %v1914_v25  ;;  %v1916_v32 = vadd.f32 %v1915_v28, %v4513_v18 }
 0x14e   :  { %v1917_v33 = vpop.f32.mrf.mxu0 }
 0x14f   :  { %v2030_v5 = vpop.f32.mrf.mxu1  ;;  %v4595_v35 = vadd.f32 %v2028_v0, %v1916_v32  ;;  %v1918_v37 = vadd.f32 %v1917_v33, %v4515_v23 }
 0x150   :  { %v1919_v39 = vpop.f32.mrf.mxu0 }
 0x151   :  { %v2032_v8 = vpop.f32.mrf.mxu1  ;;  %v4598_v40 = vadd.f32 %v2030_v5, %v1918_v37  ;;  %v1920_v43 = vadd.f32 %v1919_v39, %v4517_v26 }
 0x152   :  { %v1923_v45 = vpop.f32.mrf.mxu0 }
 0x153   :  { %v2036_v12 = vpop.f32.mrf.mxu1  ;;  %v4601_v48 = vadd.f32 %v2032_v8, %v1920_v43  ;;  %v1924_v49 = vadd.f32 %v1923_v45, %v4522_v30 }
 0x154   :  { %v1925_v52 = vpop.f32.mrf.mxu0 }
 0x155   :  { %v2038_v18 = vpop.f32.mrf.mxu1  ;;  %v4604_v54 = vadd.f32 %v2036_v12, %v1924_v49  ;;  %v1926_v57 = vadd.f32 %v1925_v52, %v4533_v36 }
 0x156   :  { %v1927_v59 = vpop.f32.mrf.mxu0 }
 0x157   :  { %v2040_v23 = vpop.f32.mrf.mxu1  ;;  %v4607_v61 = vadd.f32 %v2038_v18, %v1926_v57  ;;  %v1928_v62 = vadd.f32 %v1927_v59, %v4535_v41 }
 0x158   :  { %v1929_v1 = vpop.f32.mrf.mxu0 }
 0x159   :  { %v2042_v26 = vpop.f32.mrf.mxu1  ;;  %v4610_v4 = vadd.f32 %v2040_v23, %v1928_v62  ;;  %v1930_v6 = vadd.f32 %v1929_v1, %v4537_v44 }
 0x15a   :  { %v1933_v9 = vpop.f32.mrf.mxu0 }
 0x15b   :  { %v2046_v30 = vpop.f32.mrf.mxu1  ;;  %v4613_v13 = vadd.f32 %v2042_v26, %v1930_v6  ;;  %v1934_v14 = vadd.f32 %v1933_v9, %v4539_v47 }
 0x15c   :  { %v1935_v16 = vpop.f32.mrf.mxu0 }
 0x15d   :  { %v2048_v36 = vpop.f32.mrf.mxu1  ;;  %v4616_v20 = vadd.f32 %v2046_v30, %v1934_v14  ;;  %v1936_v21 = vadd.f32 %v1935_v16, %v4541_v50 }
 0x15e   :  { %v1937_v58 = vpop.f32.mrf.mxu0 }
 0x15f   :  { %v2050_v41 = vpop.f32.mrf.mxu1  ;;  %v4619_v25 = vadd.f32 %v2048_v36, %v1936_v21  ;;  %v1938_v28 = vadd.f32 %v1937_v58, %v4543_v53 }
 0x160   :  { %v1939_v0 = vpop.f32.mrf.mxu0 }
 0x161   :  { %v2052_v44 = vpop.f32.mrf.mxu1  ;;  %v4622_v32 = vadd.f32 %v2050_v41, %v1938_v28  ;;  %v1940_v33 = vadd.f32 %v1939_v0, %v4545_v56 }
 0x162   :  { %v1943_v5 = vpop.f32.mrf.mxu0 }
 0x163   :  { %v2056_v47 = vpop.f32.mrf.mxu1  ;;  %v4625_v37 = vadd.f32 %v2052_v44, %v1940_v33  ;;  %v1944_v39 = vadd.f32 %v1943_v5, %v4547_v60 }
 0x164   :  { %v1945_v8 = vpop.f32.mrf.mxu0 }
 0x165   :  { %v2058_v50 = vpop.f32.mrf.mxu1  ;;  %v4628_v43 = vadd.f32 %v2056_v47, %v1944_v39  ;;  %v1946_v45 = vadd.f32 %v1945_v8, %v4549_v63 }
 0x166   :  { %v1947_v12 = vpop.f32.mrf.mxu0 }
 0x167   :  { %v2060_v53 = vpop.f32.mrf.mxu1  ;;  %v4631_v49 = vadd.f32 %v2058_v50, %v1946_v45  ;;  %v1948_v52 = vadd.f32 %v1947_v12, %v4551_v3 }
 0x168   :  { %v1949_v18 = vpop.f32.mrf.mxu0 }
 0x169   :  { %v2062_v56 = vpop.f32.mrf.mxu1  ;;  %v4634_v57 = vadd.f32 %v2060_v53, %v1948_v52  ;;  %v1950_v59 = vadd.f32 %v1949_v18, %v4553_v7 }
 0x16a   :  { %v1953_v23 = vpop.f32.mrf.mxu0 }
 0x16b   :  { %v2066_v60 = vpop.f32.mrf.mxu1  ;;  %v4637_v62 = vadd.f32 %v2062_v56, %v1950_v59  ;;  %v1954_v1 = vadd.f32 %v1953_v23, %v4555_v11 }
 0x16c   :  { %v1955_v26 = vpop.f32.mrf.mxu0 }
 0x16d   :  { %v2068_v63 = vpop.f32.mrf.mxu1  ;;  %v4640_v6 = vadd.f32 %v2066_v60, %v1954_v1  ;;  %v1956_v9 = vadd.f32 %v1955_v26, %v4557_v15 }
 0x16e   :  { %v1957_v30 = vpop.f32.mrf.mxu0 }
 0x16f   :  { %v2070_v3 = vpop.f32.mrf.mxu1  ;;  %v4643_v14 = vadd.f32 %v2068_v63, %v1956_v9  ;;  %v1958_v16 = vadd.f32 %v1957_v30, %v4559_v19 }
 0x170   :  { %v1959_v36 = vpop.f32.mrf.mxu0 }
 0x171   :  { %v2072_v7 = vpop.f32.mrf.mxu1  ;;  %v4646_v21 = vadd.f32 %v2070_v3, %v1958_v16  ;;  %v1960_v58 = vadd.f32 %v1959_v36, %v4561_v22 }
 0x172   :  { %v1963_v41 = vpop.f32.mrf.mxu0 }
 0x173   :  { %v2076_v11 = vpop.f32.mrf.mxu1  ;;  %v4649_v28 = vadd.f32 %v2072_v7, %v1960_v58  ;;  %v1964_v0 = vadd.f32 %v1963_v41, %v4563_v27 }
 0x174   :  { %v1965_v44 = vpop.f32.mrf.mxu0 }
 0x175   :  { %v2078_v15 = vpop.f32.mrf.mxu1  ;;  %v4652_v33 = vadd.f32 %v2076_v11, %v1964_v0  ;;  %v1966_v5 = vadd.f32 %v1965_v44, %v4565_v31 }
 0x176   :  { %v1967_v47 = vpop.f32.mrf.mxu0 }
 0x177   :  { %v2080_v19 = vpop.f32.mrf.mxu1  ;;  %v4655_v39 = vadd.f32 %v2078_v15, %v1966_v5  ;;  %v1968_v8 = vadd.f32 %v1967_v47, %v4567_v34 }
 0x178   :  { %v1969_v50 = vpop.f32.mrf.mxu0 }
 0x179   :  { %v2082_v22 = vpop.f32.mrf.mxu1  ;;  %v4658_v45 = vadd.f32 %v2080_v19, %v1968_v8  ;;  %v1970_v12 = vadd.f32 %v1969_v50, %v4569_v38 }
 0x17a   :  { %v1973_v53 = vpop.f32.mrf.mxu0 }
 0x17b   :  { %v2086_v27 = vpop.f32.mrf.mxu1  ;;  %v4661_v52 = vadd.f32 %v2082_v22, %v1970_v12  ;;  %v1974_v18 = vadd.f32 %v1973_v53, %v4571_v42 }
 0x17c   :  { %v1975_v56 = vpop.f32.mrf.mxu0 }
 0x17d   :  { %v2088_v31 = vpop.f32.mrf.mxu1  ;;  %v4664_v59 = vadd.f32 %v2086_v27, %v1974_v18  ;;  %v1976_v23 = vadd.f32 %v1975_v56, %v4573_v46 }
 0x17e   :  { %v1977_v60 = vpop.f32.mrf.mxu0 }
 0x17f   :  { %v2090_v34 = vpop.f32.mrf.mxu1  ;;  %v4667_v1 = vadd.f32 %v2088_v31, %v1976_v23  ;;  %v1978_v26 = vadd.f32 %v1977_v60, %v4575_v51 }
 0x180   :  { %v1979_v63 = vpop.f32.mrf.mxu0 }
 0x181   :  { %v2092_v38 = vpop.f32.mrf.mxu1  ;;  %v4670_v9 = vadd.f32 %v2090_v34, %v1978_v26  ;;  %v1980_v30 = vadd.f32 %v1979_v63, %v4577_v55 }
 0x182   :  { %v4673_v3 = vpop.f32.mrf.mxu0 }
 0x183   :  { %v4675_v42 = vpop.f32.mrf.mxu1  ;;  %v4677_v16 = vadd.f32 %v2092_v38, %v1980_v30 }
 0x184   :  { %v4679_v36 = vpop.f32.mrf.mxu0 }
 0x185   :  { %v4681_v46 = vpop.f32.mrf.mxu1 }
 0x186   :  { %v2133_v7 = vpop.f32.mrf.mxu0 }
 0x187   :  { %v2246_v58 = vpop.f32.mrf.mxu1  ;;  %v2134_v51 = vadd.f32 %v2133_v7, %v4586_v17 }
 0x188   :  { %v4684_v41 = vpop.f32.mrf.mxu0 }
 0x189   :  { %v4686_v11 = vpop.f32.mrf.mxu1  ;;  %v4688_v0 = vadd.f32 %v2246_v58, %v2134_v51 }
 0x18a   :  { %v2139_v55 = vpop.f32.mrf.mxu0 }
 0x18b   :  { %4936 = vst [vmem:[#allocation3_spill] sm:$0xff] %v4688_v0  ;;  %v2252_v44 = vpop.f32.mrf.mxu1  ;;  %v2140_v15 = vadd.f32 %v2139_v55, %v4592_v29 }
 0x18c   :  { %v2141_v5 = vpop.f32.mrf.mxu0 }
 0x18d   :  { %v2254_v47 = vpop.f32.mrf.mxu1  ;;  %v4691_v19 = vadd.f32 %v2252_v44, %v2140_v15  ;;  %v2142_v8 = vadd.f32 %v2141_v5, %v4595_v35 }
 0x18e   :  { %v2143_v50 = vpop.f32.mrf.mxu0 }
 0x18f   :  { %4937 = vst [vmem:[#allocation4_spill] sm:$0xff] %v4691_v19  ;;  %v2256_v22 = vpop.f32.mrf.mxu1  ;;  %v4694_v12 = vadd.f32 %v2254_v47, %v2142_v8  ;;  %v2144_v17 = vadd.f32 %v2143_v50, %v4598_v40 }
 0x190   :  { %v2145_v53 = vpop.f32.mrf.mxu0 }
 0x191   :  { %4938 = vst [vmem:[#allocation5_spill] sm:$0xff] %v4694_v12  ;;  %v2258_v27 = vpop.f32.mrf.mxu1  ;;  %v4697_v18 = vadd.f32 %v2256_v22, %v2144_v17  ;;  %v2146_v56 = vadd.f32 %v2145_v53, %v4601_v48 }
 0x192   :  { %v2149_v31 = vpop.f32.mrf.mxu0 }
 0x193   :  { %4939 = vst [vmem:[#allocation6_spill] sm:$0xff] %v4697_v18  ;;  %v2262_v29 = vpop.f32.mrf.mxu1  ;;  %v4700_v23 = vadd.f32 %v2258_v27, %v2146_v56  ;;  %v2150_v60 = vadd.f32 %v2149_v31, %v4604_v54 }
 0x194   :  { %v2151_v34 = vpop.f32.mrf.mxu0 }
 0x195   :  { %4940 = vst [vmem:[#allocation7_spill] sm:$0xff] %v4700_v23  ;;  %v2264_v35 = vpop.f32.mrf.mxu1  ;;  %v4703_v26 = vadd.f32 %v2262_v29, %v2150_v60  ;;  %v2152_v63 = vadd.f32 %v2151_v34, %v4607_v61 }
 0x196   :  { %v2153_v38 = vpop.f32.mrf.mxu0 }
 0x197   :  { %4941 = vst [vmem:[#allocation8_spill] sm:$0xff] %v4703_v26  ;;  %v2266_v40 = vpop.f32.mrf.mxu1  ;;  %v4706_v30 = vadd.f32 %v2264_v35, %v2152_v63  ;;  %v2154_v7 = vadd.f32 %v2153_v38, %v4610_v4 }
 0x198   :  { %v2155_v58 = vpop.f32.mrf.mxu0 }
 0x199   :  { %4942 = vst [vmem:[#allocation9_spill] sm:$0xff] %v4706_v30  ;;  %v2268_v48 = vpop.f32.mrf.mxu1  ;;  %v4709_v51 = vadd.f32 %v2266_v40, %v2154_v7  ;;  %v2156_v55 = vadd.f32 %v2155_v58, %v4613_v13 }
 0x19a   :  { %v2159_v44 = vpop.f32.mrf.mxu0 }
 0x19b   :  { %4943 = vst [vmem:[#allocation10_spill] sm:$0xff] %v4709_v51  ;;  %v2272_v54 = vpop.f32.mrf.mxu1  ;;  %v4712_v15 = vadd.f32 %v2268_v48, %v2156_v55  ;;  %v2160_v5 = vadd.f32 %v2159_v44, %v4616_v20 }
 0x19c   :  { %v2161_v47 = vpop.f32.mrf.mxu0 }
 0x19d   :  { %4944 = vst [vmem:[#allocation11_spill] sm:$0xff] %v4712_v15  ;;  %v2274_v61 = vpop.f32.mrf.mxu1  ;;  %v4715_v8 = vadd.f32 %v2272_v54, %v2160_v5  ;;  %v2162_v50 = vadd.f32 %v2161_v47, %v4619_v25  ;;  %v2535_v47 = vlaneseq  ;;  %v2136_v15 = vadd.f32 %v4684_v41, %v4589_v24 }
 0x19e   :  { %v2163_v22 = vpop.f32.mrf.mxu0 }
 0x19f   :  { %4945 = vst [vmem:[#allocation12_spill] sm:$0xff] %v4715_v8  ;;  %v2276_v4 = vpop.f32.mrf.mxu1  ;;  %v4718_v17 = vadd.f32 %v2274_v61, %v2162_v50  ;;  %v2164_v53 = vadd.f32 %v2163_v22, %v4622_v32  ;;  %v2132_v8 = vadd.f32 %v4679_v36, %v4583_v10 }
 0x1a0   :  { %v2165_v27 = vpop.f32.mrf.mxu0 }
 0x1a1   :  { %4946 = vst [vmem:[#allocation13_spill] sm:$0xff] %v4718_v17  ;;  %v2278_v13 = vpop.f32.mrf.mxu1  ;;  %v4721_v56 = vadd.f32 %v2276_v4, %v2164_v53  ;;  %v2166_v31 = vadd.f32 %v2165_v27, %v4625_v37  ;;  %v2536_v4 = vshrl.u32 %v2535_v47, 7  ;;  %v2130_v17 = vadd.f32 %v4673_v3, %v4580_v2 }
 0x1a2   :  { %v2169_v29 = vpop.f32.mrf.mxu0  ;;  %v2245_v36 = vadd.f32 %v4681_v46, %v2132_v8 }
 0x1a3   :  { %4947 = vst [vmem:[#allocation14_spill] sm:$0xff] %v4721_v56  ;;  %v2282_v20 = vpop.f32.mrf.mxu1  ;;  %v4724_v60 = vadd.f32 %v2278_v13, %v2166_v31  ;;  %v2533_v56 = vld [vmem:[%s4934_s2] sm:$0x3]  ;;  %v2541_v30 = vsub.s32 1, %v2536_v4  ;;  %v2170_v26 = vadd.f32 %v2169_v29, %v4628_v43  ;;  %v2243_v24 = vadd.f32 %v4675_v42, %v2130_v17 }
 0x1a4   :  { %v2171_v34 = vpop.f32.mrf.mxu0  ;;  %v2249_v43 = vadd.f32 %v4686_v11, %v2136_v15 }
 0x1a5   :  { %4948 = vst [vmem:[#allocation15_spill] sm:$0xff] %v4724_v60  ;;  %v2284_v35 = vpop.f32.mrf.mxu1  ;;  %v2537_v60 = vsub.s32 0, %v2536_v4  ;;  %v2172_v23 = vadd.f32 %v2171_v34, %v4631_v49  ;;  %v4746_v29 = vrot.slane %v2533_v56, %v2541_v30 }
 0x1a6   :  { %v2173_v63 = vpop.f32.mrf.mxu0 }
 0x1a7   :  { %v2286_v25 = vpop.f32.mrf.mxu1  ;;  %v4737_v19 = vrot.slane %v2533_v56, %v2537_v60  ;;  %v2174_v0 = vadd.f32 %v2173_v63, %v4634_v57  ;;  %v2283_v60 = vadd.f32 %v2282_v20, %v2170_v26  ;;  %v2285_v34 = vadd.f32 %v2284_v35, %v2172_v23 }
 0x1a8   :  { %v2175_v38 = vpop.f32.mrf.mxu0 }
 0x1a9   :  { %v2288_v40 = vpop.f32.mrf.mxu1  ;;  %v2176_v2 = vadd.f32 %v2175_v38, %v4637_v62  ;;  %v2287_v15 = vadd.f32 %v2286_v25, %v2174_v0 }
 0x1aa   :  { %v2179_v7 = vpop.f32.mrf.mxu0 }
 0x1ab   :  { %v2292_v58 = vpop.f32.mrf.mxu1  ;;  %v2180_v10 = vadd.f32 %v2179_v7, %v4640_v6  ;;  %v2289_v17 = vadd.f32 %v2288_v40, %v2176_v2 }
 0x1ac   :  { %v2181_v48 = vpop.f32.mrf.mxu0 }
 0x1ad   :  { %v2294_v32 = vpop.f32.mrf.mxu1  ;;  %v2182_v3 = vadd.f32 %v2181_v48, %v4643_v14  ;;  %v2293_v30 = vadd.f32 %v2292_v58, %v2180_v10 }
 0x1ae   :  { %v2183_v55 = vpop.f32.mrf.mxu0 }
 0x1af   :  { %v2296_v44 = vpop.f32.mrf.mxu1  ;;  %v2184_v57 = vadd.f32 %v2183_v55, %v4646_v21  ;;  %v4754_v56 = vadd.f32 %v2294_v32, %v2182_v3 }
 0x1b0   :  { %v2185_v54 = vpop.f32.mrf.mxu0 }
 0x1b1   :  { %v2298_v5 = vpop.f32.mrf.mxu1  ;;  %v2186_v62 = vadd.f32 %v2185_v54, %v4649_v28 }
 0x1b2   :  { %v2189_v37 = vpop.f32.mrf.mxu0 }
 0x1b3   :  { %v2302_v61 = vpop.f32.mrf.mxu1  ;;  %v2190_v6 = vadd.f32 %v2189_v37, %v4652_v33 }
 0x1b4   :  { %v2191_v50 = vpop.f32.mrf.mxu0 }
 0x1b5   :  { %v2304_v22 = vpop.f32.mrf.mxu1  ;;  %v2192_v14 = vadd.f32 %v2191_v50, %v4655_v39  ;;  %v4764_v35 = vadd.f32 %v2302_v61, %v2190_v6  ;;  %v4949_v61 = vld [vmem:[#allocation3_spill] sm:$0xff] }
 0x1b6   :  { %v2193_v53 = vpop.f32.mrf.mxu0 }
 0x1b7   :  { %v2306_v27 = vpop.f32.mrf.mxu1  ;;  %v2194_v42 = vadd.f32 %v2193_v53, %v4658_v45  ;;  %v4760_v45 = vadd.f32 %v2296_v44, %v2184_v57  ;;  %v4766_v63 = vadd.f32 %v2304_v22, %v2192_v14 }
 0x1b8   :  { %v2195_v13 = vpop.f32.mrf.mxu0 }
 0x1b9   :  { %v2308_v31 = vpop.f32.mrf.mxu1  ;;  %v2196_v46 = vadd.f32 %v2195_v13, %v4661_v52  ;;  %v4762_v52 = vadd.f32 %v2298_v5, %v2186_v62  ;;  %v4768_v25 = vadd.f32 %v2306_v27, %v2194_v42 }
 0x1ba   :  { %v2199_v51 = vpop.f32.mrf.mxu0 }
 0x1bb   :  { %v2312_v47 = vpop.f32.mrf.mxu1  ;;  %v2200_v23 = vadd.f32 %v2199_v51, %v4664_v59  ;;  %v4770_v59 = vadd.f32 %v2308_v31, %v2196_v46 }
 0x1bc   :  { %v2201_v18 = vpop.f32.mrf.mxu0 }
 0x1bd   :  { %v2314_v12 = vpop.f32.mrf.mxu1  ;;  %v2202_v21 = vadd.f32 %v2201_v18, %v4667_v1  ;;  %v4774_v40 = vadd.f32 %v2312_v47, %v2200_v23 }
 0x1be   :  { %v2203_v41 = vpop.f32.mrf.mxu0 }
 0x1bf   :  { %v2316_v49 = vpop.f32.mrf.mxu1  ;;  %v2204_v28 = vadd.f32 %v2203_v41, %v4670_v9  ;;  %v4776_v7 = vadd.f32 %v2314_v12, %v2202_v21 }
 0x1c0   :  { %v2205_v8 = vpop.f32.mrf.mxu0 }
 0x1c1   :  { %v2318_v11 = vpop.f32.mrf.mxu1  ;;  %v2206_v33 = vadd.f32 %v2205_v8, %v4677_v16  ;;  %v4778_v58 = vadd.f32 %v2316_v49, %v2204_v28 }
 0x1c2   :  { %v2355_v39 = vpop.f32.mrf.mxu0 }
 0x1c3   :  { %v2395_v26 = vpop.f32.mrf.mxu1  ;;  %v2356_v20 = vadd.f32 %v2355_v39, %v2243_v24  ;;  %v4780_v48 = vadd.f32 %v2318_v11, %v2206_v33 }
 0x1c4   :  { %v2396_v0 = vadd.f32 %v2395_v26, %v2283_v60  ;;  %v2357_v1 = vpop.f32.mrf.mxu0  ;;  %v4951_v26 = vld [vmem:[#allocation5_spill] sm:$0xff] }
 0x1c5   :  { %v2397_v9 = vpop.f32.mrf.mxu1  ;;  %v2545_v16 = vadd.f32 %v4737_v19, %v2356_v20  ;;  %v2358_v51 = vadd.f32 %v2357_v1, %v2245_v36 }
 0x1c6   :  { %v2561_v18 = vadd.f32 %v4737_v19, %v2396_v0  ;;  %v2398_v38 = vadd.f32 %v2397_v9, %v2285_v34  ;;  %v2359_v32 = vpop.f32.mrf.mxu0  ;;  %v4950_v34 = vld [vmem:[#allocation4_spill] sm:$0xff] }
 0x1c7   :  { %v2399_v55 = vpop.f32.mrf.mxu1  ;;  %vm2577_vm0 = vcmp.ge.f32.partialorder %v2545_v16, 0.0  ;;  %v2609_v44 = vmul.f32 0.01, %v2545_v16  ;;  %v2546_v5 = vadd.f32 %v4746_v29, %v2358_v51  ;;  %v2360_v50 = vadd.f32 %v2359_v32, %v4949_v61  ;;  %v4952_v32 = vld [vmem:[#allocation6_spill] sm:$0xff]  ;;  %v4953_v61 = vld [vmem:[#allocation7_spill] sm:$0xff] }
 0x1c8   :  { %vm2593_vm1 = vcmp.ge.f32.partialorder %v2561_v18, 0.0  ;;  %v2625_v54 = vmul.f32 0.01, %v2561_v18  ;;  %v2562_v37 = vadd.f32 %v4746_v29, %v2398_v38  ;;  %v2400_v22 = vadd.f32 %v2399_v55, %v2287_v15  ;;  %v2361_v4 = vpop.f32.mrf.mxu0 }
 0x1c9   :  { %v2401_v12 = vpop.f32.mrf.mxu1  ;;  %v2641_v53 = vsel %vm2577_vm0, %v2545_v16, %v2609_v44  ;;  %v2362_v13 = vadd.f32 %v2361_v4, %v2249_v43  ;;  %vm2578_vm2 = vcmp.ge.f32.partialorder %v2546_v5, 0.0  ;;  %v2610_v47 = vmul.f32 0.01, %v2546_v5 }
 0x1ca   :  { %v2657_v27 = vsel %vm2593_vm1, %v2561_v18, %v2625_v54  ;;  %v2402_v31 = vadd.f32 %v2401_v12, %v2289_v17  ;;  %2673 = vst [vmem:[%s4935_s3] sm:$0xff] %v2641_v53  ;;  %vm2594_vm3 = vcmp.ge.f32.partialorder %v2562_v37, 0.0  ;;  %v2626_v2 = vmul.f32 0.01, %v2562_v37  ;;  %v2365_v10 = vpop.f32.mrf.mxu0 }
 0x1cb   :  { %2689 = vst [vmem:[%s4935_s3 + $0x80] sm:$0xff] %v2657_v27  ;;  %v2405_v3 = vpop.f32.mrf.mxu1  ;;  %v2547_v24 = vadd.f32 %v4737_v19, %v2360_v50  ;;  %v2563_v36 = vadd.f32 %v4737_v19, %v2400_v22  ;;  %v2548_v43 = vadd.f32 %v4746_v29, %v2362_v13  ;;  %v2642_v49 = vsel %vm2578_vm2, %v2546_v5, %v2610_v47 }
 0x1cc   :  { %v2564_v41 = vadd.f32 %v4746_v29, %v2402_v31  ;;  %v2658_v60 = vsel %vm2594_vm3, %v2562_v37, %v2626_v2  ;;  %v2366_v57 = vadd.f32 %v2365_v10, %v4950_v34  ;;  %v2406_v62 = vadd.f32 %v2405_v3, %v2293_v30  ;;  %v2367_v6 = vpop.f32.mrf.mxu0  ;;  %2674 = vst [vmem:[%s4935_s3 + $0x8] sm:$0xff] %v2642_v49  ;;  %v4954_v10 = vld [vmem:[#allocation8_spill] sm:$0xff] }
 0x1cd   :  { %v2407_v14 = vpop.f32.mrf.mxu1  ;;  %2690 = vst [vmem:[%s4935_s3 + $0x88] sm:$0xff] %v2658_v60  ;;  %vm2579_vm4 = vcmp.ge.f32.partialorder %v2547_v24, 0.0  ;;  %v2611_v42 = vmul.f32 0.01, %v2547_v24  ;;  %vm2595_vm5 = vcmp.ge.f32.partialorder %v2563_v36, 0.0  ;;  %vm2580_vm6 = vcmp.ge.f32.partialorder %v2548_v43, 0.0 }
 0x1ce   :  { %v2627_v46 = vmul.f32 0.01, %v2563_v36  ;;  %v2612_v8 = vmul.f32 0.01, %v2548_v43  ;;  %vm2596_vm7 = vcmp.ge.f32.partialorder %v2564_v41, 0.0  ;;  %v2369_v15 = vpop.f32.mrf.mxu0  ;;  %v2549_v21 = vadd.f32 %v4737_v19, %v2366_v57 }
 0x1cf   :  { %v2628_v11 = vmul.f32 0.01, %v2564_v41  ;;  %v2409_v17 = vpop.f32.mrf.mxu1  ;;  %v2643_v30 = vsel %vm2579_vm4, %v2547_v24, %v2611_v42  ;;  %v2565_v28 = vadd.f32 %v4737_v19, %v2406_v62  ;;  %v2368_v20 = vadd.f32 %v2367_v6, %v4951_v26  ;;  %v4956_v26 = vld [vmem:[#allocation10_spill] sm:$0xff] }
 0x1d0   :  { %v2659_v23 = vsel %vm2595_vm5, %v2563_v36, %v2627_v46  ;;  %2675 = vst [vmem:[%s4935_s3 + $0x10] sm:$0xff] %v2643_v30  ;;  %v2644_v33 = vsel %vm2580_vm6, %v2548_v43, %v2612_v8  ;;  %v2408_v0 = vadd.f32 %v2407_v14, %v4754_v56  ;;  %v2371_v1 = vpop.f32.mrf.mxu0  ;;  %vm2581_vm8 = vcmp.ge.f32.partialorder %v2549_v21, 0.0 }
 0x1d1   :  { %2691 = vst [vmem:[%s4935_s3 + $0x90] sm:$0xff] %v2659_v23  ;;  %v2660_v39 = vsel %vm2596_vm7, %v2564_v41, %v2628_v11  ;;  %v2411_v9 = vpop.f32.mrf.mxu1  ;;  %2676 = vst [vmem:[%s4935_s3 + $0x18] sm:$0xff] %v2644_v33  ;;  %v2613_v16 = vmul.f32 0.01, %v2549_v21  ;;  %vm2597_vm9 = vcmp.ge.f32.partialorder %v2565_v28, 0.0  ;;  %v2550_v51 = vadd.f32 %v4746_v29, %v2368_v20  ;;  %v4955_v11 = vld [vmem:[#allocation9_spill] sm:$0xff] }
 0x1d2   :  { %2692 = vst [vmem:[%s4935_s3 + $0x98] sm:$0xff] %v2660_v39  ;;  %v2629_v18 = vmul.f32 0.01, %v2565_v28  ;;  %v2566_v38 = vadd.f32 %v4746_v29, %v2408_v0  ;;  %v2370_v56 = vadd.f32 %v2369_v15, %v4952_v32  ;;  %v2410_v55 = vadd.f32 %v2409_v17, %v4760_v45  ;;  %v2375_v44 = vpop.f32.mrf.mxu0 }
 0x1d3   :  { %v2415_v54 = vpop.f32.mrf.mxu1  ;;  %v2645_v5 = vsel %vm2581_vm8, %v2549_v21, %v2613_v16  ;;  %v2372_v50 = vadd.f32 %v2371_v1, %v4953_v61  ;;  %v2412_v22 = vadd.f32 %v2411_v9, %v4762_v52  ;;  %vm2582_vm10 = vcmp.ge.f32.partialorder %v2550_v51, 0.0 }
 0x1d4   :  { %v2661_v37 = vsel %vm2597_vm9, %v2565_v28, %v2629_v18  ;;  %2677 = vst [vmem:[%s4935_s3 + $0x20] sm:$0xff] %v2645_v5  ;;  %v2614_v4 = vmul.f32 0.01, %v2550_v51  ;;  %vm2598_vm11 = vcmp.ge.f32.partialorder %v2566_v38, 0.0  ;;  %v2630_v45 = vmul.f32 0.01, %v2566_v38  ;;  %v2377_v12 = vpop.f32.mrf.mxu0 }
 0x1d5   :  { %2693 = vst [vmem:[%s4935_s3 + $0xa0] sm:$0xff] %v2661_v37  ;;  %v2417_v53 = vpop.f32.mrf.mxu1  ;;  %v2551_v27 = vadd.f32 %v4737_v19, %v2370_v56  ;;  %v2567_v13 = vadd.f32 %v4737_v19, %v2410_v55  ;;  %v2552_v52 = vadd.f32 %v4746_v29, %v2372_v50  ;;  %v2568_v31 = vadd.f32 %v4746_v29, %v2412_v22  ;;  %v4957_v18 = vld [vmem:[#allocation11_spill] sm:$0xff]  ;;  %v4958_v37 = vld [vmem:[#allocation12_spill] sm:$0xff] }
 0x1d6   :  { %v2646_v47 = vsel %vm2582_vm10, %v2550_v51, %v2614_v4  ;;  %v2662_v2 = vsel %vm2598_vm11, %v2566_v38, %v2630_v45  ;;  %v2376_v3 = vadd.f32 %v2375_v44, %v4954_v10  ;;  %v2416_v24 = vadd.f32 %v2415_v54, %v4764_v35  ;;  %v2379_v36 = vpop.f32.mrf.mxu0  ;;  %v4959_v10 = vld [vmem:[#allocation13_spill] sm:$0xff] }
 0x1d7   :  { %v2419_v43 = vpop.f32.mrf.mxu1  ;;  %2678 = vst [vmem:[%s4935_s3 + $0x28] sm:$0xff] %v2646_v47  ;;  %2694 = vst [vmem:[%s4935_s3 + $0xa8] sm:$0xff] %v2662_v2  ;;  %vm2583_vm12 = vcmp.ge.f32.partialorder %v2551_v27, 0.0  ;;  %v2615_v41 = vmul.f32 0.01, %v2551_v27  ;;  %vm2599_vm13 = vcmp.ge.f32.partialorder %v2567_v13, 0.0  ;;  %v2378_v15 = vadd.f32 %v2377_v12, %v4955_v11 }
 0x1d8   :  { %v2631_v49 = vmul.f32 0.01, %v2567_v13  ;;  %vm2584_vm14 = vcmp.ge.f32.partialorder %v2552_v52, 0.0  ;;  %v2616_v60 = vmul.f32 0.01, %v2552_v52  ;;  %vm2600_vm15 = vcmp.ge.f32.partialorder %v2568_v31, 0.0  ;;  %v2381_v57 = vpop.f32.mrf.mxu0 }
 0x1d9   :  { %v2632_v34 = vmul.f32 0.01, %v2568_v31  ;;  %v2421_v35 = vpop.f32.mrf.mxu1  ;;  %v2647_v62 = vsel %vm2583_vm12, %v2551_v27, %v2615_v41  ;;  %v2553_v14 = vadd.f32 %v4737_v19, %v2376_v3  ;;  %v2569_v42 = vadd.f32 %v4737_v19, %v2416_v24 }
 0x1da   :  { %v2663_v6 = vsel %vm2599_vm13, %v2567_v13, %v2631_v49  ;;  %2679 = vst [vmem:[%s4935_s3 + $0x30] sm:$0xff] %v2647_v62  ;;  %v2648_v46 = vsel %vm2584_vm14, %v2552_v52, %v2616_v60  ;;  %v2418_v17 = vadd.f32 %v2417_v53, %v4766_v63  ;;  %v2385_v30 = vpop.f32.mrf.mxu0  ;;  %v2554_v33 = vadd.f32 %v4746_v29, %v2378_v15 }
 0x1db   :  { %2695 = vst [vmem:[%s4935_s3 + $0xb0] sm:$0xff] %v2663_v6  ;;  %v2664_v8 = vsel %vm2600_vm15, %v2568_v31, %v2632_v34  ;;  %v2425_v23 = vpop.f32.mrf.mxu1  ;;  %2680 = vst [vmem:[%s4935_s3 + $0x38] sm:$0xff] %v2648_v46  ;;  %vm2585_vm0 = vcmp.ge.f32.partialorder %v2553_v14, 0.0  ;;  %v2617_v21 = vmul.f32 0.01, %v2553_v14  ;;  %vm2601_vm1 = vcmp.ge.f32.partialorder %v2569_v42, 0.0 }
 0x1dc   :  { %2696 = vst [vmem:[%s4935_s3 + $0xb8] sm:$0xff] %v2664_v8  ;;  %v2633_v28 = vmul.f32 0.01, %v2569_v42  ;;  %v2570_v39 = vadd.f32 %v4746_v29, %v2418_v17  ;;  %v2380_v63 = vadd.f32 %v2379_v36, %v4956_v26  ;;  %v2420_v20 = vadd.f32 %v2419_v43, %v4768_v25  ;;  %v2387_v0 = vpop.f32.mrf.mxu0 }
 0x1dd   :  { %v2427_v1 = vpop.f32.mrf.mxu1  ;;  %v2649_v9 = vsel %vm2585_vm0, %v2553_v14, %v2617_v21  ;;  %v2382_v51 = vadd.f32 %v2381_v57, %v4957_v18  ;;  %v2422_v38 = vadd.f32 %v2421_v35, %v4770_v59  ;;  %vm2586_vm2 = vcmp.ge.f32.partialorder %v2554_v33, 0.0  ;;  %v4960_v57 = vld [vmem:[#allocation14_spill] sm:$0xff]  ;;  %v4961_v14 = vld [vmem:[#allocation15_spill] sm:$0xff] }
 0x1de   :  { %v2665_v16 = vsel %vm2601_vm1, %v2569_v42, %v2633_v28  ;;  %2681 = vst [vmem:[%s4935_s3 + $0x40] sm:$0xff] %v2649_v9  ;;  %v2618_v32 = vmul.f32 0.01, %v2554_v33  ;;  %vm2602_vm3 = vcmp.ge.f32.partialorder %v2570_v39, 0.0  ;;  %v2634_v25 = vmul.f32 0.01, %v2570_v39  ;;  %v2389_v22 = vpop.f32.mrf.mxu0 }
 0x1df   :  { %2697 = vst [vmem:[%s4935_s3 + $0xc0] sm:$0xff] %v2665_v16  ;;  %v2555_v56 = vadd.f32 %v4737_v19, %v2380_v63  ;;  %v2571_v55 = vadd.f32 %v4737_v19, %v2420_v20  ;;  %v2556_v44 = vadd.f32 %v4746_v29, %v2382_v51  ;;  %v2572_v59 = vadd.f32 %v4746_v29, %v2422_v38  ;;  %v2429_v4 = vpop.f32.mrf.mxu1 }
 0x1e0   :  { %v2650_v54 = vsel %vm2586_vm2, %v2554_v33, %v2618_v32  ;;  %v2666_v5 = vsel %vm2602_vm3, %v2570_v39, %v2634_v25  ;;  %v2386_v61 = vadd.f32 %v2385_v30, %v4958_v37  ;;  %v2426_v50 = vadd.f32 %v2425_v23, %v4774_v40  ;;  %v2391_v36 = vpop.f32.mrf.mxu0 }
 0x1e1   :  { %2682 = vst [vmem:[%s4935_s3 + $0x48] sm:$0xff] %v2650_v54  ;;  %2698 = vst [vmem:[%s4935_s3 + $0xc8] sm:$0xff] %v2666_v5  ;;  %vm2587_vm4 = vcmp.ge.f32.partialorder %v2555_v56, 0.0  ;;  %v2619_v45 = vmul.f32 0.01, %v2555_v56  ;;  %vm2603_vm5 = vcmp.ge.f32.partialorder %v2571_v55, 0.0  ;;  %v2388_v3 = vadd.f32 %v2387_v0, %v4959_v10  ;;  %v2431_v43 = vpop.f32.mrf.mxu1 }
 0x1e2   :  { %v2635_v12 = vmul.f32 0.01, %v2571_v55  ;;  %vm2588_vm6 = vcmp.ge.f32.partialorder %v2556_v44, 0.0  ;;  %v2620_v53 = vmul.f32 0.01, %v2556_v44  ;;  %vm2604_vm7 = vcmp.ge.f32.partialorder %v2572_v59, 0.0 }
 0x1e3   :  { %v2636_v27 = vmul.f32 0.01, %v2572_v59  ;;  %v2651_v13 = vsel %vm2587_vm4, %v2555_v56, %v2619_v45  ;;  %v2557_v52 = vadd.f32 %v4737_v19, %v2386_v61  ;;  %v2573_v31 = vadd.f32 %v4737_v19, %v2426_v50 }
 0x1e4   :  { %v2667_v40 = vsel %vm2603_vm5, %v2571_v55, %v2635_v12  ;;  %2683 = vst [vmem:[%s4935_s3 + $0x50] sm:$0xff] %v2651_v13  ;;  %v2652_v47 = vsel %vm2588_vm6, %v2556_v44, %v2620_v53  ;;  %v2428_v24 = vadd.f32 %v2427_v1, %v4776_v7  ;;  %v2558_v60 = vadd.f32 %v4746_v29, %v2388_v3 }
 0x1e5   :  { %2699 = vst [vmem:[%s4935_s3 + $0xd0] sm:$0xff] %v2667_v40  ;;  %v2668_v2 = vsel %vm2604_vm7, %v2572_v59, %v2636_v27  ;;  %2684 = vst [vmem:[%s4935_s3 + $0x58] sm:$0xff] %v2652_v47  ;;  %vm2589_vm8 = vcmp.ge.f32.partialorder %v2557_v52, 0.0  ;;  %v2621_v41 = vmul.f32 0.01, %v2557_v52  ;;  %vm2605_vm9 = vcmp.ge.f32.partialorder %v2573_v31, 0.0 }
 0x1e6   :  { %2700 = vst [vmem:[%s4935_s3 + $0xd8] sm:$0xff] %v2668_v2  ;;  %v2637_v49 = vmul.f32 0.01, %v2573_v31  ;;  %v2574_v34 = vadd.f32 %v4746_v29, %v2428_v24  ;;  %v2390_v7 = vadd.f32 %v2389_v22, %v4960_v57  ;;  %v2430_v35 = vadd.f32 %v2429_v4, %v4778_v58 }
 0x1e7   :  { %v2653_v62 = vsel %vm2589_vm8, %v2557_v52, %v2621_v41  ;;  %v2392_v42 = vadd.f32 %v2391_v36, %v4961_v14  ;;  %v2432_v46 = vadd.f32 %v2431_v43, %v4780_v48  ;;  %vm2590_vm10 = vcmp.ge.f32.partialorder %v2558_v60, 0.0 }
 0x1e8   :  { %v2669_v6 = vsel %vm2605_vm9, %v2573_v31, %v2637_v49  ;;  %2685 = vst [vmem:[%s4935_s3 + $0x60] sm:$0xff] %v2653_v62  ;;  %v2622_v8 = vmul.f32 0.01, %v2558_v60  ;;  %vm2606_vm11 = vcmp.ge.f32.partialorder %v2574_v34, 0.0  ;;  %v2638_v11 = vmul.f32 0.01, %v2574_v34 }
 0x1e9   :  { %2701 = vst [vmem:[%s4935_s3 + $0xe0] sm:$0xff] %v2669_v6  ;;  %v2559_v58 = vadd.f32 %v4737_v19, %v2390_v7  ;;  %v2575_v15 = vadd.f32 %v4737_v19, %v2430_v35  ;;  %v2560_v17 = vadd.f32 %v4746_v29, %v2392_v42  ;;  %v2576_v48 = vadd.f32 %v4746_v29, %v2432_v46 }
 0x1ea   :  { %v2654_v30 = vsel %vm2590_vm10, %v2558_v60, %v2622_v8  ;;  %v2670_v23 = vsel %vm2606_vm11, %v2574_v34, %v2638_v11 }
 0x1eb   :  { %2686 = vst [vmem:[%s4935_s3 + $0x68] sm:$0xff] %v2654_v30  ;;  %2702 = vst [vmem:[%s4935_s3 + $0xe8] sm:$0xff] %v2670_v23  ;;  %vm2591_vm12 = vcmp.ge.f32.partialorder %v2559_v58, 0.0  ;;  %v2623_v21 = vmul.f32 0.01, %v2559_v58  ;;  %vm2607_vm13 = vcmp.ge.f32.partialorder %v2575_v15, 0.0 }
 0x1ec   :  { %v2639_v28 = vmul.f32 0.01, %v2575_v15  ;;  %vm2592_vm14 = vcmp.ge.f32.partialorder %v2560_v17, 0.0  ;;  %v2624_v19 = vmul.f32 0.01, %v2560_v17  ;;  %vm2608_vm15 = vcmp.ge.f32.partialorder %v2576_v48, 0.0 }
 0x1ed   :  { %v2640_v33 = vmul.f32 0.01, %v2576_v48  ;;  %v2655_v39 = vsel %vm2591_vm12, %v2559_v58, %v2623_v21 }
 0x1ee   :  { %v2671_v29 = vsel %vm2607_vm13, %v2575_v15, %v2639_v28  ;;  %2687 = vst [vmem:[%s4935_s3 + $0x70] sm:$0xff] %v2655_v39  ;;  %v2656_v26 = vsel %vm2592_vm14, %v2560_v17, %v2624_v19 }
 0x1ef   :  { %2703 = vst [vmem:[%s4935_s3 + $0xf0] sm:$0xff] %v2671_v29  ;;  %v2672_v63 = vsel %vm2608_vm15, %v2576_v48, %v2640_v33  ;;  %2688 = vst [vmem:[%s4935_s3 + $0x78] sm:$0xff] %v2656_v26 }
 0x1f0   :  { %2704 = vst [vmem:[%s4935_s3 + $0xf8] sm:$0xff] %v2672_v63 }

// kernel: discriminator_forward.10
= control target key start
LH: loop header
LB: loop body
LE: loop exit
PB: predicated region body
PF: predicated region fallthrough
CT: control target
= control target key end

     0   :  { %s3438_s1 = inlined_call_operand.vmem [shape: bf16[2048,256], index: 1, kind: input, shape index: {}]   ;;  %s3439_s0 = inlined_call_operand.vmem [shape: f32[8,2048], index: 0, kind: input, shape index: {}]   ;;  %s3440_s2 = inlined_call_operand.vmem [shape: f32[1,256], index: 2, kind: input, shape index: {}]   ;;  %s3441_s3 = inlined_call_operand.vmem [shape: f32[8,256], index: 3, kind: output, shape index: {}]  }
   0x1   :  { %v2209_v0 = vld [vmem:[%s3438_s1 + $0x74] ss:$8 sps:$4 sm:$0xff]   ;;  %v2213_v2 = vld [vmem:[%s3438_s1 + $0x70] ss:$8 sps:$4 sm:$0xff]   ;;  %v2215_v4 = vld [vmem:[%s3438_s1 + $0x64] ss:$8 sps:$4 sm:$0xff]  }
   0x2   :  { %v2211_v1 = vld [vmem:[%s3438_s1 + $0x174] ss:$8 sps:$4 sm:$0xff]   ;;  %1590 = vmatprep.subr.bf16.mxu0 %v2209_v0  ;;  %v2214_v3 = vld [vmem:[%s3438_s1 + $0x170] ss:$8 sps:$4 sm:$0xff]   ;;  %v2217_v5 = vld [vmem:[%s3438_s1 + $0x164] ss:$8 sps:$4 sm:$0xff]  }
   0x3   :  { %1631 = vmatprep.subr.bf16.mxu1 %v2211_v1  ;;  %1591 = vmatpush1.bf16.msra.mxu0 %v2213_v2  ;;  %v2219_v6 = vld [vmem:[%s3438_s1 + $0x60] ss:$8 sps:$4 sm:$0xff]   ;;  %v2221_v8 = vld [vmem:[%s3438_s1 + $0x54] ss:$8 sps:$4 sm:$0xff]   ;;  %v2225_v10 = vld [vmem:[%s3438_s1 + $0x50] ss:$8 sps:$4 sm:$0xff]  }
   0x4   :  { %1632 = vmatpush1.bf16.msra.mxu1 %v2214_v3  ;;  %1592 = vmatprep.subr.bf16.mxu0 %v2215_v4  ;;  %v2220_v7 = vld [vmem:[%s3438_s1 + $0x160] ss:$8 sps:$4 sm:$0xff]   ;;  %v2223_v9 = vld [vmem:[%s3438_s1 + $0x154] ss:$8 sps:$4 sm:$0xff]   ;;  %v2226_v11 = vld [vmem:[%s3438_s1 + $0x150] ss:$8 sps:$4 sm:$0xff]  }
   0x5   :  { %1633 = vmatprep.subr.bf16.mxu1 %v2217_v5  ;;  %v2227_v12 = vld [vmem:[%s3438_s1 + $0x44] ss:$8 sps:$4 sm:$0xff]   ;;  %v2231_v14 = vld [vmem:[%s3438_s1 + $0x40] ss:$8 sps:$4 sm:$0xff]   ;;  %v2233_v16 = vld [vmem:[%s3438_s1 + $0x34] ss:$8 sps:$4 sm:$0xff]  }
   0x6   :  { %v2229_v13 = vld [vmem:[%s3438_s1 + $0x144] ss:$8 sps:$4 sm:$0xff]   ;;  %v2232_v15 = vld [vmem:[%s3438_s1 + $0x140] ss:$8 sps:$4 sm:$0xff]   ;;  %v2235_v17 = vld [vmem:[%s3438_s1 + $0x134] ss:$8 sps:$4 sm:$0xff]  }
   0x7   :  { %1593 = vmatpush1.bf16.msra.mxu0 %v2219_v6  ;;  %v2237_v18 = vld [vmem:[%s3438_s1 + $0x30] ss:$8 sps:$4 sm:$0xff]   ;;  %v2239_v20 = vld [vmem:[%s3438_s1 + $0x24] ss:$8 sps:$4 sm:$0xff]   ;;  %v2243_v22 = vld [vmem:[%s3438_s1 + $0x20] ss:$8 sps:$4 sm:$0xff]  }
   0x8   :  { %1634 = vmatpush1.bf16.msra.mxu1 %v2220_v7  ;;  %1594 = vmatprep.subr.bf16.mxu0 %v2221_v8  ;;  %v2238_v19 = vld [vmem:[%s3438_s1 + $0x130] ss:$8 sps:$4 sm:$0xff]   ;;  %v2241_v21 = vld [vmem:[%s3438_s1 + $0x124] ss:$8 sps:$4 sm:$0xff]   ;;  %v2244_v23 = vld [vmem:[%s3438_s1 + $0x120] ss:$8 sps:$4 sm:$0xff]  }
   0x9   :  { %1635 = vmatprep.subr.bf16.mxu1 %v2223_v9  ;;  %v2245_v24 = vld [vmem:[%s3438_s1 + $0x14] ss:$8 sps:$4 sm:$0xff]   ;;  %v2249_v26 = vld [vmem:[%s3438_s1 + $0x10] ss:$8 sps:$4 sm:$0xff]   ;;  %v2251_v28 = vld [vmem:[%s3438_s1 + $0x4] ss:$8 sps:$4 sm:$0xff]  }
   0xa   :  { %v2247_v25 = vld [vmem:[%s3438_s1 + $0x114] ss:$8 sps:$4 sm:$0xff]   ;;  %v2250_v27 = vld [vmem:[%s3438_s1 + $0x110] ss:$8 sps:$4 sm:$0xff]   ;;  %v2253_v29 = vld [vmem:[%s3438_s1 + $0x104] ss:$8 sps:$4 sm:$0xff]  }
   0xb   :  { %1595 = vmatpush1.bf16.msra.mxu0 %v2225_v10  ;;  %v2255_v30 = vld [vmem:[%s3438_s1] ss:$8 sps:$4 sm:$0xff]   ;;  %v2257_v32 = vld [vmem:[%s3438_s1 + $0xf4] ss:$8 sps:$4 sm:$0xff]   ;;  %v2261_v34 = vld [vmem:[%s3438_s1 + $0xf0] ss:$8 sps:$4 sm:$0xff]  }
   0xc   :  { %1636 = vmatpush1.bf16.msra.mxu1 %v2226_v11  ;;  %1596 = vmatprep.subr.bf16.mxu0 %v2227_v12  ;;  %v2256_v31 = vld [vmem:[%s3438_s1 + $0x100] ss:$8 sps:$4 sm:$0xff]   ;;  %v2259_v33 = vld [vmem:[%s3438_s1 + $0x1f4] ss:$8 sps:$4 sm:$0xff]   ;;  %v2262_v35 = vld [vmem:[%s3438_s1 + $0x1f0] ss:$8 sps:$4 sm:$0xff]  }
   0xd   :  { %1637 = vmatprep.subr.bf16.mxu1 %v2229_v13  ;;  %v2263_v36 = vld [vmem:[%s3438_s1 + $0xe4] ss:$8 sps:$4 sm:$0xff]   ;;  %v2267_v38 = vld [vmem:[%s3438_s1 + $0xe0] ss:$8 sps:$4 sm:$0xff]   ;;  %v2269_v40 = vld [vmem:[%s3438_s1 + $0xd4] ss:$8 sps:$4 sm:$0xff]  }
   0xe   :  { %v2265_v37 = vld [vmem:[%s3438_s1 + $0x1e4] ss:$8 sps:$4 sm:$0xff]   ;;  %v2268_v39 = vld [vmem:[%s3438_s1 + $0x1e0] ss:$8 sps:$4 sm:$0xff]   ;;  %v2271_v41 = vld [vmem:[%s3438_s1 + $0x1d4] ss:$8 sps:$4 sm:$0xff]  }
   0xf   :  { %1597 = vmatpush1.bf16.msra.mxu0 %v2231_v14  ;;  %v2273_v42 = vld [vmem:[%s3438_s1 + $0xd0] ss:$8 sps:$4 sm:$0xff]   ;;  %v2275_v44 = vld [vmem:[%s3438_s1 + $0xc4] ss:$8 sps:$4 sm:$0xff]   ;;  %v2279_v47 = vld [vmem:[%s3438_s1 + $0xc0] ss:$8 sps:$4 sm:$0xff]  }
  0x10   :  { %1638 = vmatpush1.bf16.msra.mxu1 %v2232_v15  ;;  %1598 = vmatprep.subr.bf16.mxu0 %v2233_v16  ;;  %v2274_v43 = vld [vmem:[%s3438_s1 + $0x1d0] ss:$8 sps:$4 sm:$0xff]   ;;  %v2277_v45 = vld [vmem:[%s3438_s1 + $0x1c4] ss:$8 sps:$4 sm:$0xff]   ;;  %v2280_v48 = vld [vmem:[%s3438_s1 + $0x1c0] ss:$8 sps:$4 sm:$0xff]  }
  0x11   :  { %1639 = vmatprep.subr.bf16.mxu1 %v2235_v17  ;;  %v21_v46 = vld [vmem:[%s3439_s0 + $0x8] sm:$0xff]  ;;  %v23_v50 = vld [vmem:[%s3439_s0 + $0x18] sm:$0xff]  ;;  %v20_v4 = vld [vmem:[%s3439_s0] sm:$0xff] }
  0x12   :  { %v37_v49 = vpack.c.bf16 %v21_v46, %v21_v46  ;;  %v2281_v51 = vld [vmem:[%s3438_s1 + $0xb4] ss:$8 sps:$4 sm:$0xff]   ;;  %v39_v52 = vpack.c.bf16 %v23_v50, %v23_v50  ;;  %v2285_v54 = vld [vmem:[%s3438_s1 + $0xb0] ss:$8 sps:$4 sm:$0xff]   ;;  %v2287_v56 = vld [vmem:[%s3438_s1 + $0xa4] ss:$8 sps:$4 sm:$0xff]   ;;  %v36_v8 = vpack.c.bf16 %v20_v4, %v20_v4 }
  0x13   :  { %1599 = vmatpush1.bf16.msra.mxu0 %v2237_v18  ;;  %v2283_v53 = vld [vmem:[%s3438_s1 + $0x1b4] ss:$8 sps:$4 sm:$0xff]   ;;  %v2286_v55 = vld [vmem:[%s3438_s1 + $0x1b0] ss:$8 sps:$4 sm:$0xff]   ;;  %v2289_v57 = vld [vmem:[%s3438_s1 + $0x1a4] ss:$8 sps:$4 sm:$0xff]  }
  0x14   :  { %1640 = vmatpush1.bf16.msra.mxu1 %v2238_v19  ;;  %1600 = vmatprep.subr.bf16.mxu0 %v2239_v20  ;;  %v2291_v58 = vld [vmem:[%s3438_s1 + $0xa0] ss:$8 sps:$4 sm:$0xff]   ;;  %v2293_v60 = vld [vmem:[%s3438_s1 + $0x94] ss:$8 sps:$4 sm:$0xff]   ;;  %v2297_v62 = vld [vmem:[%s3438_s1 + $0x90] ss:$8 sps:$4 sm:$0xff]  }
  0x15   :  { %1641 = vmatprep.subr.bf16.mxu1 %v2241_v21  ;;  %1622 = vmatprep.mubr.bf16.mxu0 %v37_v49  ;;  %v2292_v59 = vld [vmem:[%s3438_s1 + $0x1a0] ss:$8 sps:$4 sm:$0xff]   ;;  %v2295_v61 = vld [vmem:[%s3438_s1 + $0x194] ss:$8 sps:$4 sm:$0xff]   ;;  %v2298_v63 = vld [vmem:[%s3438_s1 + $0x190] ss:$8 sps:$4 sm:$0xff]  }
  0x16   :  { %1663 = vmatprep.mubr.bf16.mxu1 %v39_v52  ;;  %v2299_v0 = vld [vmem:[%s3438_s1 + $0x84] ss:$8 sps:$4 sm:$0xff]   ;;  %v2303_v2 = vld [vmem:[%s3438_s1 + $0x80] ss:$8 sps:$4 sm:$0xff]   ;;  %v22_v5 = vld [vmem:[%s3439_s0 + $0x10] sm:$0xff] }
  0x17   :  { %1601 = vmatpush1.bf16.msra.mxu0 %v2243_v22  ;;  %v2301_v1 = vld [vmem:[%s3438_s1 + $0x184] ss:$8 sps:$4 sm:$0xff]   ;;  %v2304_v3 = vld [vmem:[%s3438_s1 + $0x180] ss:$8 sps:$4 sm:$0xff]   ;;  %v2307_v6 = vld [vmem:[%s3438_s1 + $0x274] ss:$8 sps:$4 sm:$0xff]   ;;  %v38_v9 = vpack.c.bf16 %v22_v5, %v22_v5 }
  0x18   :  { %1642 = vmatpush1.bf16.msra.mxu1 %v2244_v23  ;;  %1602 = vmatprep.subr.bf16.mxu0 %v2245_v24  ;;  %v2310_v7 = vld [vmem:[%s3438_s1 + $0x374] ss:$8 sps:$4 sm:$0xff]   ;;  %v2305_v10 = vld [vmem:[%s3438_s1 + $0x270] ss:$8 sps:$4 sm:$0xff]   ;;  %v2313_v12 = vld [vmem:[%s3438_s1 + $0x264] ss:$8 sps:$4 sm:$0xff]  }
  0x19   :  { %1643 = vmatprep.subr.bf16.mxu1 %v2247_v25  ;;  %v2308_v11 = vld [vmem:[%s3438_s1 + $0x370] ss:$8 sps:$4 sm:$0xff]   ;;  %v2316_v13 = vld [vmem:[%s3438_s1 + $0x364] ss:$8 sps:$4 sm:$0xff]   ;;  %v2311_v14 = vld [vmem:[%s3438_s1 + $0x260] ss:$8 sps:$4 sm:$0xff]  }
  0x1a   :  { %v2314_v15 = vld [vmem:[%s3438_s1 + $0x360] ss:$8 sps:$4 sm:$0xff]   ;;  %v2319_v16 = vld [vmem:[%s3438_s1 + $0x254] ss:$8 sps:$4 sm:$0xff]   ;;  %v2317_v18 = vld [vmem:[%s3438_s1 + $0x250] ss:$8 sps:$4 sm:$0xff]  }
  0x1b   :  { %1603 = vmatpush1.bf16.msra.mxu0 %v2249_v26  ;;  %v2322_v17 = vld [vmem:[%s3438_s1 + $0x354] ss:$8 sps:$4 sm:$0xff]   ;;  %v2320_v19 = vld [vmem:[%s3438_s1 + $0x350] ss:$8 sps:$4 sm:$0xff]   ;;  %v2325_v20 = vld [vmem:[%s3438_s1 + $0x244] ss:$8 sps:$4 sm:$0xff]  }
  0x1c   :  { %1644 = vmatpush1.bf16.msra.mxu1 %v2250_v27  ;;  %1604 = vmatprep.subr.bf16.mxu0 %v2251_v28  ;;  %v2328_v21 = vld [vmem:[%s3438_s1 + $0x344] ss:$8 sps:$4 sm:$0xff]   ;;  %v2323_v22 = vld [vmem:[%s3438_s1 + $0x240] ss:$8 sps:$4 sm:$0xff]   ;;  %v2331_v24 = vld [vmem:[%s3438_s1 + $0x234] ss:$8 sps:$4 sm:$0xff]  }
  0x1d   :  { %1645 = vmatprep.subr.bf16.mxu1 %v2253_v29  ;;  %v2326_v23 = vld [vmem:[%s3438_s1 + $0x340] ss:$8 sps:$4 sm:$0xff]   ;;  %v2334_v25 = vld [vmem:[%s3438_s1 + $0x334] ss:$8 sps:$4 sm:$0xff]   ;;  %v2329_v26 = vld [vmem:[%s3438_s1 + $0x230] ss:$8 sps:$4 sm:$0xff]  }
  0x1e   :  { %v2332_v27 = vld [vmem:[%s3438_s1 + $0x330] ss:$8 sps:$4 sm:$0xff]   ;;  %v2337_v28 = vld [vmem:[%s3438_s1 + $0x224] ss:$8 sps:$4 sm:$0xff]   ;;  %v2359_v50 = vld [vmem:[%s3438_s1 + $0x2e0] ss:$8 sps:$4 sm:$0xff]  }
  0x1f   :  { %1605 = vmatpush1.bf16.msra.mxu0 %v2255_v30  ;;  %v2340_v29 = vld [vmem:[%s3438_s1 + $0x324] ss:$8 sps:$4 sm:$0xff]   ;;  %v2335_v30 = vld [vmem:[%s3438_s1 + $0x220] ss:$8 sps:$4 sm:$0xff]   ;;  %v2353_v46 = vld [vmem:[%s3438_s1 + $0x2f0] ss:$8 sps:$4 sm:$0xff]  }
  0x20   :  { %1646 = vmatpush1.bf16.msra.mxu1 %v2256_v31  ;;  %1606 = vmatprep.subr.bf16.mxu0 %v2257_v32  ;;  %v2338_v31 = vld [vmem:[%s3438_s1 + $0x320] ss:$8 sps:$4 sm:$0xff]   ;;  %v2343_v32 = vld [vmem:[%s3438_s1 + $0x214] ss:$8 sps:$4 sm:$0xff]   ;;  %v2364_v49 = vld [vmem:[%s3438_s1 + $0x3e4] ss:$8 sps:$4 sm:$0xff]  }
  0x21   :  { %1647 = vmatprep.subr.bf16.mxu1 %v2259_v33  ;;  %v2346_v33 = vld [vmem:[%s3438_s1 + $0x314] ss:$8 sps:$4 sm:$0xff]  }
  0x22   :  { %v2367_v52 = vld [vmem:[%s3438_s1 + $0x2d4] ss:$8 sps:$4 sm:$0xff]  }
  0x23   :  { %1607 = vmatpush2.bf16.msra.mxu0 %v2261_v34  ;;  %v25_v34 = vld [vmem:[%s3439_s0 + $0x28] sm:$0xff]  ;;  %v2391_v4 = vld [vmem:[%s3438_s1 + $0x294] ss:$8 sps:$4 sm:$0xff]  }
  0x24   :  { %1648 = vmatpush2.bf16.msra.mxu1 %v2262_v35  ;;  %1608 = vmatprep.subr.bf16.mxu0 %v2263_v36  ;;  %v2341_v35 = vld [vmem:[%s3438_s1 + $0x210] ss:$8 sps:$4 sm:$0xff]   ;;  %v2394_v5 = vld [vmem:[%s3438_s1 + $0x394] ss:$8 sps:$4 sm:$0xff]  }
  0x25   :  { %1649 = vmatprep.subr.bf16.mxu1 %v2265_v37  ;;  %v2344_v36 = vld [vmem:[%s3438_s1 + $0x310] ss:$8 sps:$4 sm:$0xff]   ;;  %v41_v37 = vpack.c.bf16 %v25_v34, %v25_v34  ;;  %v2419_v34 = vld [vmem:[%s3438_s1 + $0x440] ss:$8 sps:$4 sm:$0xff]  }
  0x27   :  { %1609 = vmatpush2.bf16.msra.mxu0 %v2267_v38  ;;  %v27_v38 = vld [vmem:[%s3439_s0 + $0x38] sm:$0xff] }
  0x28   :  { %1650 = vmatpush2.bf16.msra.mxu1 %v2268_v39  ;;  %1610 = vmatprep.subr.bf16.mxu0 %v2269_v40  ;;  %v2349_v39 = vld [vmem:[%s3438_s1 + $0x204] ss:$8 sps:$4 sm:$0xff]   ;;  %v43_v40 = vpack.c.bf16 %v27_v38, %v27_v38  ;;  %v2425_v38 = vld [vmem:[%s3438_s1 + $0x430] ss:$8 sps:$4 sm:$0xff]  }
  0x29   :  { %1651 = vmatprep.subr.bf16.mxu1 %v2271_v41  ;;  %v2352_v41 = vld [vmem:[%s3438_s1 + $0x304] ss:$8 sps:$4 sm:$0xff]  }
  0x2b   :  { %1611 = vmatpush2.bf16.msra.mxu0 %v2273_v42  ;;  %v2347_v42 = vld [vmem:[%s3438_s1 + $0x200] ss:$8 sps:$4 sm:$0xff]  }
  0x2c   :  { %1652 = vmatpush2.bf16.msra.mxu1 %v2274_v43  ;;  %1612 = vmatprep.subr.bf16.mxu0 %v2275_v44  ;;  %v2350_v43 = vld [vmem:[%s3438_s1 + $0x300] ss:$8 sps:$4 sm:$0xff]   ;;  %v2355_v44 = vld [vmem:[%s3438_s1 + $0x2f4] ss:$8 sps:$4 sm:$0xff]  }
  0x2d   :  { %1653 = vmatprep.subr.bf16.mxu1 %v2277_v45  ;;  %v2358_v45 = vld [vmem:[%s3438_s1 + $0x3f4] ss:$8 sps:$4 sm:$0xff]  }
  0x2f   :  { %1613 = vmatpush2.bf16.msra.mxu0 %v2279_v47  ;;  %v2356_v47 = vld [vmem:[%s3438_s1 + $0x3f0] ss:$8 sps:$4 sm:$0xff]  }
  0x30   :  { %1654 = vmatpush2.bf16.msra.mxu1 %v2280_v48  ;;  %1614 = vmatprep.subr.bf16.mxu0 %v2281_v51  ;;  %v2361_v48 = vld [vmem:[%s3438_s1 + $0x2e4] ss:$8 sps:$4 sm:$0xff]   ;;  %v2362_v51 = vld [vmem:[%s3438_s1 + $0x3e0] ss:$8 sps:$4 sm:$0xff]  }
  0x31   :  { %1655 = vmatprep.subr.bf16.mxu1 %v2283_v53  ;;  %v2370_v53 = vld [vmem:[%s3438_s1 + $0x3d4] ss:$8 sps:$4 sm:$0xff]  }
  0x33   :  { %1615 = vmatpush2.bf16.msra.mxu0 %v2285_v54  ;;  %v2365_v54 = vld [vmem:[%s3438_s1 + $0x2d0] ss:$8 sps:$4 sm:$0xff]  }
  0x34   :  { %1656 = vmatpush2.bf16.msra.mxu1 %v2286_v55  ;;  %1616 = vmatprep.subr.bf16.mxu0 %v2287_v56  ;;  %v2368_v55 = vld [vmem:[%s3438_s1 + $0x3d0] ss:$8 sps:$4 sm:$0xff]   ;;  %v2373_v56 = vld [vmem:[%s3438_s1 + $0x2c4] ss:$8 sps:$4 sm:$0xff]  }
  0x35   :  { %1657 = vmatprep.subr.bf16.mxu1 %v2289_v57  ;;  %v2376_v57 = vld [vmem:[%s3438_s1 + $0x3c4] ss:$8 sps:$4 sm:$0xff]  }
  0x37   :  { %1617 = vmatpush2.bf16.msra.mxu0 %v2291_v58  ;;  %v2371_v58 = vld [vmem:[%s3438_s1 + $0x2c0] ss:$8 sps:$4 sm:$0xff]  }
  0x38   :  { %1658 = vmatpush2.bf16.msra.mxu1 %v2292_v59  ;;  %1618 = vmatprep.subr.bf16.mxu0 %v2293_v60  ;;  %v2374_v59 = vld [vmem:[%s3438_s1 + $0x3c0] ss:$8 sps:$4 sm:$0xff]   ;;  %v2379_v60 = vld [vmem:[%s3438_s1 + $0x2b4] ss:$8 sps:$4 sm:$0xff]  }
  0x39   :  { %1659 = vmatprep.subr.bf16.mxu1 %v2295_v61  ;;  %v2382_v61 = vld [vmem:[%s3438_s1 + $0x3b4] ss:$8 sps:$4 sm:$0xff]  }
  0x3b   :  { %1619 = vmatpush2.bf16.msra.mxu0 %v2297_v62  ;;  %v2377_v62 = vld [vmem:[%s3438_s1 + $0x2b0] ss:$8 sps:$4 sm:$0xff]  }
  0x3c   :  { %1660 = vmatpush2.bf16.msra.mxu1 %v2298_v63  ;;  %1620 = vmatprep.subr.bf16.mxu0 %v2299_v0  ;;  %v2380_v63 = vld [vmem:[%s3438_s1 + $0x3b0] ss:$8 sps:$4 sm:$0xff]   ;;  %v2385_v0 = vld [vmem:[%s3438_s1 + $0x2a4] ss:$8 sps:$4 sm:$0xff]  }
  0x3d   :  { %1661 = vmatprep.subr.bf16.mxu1 %v2301_v1  ;;  %v2388_v1 = vld [vmem:[%s3438_s1 + $0x3a4] ss:$8 sps:$4 sm:$0xff]  }
  0x3f   :  { %1621 = vmatpush2.bf16.msra.mxu0 %v2303_v2  ;;  %v2383_v2 = vld [vmem:[%s3438_s1 + $0x2a0] ss:$8 sps:$4 sm:$0xff]  }
  0x40   :  { %1662 = vmatpush2.bf16.msra.mxu1 %v2304_v3  ;;  %1672 = vmatprep.subr.bf16.mxu0 %v2307_v6  ;;  %v2386_v3 = vld [vmem:[%s3438_s1 + $0x3a0] ss:$8 sps:$4 sm:$0xff]   ;;  %v2389_v6 = vld [vmem:[%s3438_s1 + $0x290] ss:$8 sps:$4 sm:$0xff]  }
  0x41   :  { %1713 = vmatprep.subr.bf16.mxu1 %v2310_v7  ;;  %v2392_v7 = vld [vmem:[%s3438_s1 + $0x390] ss:$8 sps:$4 sm:$0xff]  }
  0x42   :  { %1623 = vmatmul.mubr.bf16.vlgmr.msra.gmra.mxu0 %v36_v8  ;;  %v2397_v8 = vld [vmem:[%s3438_s1 + $0x284] ss:$8 sps:$4 sm:$0xff]  }
  0x43   :  { %1664 = vmatmul.mubr.bf16.vlgmr.msra.gmra.mxu1 %v38_v9  ;;  %1673 = vmatpush1.bf16.msra.mxu0 %v2305_v10  ;;  %v2400_v9 = vld [vmem:[%s3438_s1 + $0x384] ss:$8 sps:$4 sm:$0xff]   ;;  %v2395_v10 = vld [vmem:[%s3438_s1 + $0x280] ss:$8 sps:$4 sm:$0xff]  }
  0x44   :  { %1714 = vmatpush1.bf16.msra.mxu1 %v2308_v11  ;;  %1674 = vmatprep.subr.bf16.mxu0 %v2313_v12  ;;  %v2398_v11 = vld [vmem:[%s3438_s1 + $0x380] ss:$8 sps:$4 sm:$0xff]  }
  0x45   :  { %1715 = vmatprep.subr.bf16.mxu1 %v2316_v13  ;;  %1704 = vmatprep.mubr.bf16.mxu0 %v41_v37  ;;  %v24_v12 = vld [vmem:[%s3439_s0 + $0x20] sm:$0xff]  ;;  %v26_v13 = vld [vmem:[%s3439_s0 + $0x30] sm:$0xff] }
  0x46   :  { %1745 = vmatprep.mubr.bf16.mxu1 %v43_v40  ;;  %v2430_v37 = vld [vmem:[%s3438_s1 + $0x534] ss:$8 sps:$4 sm:$0xff]   ;;  %v2433_v40 = vld [vmem:[%s3438_s1 + $0x424] ss:$8 sps:$4 sm:$0xff]  }
  0x47   :  { %1675 = vmatpush1.bf16.msra.mxu0 %v2311_v14  ;;  %v2403_v14 = vld [vmem:[%s3438_s1 + $0x474] ss:$8 sps:$4 sm:$0xff]  }
  0x48   :  { %1716 = vmatpush1.bf16.msra.mxu1 %v2314_v15  ;;  %1676 = vmatprep.subr.bf16.mxu0 %v2319_v16  ;;  %v2406_v15 = vld [vmem:[%s3438_s1 + $0x574] ss:$8 sps:$4 sm:$0xff]   ;;  %v40_v16 = vpack.c.bf16 %v24_v12, %v24_v12 }
  0x49   :  { %1717 = vmatprep.subr.bf16.mxu1 %v2322_v17  ;;  %v42_v17 = vpack.c.bf16 %v26_v13, %v26_v13  ;;  %v2487_v12 = vld [vmem:[%s3438_s1 + $0x494] ss:$8 sps:$4 sm:$0xff]  }
  0x4a   :  { %v2490_v13 = vld [vmem:[%s3438_s1 + $0x594] ss:$8 sps:$4 sm:$0xff]  }
  0x4b   :  { %1677 = vmatpush1.bf16.msra.mxu0 %v2317_v18  ;;  %v2401_v18 = vld [vmem:[%s3438_s1 + $0x470] ss:$8 sps:$4 sm:$0xff]  }
  0x4c   :  { %1718 = vmatpush1.bf16.msra.mxu1 %v2320_v19  ;;  %1678 = vmatprep.subr.bf16.mxu0 %v2325_v20  ;;  %v2404_v19 = vld [vmem:[%s3438_s1 + $0x570] ss:$8 sps:$4 sm:$0xff]   ;;  %v2409_v20 = vld [vmem:[%s3438_s1 + $0x464] ss:$8 sps:$4 sm:$0xff]  }
  0x4d   :  { %1719 = vmatprep.subr.bf16.mxu1 %v2328_v21  ;;  %v2412_v21 = vld [vmem:[%s3438_s1 + $0x564] ss:$8 sps:$4 sm:$0xff]  }
  0x4f   :  { %1679 = vmatpush1.bf16.msra.mxu0 %v2323_v22  ;;  %v29_v22 = vld [vmem:[%s3439_s0 + $0x48] sm:$0xff] }
  0x50   :  { %1720 = vmatpush1.bf16.msra.mxu1 %v2326_v23  ;;  %1680 = vmatprep.subr.bf16.mxu0 %v2331_v24  ;;  %v2407_v23 = vld [vmem:[%s3438_s1 + $0x460] ss:$8 sps:$4 sm:$0xff]  }
  0x51   :  { %1721 = vmatprep.subr.bf16.mxu1 %v2334_v25  ;;  %v2410_v24 = vld [vmem:[%s3438_s1 + $0x560] ss:$8 sps:$4 sm:$0xff]   ;;  %v45_v25 = vpack.c.bf16 %v29_v22, %v29_v22  ;;  %v2499_v22 = vld [vmem:[%s3438_s1 + $0x674] ss:$8 sps:$4 sm:$0xff]  }
  0x53   :  { %1681 = vmatpush1.bf16.msra.mxu0 %v2329_v26  ;;  %v31_v26 = vld [vmem:[%s3439_s0 + $0x58] sm:$0xff] }
  0x54   :  { %1722 = vmatpush1.bf16.msra.mxu1 %v2332_v27  ;;  %1682 = vmatprep.subr.bf16.mxu0 %v2337_v28  ;;  %v2415_v27 = vld [vmem:[%s3438_s1 + $0x454] ss:$8 sps:$4 sm:$0xff]   ;;  %v47_v28 = vpack.c.bf16 %v31_v26, %v31_v26  ;;  %v33_v26 = vld [vmem:[%s3439_s0 + $0x68] sm:$0xff] }
  0x55   :  { %1723 = vmatprep.subr.bf16.mxu1 %v2340_v29  ;;  %v2418_v29 = vld [vmem:[%s3438_s1 + $0x554] ss:$8 sps:$4 sm:$0xff]  }
  0x57   :  { %1683 = vmatpush1.bf16.msra.mxu0 %v2335_v30  ;;  %v2413_v30 = vld [vmem:[%s3438_s1 + $0x450] ss:$8 sps:$4 sm:$0xff]  }
  0x58   :  { %1724 = vmatpush1.bf16.msra.mxu1 %v2338_v31  ;;  %1684 = vmatprep.subr.bf16.mxu0 %v2343_v32  ;;  %v2416_v31 = vld [vmem:[%s3438_s1 + $0x550] ss:$8 sps:$4 sm:$0xff]   ;;  %v2421_v32 = vld [vmem:[%s3438_s1 + $0x444] ss:$8 sps:$4 sm:$0xff]  }
  0x59   :  { %1725 = vmatprep.subr.bf16.mxu1 %v2346_v33  ;;  %v2424_v33 = vld [vmem:[%s3438_s1 + $0x544] ss:$8 sps:$4 sm:$0xff]  }
  0x5b   :  { %1685 = vmatpush1.bf16.msra.mxu0 %v2341_v35  ;;  %v2422_v35 = vld [vmem:[%s3438_s1 + $0x540] ss:$8 sps:$4 sm:$0xff]  }
  0x5c   :  { %1726 = vmatpush1.bf16.msra.mxu1 %v2344_v36  ;;  %1686 = vmatprep.subr.bf16.mxu0 %v2349_v39  ;;  %v2427_v36 = vld [vmem:[%s3438_s1 + $0x434] ss:$8 sps:$4 sm:$0xff]   ;;  %v2428_v39 = vld [vmem:[%s3438_s1 + $0x530] ss:$8 sps:$4 sm:$0xff]  }
  0x5d   :  { %1727 = vmatprep.subr.bf16.mxu1 %v2352_v41  ;;  %v2436_v41 = vld [vmem:[%s3438_s1 + $0x524] ss:$8 sps:$4 sm:$0xff]  }
  0x5f   :  { %1687 = vmatpush1.bf16.msra.mxu0 %v2347_v42  ;;  %v2431_v42 = vld [vmem:[%s3438_s1 + $0x420] ss:$8 sps:$4 sm:$0xff]  }
  0x60   :  { %1728 = vmatpush1.bf16.msra.mxu1 %v2350_v43  ;;  %1688 = vmatprep.subr.bf16.mxu0 %v2355_v44  ;;  %v2434_v43 = vld [vmem:[%s3438_s1 + $0x520] ss:$8 sps:$4 sm:$0xff]   ;;  %v2439_v44 = vld [vmem:[%s3438_s1 + $0x414] ss:$8 sps:$4 sm:$0xff]  }
  0x61   :  { %1729 = vmatprep.subr.bf16.mxu1 %v2358_v45  ;;  %v2442_v45 = vld [vmem:[%s3438_s1 + $0x514] ss:$8 sps:$4 sm:$0xff]  }
  0x63   :  { %1689 = vmatpush2.bf16.msra.mxu0 %v2353_v46  ;;  %v2437_v46 = vld [vmem:[%s3438_s1 + $0x410] ss:$8 sps:$4 sm:$0xff]  }
  0x64   :  { %1730 = vmatpush2.bf16.msra.mxu1 %v2356_v47  ;;  %1690 = vmatprep.subr.bf16.mxu0 %v2361_v48  ;;  %v2440_v47 = vld [vmem:[%s3438_s1 + $0x510] ss:$8 sps:$4 sm:$0xff]   ;;  %v2445_v48 = vld [vmem:[%s3438_s1 + $0x404] ss:$8 sps:$4 sm:$0xff]  }
  0x65   :  { %1731 = vmatprep.subr.bf16.mxu1 %v2364_v49  ;;  %v2448_v49 = vld [vmem:[%s3438_s1 + $0x504] ss:$8 sps:$4 sm:$0xff]  }
  0x67   :  { %1691 = vmatpush2.bf16.msra.mxu0 %v2359_v50  ;;  %v2443_v50 = vld [vmem:[%s3438_s1 + $0x400] ss:$8 sps:$4 sm:$0xff]  }
  0x68   :  { %1732 = vmatpush2.bf16.msra.mxu1 %v2362_v51  ;;  %1692 = vmatprep.subr.bf16.mxu0 %v2367_v52  ;;  %v2446_v51 = vld [vmem:[%s3438_s1 + $0x500] ss:$8 sps:$4 sm:$0xff]   ;;  %v2451_v52 = vld [vmem:[%s3438_s1 + $0x4f4] ss:$8 sps:$4 sm:$0xff]  }
  0x69   :  { %1733 = vmatprep.subr.bf16.mxu1 %v2370_v53  ;;  %v2454_v53 = vld [vmem:[%s3438_s1 + $0x5f4] ss:$8 sps:$4 sm:$0xff]  }
  0x6b   :  { %1693 = vmatpush2.bf16.msra.mxu0 %v2365_v54  ;;  %v2449_v54 = vld [vmem:[%s3438_s1 + $0x4f0] ss:$8 sps:$4 sm:$0xff]  }
  0x6c   :  { %1734 = vmatpush2.bf16.msra.mxu1 %v2368_v55  ;;  %1694 = vmatprep.subr.bf16.mxu0 %v2373_v56  ;;  %v2452_v55 = vld [vmem:[%s3438_s1 + $0x5f0] ss:$8 sps:$4 sm:$0xff]   ;;  %v2457_v56 = vld [vmem:[%s3438_s1 + $0x4e4] ss:$8 sps:$4 sm:$0xff]  }
  0x6d   :  { %1735 = vmatprep.subr.bf16.mxu1 %v2376_v57  ;;  %v2460_v57 = vld [vmem:[%s3438_s1 + $0x5e4] ss:$8 sps:$4 sm:$0xff]  }
  0x6f   :  { %1695 = vmatpush2.bf16.msra.mxu0 %v2371_v58  ;;  %v2455_v58 = vld [vmem:[%s3438_s1 + $0x4e0] ss:$8 sps:$4 sm:$0xff]  }
  0x70   :  { %1736 = vmatpush2.bf16.msra.mxu1 %v2374_v59  ;;  %1696 = vmatprep.subr.bf16.mxu0 %v2379_v60  ;;  %v2458_v59 = vld [vmem:[%s3438_s1 + $0x5e0] ss:$8 sps:$4 sm:$0xff]   ;;  %v2463_v60 = vld [vmem:[%s3438_s1 + $0x4d4] ss:$8 sps:$4 sm:$0xff]  }
  0x71   :  { %1737 = vmatprep.subr.bf16.mxu1 %v2382_v61  ;;  %v2466_v61 = vld [vmem:[%s3438_s1 + $0x5d4] ss:$8 sps:$4 sm:$0xff]  }
  0x73   :  { %1697 = vmatpush2.bf16.msra.mxu0 %v2377_v62  ;;  %v2461_v62 = vld [vmem:[%s3438_s1 + $0x4d0] ss:$8 sps:$4 sm:$0xff]  }
  0x74   :  { %1738 = vmatpush2.bf16.msra.mxu1 %v2380_v63  ;;  %1698 = vmatprep.subr.bf16.mxu0 %v2385_v0  ;;  %v2464_v63 = vld [vmem:[%s3438_s1 + $0x5d0] ss:$8 sps:$4 sm:$0xff]   ;;  %v2469_v0 = vld [vmem:[%s3438_s1 + $0x4c4] ss:$8 sps:$4 sm:$0xff]  }
  0x75   :  { %1739 = vmatprep.subr.bf16.mxu1 %v2388_v1  ;;  %v2472_v1 = vld [vmem:[%s3438_s1 + $0x5c4] ss:$8 sps:$4 sm:$0xff]  }
  0x77   :  { %1699 = vmatpush2.bf16.msra.mxu0 %v2383_v2  ;;  %v2467_v2 = vld [vmem:[%s3438_s1 + $0x4c0] ss:$8 sps:$4 sm:$0xff]  }
  0x78   :  { %1740 = vmatpush2.bf16.msra.mxu1 %v2386_v3  ;;  %1700 = vmatprep.subr.bf16.mxu0 %v2391_v4  ;;  %v2470_v3 = vld [vmem:[%s3438_s1 + $0x5c0] ss:$8 sps:$4 sm:$0xff]   ;;  %v2475_v4 = vld [vmem:[%s3438_s1 + $0x4b4] ss:$8 sps:$4 sm:$0xff]  }
  0x79   :  { %1741 = vmatprep.subr.bf16.mxu1 %v2394_v5  ;;  %v2478_v5 = vld [vmem:[%s3438_s1 + $0x5b4] ss:$8 sps:$4 sm:$0xff]  }
  0x7b   :  { %1701 = vmatpush2.bf16.msra.mxu0 %v2389_v6  ;;  %v2473_v6 = vld [vmem:[%s3438_s1 + $0x4b0] ss:$8 sps:$4 sm:$0xff]  }
  0x7c   :  { %1742 = vmatpush2.bf16.msra.mxu1 %v2392_v7  ;;  %1702 = vmatprep.subr.bf16.mxu0 %v2397_v8  ;;  %v2476_v7 = vld [vmem:[%s3438_s1 + $0x5b0] ss:$8 sps:$4 sm:$0xff]   ;;  %v2481_v8 = vld [vmem:[%s3438_s1 + $0x4a4] ss:$8 sps:$4 sm:$0xff]  }
  0x7d   :  { %1743 = vmatprep.subr.bf16.mxu1 %v2400_v9  ;;  %v2484_v9 = vld [vmem:[%s3438_s1 + $0x5a4] ss:$8 sps:$4 sm:$0xff]  }
  0x7f   :  { %1703 = vmatpush2.bf16.msra.mxu0 %v2395_v10  ;;  %v2479_v10 = vld [vmem:[%s3438_s1 + $0x4a0] ss:$8 sps:$4 sm:$0xff]  }
  0x80   :  { %1744 = vmatpush2.bf16.msra.mxu1 %v2398_v11  ;;  %1754 = vmatprep.subr.bf16.mxu0 %v2403_v14  ;;  %v2482_v11 = vld [vmem:[%s3438_s1 + $0x5a0] ss:$8 sps:$4 sm:$0xff]   ;;  %v2485_v14 = vld [vmem:[%s3438_s1 + $0x490] ss:$8 sps:$4 sm:$0xff]  }
  0x81   :  { %1795 = vmatprep.subr.bf16.mxu1 %v2406_v15  ;;  %v2488_v15 = vld [vmem:[%s3438_s1 + $0x590] ss:$8 sps:$4 sm:$0xff]  }
  0x82   :  { %1705 = vmatmul.mubr.bf16.vlgmr.msra.gmra.mxu0 %v40_v16  ;;  %v2493_v16 = vld [vmem:[%s3438_s1 + $0x484] ss:$8 sps:$4 sm:$0xff]  }
  0x83   :  { %1746 = vmatmul.mubr.bf16.vlgmr.msra.gmra.mxu1 %v42_v17  ;;  %1755 = vmatpush1.bf16.msra.mxu0 %v2401_v18  ;;  %v2496_v17 = vld [vmem:[%s3438_s1 + $0x584] ss:$8 sps:$4 sm:$0xff]   ;;  %v2491_v18 = vld [vmem:[%s3438_s1 + $0x480] ss:$8 sps:$4 sm:$0xff]  }
  0x84   :  { %1796 = vmatpush1.bf16.msra.mxu1 %v2404_v19  ;;  %1756 = vmatprep.subr.bf16.mxu0 %v2409_v20  ;;  %v2494_v19 = vld [vmem:[%s3438_s1 + $0x580] ss:$8 sps:$4 sm:$0xff]  }
  0x85   :  { %1797 = vmatprep.subr.bf16.mxu1 %v2412_v21  ;;  %1786 = vmatprep.mubr.bf16.mxu0 %v45_v25  ;;  %v28_v20 = vld [vmem:[%s3439_s0 + $0x40] sm:$0xff]  ;;  %v30_v21 = vld [vmem:[%s3439_s0 + $0x50] sm:$0xff] }
  0x86   :  { %1827 = vmatprep.mubr.bf16.mxu1 %v47_v28  ;;  %v46_v25 = vpack.c.bf16 %v30_v21, %v30_v21  ;;  %v2497_v28 = vld [vmem:[%s3438_s1 + $0x670] ss:$8 sps:$4 sm:$0xff]   ;;  %v2586_v21 = vld [vmem:[%s3438_s1 + $0x794] ss:$8 sps:$4 sm:$0xff]  }
  0x87   :  { %1757 = vmatpush1.bf16.msra.mxu0 %v2407_v23  ;;  %v2502_v23 = vld [vmem:[%s3438_s1 + $0x774] ss:$8 sps:$4 sm:$0xff]  }
  0x88   :  { %1798 = vmatpush1.bf16.msra.mxu1 %v2410_v24  ;;  %1758 = vmatprep.subr.bf16.mxu0 %v2415_v27  ;;  %v44_v24 = vpack.c.bf16 %v28_v20, %v28_v20  ;;  %v35_v27 = vld [vmem:[%s3439_s0 + $0x78] sm:$0xff] }
  0x89   :  { %1799 = vmatprep.subr.bf16.mxu1 %v2418_v29  ;;  %v2500_v29 = vld [vmem:[%s3438_s1 + $0x770] ss:$8 sps:$4 sm:$0xff]   ;;  %v2583_v20 = vld [vmem:[%s3438_s1 + $0x694] ss:$8 sps:$4 sm:$0xff]  }
  0x8b   :  { %1759 = vmatpush1.bf16.msra.mxu0 %v2413_v30  ;;  %v2505_v30 = vld [vmem:[%s3438_s1 + $0x664] ss:$8 sps:$4 sm:$0xff]  }
  0x8c   :  { %1800 = vmatpush1.bf16.msra.mxu1 %v2416_v31  ;;  %1760 = vmatprep.subr.bf16.mxu0 %v2421_v32  ;;  %v2508_v31 = vld [vmem:[%s3438_s1 + $0x764] ss:$8 sps:$4 sm:$0xff]   ;;  %v49_v32 = vpack.c.bf16 %v33_v26, %v33_v26  ;;  %v2587_v26 = vld [vmem:[%s3438_s1 + $0x680] ss:$8 sps:$4 sm:$0xff]  }
  0x8d   :  { %1801 = vmatprep.subr.bf16.mxu1 %v2424_v33  ;;  %v51_v33 = vpack.c.bf16 %v35_v27, %v35_v27  ;;  %v2590_v27 = vld [vmem:[%s3438_s1 + $0x780] ss:$8 sps:$4 sm:$0xff]  }
  0x8f   :  { %1761 = vmatpush1.bf16.msra.mxu0 %v2419_v34  ;;  %v2503_v34 = vld [vmem:[%s3438_s1 + $0x660] ss:$8 sps:$4 sm:$0xff]  }
  0x90   :  { %1802 = vmatpush1.bf16.msra.mxu1 %v2422_v35  ;;  %1762 = vmatprep.subr.bf16.mxu0 %v2427_v36  ;;  %v2506_v35 = vld [vmem:[%s3438_s1 + $0x760] ss:$8 sps:$4 sm:$0xff]   ;;  %v2511_v36 = vld [vmem:[%s3438_s1 + $0x654] ss:$8 sps:$4 sm:$0xff]  }
  0x91   :  { %1803 = vmatprep.subr.bf16.mxu1 %v2430_v37  ;;  %v2514_v37 = vld [vmem:[%s3438_s1 + $0x754] ss:$8 sps:$4 sm:$0xff]  }
  0x93   :  { %1763 = vmatpush1.bf16.msra.mxu0 %v2425_v38  ;;  %v2509_v38 = vld [vmem:[%s3438_s1 + $0x650] ss:$8 sps:$4 sm:$0xff]  }
  0x94   :  { %1804 = vmatpush1.bf16.msra.mxu1 %v2428_v39  ;;  %1764 = vmatprep.subr.bf16.mxu0 %v2433_v40  ;;  %v2512_v39 = vld [vmem:[%s3438_s1 + $0x750] ss:$8 sps:$4 sm:$0xff]   ;;  %v2517_v40 = vld [vmem:[%s3438_s1 + $0x644] ss:$8 sps:$4 sm:$0xff]  }
  0x95   :  { %1805 = vmatprep.subr.bf16.mxu1 %v2436_v41  ;;  %v2520_v41 = vld [vmem:[%s3438_s1 + $0x744] ss:$8 sps:$4 sm:$0xff]  }
  0x97   :  { %1765 = vmatpush1.bf16.msra.mxu0 %v2431_v42  ;;  %v2515_v42 = vld [vmem:[%s3438_s1 + $0x640] ss:$8 sps:$4 sm:$0xff]  }
  0x98   :  { %1806 = vmatpush1.bf16.msra.mxu1 %v2434_v43  ;;  %1766 = vmatprep.subr.bf16.mxu0 %v2439_v44  ;;  %v2518_v43 = vld [vmem:[%s3438_s1 + $0x740] ss:$8 sps:$4 sm:$0xff]   ;;  %v2523_v44 = vld [vmem:[%s3438_s1 + $0x634] ss:$8 sps:$4 sm:$0xff]  }
  0x99   :  { %1807 = vmatprep.subr.bf16.mxu1 %v2442_v45  ;;  %v2526_v45 = vld [vmem:[%s3438_s1 + $0x734] ss:$8 sps:$4 sm:$0xff]  }
  0x9b   :  { %1767 = vmatpush1.bf16.msra.mxu0 %v2437_v46  ;;  %v2521_v46 = vld [vmem:[%s3438_s1 + $0x630] ss:$8 sps:$4 sm:$0xff]  }
  0x9c   :  { %1808 = vmatpush1.bf16.msra.mxu1 %v2440_v47  ;;  %1768 = vmatprep.subr.bf16.mxu0 %v2445_v48  ;;  %v2524_v47 = vld [vmem:[%s3438_s1 + $0x730] ss:$8 sps:$4 sm:$0xff]   ;;  %v2529_v48 = vld [vmem:[%s3438_s1 + $0x624] ss:$8 sps:$4 sm:$0xff]  }
  0x9d   :  { %1809 = vmatprep.subr.bf16.mxu1 %v2448_v49  ;;  %v2532_v49 = vld [vmem:[%s3438_s1 + $0x724] ss:$8 sps:$4 sm:$0xff]  }
  0x9f   :  { %1769 = vmatpush1.bf16.msra.mxu0 %v2443_v50  ;;  %v2527_v50 = vld [vmem:[%s3438_s1 + $0x620] ss:$8 sps:$4 sm:$0xff]  }
  0xa0   :  { %1810 = vmatpush1.bf16.msra.mxu1 %v2446_v51  ;;  %1770 = vmatprep.subr.bf16.mxu0 %v2451_v52  ;;  %v2530_v51 = vld [vmem:[%s3438_s1 + $0x720] ss:$8 sps:$4 sm:$0xff]   ;;  %v2535_v52 = vld [vmem:[%s3438_s1 + $0x614] ss:$8 sps:$4 sm:$0xff]  }
  0xa1   :  { %1811 = vmatprep.subr.bf16.mxu1 %v2454_v53  ;;  %v2538_v53 = vld [vmem:[%s3438_s1 + $0x714] ss:$8 sps:$4 sm:$0xff]  }
  0xa3   :  { %1771 = vmatpush2.bf16.msra.mxu0 %v2449_v54  ;;  %v2533_v54 = vld [vmem:[%s3438_s1 + $0x610] ss:$8 sps:$4 sm:$0xff]  }
  0xa4   :  { %1812 = vmatpush2.bf16.msra.mxu1 %v2452_v55  ;;  %1772 = vmatprep.subr.bf16.mxu0 %v2457_v56  ;;  %v2536_v55 = vld [vmem:[%s3438_s1 + $0x710] ss:$8 sps:$4 sm:$0xff]   ;;  %v2541_v56 = vld [vmem:[%s3438_s1 + $0x604] ss:$8 sps:$4 sm:$0xff]  }
  0xa5   :  { %1813 = vmatprep.subr.bf16.mxu1 %v2460_v57  ;;  %v2544_v57 = vld [vmem:[%s3438_s1 + $0x704] ss:$8 sps:$4 sm:$0xff]  }
  0xa7   :  { %1773 = vmatpush2.bf16.msra.mxu0 %v2455_v58  ;;  %v2539_v58 = vld [vmem:[%s3438_s1 + $0x600] ss:$8 sps:$4 sm:$0xff]  }
  0xa8   :  { %1814 = vmatpush2.bf16.msra.mxu1 %v2458_v59  ;;  %1774 = vmatprep.subr.bf16.mxu0 %v2463_v60  ;;  %v2542_v59 = vld [vmem:[%s3438_s1 + $0x700] ss:$8 sps:$4 sm:$0xff]   ;;  %v2547_v60 = vld [vmem:[%s3438_s1 + $0x6f4] ss:$8 sps:$4 sm:$0xff]  }
  0xa9   :  { %1815 = vmatprep.subr.bf16.mxu1 %v2466_v61  ;;  %v2550_v61 = vld [vmem:[%s3438_s1 + $0x7f4] ss:$8 sps:$4 sm:$0xff]  }
  0xab   :  { %1775 = vmatpush2.bf16.msra.mxu0 %v2461_v62  ;;  %v2545_v62 = vld [vmem:[%s3438_s1 + $0x6f0] ss:$8 sps:$4 sm:$0xff]  }
  0xac   :  { %1816 = vmatpush2.bf16.msra.mxu1 %v2464_v63  ;;  %1776 = vmatprep.subr.bf16.mxu0 %v2469_v0  ;;  %v2548_v63 = vld [vmem:[%s3438_s1 + $0x7f0] ss:$8 sps:$4 sm:$0xff]   ;;  %v2553_v0 = vld [vmem:[%s3438_s1 + $0x6e4] ss:$8 sps:$4 sm:$0xff]  }
  0xad   :  { %1817 = vmatprep.subr.bf16.mxu1 %v2472_v1  ;;  %v2556_v1 = vld [vmem:[%s3438_s1 + $0x7e4] ss:$8 sps:$4 sm:$0xff]  }
  0xaf   :  { %1777 = vmatpush2.bf16.msra.mxu0 %v2467_v2  ;;  %v2551_v2 = vld [vmem:[%s3438_s1 + $0x6e0] ss:$8 sps:$4 sm:$0xff]  }
  0xb0   :  { %1818 = vmatpush2.bf16.msra.mxu1 %v2470_v3  ;;  %1778 = vmatprep.subr.bf16.mxu0 %v2475_v4  ;;  %v2554_v3 = vld [vmem:[%s3438_s1 + $0x7e0] ss:$8 sps:$4 sm:$0xff]   ;;  %v2559_v4 = vld [vmem:[%s3438_s1 + $0x6d4] ss:$8 sps:$4 sm:$0xff]  }
  0xb1   :  { %1819 = vmatprep.subr.bf16.mxu1 %v2478_v5  ;;  %v2562_v5 = vld [vmem:[%s3438_s1 + $0x7d4] ss:$8 sps:$4 sm:$0xff]  }
  0xb3   :  { %1779 = vmatpush2.bf16.msra.mxu0 %v2473_v6  ;;  %v2557_v6 = vld [vmem:[%s3438_s1 + $0x6d0] ss:$8 sps:$4 sm:$0xff]  }
  0xb4   :  { %1820 = vmatpush2.bf16.msra.mxu1 %v2476_v7  ;;  %1780 = vmatprep.subr.bf16.mxu0 %v2481_v8  ;;  %v2560_v7 = vld [vmem:[%s3438_s1 + $0x7d0] ss:$8 sps:$4 sm:$0xff]   ;;  %v2565_v8 = vld [vmem:[%s3438_s1 + $0x6c4] ss:$8 sps:$4 sm:$0xff]  }
  0xb5   :  { %1821 = vmatprep.subr.bf16.mxu1 %v2484_v9  ;;  %v2568_v9 = vld [vmem:[%s3438_s1 + $0x7c4] ss:$8 sps:$4 sm:$0xff]  }
  0xb7   :  { %1781 = vmatpush2.bf16.msra.mxu0 %v2479_v10  ;;  %v2563_v10 = vld [vmem:[%s3438_s1 + $0x6c0] ss:$8 sps:$4 sm:$0xff]  }
  0xb8   :  { %1822 = vmatpush2.bf16.msra.mxu1 %v2482_v11  ;;  %1782 = vmatprep.subr.bf16.mxu0 %v2487_v12  ;;  %v2566_v11 = vld [vmem:[%s3438_s1 + $0x7c0] ss:$8 sps:$4 sm:$0xff]   ;;  %v2571_v12 = vld [vmem:[%s3438_s1 + $0x6b4] ss:$8 sps:$4 sm:$0xff]  }
  0xb9   :  { %1823 = vmatprep.subr.bf16.mxu1 %v2490_v13  ;;  %v2574_v13 = vld [vmem:[%s3438_s1 + $0x7b4] ss:$8 sps:$4 sm:$0xff]  }
  0xbb   :  { %1783 = vmatpush2.bf16.msra.mxu0 %v2485_v14  ;;  %v2569_v14 = vld [vmem:[%s3438_s1 + $0x6b0] ss:$8 sps:$4 sm:$0xff]  }
  0xbc   :  { %1824 = vmatpush2.bf16.msra.mxu1 %v2488_v15  ;;  %1784 = vmatprep.subr.bf16.mxu0 %v2493_v16  ;;  %v2572_v15 = vld [vmem:[%s3438_s1 + $0x7b0] ss:$8 sps:$4 sm:$0xff]   ;;  %v2577_v16 = vld [vmem:[%s3438_s1 + $0x6a4] ss:$8 sps:$4 sm:$0xff]  }
  0xbd   :  { %1825 = vmatprep.subr.bf16.mxu1 %v2496_v17  ;;  %v2580_v17 = vld [vmem:[%s3438_s1 + $0x7a4] ss:$8 sps:$4 sm:$0xff]  }
  0xbf   :  { %1785 = vmatpush2.bf16.msra.mxu0 %v2491_v18  ;;  %v2575_v18 = vld [vmem:[%s3438_s1 + $0x6a0] ss:$8 sps:$4 sm:$0xff]  }
  0xc0   :  { %1826 = vmatpush2.bf16.msra.mxu1 %v2494_v19  ;;  %1836 = vmatprep.subr.bf16.mxu0 %v2499_v22  ;;  %v2578_v19 = vld [vmem:[%s3438_s1 + $0x7a0] ss:$8 sps:$4 sm:$0xff]   ;;  %v2581_v22 = vld [vmem:[%s3438_s1 + $0x690] ss:$8 sps:$4 sm:$0xff]  }
  0xc1   :  { %1877 = vmatprep.subr.bf16.mxu1 %v2502_v23  ;;  %v2584_v23 = vld [vmem:[%s3438_s1 + $0x790] ss:$8 sps:$4 sm:$0xff]  }
  0xc2   :  { %1787 = vmatmul.mubr.bf16.vlgmr.msra.gmra.mxu0 %v44_v24  ;;  %v2589_v24 = vld [vmem:[%s3438_s1 + $0x684] ss:$8 sps:$4 sm:$0xff]  }
  0xc3   :  { %1828 = vmatmul.mubr.bf16.vlgmr.msra.gmra.mxu1 %v46_v25  ;;  %1837 = vmatpush1.bf16.msra.mxu0 %v2497_v28  ;;  %v2592_v25 = vld [vmem:[%s3438_s1 + $0x784] ss:$8 sps:$4 sm:$0xff]  }
  0xc4   :  { %1878 = vmatpush1.bf16.msra.mxu1 %v2500_v29  ;;  %1838 = vmatprep.subr.bf16.mxu0 %v2505_v30  ;;  %v32_v28 = vld [vmem:[%s3439_s0 + $0x60] sm:$0xff]  ;;  %v34_v29 = vld [vmem:[%s3439_s0 + $0x70] sm:$0xff] }
  0xc5   :  { %1879 = vmatprep.subr.bf16.mxu1 %v2508_v31  ;;  %1868 = vmatprep.mubr.bf16.mxu0 %v49_v32  ;;  %v48_v30 = vpack.c.bf16 %v32_v28, %v32_v28  ;;  %v50_v31 = vpack.c.bf16 %v34_v29, %v34_v29 }
  0xc6   :  { %1909 = vmatprep.mubr.bf16.mxu1 %v51_v33 }
  0xc7   :  { %1839 = vmatpush1.bf16.msra.mxu0 %v2503_v34 }
  0xc8   :  { %1880 = vmatpush1.bf16.msra.mxu1 %v2506_v35  ;;  %1840 = vmatprep.subr.bf16.mxu0 %v2511_v36 }
  0xc9   :  { %1881 = vmatprep.subr.bf16.mxu1 %v2514_v37 }
  0xcb   :  { %1841 = vmatpush1.bf16.msra.mxu0 %v2509_v38 }
  0xcc   :  { %1882 = vmatpush1.bf16.msra.mxu1 %v2512_v39  ;;  %1842 = vmatprep.subr.bf16.mxu0 %v2517_v40 }
  0xcd   :  { %1883 = vmatprep.subr.bf16.mxu1 %v2520_v41 }
  0xcf   :  { %1843 = vmatpush1.bf16.msra.mxu0 %v2515_v42 }
  0xd0   :  { %1884 = vmatpush1.bf16.msra.mxu1 %v2518_v43  ;;  %1844 = vmatprep.subr.bf16.mxu0 %v2523_v44 }
  0xd1   :  { %1885 = vmatprep.subr.bf16.mxu1 %v2526_v45 }
  0xd3   :  { %1845 = vmatpush1.bf16.msra.mxu0 %v2521_v46 }
  0xd4   :  { %1886 = vmatpush1.bf16.msra.mxu1 %v2524_v47  ;;  %1846 = vmatprep.subr.bf16.mxu0 %v2529_v48 }
  0xd5   :  { %1887 = vmatprep.subr.bf16.mxu1 %v2532_v49 }
  0xd7   :  { %1847 = vmatpush1.bf16.msra.mxu0 %v2527_v50 }
  0xd8   :  { %1888 = vmatpush1.bf16.msra.mxu1 %v2530_v51  ;;  %1848 = vmatprep.subr.bf16.mxu0 %v2535_v52 }
  0xd9   :  { %1889 = vmatprep.subr.bf16.mxu1 %v2538_v53 }
  0xdb   :  { %1849 = vmatpush1.bf16.msra.mxu0 %v2533_v54 }
  0xdc   :  { %1890 = vmatpush1.bf16.msra.mxu1 %v2536_v55  ;;  %1850 = vmatprep.subr.bf16.mxu0 %v2541_v56 }
  0xdd   :  { %1891 = vmatprep.subr.bf16.mxu1 %v2544_v57 }
  0xdf   :  { %1851 = vmatpush1.bf16.msra.mxu0 %v2539_v58 }
  0xe0   :  { %1892 = vmatpush1.bf16.msra.mxu1 %v2542_v59  ;;  %1852 = vmatprep.subr.bf16.mxu0 %v2547_v60 }
  0xe1   :  { %1893 = vmatprep.subr.bf16.mxu1 %v2550_v61 }
  0xe3   :  { %1853 = vmatpush2.bf16.msra.mxu0 %v2545_v62  ;;  %v1929_v62 = vlaneseq }
  0xe4   :  { %1894 = vmatpush2.bf16.msra.mxu1 %v2548_v63  ;;  %1854 = vmatprep.subr.bf16.mxu0 %v2553_v0 }
  0xe5   :  { %1895 = vmatprep.subr.bf16.mxu1 %v2556_v1  ;;  %v1930_v63 = vshrl.u32 %v1929_v62, 7 }
  0xe7   :  { %1855 = vmatpush2.bf16.msra.mxu0 %v2551_v2  ;;  %v1931_v2 = vsub.s32 0, %v1930_v63 }
  0xe8   :  { %1896 = vmatpush2.bf16.msra.mxu1 %v2554_v3  ;;  %1856 = vmatprep.subr.bf16.mxu0 %v2559_v4  ;;  %v1927_v3 = vld [vmem:[%s3440_s2] sm:$0x3] }
  0xe9   :  { %1897 = vmatprep.subr.bf16.mxu1 %v2562_v5  ;;  %v1935_v5 = vsub.s32 1, %v1930_v63 }
  0xeb   :  { %1857 = vmatpush2.bf16.msra.mxu0 %v2557_v6 }
  0xec   :  { %1898 = vmatpush2.bf16.msra.mxu1 %v2560_v7  ;;  %1858 = vmatprep.subr.bf16.mxu0 %v2565_v8 }
  0xed   :  { %1899 = vmatprep.subr.bf16.mxu1 %v2568_v9 }
  0xef   :  { %1859 = vmatpush2.bf16.msra.mxu0 %v2563_v10  ;;  %v1932_v10 = vrot.slane %v1927_v3, %v1931_v2 }
  0xf0   :  { %1900 = vmatpush2.bf16.msra.mxu1 %v2566_v11  ;;  %1860 = vmatprep.subr.bf16.mxu0 %v2571_v12 }
  0xf1   :  { %1901 = vmatprep.subr.bf16.mxu1 %v2574_v13 }
  0xf3   :  { %1861 = vmatpush2.bf16.msra.mxu0 %v2569_v14 }
  0xf4   :  { %1902 = vmatpush2.bf16.msra.mxu1 %v2572_v15  ;;  %1862 = vmatprep.subr.bf16.mxu0 %v2577_v16  ;;  %v1936_v15 = vrot.slane %v1927_v3, %v1935_v5 }
  0xf5   :  { %1903 = vmatprep.subr.bf16.mxu1 %v2580_v17 }
  0xf7   :  { %1863 = vmatpush2.bf16.msra.mxu0 %v2575_v18 }
  0xf8   :  { %1904 = vmatpush2.bf16.msra.mxu1 %v2578_v19  ;;  %1864 = vmatprep.subr.bf16.mxu0 %v2583_v20 }
  0xf9   :  { %1905 = vmatprep.subr.bf16.mxu1 %v2586_v21 }
  0xfb   :  { %1865 = vmatpush2.bf16.msra.mxu0 %v2581_v22 }
  0xfc   :  { %1906 = vmatpush2.bf16.msra.mxu1 %v2584_v23  ;;  %1866 = vmatprep.subr.bf16.mxu0 %v2589_v24 }
  0xfd   :  { %1907 = vmatprep.subr.bf16.mxu1 %v2592_v25 }
  0xff   :  { %1867 = vmatpush2.bf16.msra.mxu0 %v2587_v26 }
 0x100   :  { %1908 = vmatpush2.bf16.msra.mxu1 %v2590_v27 }
 0x102   :  { %v1624_v32 = vpop.f32.mrf.mxu0  ;;  %1869 = vmatmul.mubr.bf16.vlgmr.msra.gmra.mxu0 %v48_v30 }
 0x103   :  { %v1665_v33 = vpop.f32.mrf.mxu1  ;;  %1910 = vmatmul.mubr.bf16.vlgmr.msra.gmra.mxu1 %v50_v31 }
 0x104   :  { %v1666_v34 = vadd.f32 %v1665_v33, %v1624_v32  ;;  %v1626_v35 = vpop.f32.mrf.mxu0 }
 0x105   :  { %v1667_v36 = vpop.f32.mrf.mxu1 }
 0x106   :  { %v1668_v37 = vadd.f32 %v1667_v36, %v1626_v35  ;;  %v1628_v38 = vpop.f32.mrf.mxu0 }
 0x107   :  { %v1669_v39 = vpop.f32.mrf.mxu1 }
 0x108   :  { %v1629_v40 = vpop.f32.mrf.mxu0 }
 0x109   :  { %v1670_v41 = vpop.f32.mrf.mxu1 }
 0x142   :  { %v1706_v42 = vpop.f32.mrf.mxu0 }
 0x143   :  { %v1747_v43 = vpop.f32.mrf.mxu1  ;;  %v1707_v44 = vadd.f32 %v1706_v42, %v1666_v34 }
 0x144   :  { %v1708_v45 = vpop.f32.mrf.mxu0 }
 0x145   :  { %v1749_v46 = vpop.f32.mrf.mxu1  ;;  %v1748_v47 = vadd.f32 %v1747_v43, %v1707_v44  ;;  %v1709_v48 = vadd.f32 %v1708_v45, %v1668_v37 }
 0x146   :  { %v1710_v49 = vpop.f32.mrf.mxu0 }
 0x147   :  { %v1751_v50 = vpop.f32.mrf.mxu1  ;;  %v1750_v51 = vadd.f32 %v1749_v46, %v1709_v48 }
 0x148   :  { %v1711_v52 = vpop.f32.mrf.mxu0 }
 0x149   :  { %v1752_v53 = vpop.f32.mrf.mxu1 }
 0x182   :  { %v1788_v54 = vpop.f32.mrf.mxu0 }
 0x183   :  { %v1829_v55 = vpop.f32.mrf.mxu1  ;;  %v1789_v0 = vadd.f32 %v1788_v54, %v1748_v47 }
 0x184   :  { %v1790_v56 = vpop.f32.mrf.mxu0 }
 0x185   :  { %v1831_v57 = vpop.f32.mrf.mxu1  ;;  %v1791_v1 = vadd.f32 %v1790_v56, %v1750_v51  ;;  %v1830_v4 = vadd.f32 %v1829_v55, %v1789_v0 }
 0x186   :  { %v1792_v58 = vpop.f32.mrf.mxu0 }
 0x187   :  { %v1833_v59 = vpop.f32.mrf.mxu1  ;;  %v1832_v8 = vadd.f32 %v1831_v57, %v1791_v1 }
 0x188   :  { %v1793_v60 = vpop.f32.mrf.mxu0 }
 0x189   :  { %v1834_v61 = vpop.f32.mrf.mxu1 }
 0x1c2   :  { %v1870_v6 = vpop.f32.mrf.mxu0 }
 0x1c3   :  { %v1911_v7 = vpop.f32.mrf.mxu1  ;;  %v1871_v9 = vadd.f32 %v1870_v6, %v1830_v4 }
 0x1c4   :  { %v1872_v11 = vpop.f32.mrf.mxu0 }
 0x1c5   :  { %v1913_v12 = vpop.f32.mrf.mxu1  ;;  %v1912_v13 = vadd.f32 %v1911_v7, %v1871_v9  ;;  %v1873_v14 = vadd.f32 %v1872_v11, %v1832_v8 }
 0x1c6   :  { %v1874_v16 = vpop.f32.mrf.mxu0 }
 0x1c7   :  { %v1915_v17 = vpop.f32.mrf.mxu1  ;;  %v1939_v18 = vadd.f32 %v1932_v10, %v1912_v13  ;;  %v1914_v19 = vadd.f32 %v1913_v12, %v1873_v14 }
 0x1c8   :  { %v1875_v20 = vpop.f32.mrf.mxu0 }
 0x1c9   :  { %v1916_v21 = vpop.f32.mrf.mxu1  ;;  %vm1941_vm0 = vcmp.ge.f32.partialorder %v1939_v18, 0.0  ;;  %v1943_v22 = vmul.f32 0.01, %v1939_v18  ;;  %v1940_v23 = vadd.f32 %v1936_v15, %v1914_v19 }
 0x1cb   :  { %v1945_v24 = vsel %vm1941_vm0, %v1939_v18, %v1943_v22  ;;  %vm1942_vm1 = vcmp.ge.f32.partialorder %v1940_v23, 0.0  ;;  %v1944_v25 = vmul.f32 0.01, %v1940_v23 }
 0x1cc   :  { %1947 = vst [vmem:[%s3441_s3] sm:$0xff] %v1945_v24 }
 0x1cd   :  { %v1946_v26 = vsel %vm1942_vm1, %v1940_v23, %v1944_v25 }
 0x1ce   :  { %1948 = vst [vmem:[%s3441_s3 + $0x8] sm:$0xff] %v1946_v26 }

// kernel: discriminator_forward.11
= control target key start
LH: loop header
LB: loop body
LE: loop exit
PB: predicated region body
PF: predicated region fallthrough
CT: control target
= control target key end

     0   :  { %s350_s1 = inlined_call_operand.vmem [shape: bf16[256,128], index: 1, kind: input, shape index: {}]   ;;  %s351_s0 = inlined_call_operand.vmem [shape: f32[8,256], index: 0, kind: input, shape index: {}]   ;;  %s352_s2 = inlined_call_operand.vmem [shape: f32[1,128], index: 2, kind: input, shape index: {}]   ;;  %s353_s3 = inlined_call_operand.vmem [shape: f32[8,128], index: 3, kind: output, shape index: {}]  }
   0x1   :  { %v254_v0 = vld [vmem:[%s350_s1 + $0x78] sm:$0xff]   ;;  %v256_v2 = vld [vmem:[%s350_s1 + $0x70] sm:$0xff]   ;;  %v258_v4 = vld [vmem:[%s350_s1 + $0x68] sm:$0xff]  }
   0x2   :  { %v255_v1 = vld [vmem:[%s350_s1 + $0x38] sm:$0xff]   ;;  %232 = vmatprep.subr.bf16.mxu0 %v254_v0  ;;  %v257_v3 = vld [vmem:[%s350_s1 + $0x30] sm:$0xff]   ;;  %v259_v5 = vld [vmem:[%s350_s1 + $0x28] sm:$0xff]  }
   0x3   :  { %233 = vmatpush3.bf16.msra.mxu0 %v255_v1  ;;  %v260_v6 = vld [vmem:[%s350_s1 + $0x60] sm:$0xff]   ;;  %v262_v8 = vld [vmem:[%s350_s1 + $0x58] sm:$0xff]   ;;  %v264_v10 = vld [vmem:[%s350_s1 + $0x50] sm:$0xff]  }
   0x4   :  { %234 = vmatprep.subr.bf16.mxu0 %v256_v2  ;;  %v261_v7 = vld [vmem:[%s350_s1 + $0x20] sm:$0xff]   ;;  %v263_v9 = vld [vmem:[%s350_s1 + $0x18] sm:$0xff]   ;;  %v21_v11 = vld [vmem:[%s351_s0 + $0x8] sm:$0xff] }
   0x5   :  { %v23_v12 = vpack.c.bf16 %v21_v11, %v21_v11  ;;  %v265_v13 = vld [vmem:[%s350_s1 + $0x10] sm:$0xff]   ;;  %v266_v14 = vld [vmem:[%s350_s1 + $0x48] sm:$0xff]   ;;  %v268_v16 = vld [vmem:[%s350_s1 + $0x40] sm:$0xff]  }
   0x6   :  { %v267_v15 = vld [vmem:[%s350_s1 + $0x8] sm:$0xff]   ;;  %v269_v17 = vld [vmem:[%s350_s1] sm:$0xff]  }
   0x7   :  { %235 = vmatpush3.bf16.msra.mxu0 %v257_v3  ;;  %185 = vmatprep.mubr.bf16.mxu0 %v23_v12  ;;  %v20_v18 = vld [vmem:[%s351_s0] sm:$0xff] }
   0x8   :  { %236 = vmatprep.subr.bf16.mxu0 %v258_v4  ;;  %v22_v19 = vpack.c.bf16 %v20_v18, %v20_v18  ;;  %v231_v22 = vld [vmem:[%s352_s2] ss:$0 sm:$0xff] }
   0xb   :  { %237 = vmatpush3.bf16.msra.mxu0 %v259_v5 }
   0xc   :  { %238 = vmatprep.subr.bf16.mxu0 %v260_v6 }
   0xf   :  { %239 = vmatpush3.bf16.msra.mxu0 %v261_v7 }
  0x10   :  { %240 = vmatprep.subr.bf16.mxu0 %v262_v8 }
  0x13   :  { %241 = vmatpush3.bf16.msra.mxu0 %v263_v9 }
  0x14   :  { %242 = vmatprep.subr.bf16.mxu0 %v264_v10 }
  0x17   :  { %243 = vmatpush3.bf16.msra.mxu0 %v265_v13 }
  0x18   :  { %244 = vmatprep.subr.bf16.mxu0 %v266_v14 }
  0x1b   :  { %245 = vmatpush3.bf16.msra.mxu0 %v267_v15 }
  0x1c   :  { %246 = vmatprep.subr.bf16.mxu0 %v268_v16 }
  0x1f   :  { %247 = vmatpush3.bf16.msra.mxu0 %v269_v17 }
  0x22   :  { %186 = vmatmul.mubr.bf16.vlgmr.msra.gmra.mxu0 %v22_v19 }
  0xe2   :  { %v248_v20 = vpop.f32.mrf.mxu0 }
  0xe4   :  { %v249_v21 = vpop.f32.mrf.mxu0 }
  0xe5   :  { %v250_v23 = vadd.f32 %v249_v21, %v248_v20 }
  0xe6   :  { %v251_v24 = vpop.f32.mrf.mxu0 }
  0xe7   :  { %v206_v25 = vadd.f32 %v250_v23, %v231_v22 }
  0xe8   :  { %v252_v26 = vpop.f32.mrf.mxu0 }
  0xe9   :  { %vm207_vm0 = vcmp.ge.f32.partialorder %v206_v25, 0.0  ;;  %v208_v27 = vmul.f32 0.01, %v206_v25 }
  0xeb   :  { %v209_v28 = vsel %vm207_vm0, %v206_v25, %v208_v27 }
  0xec   :  { %210 = vst [vmem:[%s353_s3] sm:$0xff] %v209_v28 }

// kernel: discriminator_forward.9
= control target key start
LH: loop header
LB: loop body
LE: loop exit
PB: predicated region body
PF: predicated region fallthrough
CT: control target
= control target key end

     0   :  { %s6693_s12 = smov 0   ;;  %s6695_s13 = smov 0   ;;  %s8453_s0 = inlined_call_operand.vmem [shape: f32[8,16384], index: 0, kind: input, shape index: {}]   ;;  %s8454_s1 = inlined_call_operand.vmem [shape: bf16[16384,2048], index: 1, kind: input, shape index: {}]   ;;  %s8455_s2 = inlined_call_operand.vmem [shape: f32[1,2048], index: 2, kind: input, shape index: {}]   ;;  %s8456_s3 = inlined_call_operand.vmem [shape: f32[8,2048], index: 3, kind: output, shape index: {}]  }
   0x1   :  { %s6697_s14 = smov 0   ;;  %s6699_s15 = smov 0  }
   0x2   :  { %s6701_s16 = smov 0   ;;  %s6703_s17 = smov 0  }
   0x3   :  { %s6705_s18 = smov 0  }
   0x4 LB: > { %s25_s19 = sadd.s32 1, %s6662_s16  ;;  %s28_s20 = sadd.s32 1, %s6666_s17  ;;  %s6670_s18 = sphi %s6705_s18, %s13_s18   ;;  %s6666_s17 = sphi %s6703_s17, %s8462_s17   ;;  %s6662_s16 = sphi %s6701_s16, %s8461_s16   ;;  %s6658_s15 = sphi %s6699_s15, %s8460_s15   ;;  %s6654_s14 = sphi %s6697_s14, %s8459_s14   ;;  %s6650_s13 = sphi %s6695_s13, %s8458_s13   ;;  %s6646_s12 = sphi %s6693_s12, %s8457_s12  }
   0x5   : > { %p26_p0 = scmp.ge.s32.totalorder %s25_s19, 8  ;;  %p76_p1 = scmp.ne.s32.totalorder %s6650_s13, %s6646_s12 }
   0x6   : > { %p77_p2 = scmp.eq.s32.totalorder %s6670_s18, 0  ;;  %s69_s24 = sadd.s32 1, %s6650_s13 }
   0x7   : > { %s8464_s19 = smov (%p26_p0, %s25_s19), 0  ;;  %s8466_s20 = smov (!%p26_p0, %s28_s20), %s6666_s17 }
   0x8   : > { %p78_p3 = por %p77_p2, %p76_p1  ;;  %p30_p4 = scmp.ge.s32.totalorder %s8466_s20, 4 }
   0x9   : > { %s64_s21 = ssub.s32 %s6662_s16, %s8464_s19  ;;  %p5261_p6 = scmp.ge.s32.totalorder %s6670_s18, 32 }
   0xa   : > { %s8468_s20 = smov (%p30_p4, %s8466_s20), 0 }
   0xb   : > { %s65_s22 = ssub.s32 %s6666_s17, %s8468_s20  ;;  %156 = sbr.rel (%p5261_p6) target bundleno = 279 (0x117), region = 16 }
   0xc   : > { %s66_s23 = sor.u32 %s65_s22, %s64_s21 }
   0xd   : > { %p67_p5 = scmp.eq.s32.totalorder %s66_s23, 0 }
   0xf   : > { %s6744_s25 = scalar_select %p67_p5, %s6650_s13, %s69_s24  }
  0x10   : > { %172 = sbr.rel (!%p78_p3) target bundleno = 279 (0x117), region = 24  ;;  %s174_s26 = sand.u32 (%p78_p3), 1, %s6650_s13  }
  0x11   : > { %s5264_s27 = sshll.u32 (%p78_p3), %s6666_s17, 2  ;;  %s5262_s28 = sshll.u32 (%p78_p3), %s174_s26, 12 }
  0x12   : > { %s5790_s29 = sshll.u32 (%p78_p3), %s6662_s16, 12  ;;  %s6758_s8 = scalar_lea.vmem (%p78_p3), [#allocation3], %s5262_s28 }
  0x13   : > { %s180_s30 = sadd.s32 (%p78_p3), %s5790_s29, %s5264_s27 }
  0x14   : > { %s5266_s4 = sshll.u32 (%p78_p3), %s180_s30, 2 }
  0x15   : > { %s6753_s7 = scalar_lea.vmem %s8454_s1, %s5266_s4 }
  0x16   : > { %v195_v0 = vld [vmem:[%s6753_s7] sm:$0xff]  ;;  %v197_v1 = vld [vmem:[%s6753_s7 + $0x8] sm:$0xff] }
  0x17   : > { %v199_v2 = vld [vmem:[%s6753_s7 + $0x40] sm:$0xff]  ;;  %196 = vst [vmem:[%s6758_s8] sm:$0xff] %v195_v0  ;;  %198 = vst [vmem:[%s6758_s8 + $0x8] sm:$0xff] %v197_v1  ;;  %v201_v3 = vld [vmem:[%s6753_s7 + $0x48] sm:$0xff] }
  0x18   : > { %200 = vst [vmem:[%s6758_s8 + $0x10] sm:$0xff] %v199_v2  ;;  %v203_v4 = vld [vmem:[%s6753_s7 + $0x80] sm:$0xff]  ;;  %v205_v5 = vld [vmem:[%s6753_s7 + $0x88] sm:$0xff]  ;;  %202 = vst [vmem:[%s6758_s8 + $0x18] sm:$0xff] %v201_v3 }
  0x19   : > { %204 = vst [vmem:[%s6758_s8 + $0x20] sm:$0xff] %v203_v4  ;;  %206 = vst [vmem:[%s6758_s8 + $0x28] sm:$0xff] %v205_v5  ;;  %v207_v6 = vld [vmem:[%s6753_s7 + $0xc0] sm:$0xff]  ;;  %v209_v7 = vld [vmem:[%s6753_s7 + $0xc8] sm:$0xff] }
  0x1a   : > { %v211_v8 = vld [vmem:[%s6753_s7 + $0x100] sm:$0xff]  ;;  %208 = vst [vmem:[%s6758_s8 + $0x30] sm:$0xff] %v207_v6  ;;  %210 = vst [vmem:[%s6758_s8 + $0x38] sm:$0xff] %v209_v7  ;;  %v213_v9 = vld [vmem:[%s6753_s7 + $0x108] sm:$0xff] }
  0x1b   : > { %212 = vst [vmem:[%s6758_s8 + $0x40] sm:$0xff] %v211_v8  ;;  %v215_v10 = vld [vmem:[%s6753_s7 + $0x140] sm:$0xff]  ;;  %v217_v11 = vld [vmem:[%s6753_s7 + $0x148] sm:$0xff]  ;;  %214 = vst [vmem:[%s6758_s8 + $0x48] sm:$0xff] %v213_v9 }
  0x1c   : > { %216 = vst [vmem:[%s6758_s8 + $0x50] sm:$0xff] %v215_v10  ;;  %218 = vst [vmem:[%s6758_s8 + $0x58] sm:$0xff] %v217_v11  ;;  %v219_v12 = vld [vmem:[%s6753_s7 + $0x180] sm:$0xff]  ;;  %v221_v13 = vld [vmem:[%s6753_s7 + $0x188] sm:$0xff] }
  0x1d   : > { %v223_v14 = vld [vmem:[%s6753_s7 + $0x1c0] sm:$0xff]  ;;  %220 = vst [vmem:[%s6758_s8 + $0x60] sm:$0xff] %v219_v12  ;;  %222 = vst [vmem:[%s6758_s8 + $0x68] sm:$0xff] %v221_v13  ;;  %v225_v15 = vld [vmem:[%s6753_s7 + $0x1c8] sm:$0xff] }
  0x1e   : > { %224 = vst [vmem:[%s6758_s8 + $0x70] sm:$0xff] %v223_v14  ;;  %v227_v16 = vld [vmem:[%s6753_s7 + $0x200] sm:$0xff]  ;;  %v229_v17 = vld [vmem:[%s6753_s7 + $0x208] sm:$0xff]  ;;  %226 = vst [vmem:[%s6758_s8 + $0x78] sm:$0xff] %v225_v15 }
  0x1f   : > { %228 = vst [vmem:[%s6758_s8 + $0x80] sm:$0xff] %v227_v16  ;;  %230 = vst [vmem:[%s6758_s8 + $0x88] sm:$0xff] %v229_v17  ;;  %v231_v18 = vld [vmem:[%s6753_s7 + $0x240] sm:$0xff]  ;;  %v233_v19 = vld [vmem:[%s6753_s7 + $0x248] sm:$0xff] }
  0x20   : > { %v235_v20 = vld [vmem:[%s6753_s7 + $0x280] sm:$0xff]  ;;  %232 = vst [vmem:[%s6758_s8 + $0x90] sm:$0xff] %v231_v18  ;;  %234 = vst [vmem:[%s6758_s8 + $0x98] sm:$0xff] %v233_v19  ;;  %v237_v21 = vld [vmem:[%s6753_s7 + $0x288] sm:$0xff] }
  0x21   : > { %236 = vst [vmem:[%s6758_s8 + $0xa0] sm:$0xff] %v235_v20  ;;  %v239_v22 = vld [vmem:[%s6753_s7 + $0x2c0] sm:$0xff]  ;;  %v241_v23 = vld [vmem:[%s6753_s7 + $0x2c8] sm:$0xff]  ;;  %238 = vst [vmem:[%s6758_s8 + $0xa8] sm:$0xff] %v237_v21 }
  0x22   : > { %240 = vst [vmem:[%s6758_s8 + $0xb0] sm:$0xff] %v239_v22  ;;  %242 = vst [vmem:[%s6758_s8 + $0xb8] sm:$0xff] %v241_v23  ;;  %v243_v24 = vld [vmem:[%s6753_s7 + $0x300] sm:$0xff]  ;;  %v245_v25 = vld [vmem:[%s6753_s7 + $0x308] sm:$0xff] }
  0x23   : > { %v247_v26 = vld [vmem:[%s6753_s7 + $0x340] sm:$0xff]  ;;  %244 = vst [vmem:[%s6758_s8 + $0xc0] sm:$0xff] %v243_v24  ;;  %246 = vst [vmem:[%s6758_s8 + $0xc8] sm:$0xff] %v245_v25  ;;  %v249_v27 = vld [vmem:[%s6753_s7 + $0x348] sm:$0xff] }
  0x24   : > { %248 = vst [vmem:[%s6758_s8 + $0xd0] sm:$0xff] %v247_v26  ;;  %v251_v28 = vld [vmem:[%s6753_s7 + $0x380] sm:$0xff]  ;;  %v253_v29 = vld [vmem:[%s6753_s7 + $0x388] sm:$0xff]  ;;  %250 = vst [vmem:[%s6758_s8 + $0xd8] sm:$0xff] %v249_v27 }
  0x25   : > { %252 = vst [vmem:[%s6758_s8 + $0xe0] sm:$0xff] %v251_v28  ;;  %254 = vst [vmem:[%s6758_s8 + $0xe8] sm:$0xff] %v253_v29  ;;  %v255_v30 = vld [vmem:[%s6753_s7 + $0x3c0] sm:$0xff]  ;;  %v257_v31 = vld [vmem:[%s6753_s7 + $0x3c8] sm:$0xff] }
  0x26   : > { %v259_v32 = vld [vmem:[%s6753_s7 + $0x400] sm:$0xff]  ;;  %256 = vst [vmem:[%s6758_s8 + $0xf0] sm:$0xff] %v255_v30  ;;  %258 = vst [vmem:[%s6758_s8 + $0xf8] sm:$0xff] %v257_v31  ;;  %v261_v33 = vld [vmem:[%s6753_s7 + $0x408] sm:$0xff] }
  0x27   : > { %260 = vst [vmem:[%s6758_s8 + $0x100] sm:$0xff] %v259_v32  ;;  %v263_v34 = vld [vmem:[%s6753_s7 + $0x440] sm:$0xff]  ;;  %v265_v35 = vld [vmem:[%s6753_s7 + $0x448] sm:$0xff]  ;;  %262 = vst [vmem:[%s6758_s8 + $0x108] sm:$0xff] %v261_v33 }
  0x28   : > { %264 = vst [vmem:[%s6758_s8 + $0x110] sm:$0xff] %v263_v34  ;;  %266 = vst [vmem:[%s6758_s8 + $0x118] sm:$0xff] %v265_v35  ;;  %v267_v36 = vld [vmem:[%s6753_s7 + $0x480] sm:$0xff]  ;;  %v269_v37 = vld [vmem:[%s6753_s7 + $0x488] sm:$0xff] }
  0x29   : > { %v271_v38 = vld [vmem:[%s6753_s7 + $0x4c0] sm:$0xff]  ;;  %268 = vst [vmem:[%s6758_s8 + $0x120] sm:$0xff] %v267_v36  ;;  %270 = vst [vmem:[%s6758_s8 + $0x128] sm:$0xff] %v269_v37  ;;  %v273_v39 = vld [vmem:[%s6753_s7 + $0x4c8] sm:$0xff] }
  0x2a   : > { %272 = vst [vmem:[%s6758_s8 + $0x130] sm:$0xff] %v271_v38  ;;  %v275_v40 = vld [vmem:[%s6753_s7 + $0x500] sm:$0xff]  ;;  %v277_v41 = vld [vmem:[%s6753_s7 + $0x508] sm:$0xff]  ;;  %274 = vst [vmem:[%s6758_s8 + $0x138] sm:$0xff] %v273_v39 }
  0x2b   : > { %276 = vst [vmem:[%s6758_s8 + $0x140] sm:$0xff] %v275_v40  ;;  %278 = vst [vmem:[%s6758_s8 + $0x148] sm:$0xff] %v277_v41  ;;  %v279_v42 = vld [vmem:[%s6753_s7 + $0x540] sm:$0xff]  ;;  %v281_v43 = vld [vmem:[%s6753_s7 + $0x548] sm:$0xff] }
  0x2c   : > { %v283_v44 = vld [vmem:[%s6753_s7 + $0x580] sm:$0xff]  ;;  %280 = vst [vmem:[%s6758_s8 + $0x150] sm:$0xff] %v279_v42  ;;  %282 = vst [vmem:[%s6758_s8 + $0x158] sm:$0xff] %v281_v43  ;;  %v285_v45 = vld [vmem:[%s6753_s7 + $0x588] sm:$0xff] }
  0x2d   : > { %284 = vst [vmem:[%s6758_s8 + $0x160] sm:$0xff] %v283_v44  ;;  %v287_v46 = vld [vmem:[%s6753_s7 + $0x5c0] sm:$0xff]  ;;  %v289_v47 = vld [vmem:[%s6753_s7 + $0x5c8] sm:$0xff]  ;;  %286 = vst [vmem:[%s6758_s8 + $0x168] sm:$0xff] %v285_v45 }
  0x2e   : > { %288 = vst [vmem:[%s6758_s8 + $0x170] sm:$0xff] %v287_v46  ;;  %290 = vst [vmem:[%s6758_s8 + $0x178] sm:$0xff] %v289_v47  ;;  %v291_v48 = vld [vmem:[%s6753_s7 + $0x600] sm:$0xff]  ;;  %v293_v49 = vld [vmem:[%s6753_s7 + $0x608] sm:$0xff] }
  0x2f   : > { %v295_v50 = vld [vmem:[%s6753_s7 + $0x640] sm:$0xff]  ;;  %292 = vst [vmem:[%s6758_s8 + $0x180] sm:$0xff] %v291_v48  ;;  %294 = vst [vmem:[%s6758_s8 + $0x188] sm:$0xff] %v293_v49  ;;  %v297_v51 = vld [vmem:[%s6753_s7 + $0x648] sm:$0xff] }
  0x30   : > { %296 = vst [vmem:[%s6758_s8 + $0x190] sm:$0xff] %v295_v50  ;;  %v299_v52 = vld [vmem:[%s6753_s7 + $0x680] sm:$0xff]  ;;  %v301_v53 = vld [vmem:[%s6753_s7 + $0x688] sm:$0xff]  ;;  %298 = vst [vmem:[%s6758_s8 + $0x198] sm:$0xff] %v297_v51 }
  0x31   : > { %300 = vst [vmem:[%s6758_s8 + $0x1a0] sm:$0xff] %v299_v52  ;;  %302 = vst [vmem:[%s6758_s8 + $0x1a8] sm:$0xff] %v301_v53  ;;  %v303_v54 = vld [vmem:[%s6753_s7 + $0x6c0] sm:$0xff]  ;;  %v305_v55 = vld [vmem:[%s6753_s7 + $0x6c8] sm:$0xff] }
  0x32   : > { %v307_v56 = vld [vmem:[%s6753_s7 + $0x700] sm:$0xff]  ;;  %304 = vst [vmem:[%s6758_s8 + $0x1b0] sm:$0xff] %v303_v54  ;;  %306 = vst [vmem:[%s6758_s8 + $0x1b8] sm:$0xff] %v305_v55  ;;  %v309_v57 = vld [vmem:[%s6753_s7 + $0x708] sm:$0xff] }
  0x33   : > { %308 = vst [vmem:[%s6758_s8 + $0x1c0] sm:$0xff] %v307_v56  ;;  %v311_v58 = vld [vmem:[%s6753_s7 + $0x740] sm:$0xff]  ;;  %v313_v59 = vld [vmem:[%s6753_s7 + $0x748] sm:$0xff]  ;;  %310 = vst [vmem:[%s6758_s8 + $0x1c8] sm:$0xff] %v309_v57 }
  0x34   : > { %312 = vst [vmem:[%s6758_s8 + $0x1d0] sm:$0xff] %v311_v58  ;;  %314 = vst [vmem:[%s6758_s8 + $0x1d8] sm:$0xff] %v313_v59  ;;  %v315_v60 = vld [vmem:[%s6753_s7 + $0x780] sm:$0xff]  ;;  %v317_v61 = vld [vmem:[%s6753_s7 + $0x788] sm:$0xff] }
  0x35   : > { %v319_v62 = vld [vmem:[%s6753_s7 + $0x7c0] sm:$0xff]  ;;  %316 = vst [vmem:[%s6758_s8 + $0x1e0] sm:$0xff] %v315_v60  ;;  %318 = vst [vmem:[%s6758_s8 + $0x1e8] sm:$0xff] %v317_v61  ;;  %v321_v63 = vld [vmem:[%s6753_s7 + $0x7c8] sm:$0xff] }
  0x36   : > { %320 = vst [vmem:[%s6758_s8 + $0x1f0] sm:$0xff] %v319_v62  ;;  %v323_v0 = vld [vmem:[%s6753_s7 + $0x800] sm:$0xff]  ;;  %v325_v1 = vld [vmem:[%s6753_s7 + $0x808] sm:$0xff]  ;;  %322 = vst [vmem:[%s6758_s8 + $0x1f8] sm:$0xff] %v321_v63 }
  0x37   : > { %324 = vst [vmem:[%s6758_s8 + $0x200] sm:$0xff] %v323_v0  ;;  %326 = vst [vmem:[%s6758_s8 + $0x208] sm:$0xff] %v325_v1  ;;  %v327_v2 = vld [vmem:[%s6753_s7 + $0x840] sm:$0xff]  ;;  %v329_v3 = vld [vmem:[%s6753_s7 + $0x848] sm:$0xff] }
  0x38   : > { %v331_v4 = vld [vmem:[%s6753_s7 + $0x880] sm:$0xff]  ;;  %328 = vst [vmem:[%s6758_s8 + $0x210] sm:$0xff] %v327_v2  ;;  %330 = vst [vmem:[%s6758_s8 + $0x218] sm:$0xff] %v329_v3  ;;  %v333_v5 = vld [vmem:[%s6753_s7 + $0x888] sm:$0xff] }
  0x39   : > { %332 = vst [vmem:[%s6758_s8 + $0x220] sm:$0xff] %v331_v4  ;;  %v335_v6 = vld [vmem:[%s6753_s7 + $0x8c0] sm:$0xff]  ;;  %v337_v7 = vld [vmem:[%s6753_s7 + $0x8c8] sm:$0xff]  ;;  %334 = vst [vmem:[%s6758_s8 + $0x228] sm:$0xff] %v333_v5 }
  0x3a   : > { %336 = vst [vmem:[%s6758_s8 + $0x230] sm:$0xff] %v335_v6  ;;  %338 = vst [vmem:[%s6758_s8 + $0x238] sm:$0xff] %v337_v7  ;;  %v339_v8 = vld [vmem:[%s6753_s7 + $0x900] sm:$0xff]  ;;  %v341_v9 = vld [vmem:[%s6753_s7 + $0x908] sm:$0xff] }
  0x3b   : > { %v343_v10 = vld [vmem:[%s6753_s7 + $0x940] sm:$0xff]  ;;  %340 = vst [vmem:[%s6758_s8 + $0x240] sm:$0xff] %v339_v8  ;;  %342 = vst [vmem:[%s6758_s8 + $0x248] sm:$0xff] %v341_v9  ;;  %v345_v11 = vld [vmem:[%s6753_s7 + $0x948] sm:$0xff] }
  0x3c   : > { %344 = vst [vmem:[%s6758_s8 + $0x250] sm:$0xff] %v343_v10  ;;  %v347_v12 = vld [vmem:[%s6753_s7 + $0x980] sm:$0xff]  ;;  %v349_v13 = vld [vmem:[%s6753_s7 + $0x988] sm:$0xff]  ;;  %346 = vst [vmem:[%s6758_s8 + $0x258] sm:$0xff] %v345_v11 }
  0x3d   : > { %348 = vst [vmem:[%s6758_s8 + $0x260] sm:$0xff] %v347_v12  ;;  %350 = vst [vmem:[%s6758_s8 + $0x268] sm:$0xff] %v349_v13  ;;  %v351_v14 = vld [vmem:[%s6753_s7 + $0x9c0] sm:$0xff]  ;;  %v353_v15 = vld [vmem:[%s6753_s7 + $0x9c8] sm:$0xff] }
  0x3e   : > { %v355_v16 = vld [vmem:[%s6753_s7 + $0xa00] sm:$0xff]  ;;  %352 = vst [vmem:[%s6758_s8 + $0x270] sm:$0xff] %v351_v14  ;;  %354 = vst [vmem:[%s6758_s8 + $0x278] sm:$0xff] %v353_v15  ;;  %v357_v17 = vld [vmem:[%s6753_s7 + $0xa08] sm:$0xff] }
  0x3f   : > { %356 = vst [vmem:[%s6758_s8 + $0x280] sm:$0xff] %v355_v16  ;;  %v359_v18 = vld [vmem:[%s6753_s7 + $0xa40] sm:$0xff]  ;;  %v361_v19 = vld [vmem:[%s6753_s7 + $0xa48] sm:$0xff]  ;;  %358 = vst [vmem:[%s6758_s8 + $0x288] sm:$0xff] %v357_v17 }
  0x40   : > { %360 = vst [vmem:[%s6758_s8 + $0x290] sm:$0xff] %v359_v18  ;;  %362 = vst [vmem:[%s6758_s8 + $0x298] sm:$0xff] %v361_v19  ;;  %v363_v20 = vld [vmem:[%s6753_s7 + $0xa80] sm:$0xff]  ;;  %v365_v21 = vld [vmem:[%s6753_s7 + $0xa88] sm:$0xff] }
  0x41   : > { %v367_v22 = vld [vmem:[%s6753_s7 + $0xac0] sm:$0xff]  ;;  %364 = vst [vmem:[%s6758_s8 + $0x2a0] sm:$0xff] %v363_v20  ;;  %366 = vst [vmem:[%s6758_s8 + $0x2a8] sm:$0xff] %v365_v21  ;;  %v369_v23 = vld [vmem:[%s6753_s7 + $0xac8] sm:$0xff] }
  0x42   : > { %368 = vst [vmem:[%s6758_s8 + $0x2b0] sm:$0xff] %v367_v22  ;;  %v371_v24 = vld [vmem:[%s6753_s7 + $0xb00] sm:$0xff]  ;;  %v373_v25 = vld [vmem:[%s6753_s7 + $0xb08] sm:$0xff]  ;;  %370 = vst [vmem:[%s6758_s8 + $0x2b8] sm:$0xff] %v369_v23 }
  0x43   : > { %372 = vst [vmem:[%s6758_s8 + $0x2c0] sm:$0xff] %v371_v24  ;;  %374 = vst [vmem:[%s6758_s8 + $0x2c8] sm:$0xff] %v373_v25  ;;  %v375_v26 = vld [vmem:[%s6753_s7 + $0xb40] sm:$0xff]  ;;  %v377_v27 = vld [vmem:[%s6753_s7 + $0xb48] sm:$0xff] }
  0x44   : > { %v379_v28 = vld [vmem:[%s6753_s7 + $0xb80] sm:$0xff]  ;;  %376 = vst [vmem:[%s6758_s8 + $0x2d0] sm:$0xff] %v375_v26  ;;  %378 = vst [vmem:[%s6758_s8 + $0x2d8] sm:$0xff] %v377_v27  ;;  %v381_v29 = vld [vmem:[%s6753_s7 + $0xb88] sm:$0xff] }
  0x45   : > { %380 = vst [vmem:[%s6758_s8 + $0x2e0] sm:$0xff] %v379_v28  ;;  %v383_v30 = vld [vmem:[%s6753_s7 + $0xbc0] sm:$0xff]  ;;  %v385_v31 = vld [vmem:[%s6753_s7 + $0xbc8] sm:$0xff]  ;;  %382 = vst [vmem:[%s6758_s8 + $0x2e8] sm:$0xff] %v381_v29 }
  0x46   : > { %384 = vst [vmem:[%s6758_s8 + $0x2f0] sm:$0xff] %v383_v30  ;;  %386 = vst [vmem:[%s6758_s8 + $0x2f8] sm:$0xff] %v385_v31  ;;  %v387_v32 = vld [vmem:[%s6753_s7 + $0xc00] sm:$0xff]  ;;  %v389_v33 = vld [vmem:[%s6753_s7 + $0xc08] sm:$0xff] }
  0x47   : > { %v391_v34 = vld [vmem:[%s6753_s7 + $0xc40] sm:$0xff]  ;;  %388 = vst [vmem:[%s6758_s8 + $0x300] sm:$0xff] %v387_v32  ;;  %390 = vst [vmem:[%s6758_s8 + $0x308] sm:$0xff] %v389_v33  ;;  %v393_v35 = vld [vmem:[%s6753_s7 + $0xc48] sm:$0xff] }
  0x48   : > { %392 = vst [vmem:[%s6758_s8 + $0x310] sm:$0xff] %v391_v34  ;;  %v395_v36 = vld [vmem:[%s6753_s7 + $0xc80] sm:$0xff]  ;;  %v397_v37 = vld [vmem:[%s6753_s7 + $0xc88] sm:$0xff]  ;;  %394 = vst [vmem:[%s6758_s8 + $0x318] sm:$0xff] %v393_v35 }
  0x49   : > { %396 = vst [vmem:[%s6758_s8 + $0x320] sm:$0xff] %v395_v36  ;;  %398 = vst [vmem:[%s6758_s8 + $0x328] sm:$0xff] %v397_v37  ;;  %v399_v38 = vld [vmem:[%s6753_s7 + $0xcc0] sm:$0xff]  ;;  %v401_v39 = vld [vmem:[%s6753_s7 + $0xcc8] sm:$0xff] }
  0x4a   : > { %v403_v40 = vld [vmem:[%s6753_s7 + $0xd00] sm:$0xff]  ;;  %400 = vst [vmem:[%s6758_s8 + $0x330] sm:$0xff] %v399_v38  ;;  %402 = vst [vmem:[%s6758_s8 + $0x338] sm:$0xff] %v401_v39  ;;  %v405_v41 = vld [vmem:[%s6753_s7 + $0xd08] sm:$0xff] }
  0x4b   : > { %404 = vst [vmem:[%s6758_s8 + $0x340] sm:$0xff] %v403_v40  ;;  %v407_v42 = vld [vmem:[%s6753_s7 + $0xd40] sm:$0xff]  ;;  %v409_v43 = vld [vmem:[%s6753_s7 + $0xd48] sm:$0xff]  ;;  %406 = vst [vmem:[%s6758_s8 + $0x348] sm:$0xff] %v405_v41 }
  0x4c   : > { %408 = vst [vmem:[%s6758_s8 + $0x350] sm:$0xff] %v407_v42  ;;  %410 = vst [vmem:[%s6758_s8 + $0x358] sm:$0xff] %v409_v43  ;;  %v411_v44 = vld [vmem:[%s6753_s7 + $0xd80] sm:$0xff]  ;;  %v413_v45 = vld [vmem:[%s6753_s7 + $0xd88] sm:$0xff] }
  0x4d   : > { %v415_v46 = vld [vmem:[%s6753_s7 + $0xdc0] sm:$0xff]  ;;  %412 = vst [vmem:[%s6758_s8 + $0x360] sm:$0xff] %v411_v44  ;;  %414 = vst [vmem:[%s6758_s8 + $0x368] sm:$0xff] %v413_v45  ;;  %v417_v47 = vld [vmem:[%s6753_s7 + $0xdc8] sm:$0xff] }
  0x4e   : > { %416 = vst [vmem:[%s6758_s8 + $0x370] sm:$0xff] %v415_v46  ;;  %v419_v48 = vld [vmem:[%s6753_s7 + $0xe00] sm:$0xff]  ;;  %v421_v49 = vld [vmem:[%s6753_s7 + $0xe08] sm:$0xff]  ;;  %418 = vst [vmem:[%s6758_s8 + $0x378] sm:$0xff] %v417_v47 }
  0x4f   : > { %420 = vst [vmem:[%s6758_s8 + $0x380] sm:$0xff] %v419_v48  ;;  %422 = vst [vmem:[%s6758_s8 + $0x388] sm:$0xff] %v421_v49  ;;  %v423_v50 = vld [vmem:[%s6753_s7 + $0xe40] sm:$0xff]  ;;  %v425_v51 = vld [vmem:[%s6753_s7 + $0xe48] sm:$0xff] }
  0x50   : > { %v427_v52 = vld [vmem:[%s6753_s7 + $0xe80] sm:$0xff]  ;;  %424 = vst [vmem:[%s6758_s8 + $0x390] sm:$0xff] %v423_v50  ;;  %426 = vst [vmem:[%s6758_s8 + $0x398] sm:$0xff] %v425_v51  ;;  %v429_v53 = vld [vmem:[%s6753_s7 + $0xe88] sm:$0xff] }
  0x51   : > { %428 = vst [vmem:[%s6758_s8 + $0x3a0] sm:$0xff] %v427_v52  ;;  %v431_v54 = vld [vmem:[%s6753_s7 + $0xec0] sm:$0xff]  ;;  %v433_v55 = vld [vmem:[%s6753_s7 + $0xec8] sm:$0xff]  ;;  %430 = vst [vmem:[%s6758_s8 + $0x3a8] sm:$0xff] %v429_v53 }
  0x52   : > { %432 = vst [vmem:[%s6758_s8 + $0x3b0] sm:$0xff] %v431_v54  ;;  %434 = vst [vmem:[%s6758_s8 + $0x3b8] sm:$0xff] %v433_v55  ;;  %v435_v56 = vld [vmem:[%s6753_s7 + $0xf00] sm:$0xff]  ;;  %v437_v57 = vld [vmem:[%s6753_s7 + $0xf08] sm:$0xff] }
  0x53   : > { %v439_v58 = vld [vmem:[%s6753_s7 + $0xf40] sm:$0xff]  ;;  %436 = vst [vmem:[%s6758_s8 + $0x3c0] sm:$0xff] %v435_v56  ;;  %438 = vst [vmem:[%s6758_s8 + $0x3c8] sm:$0xff] %v437_v57  ;;  %v441_v59 = vld [vmem:[%s6753_s7 + $0xf48] sm:$0xff] }
  0x54   : > { %440 = vst [vmem:[%s6758_s8 + $0x3d0] sm:$0xff] %v439_v58  ;;  %v443_v60 = vld [vmem:[%s6753_s7 + $0xf80] sm:$0xff]  ;;  %v445_v61 = vld [vmem:[%s6753_s7 + $0xf88] sm:$0xff]  ;;  %442 = vst [vmem:[%s6758_s8 + $0x3d8] sm:$0xff] %v441_v59 }
  0x55   : > { %444 = vst [vmem:[%s6758_s8 + $0x3e0] sm:$0xff] %v443_v60  ;;  %446 = vst [vmem:[%s6758_s8 + $0x3e8] sm:$0xff] %v445_v61  ;;  %v447_v62 = vld [vmem:[%s6753_s7 + $0xfc0] sm:$0xff]  ;;  %v449_v63 = vld [vmem:[%s6753_s7 + $0xfc8] sm:$0xff] }
  0x56   : > { %v451_v0 = vld [vmem:[%s6753_s7 + $0x1000] sm:$0xff]  ;;  %448 = vst [vmem:[%s6758_s8 + $0x3f0] sm:$0xff] %v447_v62  ;;  %450 = vst [vmem:[%s6758_s8 + $0x3f8] sm:$0xff] %v449_v63  ;;  %v453_v1 = vld [vmem:[%s6753_s7 + $0x1008] sm:$0xff] }
  0x57   : > { %452 = vst [vmem:[%s6758_s8 + $0x400] sm:$0xff] %v451_v0  ;;  %v455_v2 = vld [vmem:[%s6753_s7 + $0x1040] sm:$0xff]  ;;  %v457_v3 = vld [vmem:[%s6753_s7 + $0x1048] sm:$0xff]  ;;  %454 = vst [vmem:[%s6758_s8 + $0x408] sm:$0xff] %v453_v1 }
  0x58   : > { %456 = vst [vmem:[%s6758_s8 + $0x410] sm:$0xff] %v455_v2  ;;  %458 = vst [vmem:[%s6758_s8 + $0x418] sm:$0xff] %v457_v3  ;;  %v459_v4 = vld [vmem:[%s6753_s7 + $0x1080] sm:$0xff]  ;;  %v461_v5 = vld [vmem:[%s6753_s7 + $0x1088] sm:$0xff] }
  0x59   : > { %v463_v6 = vld [vmem:[%s6753_s7 + $0x10c0] sm:$0xff]  ;;  %460 = vst [vmem:[%s6758_s8 + $0x420] sm:$0xff] %v459_v4  ;;  %462 = vst [vmem:[%s6758_s8 + $0x428] sm:$0xff] %v461_v5  ;;  %v465_v7 = vld [vmem:[%s6753_s7 + $0x10c8] sm:$0xff] }
  0x5a   : > { %464 = vst [vmem:[%s6758_s8 + $0x430] sm:$0xff] %v463_v6  ;;  %v467_v8 = vld [vmem:[%s6753_s7 + $0x1100] sm:$0xff]  ;;  %v469_v9 = vld [vmem:[%s6753_s7 + $0x1108] sm:$0xff]  ;;  %466 = vst [vmem:[%s6758_s8 + $0x438] sm:$0xff] %v465_v7 }
  0x5b   : > { %468 = vst [vmem:[%s6758_s8 + $0x440] sm:$0xff] %v467_v8  ;;  %470 = vst [vmem:[%s6758_s8 + $0x448] sm:$0xff] %v469_v9  ;;  %v471_v10 = vld [vmem:[%s6753_s7 + $0x1140] sm:$0xff]  ;;  %v473_v11 = vld [vmem:[%s6753_s7 + $0x1148] sm:$0xff] }
  0x5c   : > { %v475_v12 = vld [vmem:[%s6753_s7 + $0x1180] sm:$0xff]  ;;  %472 = vst [vmem:[%s6758_s8 + $0x450] sm:$0xff] %v471_v10  ;;  %474 = vst [vmem:[%s6758_s8 + $0x458] sm:$0xff] %v473_v11  ;;  %v477_v13 = vld [vmem:[%s6753_s7 + $0x1188] sm:$0xff] }
  0x5d   : > { %476 = vst [vmem:[%s6758_s8 + $0x460] sm:$0xff] %v475_v12  ;;  %v479_v14 = vld [vmem:[%s6753_s7 + $0x11c0] sm:$0xff]  ;;  %v481_v15 = vld [vmem:[%s6753_s7 + $0x11c8] sm:$0xff]  ;;  %478 = vst [vmem:[%s6758_s8 + $0x468] sm:$0xff] %v477_v13 }
  0x5e   : > { %480 = vst [vmem:[%s6758_s8 + $0x470] sm:$0xff] %v479_v14  ;;  %482 = vst [vmem:[%s6758_s8 + $0x478] sm:$0xff] %v481_v15  ;;  %v483_v16 = vld [vmem:[%s6753_s7 + $0x1200] sm:$0xff]  ;;  %v485_v17 = vld [vmem:[%s6753_s7 + $0x1208] sm:$0xff] }
  0x5f   : > { %v487_v18 = vld [vmem:[%s6753_s7 + $0x1240] sm:$0xff]  ;;  %484 = vst [vmem:[%s6758_s8 + $0x480] sm:$0xff] %v483_v16  ;;  %486 = vst [vmem:[%s6758_s8 + $0x488] sm:$0xff] %v485_v17  ;;  %v489_v19 = vld [vmem:[%s6753_s7 + $0x1248] sm:$0xff] }
  0x60   : > { %488 = vst [vmem:[%s6758_s8 + $0x490] sm:$0xff] %v487_v18  ;;  %v491_v20 = vld [vmem:[%s6753_s7 + $0x1280] sm:$0xff]  ;;  %v493_v21 = vld [vmem:[%s6753_s7 + $0x1288] sm:$0xff]  ;;  %490 = vst [vmem:[%s6758_s8 + $0x498] sm:$0xff] %v489_v19 }
  0x61   : > { %492 = vst [vmem:[%s6758_s8 + $0x4a0] sm:$0xff] %v491_v20  ;;  %494 = vst [vmem:[%s6758_s8 + $0x4a8] sm:$0xff] %v493_v21  ;;  %v495_v22 = vld [vmem:[%s6753_s7 + $0x12c0] sm:$0xff]  ;;  %v497_v23 = vld [vmem:[%s6753_s7 + $0x12c8] sm:$0xff] }
  0x62   : > { %v499_v24 = vld [vmem:[%s6753_s7 + $0x1300] sm:$0xff]  ;;  %496 = vst [vmem:[%s6758_s8 + $0x4b0] sm:$0xff] %v495_v22  ;;  %498 = vst [vmem:[%s6758_s8 + $0x4b8] sm:$0xff] %v497_v23  ;;  %v501_v25 = vld [vmem:[%s6753_s7 + $0x1308] sm:$0xff] }
  0x63   : > { %500 = vst [vmem:[%s6758_s8 + $0x4c0] sm:$0xff] %v499_v24  ;;  %v503_v26 = vld [vmem:[%s6753_s7 + $0x1340] sm:$0xff]  ;;  %v505_v27 = vld [vmem:[%s6753_s7 + $0x1348] sm:$0xff]  ;;  %502 = vst [vmem:[%s6758_s8 + $0x4c8] sm:$0xff] %v501_v25 }
  0x64   : > { %504 = vst [vmem:[%s6758_s8 + $0x4d0] sm:$0xff] %v503_v26  ;;  %506 = vst [vmem:[%s6758_s8 + $0x4d8] sm:$0xff] %v505_v27  ;;  %v507_v28 = vld [vmem:[%s6753_s7 + $0x1380] sm:$0xff]  ;;  %v509_v29 = vld [vmem:[%s6753_s7 + $0x1388] sm:$0xff] }
  0x65   : > { %v511_v30 = vld [vmem:[%s6753_s7 + $0x13c0] sm:$0xff]  ;;  %508 = vst [vmem:[%s6758_s8 + $0x4e0] sm:$0xff] %v507_v28  ;;  %510 = vst [vmem:[%s6758_s8 + $0x4e8] sm:$0xff] %v509_v29  ;;  %v513_v31 = vld [vmem:[%s6753_s7 + $0x13c8] sm:$0xff] }
  0x66   : > { %512 = vst [vmem:[%s6758_s8 + $0x4f0] sm:$0xff] %v511_v30  ;;  %v515_v32 = vld [vmem:[%s6753_s7 + $0x1400] sm:$0xff]  ;;  %v517_v33 = vld [vmem:[%s6753_s7 + $0x1408] sm:$0xff]  ;;  %514 = vst [vmem:[%s6758_s8 + $0x4f8] sm:$0xff] %v513_v31 }
  0x67   : > { %516 = vst [vmem:[%s6758_s8 + $0x500] sm:$0xff] %v515_v32  ;;  %518 = vst [vmem:[%s6758_s8 + $0x508] sm:$0xff] %v517_v33  ;;  %v519_v34 = vld [vmem:[%s6753_s7 + $0x1440] sm:$0xff]  ;;  %v521_v35 = vld [vmem:[%s6753_s7 + $0x1448] sm:$0xff] }
  0x68   : > { %v523_v36 = vld [vmem:[%s6753_s7 + $0x1480] sm:$0xff]  ;;  %520 = vst [vmem:[%s6758_s8 + $0x510] sm:$0xff] %v519_v34  ;;  %522 = vst [vmem:[%s6758_s8 + $0x518] sm:$0xff] %v521_v35  ;;  %v525_v37 = vld [vmem:[%s6753_s7 + $0x1488] sm:$0xff] }
  0x69   : > { %524 = vst [vmem:[%s6758_s8 + $0x520] sm:$0xff] %v523_v36  ;;  %v527_v38 = vld [vmem:[%s6753_s7 + $0x14c0] sm:$0xff]  ;;  %v529_v39 = vld [vmem:[%s6753_s7 + $0x14c8] sm:$0xff]  ;;  %526 = vst [vmem:[%s6758_s8 + $0x528] sm:$0xff] %v525_v37 }
  0x6a   : > { %528 = vst [vmem:[%s6758_s8 + $0x530] sm:$0xff] %v527_v38  ;;  %530 = vst [vmem:[%s6758_s8 + $0x538] sm:$0xff] %v529_v39  ;;  %v531_v40 = vld [vmem:[%s6753_s7 + $0x1500] sm:$0xff]  ;;  %v533_v41 = vld [vmem:[%s6753_s7 + $0x1508] sm:$0xff] }
  0x6b   : > { %v535_v42 = vld [vmem:[%s6753_s7 + $0x1540] sm:$0xff]  ;;  %532 = vst [vmem:[%s6758_s8 + $0x540] sm:$0xff] %v531_v40  ;;  %534 = vst [vmem:[%s6758_s8 + $0x548] sm:$0xff] %v533_v41  ;;  %v537_v43 = vld [vmem:[%s6753_s7 + $0x1548] sm:$0xff] }
  0x6c   : > { %536 = vst [vmem:[%s6758_s8 + $0x550] sm:$0xff] %v535_v42  ;;  %v539_v44 = vld [vmem:[%s6753_s7 + $0x1580] sm:$0xff]  ;;  %v541_v45 = vld [vmem:[%s6753_s7 + $0x1588] sm:$0xff]  ;;  %538 = vst [vmem:[%s6758_s8 + $0x558] sm:$0xff] %v537_v43 }
  0x6d   : > { %540 = vst [vmem:[%s6758_s8 + $0x560] sm:$0xff] %v539_v44  ;;  %542 = vst [vmem:[%s6758_s8 + $0x568] sm:$0xff] %v541_v45  ;;  %v543_v46 = vld [vmem:[%s6753_s7 + $0x15c0] sm:$0xff]  ;;  %v545_v47 = vld [vmem:[%s6753_s7 + $0x15c8] sm:$0xff] }
  0x6e   : > { %v547_v48 = vld [vmem:[%s6753_s7 + $0x1600] sm:$0xff]  ;;  %544 = vst [vmem:[%s6758_s8 + $0x570] sm:$0xff] %v543_v46  ;;  %546 = vst [vmem:[%s6758_s8 + $0x578] sm:$0xff] %v545_v47  ;;  %v549_v49 = vld [vmem:[%s6753_s7 + $0x1608] sm:$0xff] }
  0x6f   : > { %548 = vst [vmem:[%s6758_s8 + $0x580] sm:$0xff] %v547_v48  ;;  %v551_v50 = vld [vmem:[%s6753_s7 + $0x1640] sm:$0xff]  ;;  %v553_v51 = vld [vmem:[%s6753_s7 + $0x1648] sm:$0xff]  ;;  %550 = vst [vmem:[%s6758_s8 + $0x588] sm:$0xff] %v549_v49 }
  0x70   : > { %552 = vst [vmem:[%s6758_s8 + $0x590] sm:$0xff] %v551_v50  ;;  %554 = vst [vmem:[%s6758_s8 + $0x598] sm:$0xff] %v553_v51  ;;  %v555_v52 = vld [vmem:[%s6753_s7 + $0x1680] sm:$0xff]  ;;  %v557_v53 = vld [vmem:[%s6753_s7 + $0x1688] sm:$0xff] }
  0x71   : > { %v559_v54 = vld [vmem:[%s6753_s7 + $0x16c0] sm:$0xff]  ;;  %556 = vst [vmem:[%s6758_s8 + $0x5a0] sm:$0xff] %v555_v52  ;;  %558 = vst [vmem:[%s6758_s8 + $0x5a8] sm:$0xff] %v557_v53  ;;  %v561_v55 = vld [vmem:[%s6753_s7 + $0x16c8] sm:$0xff] }
  0x72   : > { %560 = vst [vmem:[%s6758_s8 + $0x5b0] sm:$0xff] %v559_v54  ;;  %v563_v56 = vld [vmem:[%s6753_s7 + $0x1700] sm:$0xff]  ;;  %v565_v57 = vld [vmem:[%s6753_s7 + $0x1708] sm:$0xff]  ;;  %562 = vst [vmem:[%s6758_s8 + $0x5b8] sm:$0xff] %v561_v55 }
  0x73   : > { %564 = vst [vmem:[%s6758_s8 + $0x5c0] sm:$0xff] %v563_v56  ;;  %566 = vst [vmem:[%s6758_s8 + $0x5c8] sm:$0xff] %v565_v57  ;;  %v567_v58 = vld [vmem:[%s6753_s7 + $0x1740] sm:$0xff]  ;;  %v569_v59 = vld [vmem:[%s6753_s7 + $0x1748] sm:$0xff] }
  0x74   : > { %v571_v60 = vld [vmem:[%s6753_s7 + $0x1780] sm:$0xff]  ;;  %568 = vst [vmem:[%s6758_s8 + $0x5d0] sm:$0xff] %v567_v58  ;;  %570 = vst [vmem:[%s6758_s8 + $0x5d8] sm:$0xff] %v569_v59  ;;  %v573_v61 = vld [vmem:[%s6753_s7 + $0x1788] sm:$0xff] }
  0x75   : > { %572 = vst [vmem:[%s6758_s8 + $0x5e0] sm:$0xff] %v571_v60  ;;  %v575_v62 = vld [vmem:[%s6753_s7 + $0x17c0] sm:$0xff]  ;;  %v577_v63 = vld [vmem:[%s6753_s7 + $0x17c8] sm:$0xff]  ;;  %574 = vst [vmem:[%s6758_s8 + $0x5e8] sm:$0xff] %v573_v61 }
  0x76   : > { %576 = vst [vmem:[%s6758_s8 + $0x5f0] sm:$0xff] %v575_v62  ;;  %578 = vst [vmem:[%s6758_s8 + $0x5f8] sm:$0xff] %v577_v63  ;;  %v579_v0 = vld [vmem:[%s6753_s7 + $0x1800] sm:$0xff]  ;;  %v581_v1 = vld [vmem:[%s6753_s7 + $0x1808] sm:$0xff] }
  0x77   : > { %v583_v2 = vld [vmem:[%s6753_s7 + $0x1840] sm:$0xff]  ;;  %580 = vst [vmem:[%s6758_s8 + $0x600] sm:$0xff] %v579_v0  ;;  %582 = vst [vmem:[%s6758_s8 + $0x608] sm:$0xff] %v581_v1  ;;  %v585_v3 = vld [vmem:[%s6753_s7 + $0x1848] sm:$0xff] }
  0x78   : > { %584 = vst [vmem:[%s6758_s8 + $0x610] sm:$0xff] %v583_v2  ;;  %v587_v4 = vld [vmem:[%s6753_s7 + $0x1880] sm:$0xff]  ;;  %v589_v5 = vld [vmem:[%s6753_s7 + $0x1888] sm:$0xff]  ;;  %586 = vst [vmem:[%s6758_s8 + $0x618] sm:$0xff] %v585_v3 }
  0x79   : > { %588 = vst [vmem:[%s6758_s8 + $0x620] sm:$0xff] %v587_v4  ;;  %590 = vst [vmem:[%s6758_s8 + $0x628] sm:$0xff] %v589_v5  ;;  %v591_v6 = vld [vmem:[%s6753_s7 + $0x18c0] sm:$0xff]  ;;  %v593_v7 = vld [vmem:[%s6753_s7 + $0x18c8] sm:$0xff] }
  0x7a   : > { %v595_v8 = vld [vmem:[%s6753_s7 + $0x1900] sm:$0xff]  ;;  %592 = vst [vmem:[%s6758_s8 + $0x630] sm:$0xff] %v591_v6  ;;  %594 = vst [vmem:[%s6758_s8 + $0x638] sm:$0xff] %v593_v7  ;;  %v597_v9 = vld [vmem:[%s6753_s7 + $0x1908] sm:$0xff] }
  0x7b   : > { %596 = vst [vmem:[%s6758_s8 + $0x640] sm:$0xff] %v595_v8  ;;  %v599_v10 = vld [vmem:[%s6753_s7 + $0x1940] sm:$0xff]  ;;  %v601_v11 = vld [vmem:[%s6753_s7 + $0x1948] sm:$0xff]  ;;  %598 = vst [vmem:[%s6758_s8 + $0x648] sm:$0xff] %v597_v9 }
  0x7c   : > { %600 = vst [vmem:[%s6758_s8 + $0x650] sm:$0xff] %v599_v10  ;;  %602 = vst [vmem:[%s6758_s8 + $0x658] sm:$0xff] %v601_v11  ;;  %v603_v12 = vld [vmem:[%s6753_s7 + $0x1980] sm:$0xff]  ;;  %v605_v13 = vld [vmem:[%s6753_s7 + $0x1988] sm:$0xff] }
  0x7d   : > { %v607_v14 = vld [vmem:[%s6753_s7 + $0x19c0] sm:$0xff]  ;;  %604 = vst [vmem:[%s6758_s8 + $0x660] sm:$0xff] %v603_v12  ;;  %606 = vst [vmem:[%s6758_s8 + $0x668] sm:$0xff] %v605_v13  ;;  %v609_v15 = vld [vmem:[%s6753_s7 + $0x19c8] sm:$0xff] }
  0x7e   : > { %608 = vst [vmem:[%s6758_s8 + $0x670] sm:$0xff] %v607_v14  ;;  %v611_v16 = vld [vmem:[%s6753_s7 + $0x1a00] sm:$0xff]  ;;  %v613_v17 = vld [vmem:[%s6753_s7 + $0x1a08] sm:$0xff]  ;;  %610 = vst [vmem:[%s6758_s8 + $0x678] sm:$0xff] %v609_v15 }
  0x7f   : > { %612 = vst [vmem:[%s6758_s8 + $0x680] sm:$0xff] %v611_v16  ;;  %614 = vst [vmem:[%s6758_s8 + $0x688] sm:$0xff] %v613_v17  ;;  %v615_v18 = vld [vmem:[%s6753_s7 + $0x1a40] sm:$0xff]  ;;  %v617_v19 = vld [vmem:[%s6753_s7 + $0x1a48] sm:$0xff] }
  0x80   : > { %v619_v20 = vld [vmem:[%s6753_s7 + $0x1a80] sm:$0xff]  ;;  %616 = vst [vmem:[%s6758_s8 + $0x690] sm:$0xff] %v615_v18  ;;  %618 = vst [vmem:[%s6758_s8 + $0x698] sm:$0xff] %v617_v19  ;;  %v621_v21 = vld [vmem:[%s6753_s7 + $0x1a88] sm:$0xff] }
  0x81   : > { %620 = vst [vmem:[%s6758_s8 + $0x6a0] sm:$0xff] %v619_v20  ;;  %v623_v22 = vld [vmem:[%s6753_s7 + $0x1ac0] sm:$0xff]  ;;  %v625_v23 = vld [vmem:[%s6753_s7 + $0x1ac8] sm:$0xff]  ;;  %622 = vst [vmem:[%s6758_s8 + $0x6a8] sm:$0xff] %v621_v21 }
  0x82   : > { %624 = vst [vmem:[%s6758_s8 + $0x6b0] sm:$0xff] %v623_v22  ;;  %626 = vst [vmem:[%s6758_s8 + $0x6b8] sm:$0xff] %v625_v23  ;;  %v627_v24 = vld [vmem:[%s6753_s7 + $0x1b00] sm:$0xff]  ;;  %v629_v25 = vld [vmem:[%s6753_s7 + $0x1b08] sm:$0xff] }
  0x83   : > { %v631_v26 = vld [vmem:[%s6753_s7 + $0x1b40] sm:$0xff]  ;;  %628 = vst [vmem:[%s6758_s8 + $0x6c0] sm:$0xff] %v627_v24  ;;  %630 = vst [vmem:[%s6758_s8 + $0x6c8] sm:$0xff] %v629_v25  ;;  %v633_v27 = vld [vmem:[%s6753_s7 + $0x1b48] sm:$0xff] }
  0x84   : > { %632 = vst [vmem:[%s6758_s8 + $0x6d0] sm:$0xff] %v631_v26  ;;  %v635_v28 = vld [vmem:[%s6753_s7 + $0x1b80] sm:$0xff]  ;;  %v637_v29 = vld [vmem:[%s6753_s7 + $0x1b88] sm:$0xff]  ;;  %634 = vst [vmem:[%s6758_s8 + $0x6d8] sm:$0xff] %v633_v27 }
  0x85   : > { %636 = vst [vmem:[%s6758_s8 + $0x6e0] sm:$0xff] %v635_v28  ;;  %638 = vst [vmem:[%s6758_s8 + $0x6e8] sm:$0xff] %v637_v29  ;;  %v639_v30 = vld [vmem:[%s6753_s7 + $0x1bc0] sm:$0xff]  ;;  %v641_v31 = vld [vmem:[%s6753_s7 + $0x1bc8] sm:$0xff] }
  0x86   : > { %v643_v32 = vld [vmem:[%s6753_s7 + $0x1c00] sm:$0xff]  ;;  %640 = vst [vmem:[%s6758_s8 + $0x6f0] sm:$0xff] %v639_v30  ;;  %642 = vst [vmem:[%s6758_s8 + $0x6f8] sm:$0xff] %v641_v31  ;;  %v645_v33 = vld [vmem:[%s6753_s7 + $0x1c08] sm:$0xff] }
  0x87   : > { %644 = vst [vmem:[%s6758_s8 + $0x700] sm:$0xff] %v643_v32  ;;  %v647_v34 = vld [vmem:[%s6753_s7 + $0x1c40] sm:$0xff]  ;;  %v649_v35 = vld [vmem:[%s6753_s7 + $0x1c48] sm:$0xff]  ;;  %646 = vst [vmem:[%s6758_s8 + $0x708] sm:$0xff] %v645_v33 }
  0x88   : > { %648 = vst [vmem:[%s6758_s8 + $0x710] sm:$0xff] %v647_v34  ;;  %650 = vst [vmem:[%s6758_s8 + $0x718] sm:$0xff] %v649_v35  ;;  %v651_v36 = vld [vmem:[%s6753_s7 + $0x1c80] sm:$0xff]  ;;  %v653_v37 = vld [vmem:[%s6753_s7 + $0x1c88] sm:$0xff] }
  0x89   : > { %v655_v38 = vld [vmem:[%s6753_s7 + $0x1cc0] sm:$0xff]  ;;  %652 = vst [vmem:[%s6758_s8 + $0x720] sm:$0xff] %v651_v36  ;;  %654 = vst [vmem:[%s6758_s8 + $0x728] sm:$0xff] %v653_v37  ;;  %v657_v39 = vld [vmem:[%s6753_s7 + $0x1cc8] sm:$0xff] }
  0x8a   : > { %656 = vst [vmem:[%s6758_s8 + $0x730] sm:$0xff] %v655_v38  ;;  %v659_v40 = vld [vmem:[%s6753_s7 + $0x1d00] sm:$0xff]  ;;  %v661_v41 = vld [vmem:[%s6753_s7 + $0x1d08] sm:$0xff]  ;;  %658 = vst [vmem:[%s6758_s8 + $0x738] sm:$0xff] %v657_v39 }
  0x8b   : > { %660 = vst [vmem:[%s6758_s8 + $0x740] sm:$0xff] %v659_v40  ;;  %662 = vst [vmem:[%s6758_s8 + $0x748] sm:$0xff] %v661_v41  ;;  %v663_v42 = vld [vmem:[%s6753_s7 + $0x1d40] sm:$0xff]  ;;  %v665_v43 = vld [vmem:[%s6753_s7 + $0x1d48] sm:$0xff] }
  0x8c   : > { %v667_v44 = vld [vmem:[%s6753_s7 + $0x1d80] sm:$0xff]  ;;  %664 = vst [vmem:[%s6758_s8 + $0x750] sm:$0xff] %v663_v42  ;;  %666 = vst [vmem:[%s6758_s8 + $0x758] sm:$0xff] %v665_v43  ;;  %v669_v45 = vld [vmem:[%s6753_s7 + $0x1d88] sm:$0xff] }
  0x8d   : > { %668 = vst [vmem:[%s6758_s8 + $0x760] sm:$0xff] %v667_v44  ;;  %v671_v46 = vld [vmem:[%s6753_s7 + $0x1dc0] sm:$0xff]  ;;  %v673_v47 = vld [vmem:[%s6753_s7 + $0x1dc8] sm:$0xff]  ;;  %670 = vst [vmem:[%s6758_s8 + $0x768] sm:$0xff] %v669_v45 }
  0x8e   : > { %672 = vst [vmem:[%s6758_s8 + $0x770] sm:$0xff] %v671_v46  ;;  %674 = vst [vmem:[%s6758_s8 + $0x778] sm:$0xff] %v673_v47  ;;  %v675_v48 = vld [vmem:[%s6753_s7 + $0x1e00] sm:$0xff]  ;;  %v677_v49 = vld [vmem:[%s6753_s7 + $0x1e08] sm:$0xff] }
  0x8f   : > { %v679_v50 = vld [vmem:[%s6753_s7 + $0x1e40] sm:$0xff]  ;;  %676 = vst [vmem:[%s6758_s8 + $0x780] sm:$0xff] %v675_v48  ;;  %678 = vst [vmem:[%s6758_s8 + $0x788] sm:$0xff] %v677_v49  ;;  %v681_v51 = vld [vmem:[%s6753_s7 + $0x1e48] sm:$0xff] }
  0x90   : > { %680 = vst [vmem:[%s6758_s8 + $0x790] sm:$0xff] %v679_v50  ;;  %v683_v52 = vld [vmem:[%s6753_s7 + $0x1e80] sm:$0xff]  ;;  %v685_v53 = vld [vmem:[%s6753_s7 + $0x1e88] sm:$0xff]  ;;  %682 = vst [vmem:[%s6758_s8 + $0x798] sm:$0xff] %v681_v51 }
  0x91   : > { %684 = vst [vmem:[%s6758_s8 + $0x7a0] sm:$0xff] %v683_v52  ;;  %686 = vst [vmem:[%s6758_s8 + $0x7a8] sm:$0xff] %v685_v53  ;;  %v687_v54 = vld [vmem:[%s6753_s7 + $0x1ec0] sm:$0xff]  ;;  %v689_v55 = vld [vmem:[%s6753_s7 + $0x1ec8] sm:$0xff] }
  0x92   : > { %v691_v56 = vld [vmem:[%s6753_s7 + $0x1f00] sm:$0xff]  ;;  %688 = vst [vmem:[%s6758_s8 + $0x7b0] sm:$0xff] %v687_v54  ;;  %690 = vst [vmem:[%s6758_s8 + $0x7b8] sm:$0xff] %v689_v55  ;;  %v693_v57 = vld [vmem:[%s6753_s7 + $0x1f08] sm:$0xff] }
  0x93   : > { %692 = vst [vmem:[%s6758_s8 + $0x7c0] sm:$0xff] %v691_v56  ;;  %v695_v58 = vld [vmem:[%s6753_s7 + $0x1f40] sm:$0xff]  ;;  %v697_v59 = vld [vmem:[%s6753_s7 + $0x1f48] sm:$0xff]  ;;  %694 = vst [vmem:[%s6758_s8 + $0x7c8] sm:$0xff] %v693_v57 }
  0x94   : > { %696 = vst [vmem:[%s6758_s8 + $0x7d0] sm:$0xff] %v695_v58  ;;  %698 = vst [vmem:[%s6758_s8 + $0x7d8] sm:$0xff] %v697_v59  ;;  %v699_v60 = vld [vmem:[%s6753_s7 + $0x1f80] sm:$0xff]  ;;  %v701_v61 = vld [vmem:[%s6753_s7 + $0x1f88] sm:$0xff] }
  0x95   : > { %v703_v62 = vld [vmem:[%s6753_s7 + $0x1fc0] sm:$0xff]  ;;  %700 = vst [vmem:[%s6758_s8 + $0x7e0] sm:$0xff] %v699_v60  ;;  %702 = vst [vmem:[%s6758_s8 + $0x7e8] sm:$0xff] %v701_v61  ;;  %v705_v63 = vld [vmem:[%s6753_s7 + $0x1fc8] sm:$0xff] }
  0x96   : > { %704 = vst [vmem:[%s6758_s8 + $0x7f0] sm:$0xff] %v703_v62  ;;  %v707_v0 = vld [vmem:[%s6753_s7 + $0x2000] sm:$0xff]  ;;  %v709_v1 = vld [vmem:[%s6753_s7 + $0x2008] sm:$0xff]  ;;  %706 = vst [vmem:[%s6758_s8 + $0x7f8] sm:$0xff] %v705_v63 }
  0x97   : > { %708 = vst [vmem:[%s6758_s8 + $0x800] sm:$0xff] %v707_v0  ;;  %710 = vst [vmem:[%s6758_s8 + $0x808] sm:$0xff] %v709_v1  ;;  %v711_v2 = vld [vmem:[%s6753_s7 + $0x2040] sm:$0xff]  ;;  %v713_v3 = vld [vmem:[%s6753_s7 + $0x2048] sm:$0xff] }
  0x98   : > { %v715_v4 = vld [vmem:[%s6753_s7 + $0x2080] sm:$0xff]  ;;  %712 = vst [vmem:[%s6758_s8 + $0x810] sm:$0xff] %v711_v2  ;;  %714 = vst [vmem:[%s6758_s8 + $0x818] sm:$0xff] %v713_v3  ;;  %v717_v5 = vld [vmem:[%s6753_s7 + $0x2088] sm:$0xff] }
  0x99   : > { %716 = vst [vmem:[%s6758_s8 + $0x820] sm:$0xff] %v715_v4  ;;  %v719_v6 = vld [vmem:[%s6753_s7 + $0x20c0] sm:$0xff]  ;;  %v721_v7 = vld [vmem:[%s6753_s7 + $0x20c8] sm:$0xff]  ;;  %718 = vst [vmem:[%s6758_s8 + $0x828] sm:$0xff] %v717_v5 }
  0x9a   : > { %720 = vst [vmem:[%s6758_s8 + $0x830] sm:$0xff] %v719_v6  ;;  %722 = vst [vmem:[%s6758_s8 + $0x838] sm:$0xff] %v721_v7  ;;  %v723_v8 = vld [vmem:[%s6753_s7 + $0x2100] sm:$0xff]  ;;  %v725_v9 = vld [vmem:[%s6753_s7 + $0x2108] sm:$0xff] }
  0x9b   : > { %v727_v10 = vld [vmem:[%s6753_s7 + $0x2140] sm:$0xff]  ;;  %724 = vst [vmem:[%s6758_s8 + $0x840] sm:$0xff] %v723_v8  ;;  %726 = vst [vmem:[%s6758_s8 + $0x848] sm:$0xff] %v725_v9  ;;  %v729_v11 = vld [vmem:[%s6753_s7 + $0x2148] sm:$0xff] }
  0x9c   : > { %728 = vst [vmem:[%s6758_s8 + $0x850] sm:$0xff] %v727_v10  ;;  %v731_v12 = vld [vmem:[%s6753_s7 + $0x2180] sm:$0xff]  ;;  %v733_v13 = vld [vmem:[%s6753_s7 + $0x2188] sm:$0xff]  ;;  %730 = vst [vmem:[%s6758_s8 + $0x858] sm:$0xff] %v729_v11 }
  0x9d   : > { %732 = vst [vmem:[%s6758_s8 + $0x860] sm:$0xff] %v731_v12  ;;  %734 = vst [vmem:[%s6758_s8 + $0x868] sm:$0xff] %v733_v13  ;;  %v735_v14 = vld [vmem:[%s6753_s7 + $0x21c0] sm:$0xff]  ;;  %v737_v15 = vld [vmem:[%s6753_s7 + $0x21c8] sm:$0xff] }
  0x9e   : > { %v739_v16 = vld [vmem:[%s6753_s7 + $0x2200] sm:$0xff]  ;;  %736 = vst [vmem:[%s6758_s8 + $0x870] sm:$0xff] %v735_v14  ;;  %738 = vst [vmem:[%s6758_s8 + $0x878] sm:$0xff] %v737_v15  ;;  %v741_v17 = vld [vmem:[%s6753_s7 + $0x2208] sm:$0xff] }
  0x9f   : > { %740 = vst [vmem:[%s6758_s8 + $0x880] sm:$0xff] %v739_v16  ;;  %v743_v18 = vld [vmem:[%s6753_s7 + $0x2240] sm:$0xff]  ;;  %v745_v19 = vld [vmem:[%s6753_s7 + $0x2248] sm:$0xff]  ;;  %742 = vst [vmem:[%s6758_s8 + $0x888] sm:$0xff] %v741_v17 }
  0xa0   : > { %744 = vst [vmem:[%s6758_s8 + $0x890] sm:$0xff] %v743_v18  ;;  %746 = vst [vmem:[%s6758_s8 + $0x898] sm:$0xff] %v745_v19  ;;  %v747_v20 = vld [vmem:[%s6753_s7 + $0x2280] sm:$0xff]  ;;  %v749_v21 = vld [vmem:[%s6753_s7 + $0x2288] sm:$0xff] }
  0xa1   : > { %v751_v22 = vld [vmem:[%s6753_s7 + $0x22c0] sm:$0xff]  ;;  %748 = vst [vmem:[%s6758_s8 + $0x8a0] sm:$0xff] %v747_v20  ;;  %750 = vst [vmem:[%s6758_s8 + $0x8a8] sm:$0xff] %v749_v21  ;;  %v753_v23 = vld [vmem:[%s6753_s7 + $0x22c8] sm:$0xff] }
  0xa2   : > { %752 = vst [vmem:[%s6758_s8 + $0x8b0] sm:$0xff] %v751_v22  ;;  %v755_v24 = vld [vmem:[%s6753_s7 + $0x2300] sm:$0xff]  ;;  %v757_v25 = vld [vmem:[%s6753_s7 + $0x2308] sm:$0xff]  ;;  %754 = vst [vmem:[%s6758_s8 + $0x8b8] sm:$0xff] %v753_v23 }
  0xa3   : > { %756 = vst [vmem:[%s6758_s8 + $0x8c0] sm:$0xff] %v755_v24  ;;  %758 = vst [vmem:[%s6758_s8 + $0x8c8] sm:$0xff] %v757_v25  ;;  %v759_v26 = vld [vmem:[%s6753_s7 + $0x2340] sm:$0xff]  ;;  %v761_v27 = vld [vmem:[%s6753_s7 + $0x2348] sm:$0xff] }
  0xa4   : > { %v763_v28 = vld [vmem:[%s6753_s7 + $0x2380] sm:$0xff]  ;;  %760 = vst [vmem:[%s6758_s8 + $0x8d0] sm:$0xff] %v759_v26  ;;  %762 = vst [vmem:[%s6758_s8 + $0x8d8] sm:$0xff] %v761_v27  ;;  %v765_v29 = vld [vmem:[%s6753_s7 + $0x2388] sm:$0xff] }
  0xa5   : > { %764 = vst [vmem:[%s6758_s8 + $0x8e0] sm:$0xff] %v763_v28  ;;  %v767_v30 = vld [vmem:[%s6753_s7 + $0x23c0] sm:$0xff]  ;;  %v769_v31 = vld [vmem:[%s6753_s7 + $0x23c8] sm:$0xff]  ;;  %766 = vst [vmem:[%s6758_s8 + $0x8e8] sm:$0xff] %v765_v29 }
  0xa6   : > { %768 = vst [vmem:[%s6758_s8 + $0x8f0] sm:$0xff] %v767_v30  ;;  %770 = vst [vmem:[%s6758_s8 + $0x8f8] sm:$0xff] %v769_v31  ;;  %v771_v32 = vld [vmem:[%s6753_s7 + $0x2400] sm:$0xff]  ;;  %v773_v33 = vld [vmem:[%s6753_s7 + $0x2408] sm:$0xff] }
  0xa7   : > { %v775_v34 = vld [vmem:[%s6753_s7 + $0x2440] sm:$0xff]  ;;  %772 = vst [vmem:[%s6758_s8 + $0x900] sm:$0xff] %v771_v32  ;;  %774 = vst [vmem:[%s6758_s8 + $0x908] sm:$0xff] %v773_v33  ;;  %v777_v35 = vld [vmem:[%s6753_s7 + $0x2448] sm:$0xff] }
  0xa8   : > { %776 = vst [vmem:[%s6758_s8 + $0x910] sm:$0xff] %v775_v34  ;;  %v779_v36 = vld [vmem:[%s6753_s7 + $0x2480] sm:$0xff]  ;;  %v781_v37 = vld [vmem:[%s6753_s7 + $0x2488] sm:$0xff]  ;;  %778 = vst [vmem:[%s6758_s8 + $0x918] sm:$0xff] %v777_v35 }
  0xa9   : > { %780 = vst [vmem:[%s6758_s8 + $0x920] sm:$0xff] %v779_v36  ;;  %782 = vst [vmem:[%s6758_s8 + $0x928] sm:$0xff] %v781_v37  ;;  %v783_v38 = vld [vmem:[%s6753_s7 + $0x24c0] sm:$0xff]  ;;  %v785_v39 = vld [vmem:[%s6753_s7 + $0x24c8] sm:$0xff] }
  0xaa   : > { %v787_v40 = vld [vmem:[%s6753_s7 + $0x2500] sm:$0xff]  ;;  %784 = vst [vmem:[%s6758_s8 + $0x930] sm:$0xff] %v783_v38  ;;  %786 = vst [vmem:[%s6758_s8 + $0x938] sm:$0xff] %v785_v39  ;;  %v789_v41 = vld [vmem:[%s6753_s7 + $0x2508] sm:$0xff] }
  0xab   : > { %788 = vst [vmem:[%s6758_s8 + $0x940] sm:$0xff] %v787_v40  ;;  %v791_v42 = vld [vmem:[%s6753_s7 + $0x2540] sm:$0xff]  ;;  %v793_v43 = vld [vmem:[%s6753_s7 + $0x2548] sm:$0xff]  ;;  %790 = vst [vmem:[%s6758_s8 + $0x948] sm:$0xff] %v789_v41 }
  0xac   : > { %792 = vst [vmem:[%s6758_s8 + $0x950] sm:$0xff] %v791_v42  ;;  %794 = vst [vmem:[%s6758_s8 + $0x958] sm:$0xff] %v793_v43  ;;  %v795_v44 = vld [vmem:[%s6753_s7 + $0x2580] sm:$0xff]  ;;  %v797_v45 = vld [vmem:[%s6753_s7 + $0x2588] sm:$0xff] }
  0xad   : > { %v799_v46 = vld [vmem:[%s6753_s7 + $0x25c0] sm:$0xff]  ;;  %796 = vst [vmem:[%s6758_s8 + $0x960] sm:$0xff] %v795_v44  ;;  %798 = vst [vmem:[%s6758_s8 + $0x968] sm:$0xff] %v797_v45  ;;  %v801_v47 = vld [vmem:[%s6753_s7 + $0x25c8] sm:$0xff] }
  0xae   : > { %800 = vst [vmem:[%s6758_s8 + $0x970] sm:$0xff] %v799_v46  ;;  %v803_v48 = vld [vmem:[%s6753_s7 + $0x2600] sm:$0xff]  ;;  %v805_v49 = vld [vmem:[%s6753_s7 + $0x2608] sm:$0xff]  ;;  %802 = vst [vmem:[%s6758_s8 + $0x978] sm:$0xff] %v801_v47 }
  0xaf   : > { %804 = vst [vmem:[%s6758_s8 + $0x980] sm:$0xff] %v803_v48  ;;  %806 = vst [vmem:[%s6758_s8 + $0x988] sm:$0xff] %v805_v49  ;;  %v807_v50 = vld [vmem:[%s6753_s7 + $0x2640] sm:$0xff]  ;;  %v809_v51 = vld [vmem:[%s6753_s7 + $0x2648] sm:$0xff] }
  0xb0   : > { %v811_v52 = vld [vmem:[%s6753_s7 + $0x2680] sm:$0xff]  ;;  %808 = vst [vmem:[%s6758_s8 + $0x990] sm:$0xff] %v807_v50  ;;  %810 = vst [vmem:[%s6758_s8 + $0x998] sm:$0xff] %v809_v51  ;;  %v813_v53 = vld [vmem:[%s6753_s7 + $0x2688] sm:$0xff] }
  0xb1   : > { %812 = vst [vmem:[%s6758_s8 + $0x9a0] sm:$0xff] %v811_v52  ;;  %v815_v54 = vld [vmem:[%s6753_s7 + $0x26c0] sm:$0xff]  ;;  %v817_v55 = vld [vmem:[%s6753_s7 + $0x26c8] sm:$0xff]  ;;  %814 = vst [vmem:[%s6758_s8 + $0x9a8] sm:$0xff] %v813_v53 }
  0xb2   : > { %816 = vst [vmem:[%s6758_s8 + $0x9b0] sm:$0xff] %v815_v54  ;;  %818 = vst [vmem:[%s6758_s8 + $0x9b8] sm:$0xff] %v817_v55  ;;  %v819_v56 = vld [vmem:[%s6753_s7 + $0x2700] sm:$0xff]  ;;  %v821_v57 = vld [vmem:[%s6753_s7 + $0x2708] sm:$0xff] }
  0xb3   : > { %v823_v58 = vld [vmem:[%s6753_s7 + $0x2740] sm:$0xff]  ;;  %820 = vst [vmem:[%s6758_s8 + $0x9c0] sm:$0xff] %v819_v56  ;;  %822 = vst [vmem:[%s6758_s8 + $0x9c8] sm:$0xff] %v821_v57  ;;  %v825_v59 = vld [vmem:[%s6753_s7 + $0x2748] sm:$0xff] }
  0xb4   : > { %824 = vst [vmem:[%s6758_s8 + $0x9d0] sm:$0xff] %v823_v58  ;;  %v827_v60 = vld [vmem:[%s6753_s7 + $0x2780] sm:$0xff]  ;;  %v829_v61 = vld [vmem:[%s6753_s7 + $0x2788] sm:$0xff]  ;;  %826 = vst [vmem:[%s6758_s8 + $0x9d8] sm:$0xff] %v825_v59 }
  0xb5   : > { %828 = vst [vmem:[%s6758_s8 + $0x9e0] sm:$0xff] %v827_v60  ;;  %830 = vst [vmem:[%s6758_s8 + $0x9e8] sm:$0xff] %v829_v61  ;;  %v831_v62 = vld [vmem:[%s6753_s7 + $0x27c0] sm:$0xff]  ;;  %v833_v63 = vld [vmem:[%s6753_s7 + $0x27c8] sm:$0xff] }
  0xb6   : > { %v835_v0 = vld [vmem:[%s6753_s7 + $0x2800] sm:$0xff]  ;;  %832 = vst [vmem:[%s6758_s8 + $0x9f0] sm:$0xff] %v831_v62  ;;  %834 = vst [vmem:[%s6758_s8 + $0x9f8] sm:$0xff] %v833_v63  ;;  %v837_v1 = vld [vmem:[%s6753_s7 + $0x2808] sm:$0xff] }
  0xb7   : > { %836 = vst [vmem:[%s6758_s8 + $0xa00] sm:$0xff] %v835_v0  ;;  %v839_v2 = vld [vmem:[%s6753_s7 + $0x2840] sm:$0xff]  ;;  %v841_v3 = vld [vmem:[%s6753_s7 + $0x2848] sm:$0xff]  ;;  %838 = vst [vmem:[%s6758_s8 + $0xa08] sm:$0xff] %v837_v1 }
  0xb8   : > { %840 = vst [vmem:[%s6758_s8 + $0xa10] sm:$0xff] %v839_v2  ;;  %842 = vst [vmem:[%s6758_s8 + $0xa18] sm:$0xff] %v841_v3  ;;  %v843_v4 = vld [vmem:[%s6753_s7 + $0x2880] sm:$0xff]  ;;  %v845_v5 = vld [vmem:[%s6753_s7 + $0x2888] sm:$0xff] }
  0xb9   : > { %v847_v6 = vld [vmem:[%s6753_s7 + $0x28c0] sm:$0xff]  ;;  %844 = vst [vmem:[%s6758_s8 + $0xa20] sm:$0xff] %v843_v4  ;;  %846 = vst [vmem:[%s6758_s8 + $0xa28] sm:$0xff] %v845_v5  ;;  %v849_v7 = vld [vmem:[%s6753_s7 + $0x28c8] sm:$0xff] }
  0xba   : > { %848 = vst [vmem:[%s6758_s8 + $0xa30] sm:$0xff] %v847_v6  ;;  %v851_v8 = vld [vmem:[%s6753_s7 + $0x2900] sm:$0xff]  ;;  %v853_v9 = vld [vmem:[%s6753_s7 + $0x2908] sm:$0xff]  ;;  %850 = vst [vmem:[%s6758_s8 + $0xa38] sm:$0xff] %v849_v7 }
  0xbb   : > { %852 = vst [vmem:[%s6758_s8 + $0xa40] sm:$0xff] %v851_v8  ;;  %854 = vst [vmem:[%s6758_s8 + $0xa48] sm:$0xff] %v853_v9  ;;  %v855_v10 = vld [vmem:[%s6753_s7 + $0x2940] sm:$0xff]  ;;  %v857_v11 = vld [vmem:[%s6753_s7 + $0x2948] sm:$0xff] }
  0xbc   : > { %v859_v12 = vld [vmem:[%s6753_s7 + $0x2980] sm:$0xff]  ;;  %856 = vst [vmem:[%s6758_s8 + $0xa50] sm:$0xff] %v855_v10  ;;  %858 = vst [vmem:[%s6758_s8 + $0xa58] sm:$0xff] %v857_v11  ;;  %v861_v13 = vld [vmem:[%s6753_s7 + $0x2988] sm:$0xff] }
  0xbd   : > { %860 = vst [vmem:[%s6758_s8 + $0xa60] sm:$0xff] %v859_v12  ;;  %v863_v14 = vld [vmem:[%s6753_s7 + $0x29c0] sm:$0xff]  ;;  %v865_v15 = vld [vmem:[%s6753_s7 + $0x29c8] sm:$0xff]  ;;  %862 = vst [vmem:[%s6758_s8 + $0xa68] sm:$0xff] %v861_v13 }
  0xbe   : > { %864 = vst [vmem:[%s6758_s8 + $0xa70] sm:$0xff] %v863_v14  ;;  %866 = vst [vmem:[%s6758_s8 + $0xa78] sm:$0xff] %v865_v15  ;;  %v867_v16 = vld [vmem:[%s6753_s7 + $0x2a00] sm:$0xff]  ;;  %v869_v17 = vld [vmem:[%s6753_s7 + $0x2a08] sm:$0xff] }
  0xbf   : > { %v871_v18 = vld [vmem:[%s6753_s7 + $0x2a40] sm:$0xff]  ;;  %868 = vst [vmem:[%s6758_s8 + $0xa80] sm:$0xff] %v867_v16  ;;  %870 = vst [vmem:[%s6758_s8 + $0xa88] sm:$0xff] %v869_v17  ;;  %v873_v19 = vld [vmem:[%s6753_s7 + $0x2a48] sm:$0xff] }
  0xc0   : > { %872 = vst [vmem:[%s6758_s8 + $0xa90] sm:$0xff] %v871_v18  ;;  %v875_v20 = vld [vmem:[%s6753_s7 + $0x2a80] sm:$0xff]  ;;  %v877_v21 = vld [vmem:[%s6753_s7 + $0x2a88] sm:$0xff]  ;;  %874 = vst [vmem:[%s6758_s8 + $0xa98] sm:$0xff] %v873_v19 }
  0xc1   : > { %876 = vst [vmem:[%s6758_s8 + $0xaa0] sm:$0xff] %v875_v20  ;;  %878 = vst [vmem:[%s6758_s8 + $0xaa8] sm:$0xff] %v877_v21  ;;  %v879_v22 = vld [vmem:[%s6753_s7 + $0x2ac0] sm:$0xff]  ;;  %v881_v23 = vld [vmem:[%s6753_s7 + $0x2ac8] sm:$0xff] }
  0xc2   : > { %v883_v24 = vld [vmem:[%s6753_s7 + $0x2b00] sm:$0xff]  ;;  %880 = vst [vmem:[%s6758_s8 + $0xab0] sm:$0xff] %v879_v22  ;;  %882 = vst [vmem:[%s6758_s8 + $0xab8] sm:$0xff] %v881_v23  ;;  %v885_v25 = vld [vmem:[%s6753_s7 + $0x2b08] sm:$0xff] }
  0xc3   : > { %884 = vst [vmem:[%s6758_s8 + $0xac0] sm:$0xff] %v883_v24  ;;  %v887_v26 = vld [vmem:[%s6753_s7 + $0x2b40] sm:$0xff]  ;;  %v889_v27 = vld [vmem:[%s6753_s7 + $0x2b48] sm:$0xff]  ;;  %886 = vst [vmem:[%s6758_s8 + $0xac8] sm:$0xff] %v885_v25 }
  0xc4   : > { %888 = vst [vmem:[%s6758_s8 + $0xad0] sm:$0xff] %v887_v26  ;;  %890 = vst [vmem:[%s6758_s8 + $0xad8] sm:$0xff] %v889_v27  ;;  %v891_v28 = vld [vmem:[%s6753_s7 + $0x2b80] sm:$0xff]  ;;  %v893_v29 = vld [vmem:[%s6753_s7 + $0x2b88] sm:$0xff] }
  0xc5   : > { %v895_v30 = vld [vmem:[%s6753_s7 + $0x2bc0] sm:$0xff]  ;;  %892 = vst [vmem:[%s6758_s8 + $0xae0] sm:$0xff] %v891_v28  ;;  %894 = vst [vmem:[%s6758_s8 + $0xae8] sm:$0xff] %v893_v29  ;;  %v897_v31 = vld [vmem:[%s6753_s7 + $0x2bc8] sm:$0xff] }
  0xc6   : > { %896 = vst [vmem:[%s6758_s8 + $0xaf0] sm:$0xff] %v895_v30  ;;  %v899_v32 = vld [vmem:[%s6753_s7 + $0x2c00] sm:$0xff]  ;;  %v901_v33 = vld [vmem:[%s6753_s7 + $0x2c08] sm:$0xff]  ;;  %898 = vst [vmem:[%s6758_s8 + $0xaf8] sm:$0xff] %v897_v31 }
  0xc7   : > { %900 = vst [vmem:[%s6758_s8 + $0xb00] sm:$0xff] %v899_v32  ;;  %902 = vst [vmem:[%s6758_s8 + $0xb08] sm:$0xff] %v901_v33  ;;  %v903_v34 = vld [vmem:[%s6753_s7 + $0x2c40] sm:$0xff]  ;;  %v905_v35 = vld [vmem:[%s6753_s7 + $0x2c48] sm:$0xff] }
  0xc8   : > { %v907_v36 = vld [vmem:[%s6753_s7 + $0x2c80] sm:$0xff]  ;;  %904 = vst [vmem:[%s6758_s8 + $0xb10] sm:$0xff] %v903_v34  ;;  %906 = vst [vmem:[%s6758_s8 + $0xb18] sm:$0xff] %v905_v35  ;;  %v909_v37 = vld [vmem:[%s6753_s7 + $0x2c88] sm:$0xff] }
  0xc9   : > { %908 = vst [vmem:[%s6758_s8 + $0xb20] sm:$0xff] %v907_v36  ;;  %v911_v38 = vld [vmem:[%s6753_s7 + $0x2cc0] sm:$0xff]  ;;  %v913_v39 = vld [vmem:[%s6753_s7 + $0x2cc8] sm:$0xff]  ;;  %910 = vst [vmem:[%s6758_s8 + $0xb28] sm:$0xff] %v909_v37 }
  0xca   : > { %912 = vst [vmem:[%s6758_s8 + $0xb30] sm:$0xff] %v911_v38  ;;  %914 = vst [vmem:[%s6758_s8 + $0xb38] sm:$0xff] %v913_v39  ;;  %v915_v40 = vld [vmem:[%s6753_s7 + $0x2d00] sm:$0xff]  ;;  %v917_v41 = vld [vmem:[%s6753_s7 + $0x2d08] sm:$0xff] }
  0xcb   : > { %v919_v42 = vld [vmem:[%s6753_s7 + $0x2d40] sm:$0xff]  ;;  %916 = vst [vmem:[%s6758_s8 + $0xb40] sm:$0xff] %v915_v40  ;;  %918 = vst [vmem:[%s6758_s8 + $0xb48] sm:$0xff] %v917_v41  ;;  %v921_v43 = vld [vmem:[%s6753_s7 + $0x2d48] sm:$0xff] }
  0xcc   : > { %920 = vst [vmem:[%s6758_s8 + $0xb50] sm:$0xff] %v919_v42  ;;  %v923_v44 = vld [vmem:[%s6753_s7 + $0x2d80] sm:$0xff]  ;;  %v925_v45 = vld [vmem:[%s6753_s7 + $0x2d88] sm:$0xff]  ;;  %922 = vst [vmem:[%s6758_s8 + $0xb58] sm:$0xff] %v921_v43 }
  0xcd   : > { %924 = vst [vmem:[%s6758_s8 + $0xb60] sm:$0xff] %v923_v44  ;;  %926 = vst [vmem:[%s6758_s8 + $0xb68] sm:$0xff] %v925_v45  ;;  %v927_v46 = vld [vmem:[%s6753_s7 + $0x2dc0] sm:$0xff]  ;;  %v929_v47 = vld [vmem:[%s6753_s7 + $0x2dc8] sm:$0xff] }
  0xce   : > { %v931_v48 = vld [vmem:[%s6753_s7 + $0x2e00] sm:$0xff]  ;;  %928 = vst [vmem:[%s6758_s8 + $0xb70] sm:$0xff] %v927_v46  ;;  %930 = vst [vmem:[%s6758_s8 + $0xb78] sm:$0xff] %v929_v47  ;;  %v933_v49 = vld [vmem:[%s6753_s7 + $0x2e08] sm:$0xff] }
  0xcf   : > { %932 = vst [vmem:[%s6758_s8 + $0xb80] sm:$0xff] %v931_v48  ;;  %v935_v50 = vld [vmem:[%s6753_s7 + $0x2e40] sm:$0xff]  ;;  %v937_v51 = vld [vmem:[%s6753_s7 + $0x2e48] sm:$0xff]  ;;  %934 = vst [vmem:[%s6758_s8 + $0xb88] sm:$0xff] %v933_v49 }
  0xd0   : > { %936 = vst [vmem:[%s6758_s8 + $0xb90] sm:$0xff] %v935_v50  ;;  %938 = vst [vmem:[%s6758_s8 + $0xb98] sm:$0xff] %v937_v51  ;;  %v939_v52 = vld [vmem:[%s6753_s7 + $0x2e80] sm:$0xff]  ;;  %v941_v53 = vld [vmem:[%s6753_s7 + $0x2e88] sm:$0xff] }
  0xd1   : > { %v943_v54 = vld [vmem:[%s6753_s7 + $0x2ec0] sm:$0xff]  ;;  %940 = vst [vmem:[%s6758_s8 + $0xba0] sm:$0xff] %v939_v52  ;;  %942 = vst [vmem:[%s6758_s8 + $0xba8] sm:$0xff] %v941_v53  ;;  %v945_v55 = vld [vmem:[%s6753_s7 + $0x2ec8] sm:$0xff] }
  0xd2   : > { %944 = vst [vmem:[%s6758_s8 + $0xbb0] sm:$0xff] %v943_v54  ;;  %v947_v56 = vld [vmem:[%s6753_s7 + $0x2f00] sm:$0xff]  ;;  %v949_v57 = vld [vmem:[%s6753_s7 + $0x2f08] sm:$0xff]  ;;  %946 = vst [vmem:[%s6758_s8 + $0xbb8] sm:$0xff] %v945_v55 }
  0xd3   : > { %948 = vst [vmem:[%s6758_s8 + $0xbc0] sm:$0xff] %v947_v56  ;;  %950 = vst [vmem:[%s6758_s8 + $0xbc8] sm:$0xff] %v949_v57  ;;  %v951_v58 = vld [vmem:[%s6753_s7 + $0x2f40] sm:$0xff]  ;;  %v953_v59 = vld [vmem:[%s6753_s7 + $0x2f48] sm:$0xff] }
  0xd4   : > { %v955_v60 = vld [vmem:[%s6753_s7 + $0x2f80] sm:$0xff]  ;;  %952 = vst [vmem:[%s6758_s8 + $0xbd0] sm:$0xff] %v951_v58  ;;  %954 = vst [vmem:[%s6758_s8 + $0xbd8] sm:$0xff] %v953_v59  ;;  %v957_v61 = vld [vmem:[%s6753_s7 + $0x2f88] sm:$0xff] }
  0xd5   : > { %956 = vst [vmem:[%s6758_s8 + $0xbe0] sm:$0xff] %v955_v60  ;;  %v959_v62 = vld [vmem:[%s6753_s7 + $0x2fc0] sm:$0xff]  ;;  %v961_v63 = vld [vmem:[%s6753_s7 + $0x2fc8] sm:$0xff]  ;;  %958 = vst [vmem:[%s6758_s8 + $0xbe8] sm:$0xff] %v957_v61 }
  0xd6   : > { %960 = vst [vmem:[%s6758_s8 + $0xbf0] sm:$0xff] %v959_v62  ;;  %962 = vst [vmem:[%s6758_s8 + $0xbf8] sm:$0xff] %v961_v63  ;;  %v963_v0 = vld [vmem:[%s6753_s7 + $0x3000] sm:$0xff]  ;;  %v965_v1 = vld [vmem:[%s6753_s7 + $0x3008] sm:$0xff] }
  0xd7   : > { %v967_v2 = vld [vmem:[%s6753_s7 + $0x3040] sm:$0xff]  ;;  %964 = vst [vmem:[%s6758_s8 + $0xc00] sm:$0xff] %v963_v0  ;;  %966 = vst [vmem:[%s6758_s8 + $0xc08] sm:$0xff] %v965_v1  ;;  %v969_v3 = vld [vmem:[%s6753_s7 + $0x3048] sm:$0xff] }
  0xd8   : > { %968 = vst [vmem:[%s6758_s8 + $0xc10] sm:$0xff] %v967_v2  ;;  %v971_v4 = vld [vmem:[%s6753_s7 + $0x3080] sm:$0xff]  ;;  %v973_v5 = vld [vmem:[%s6753_s7 + $0x3088] sm:$0xff]  ;;  %970 = vst [vmem:[%s6758_s8 + $0xc18] sm:$0xff] %v969_v3 }
  0xd9   : > { %972 = vst [vmem:[%s6758_s8 + $0xc20] sm:$0xff] %v971_v4  ;;  %974 = vst [vmem:[%s6758_s8 + $0xc28] sm:$0xff] %v973_v5  ;;  %v975_v6 = vld [vmem:[%s6753_s7 + $0x30c0] sm:$0xff]  ;;  %v977_v7 = vld [vmem:[%s6753_s7 + $0x30c8] sm:$0xff] }
  0xda   : > { %v979_v8 = vld [vmem:[%s6753_s7 + $0x3100] sm:$0xff]  ;;  %976 = vst [vmem:[%s6758_s8 + $0xc30] sm:$0xff] %v975_v6  ;;  %978 = vst [vmem:[%s6758_s8 + $0xc38] sm:$0xff] %v977_v7  ;;  %v981_v9 = vld [vmem:[%s6753_s7 + $0x3108] sm:$0xff] }
  0xdb   : > { %980 = vst [vmem:[%s6758_s8 + $0xc40] sm:$0xff] %v979_v8  ;;  %v983_v10 = vld [vmem:[%s6753_s7 + $0x3140] sm:$0xff]  ;;  %v985_v11 = vld [vmem:[%s6753_s7 + $0x3148] sm:$0xff]  ;;  %982 = vst [vmem:[%s6758_s8 + $0xc48] sm:$0xff] %v981_v9 }
  0xdc   : > { %984 = vst [vmem:[%s6758_s8 + $0xc50] sm:$0xff] %v983_v10  ;;  %986 = vst [vmem:[%s6758_s8 + $0xc58] sm:$0xff] %v985_v11  ;;  %v987_v12 = vld [vmem:[%s6753_s7 + $0x3180] sm:$0xff]  ;;  %v989_v13 = vld [vmem:[%s6753_s7 + $0x3188] sm:$0xff] }
  0xdd   : > { %v991_v14 = vld [vmem:[%s6753_s7 + $0x31c0] sm:$0xff]  ;;  %988 = vst [vmem:[%s6758_s8 + $0xc60] sm:$0xff] %v987_v12  ;;  %990 = vst [vmem:[%s6758_s8 + $0xc68] sm:$0xff] %v989_v13  ;;  %v993_v15 = vld [vmem:[%s6753_s7 + $0x31c8] sm:$0xff] }
  0xde   : > { %992 = vst [vmem:[%s6758_s8 + $0xc70] sm:$0xff] %v991_v14  ;;  %v995_v16 = vld [vmem:[%s6753_s7 + $0x3200] sm:$0xff]  ;;  %v997_v17 = vld [vmem:[%s6753_s7 + $0x3208] sm:$0xff]  ;;  %994 = vst [vmem:[%s6758_s8 + $0xc78] sm:$0xff] %v993_v15 }
  0xdf   : > { %996 = vst [vmem:[%s6758_s8 + $0xc80] sm:$0xff] %v995_v16  ;;  %998 = vst [vmem:[%s6758_s8 + $0xc88] sm:$0xff] %v997_v17  ;;  %v999_v18 = vld [vmem:[%s6753_s7 + $0x3240] sm:$0xff]  ;;  %v1001_v19 = vld [vmem:[%s6753_s7 + $0x3248] sm:$0xff] }
  0xe0   : > { %v1003_v20 = vld [vmem:[%s6753_s7 + $0x3280] sm:$0xff]  ;;  %1000 = vst [vmem:[%s6758_s8 + $0xc90] sm:$0xff] %v999_v18  ;;  %1002 = vst [vmem:[%s6758_s8 + $0xc98] sm:$0xff] %v1001_v19  ;;  %v1005_v21 = vld [vmem:[%s6753_s7 + $0x3288] sm:$0xff] }
  0xe1   : > { %1004 = vst [vmem:[%s6758_s8 + $0xca0] sm:$0xff] %v1003_v20  ;;  %v1007_v22 = vld [vmem:[%s6753_s7 + $0x32c0] sm:$0xff]  ;;  %v1009_v23 = vld [vmem:[%s6753_s7 + $0x32c8] sm:$0xff]  ;;  %1006 = vst [vmem:[%s6758_s8 + $0xca8] sm:$0xff] %v1005_v21 }
  0xe2   : > { %1008 = vst [vmem:[%s6758_s8 + $0xcb0] sm:$0xff] %v1007_v22  ;;  %1010 = vst [vmem:[%s6758_s8 + $0xcb8] sm:$0xff] %v1009_v23  ;;  %v1011_v24 = vld [vmem:[%s6753_s7 + $0x3300] sm:$0xff]  ;;  %v1013_v25 = vld [vmem:[%s6753_s7 + $0x3308] sm:$0xff] }
  0xe3   : > { %v1015_v26 = vld [vmem:[%s6753_s7 + $0x3340] sm:$0xff]  ;;  %1012 = vst [vmem:[%s6758_s8 + $0xcc0] sm:$0xff] %v1011_v24  ;;  %1014 = vst [vmem:[%s6758_s8 + $0xcc8] sm:$0xff] %v1013_v25  ;;  %v1017_v27 = vld [vmem:[%s6753_s7 + $0x3348] sm:$0xff] }
  0xe4   : > { %1016 = vst [vmem:[%s6758_s8 + $0xcd0] sm:$0xff] %v1015_v26  ;;  %v1019_v28 = vld [vmem:[%s6753_s7 + $0x3380] sm:$0xff]  ;;  %v1021_v29 = vld [vmem:[%s6753_s7 + $0x3388] sm:$0xff]  ;;  %1018 = vst [vmem:[%s6758_s8 + $0xcd8] sm:$0xff] %v1017_v27 }
  0xe5   : > { %1020 = vst [vmem:[%s6758_s8 + $0xce0] sm:$0xff] %v1019_v28  ;;  %1022 = vst [vmem:[%s6758_s8 + $0xce8] sm:$0xff] %v1021_v29  ;;  %v1023_v30 = vld [vmem:[%s6753_s7 + $0x33c0] sm:$0xff]  ;;  %v1025_v31 = vld [vmem:[%s6753_s7 + $0x33c8] sm:$0xff] }
  0xe6   : > { %v1027_v32 = vld [vmem:[%s6753_s7 + $0x3400] sm:$0xff]  ;;  %1024 = vst [vmem:[%s6758_s8 + $0xcf0] sm:$0xff] %v1023_v30  ;;  %1026 = vst [vmem:[%s6758_s8 + $0xcf8] sm:$0xff] %v1025_v31  ;;  %v1029_v33 = vld [vmem:[%s6753_s7 + $0x3408] sm:$0xff] }
  0xe7   : > { %1028 = vst [vmem:[%s6758_s8 + $0xd00] sm:$0xff] %v1027_v32  ;;  %v1031_v34 = vld [vmem:[%s6753_s7 + $0x3440] sm:$0xff]  ;;  %v1033_v35 = vld [vmem:[%s6753_s7 + $0x3448] sm:$0xff]  ;;  %1030 = vst [vmem:[%s6758_s8 + $0xd08] sm:$0xff] %v1029_v33 }
  0xe8   : > { %1032 = vst [vmem:[%s6758_s8 + $0xd10] sm:$0xff] %v1031_v34  ;;  %1034 = vst [vmem:[%s6758_s8 + $0xd18] sm:$0xff] %v1033_v35  ;;  %v1035_v36 = vld [vmem:[%s6753_s7 + $0x3480] sm:$0xff]  ;;  %v1037_v37 = vld [vmem:[%s6753_s7 + $0x3488] sm:$0xff] }
  0xe9   : > { %v1039_v38 = vld [vmem:[%s6753_s7 + $0x34c0] sm:$0xff]  ;;  %1036 = vst [vmem:[%s6758_s8 + $0xd20] sm:$0xff] %v1035_v36  ;;  %1038 = vst [vmem:[%s6758_s8 + $0xd28] sm:$0xff] %v1037_v37  ;;  %v1041_v39 = vld [vmem:[%s6753_s7 + $0x34c8] sm:$0xff] }
  0xea   : > { %1040 = vst [vmem:[%s6758_s8 + $0xd30] sm:$0xff] %v1039_v38  ;;  %v1043_v40 = vld [vmem:[%s6753_s7 + $0x3500] sm:$0xff]  ;;  %v1045_v41 = vld [vmem:[%s6753_s7 + $0x3508] sm:$0xff]  ;;  %1042 = vst [vmem:[%s6758_s8 + $0xd38] sm:$0xff] %v1041_v39 }
  0xeb   : > { %1044 = vst [vmem:[%s6758_s8 + $0xd40] sm:$0xff] %v1043_v40  ;;  %1046 = vst [vmem:[%s6758_s8 + $0xd48] sm:$0xff] %v1045_v41  ;;  %v1047_v42 = vld [vmem:[%s6753_s7 + $0x3540] sm:$0xff]  ;;  %v1049_v43 = vld [vmem:[%s6753_s7 + $0x3548] sm:$0xff] }
  0xec   : > { %v1051_v44 = vld [vmem:[%s6753_s7 + $0x3580] sm:$0xff]  ;;  %1048 = vst [vmem:[%s6758_s8 + $0xd50] sm:$0xff] %v1047_v42  ;;  %1050 = vst [vmem:[%s6758_s8 + $0xd58] sm:$0xff] %v1049_v43  ;;  %v1053_v45 = vld [vmem:[%s6753_s7 + $0x3588] sm:$0xff] }
  0xed   : > { %1052 = vst [vmem:[%s6758_s8 + $0xd60] sm:$0xff] %v1051_v44  ;;  %v1055_v46 = vld [vmem:[%s6753_s7 + $0x35c0] sm:$0xff]  ;;  %v1057_v47 = vld [vmem:[%s6753_s7 + $0x35c8] sm:$0xff]  ;;  %1054 = vst [vmem:[%s6758_s8 + $0xd68] sm:$0xff] %v1053_v45 }
  0xee   : > { %1056 = vst [vmem:[%s6758_s8 + $0xd70] sm:$0xff] %v1055_v46  ;;  %1058 = vst [vmem:[%s6758_s8 + $0xd78] sm:$0xff] %v1057_v47  ;;  %v1059_v48 = vld [vmem:[%s6753_s7 + $0x3600] sm:$0xff]  ;;  %v1061_v49 = vld [vmem:[%s6753_s7 + $0x3608] sm:$0xff] }
  0xef   : > { %v1063_v50 = vld [vmem:[%s6753_s7 + $0x3640] sm:$0xff]  ;;  %1060 = vst [vmem:[%s6758_s8 + $0xd80] sm:$0xff] %v1059_v48  ;;  %1062 = vst [vmem:[%s6758_s8 + $0xd88] sm:$0xff] %v1061_v49  ;;  %v1065_v51 = vld [vmem:[%s6753_s7 + $0x3648] sm:$0xff] }
  0xf0   : > { %1064 = vst [vmem:[%s6758_s8 + $0xd90] sm:$0xff] %v1063_v50  ;;  %v1067_v52 = vld [vmem:[%s6753_s7 + $0x3680] sm:$0xff]  ;;  %v1069_v53 = vld [vmem:[%s6753_s7 + $0x3688] sm:$0xff]  ;;  %1066 = vst [vmem:[%s6758_s8 + $0xd98] sm:$0xff] %v1065_v51 }
  0xf1   : > { %1068 = vst [vmem:[%s6758_s8 + $0xda0] sm:$0xff] %v1067_v52  ;;  %1070 = vst [vmem:[%s6758_s8 + $0xda8] sm:$0xff] %v1069_v53  ;;  %v1071_v54 = vld [vmem:[%s6753_s7 + $0x36c0] sm:$0xff]  ;;  %v1073_v55 = vld [vmem:[%s6753_s7 + $0x36c8] sm:$0xff] }
  0xf2   : > { %v1075_v56 = vld [vmem:[%s6753_s7 + $0x3700] sm:$0xff]  ;;  %1072 = vst [vmem:[%s6758_s8 + $0xdb0] sm:$0xff] %v1071_v54  ;;  %1074 = vst [vmem:[%s6758_s8 + $0xdb8] sm:$0xff] %v1073_v55  ;;  %v1077_v57 = vld [vmem:[%s6753_s7 + $0x3708] sm:$0xff] }
  0xf3   : > { %1076 = vst [vmem:[%s6758_s8 + $0xdc0] sm:$0xff] %v1075_v56  ;;  %v1079_v58 = vld [vmem:[%s6753_s7 + $0x3740] sm:$0xff]  ;;  %v1081_v59 = vld [vmem:[%s6753_s7 + $0x3748] sm:$0xff]  ;;  %1078 = vst [vmem:[%s6758_s8 + $0xdc8] sm:$0xff] %v1077_v57 }
  0xf4   : > { %1080 = vst [vmem:[%s6758_s8 + $0xdd0] sm:$0xff] %v1079_v58  ;;  %1082 = vst [vmem:[%s6758_s8 + $0xdd8] sm:$0xff] %v1081_v59  ;;  %v1083_v60 = vld [vmem:[%s6753_s7 + $0x3780] sm:$0xff]  ;;  %v1085_v61 = vld [vmem:[%s6753_s7 + $0x3788] sm:$0xff] }
  0xf5   : > { %v1087_v62 = vld [vmem:[%s6753_s7 + $0x37c0] sm:$0xff]  ;;  %1084 = vst [vmem:[%s6758_s8 + $0xde0] sm:$0xff] %v1083_v60  ;;  %1086 = vst [vmem:[%s6758_s8 + $0xde8] sm:$0xff] %v1085_v61  ;;  %v1089_v63 = vld [vmem:[%s6753_s7 + $0x37c8] sm:$0xff] }
  0xf6   : > { %1088 = vst [vmem:[%s6758_s8 + $0xdf0] sm:$0xff] %v1087_v62  ;;  %v1091_v0 = vld [vmem:[%s6753_s7 + $0x3800] sm:$0xff]  ;;  %v1093_v1 = vld [vmem:[%s6753_s7 + $0x3808] sm:$0xff]  ;;  %1090 = vst [vmem:[%s6758_s8 + $0xdf8] sm:$0xff] %v1089_v63 }
  0xf7   : > { %1092 = vst [vmem:[%s6758_s8 + $0xe00] sm:$0xff] %v1091_v0  ;;  %1094 = vst [vmem:[%s6758_s8 + $0xe08] sm:$0xff] %v1093_v1  ;;  %v1095_v2 = vld [vmem:[%s6753_s7 + $0x3840] sm:$0xff]  ;;  %v1097_v3 = vld [vmem:[%s6753_s7 + $0x3848] sm:$0xff] }
  0xf8   : > { %v1099_v4 = vld [vmem:[%s6753_s7 + $0x3880] sm:$0xff]  ;;  %1096 = vst [vmem:[%s6758_s8 + $0xe10] sm:$0xff] %v1095_v2  ;;  %1098 = vst [vmem:[%s6758_s8 + $0xe18] sm:$0xff] %v1097_v3  ;;  %v1101_v5 = vld [vmem:[%s6753_s7 + $0x3888] sm:$0xff] }
  0xf9   : > { %1100 = vst [vmem:[%s6758_s8 + $0xe20] sm:$0xff] %v1099_v4  ;;  %v1103_v6 = vld [vmem:[%s6753_s7 + $0x38c0] sm:$0xff]  ;;  %v1105_v7 = vld [vmem:[%s6753_s7 + $0x38c8] sm:$0xff]  ;;  %1102 = vst [vmem:[%s6758_s8 + $0xe28] sm:$0xff] %v1101_v5 }
  0xfa   : > { %1104 = vst [vmem:[%s6758_s8 + $0xe30] sm:$0xff] %v1103_v6  ;;  %1106 = vst [vmem:[%s6758_s8 + $0xe38] sm:$0xff] %v1105_v7  ;;  %v1107_v8 = vld [vmem:[%s6753_s7 + $0x3900] sm:$0xff]  ;;  %v1109_v9 = vld [vmem:[%s6753_s7 + $0x3908] sm:$0xff] }
  0xfb   : > { %v1111_v10 = vld [vmem:[%s6753_s7 + $0x3940] sm:$0xff]  ;;  %1108 = vst [vmem:[%s6758_s8 + $0xe40] sm:$0xff] %v1107_v8  ;;  %1110 = vst [vmem:[%s6758_s8 + $0xe48] sm:$0xff] %v1109_v9  ;;  %v1113_v11 = vld [vmem:[%s6753_s7 + $0x3948] sm:$0xff] }
  0xfc   : > { %1112 = vst [vmem:[%s6758_s8 + $0xe50] sm:$0xff] %v1111_v10  ;;  %v1115_v12 = vld [vmem:[%s6753_s7 + $0x3980] sm:$0xff]  ;;  %v1117_v13 = vld [vmem:[%s6753_s7 + $0x3988] sm:$0xff]  ;;  %1114 = vst [vmem:[%s6758_s8 + $0xe58] sm:$0xff] %v1113_v11 }
  0xfd   : > { %1116 = vst [vmem:[%s6758_s8 + $0xe60] sm:$0xff] %v1115_v12  ;;  %1118 = vst [vmem:[%s6758_s8 + $0xe68] sm:$0xff] %v1117_v13  ;;  %v1119_v14 = vld [vmem:[%s6753_s7 + $0x39c0] sm:$0xff]  ;;  %v1121_v15 = vld [vmem:[%s6753_s7 + $0x39c8] sm:$0xff] }
  0xfe   : > { %v1123_v16 = vld [vmem:[%s6753_s7 + $0x3a00] sm:$0xff]  ;;  %1120 = vst [vmem:[%s6758_s8 + $0xe70] sm:$0xff] %v1119_v14  ;;  %1122 = vst [vmem:[%s6758_s8 + $0xe78] sm:$0xff] %v1121_v15  ;;  %v1125_v17 = vld [vmem:[%s6753_s7 + $0x3a08] sm:$0xff] }
  0xff   : > { %1124 = vst [vmem:[%s6758_s8 + $0xe80] sm:$0xff] %v1123_v16  ;;  %v1127_v18 = vld [vmem:[%s6753_s7 + $0x3a40] sm:$0xff]  ;;  %v1129_v19 = vld [vmem:[%s6753_s7 + $0x3a48] sm:$0xff]  ;;  %1126 = vst [vmem:[%s6758_s8 + $0xe88] sm:$0xff] %v1125_v17 }
 0x100   : > { %1128 = vst [vmem:[%s6758_s8 + $0xe90] sm:$0xff] %v1127_v18  ;;  %1130 = vst [vmem:[%s6758_s8 + $0xe98] sm:$0xff] %v1129_v19  ;;  %v1131_v20 = vld [vmem:[%s6753_s7 + $0x3a80] sm:$0xff]  ;;  %v1133_v21 = vld [vmem:[%s6753_s7 + $0x3a88] sm:$0xff] }
 0x101   : > { %v1135_v22 = vld [vmem:[%s6753_s7 + $0x3ac0] sm:$0xff]  ;;  %1132 = vst [vmem:[%s6758_s8 + $0xea0] sm:$0xff] %v1131_v20  ;;  %1134 = vst [vmem:[%s6758_s8 + $0xea8] sm:$0xff] %v1133_v21  ;;  %v1137_v23 = vld [vmem:[%s6753_s7 + $0x3ac8] sm:$0xff] }
 0x102   : > { %1136 = vst [vmem:[%s6758_s8 + $0xeb0] sm:$0xff] %v1135_v22  ;;  %v1139_v24 = vld [vmem:[%s6753_s7 + $0x3b00] sm:$0xff]  ;;  %v1141_v25 = vld [vmem:[%s6753_s7 + $0x3b08] sm:$0xff]  ;;  %1138 = vst [vmem:[%s6758_s8 + $0xeb8] sm:$0xff] %v1137_v23 }
 0x103   : > { %1140 = vst [vmem:[%s6758_s8 + $0xec0] sm:$0xff] %v1139_v24  ;;  %1142 = vst [vmem:[%s6758_s8 + $0xec8] sm:$0xff] %v1141_v25  ;;  %v1143_v26 = vld [vmem:[%s6753_s7 + $0x3b40] sm:$0xff]  ;;  %v1145_v27 = vld [vmem:[%s6753_s7 + $0x3b48] sm:$0xff] }
 0x104   : > { %v1147_v28 = vld [vmem:[%s6753_s7 + $0x3b80] sm:$0xff]  ;;  %1144 = vst [vmem:[%s6758_s8 + $0xed0] sm:$0xff] %v1143_v26  ;;  %1146 = vst [vmem:[%s6758_s8 + $0xed8] sm:$0xff] %v1145_v27  ;;  %v1149_v29 = vld [vmem:[%s6753_s7 + $0x3b88] sm:$0xff] }
 0x105   : > { %1148 = vst [vmem:[%s6758_s8 + $0xee0] sm:$0xff] %v1147_v28  ;;  %v1151_v30 = vld [vmem:[%s6753_s7 + $0x3bc0] sm:$0xff]  ;;  %v1153_v31 = vld [vmem:[%s6753_s7 + $0x3bc8] sm:$0xff]  ;;  %1150 = vst [vmem:[%s6758_s8 + $0xee8] sm:$0xff] %v1149_v29 }
 0x106   : > { %1152 = vst [vmem:[%s6758_s8 + $0xef0] sm:$0xff] %v1151_v30  ;;  %1154 = vst [vmem:[%s6758_s8 + $0xef8] sm:$0xff] %v1153_v31  ;;  %v1155_v32 = vld [vmem:[%s6753_s7 + $0x3c00] sm:$0xff]  ;;  %v1157_v33 = vld [vmem:[%s6753_s7 + $0x3c08] sm:$0xff] }
 0x107   : > { %v1159_v34 = vld [vmem:[%s6753_s7 + $0x3c40] sm:$0xff]  ;;  %1156 = vst [vmem:[%s6758_s8 + $0xf00] sm:$0xff] %v1155_v32  ;;  %1158 = vst [vmem:[%s6758_s8 + $0xf08] sm:$0xff] %v1157_v33  ;;  %v1161_v35 = vld [vmem:[%s6753_s7 + $0x3c48] sm:$0xff] }
 0x108   : > { %1160 = vst [vmem:[%s6758_s8 + $0xf10] sm:$0xff] %v1159_v34  ;;  %v1163_v36 = vld [vmem:[%s6753_s7 + $0x3c80] sm:$0xff]  ;;  %v1165_v37 = vld [vmem:[%s6753_s7 + $0x3c88] sm:$0xff]  ;;  %1162 = vst [vmem:[%s6758_s8 + $0xf18] sm:$0xff] %v1161_v35 }
 0x109   : > { %1164 = vst [vmem:[%s6758_s8 + $0xf20] sm:$0xff] %v1163_v36  ;;  %1166 = vst [vmem:[%s6758_s8 + $0xf28] sm:$0xff] %v1165_v37  ;;  %v1167_v38 = vld [vmem:[%s6753_s7 + $0x3cc0] sm:$0xff]  ;;  %v1169_v39 = vld [vmem:[%s6753_s7 + $0x3cc8] sm:$0xff] }
 0x10a   : > { %v1171_v40 = vld [vmem:[%s6753_s7 + $0x3d00] sm:$0xff]  ;;  %1168 = vst [vmem:[%s6758_s8 + $0xf30] sm:$0xff] %v1167_v38  ;;  %1170 = vst [vmem:[%s6758_s8 + $0xf38] sm:$0xff] %v1169_v39  ;;  %v1173_v41 = vld [vmem:[%s6753_s7 + $0x3d08] sm:$0xff] }
 0x10b   : > { %1172 = vst [vmem:[%s6758_s8 + $0xf40] sm:$0xff] %v1171_v40  ;;  %v1175_v42 = vld [vmem:[%s6753_s7 + $0x3d40] sm:$0xff]  ;;  %v1177_v43 = vld [vmem:[%s6753_s7 + $0x3d48] sm:$0xff]  ;;  %1174 = vst [vmem:[%s6758_s8 + $0xf48] sm:$0xff] %v1173_v41 }
 0x10c   : > { %1176 = vst [vmem:[%s6758_s8 + $0xf50] sm:$0xff] %v1175_v42  ;;  %1178 = vst [vmem:[%s6758_s8 + $0xf58] sm:$0xff] %v1177_v43  ;;  %v1179_v44 = vld [vmem:[%s6753_s7 + $0x3d80] sm:$0xff]  ;;  %v1181_v45 = vld [vmem:[%s6753_s7 + $0x3d88] sm:$0xff] }
 0x10d   : > { %v1183_v46 = vld [vmem:[%s6753_s7 + $0x3dc0] sm:$0xff]  ;;  %1180 = vst [vmem:[%s6758_s8 + $0xf60] sm:$0xff] %v1179_v44  ;;  %1182 = vst [vmem:[%s6758_s8 + $0xf68] sm:$0xff] %v1181_v45  ;;  %v1185_v47 = vld [vmem:[%s6753_s7 + $0x3dc8] sm:$0xff] }
 0x10e   : > { %1184 = vst [vmem:[%s6758_s8 + $0xf70] sm:$0xff] %v1183_v46  ;;  %v1187_v48 = vld [vmem:[%s6753_s7 + $0x3e00] sm:$0xff]  ;;  %v1189_v49 = vld [vmem:[%s6753_s7 + $0x3e08] sm:$0xff]  ;;  %1186 = vst [vmem:[%s6758_s8 + $0xf78] sm:$0xff] %v1185_v47 }
 0x10f   : > { %1188 = vst [vmem:[%s6758_s8 + $0xf80] sm:$0xff] %v1187_v48  ;;  %1190 = vst [vmem:[%s6758_s8 + $0xf88] sm:$0xff] %v1189_v49  ;;  %v1191_v50 = vld [vmem:[%s6753_s7 + $0x3e40] sm:$0xff]  ;;  %v1193_v51 = vld [vmem:[%s6753_s7 + $0x3e48] sm:$0xff] }
 0x110   : > { %v1195_v52 = vld [vmem:[%s6753_s7 + $0x3e80] sm:$0xff]  ;;  %1192 = vst [vmem:[%s6758_s8 + $0xf90] sm:$0xff] %v1191_v50  ;;  %1194 = vst [vmem:[%s6758_s8 + $0xf98] sm:$0xff] %v1193_v51  ;;  %v1197_v53 = vld [vmem:[%s6753_s7 + $0x3e88] sm:$0xff] }
 0x111   : > { %1196 = vst [vmem:[%s6758_s8 + $0xfa0] sm:$0xff] %v1195_v52  ;;  %v1199_v54 = vld [vmem:[%s6753_s7 + $0x3ec0] sm:$0xff]  ;;  %v1201_v55 = vld [vmem:[%s6753_s7 + $0x3ec8] sm:$0xff]  ;;  %1198 = vst [vmem:[%s6758_s8 + $0xfa8] sm:$0xff] %v1197_v53 }
 0x112   : > { %1200 = vst [vmem:[%s6758_s8 + $0xfb0] sm:$0xff] %v1199_v54  ;;  %1202 = vst [vmem:[%s6758_s8 + $0xfb8] sm:$0xff] %v1201_v55  ;;  %v1203_v56 = vld [vmem:[%s6753_s7 + $0x3f00] sm:$0xff]  ;;  %v1205_v57 = vld [vmem:[%s6753_s7 + $0x3f08] sm:$0xff] }
 0x113   : > { %v1207_v58 = vld [vmem:[%s6753_s7 + $0x3f40] sm:$0xff]  ;;  %1204 = vst [vmem:[%s6758_s8 + $0xfc0] sm:$0xff] %v1203_v56  ;;  %1206 = vst [vmem:[%s6758_s8 + $0xfc8] sm:$0xff] %v1205_v57  ;;  %v1209_v59 = vld [vmem:[%s6753_s7 + $0x3f48] sm:$0xff] }
 0x114   : > { %1208 = vst [vmem:[%s6758_s8 + $0xfd0] sm:$0xff] %v1207_v58  ;;  %v1211_v60 = vld [vmem:[%s6753_s7 + $0x3f80] sm:$0xff]  ;;  %v1213_v61 = vld [vmem:[%s6753_s7 + $0x3f88] sm:$0xff]  ;;  %1210 = vst [vmem:[%s6758_s8 + $0xfd8] sm:$0xff] %v1209_v59 }
 0x115   : > { %1212 = vst [vmem:[%s6758_s8 + $0xfe0] sm:$0xff] %v1211_v60  ;;  %1214 = vst [vmem:[%s6758_s8 + $0xfe8] sm:$0xff] %v1213_v61  ;;  %v1215_v62 = vld [vmem:[%s6753_s7 + $0x3fc0] sm:$0xff]  ;;  %v1217_v63 = vld [vmem:[%s6753_s7 + $0x3fc8] sm:$0xff] }
 0x116   : > { %1216 = vst [vmem:[%s6758_s8 + $0xff0] sm:$0xff] %v1215_v62  ;;  %1218 = vst [vmem:[%s6758_s8 + $0xff8] sm:$0xff] %v1217_v63 }
 0x117 PF: > { %p5267_p7 = scmp.ge.s32.totalorder %s6670_s18, 1  ;;  %p1231_p8 = scmp.lt.s32.totalorder %s6670_s18, 33 }
 0x119   : > { %p1232_p9 = pnand %p5267_p7, %p1231_p8 }
 0x11a   : > { %s1238_s9 = sand.u32 (!%p1232_p9), 1, %s6646_s12   ;;  %s5269_s10 = sshll.u32 (!%p1232_p9), %s6654_s14, 4 }
 0x11b   : > { %1235 = sbr.rel (%p1232_p9) target bundleno = 1029 (0x405), region = 51  ;;  %s5268_s11 = sshll.u32 (!%p1232_p9), %s1238_s9, 12 }
 0x11c   : > { %p1281_p10 = scmp.lt.s32.totalorder (!%p1232_p9), %s5269_s10, 127  ;;  %s5271_s21 = sshll.u32 (!%p1232_p9), %s6658_s15, 2 }
 0x11d   : > { %p1291_p11 = scmp.lt.s32.totalorder (!%p1232_p9), %s5271_s21, 15  ;;  %s7803_s5 = scalar_lea.vmem (!%p1232_p9), [#allocation3], %s5268_s11 }
 0x11e   : > { %p5274_p12 = scmp.ne.s32.totalorder (!%p1232_p9), %s6654_s14, 0 }
 0x120   : > { %s8470_s10 = smov (!%p1281_p10, %s5269_s10), 127  ;;  %s8472_s21 = smov (!%p1291_p11, %s5271_s21), 15 }
 0x121   : > { %s5270_s22 = sshll.u32 %s8470_s10, 3  ;;  %s1293_s12 = scalar_lea.vmem %s8455_s2, %s8472_s21 }
 0x122   : > { %s7789_s26 = scalar_lea.vmem %s8453_s0, %s5270_s22  ;;  %s5273_s29 = sshll.u32 %s8472_s21, 3 }
 0x123   : > { %s7801_s15 = scalar_lea.vmem %s8456_s3, %s5273_s29  ;;  %1308 = sbr.rel (%p5274_p12) target bundleno = 299 (0x12b), region = 59 }
 0x128   : > { %v6672_v0 = vmov 0.0  }
 0x129   : > { %1309 = vst [vmem:[#allocation2 + $0x10] sm:$0xff] %v6672_v0  ;;  %1310 = vst [vmem:[#allocation2] sm:$0xff] %v6672_v0 }
 0x12a   : > { %1311 = vst [vmem:[#allocation2 + $0x18] sm:$0xff] %v6672_v0  ;;  %1312 = vst [vmem:[#allocation2 + $0x8] sm:$0xff] %v6672_v0 }
 0x12b PF: > { %v5848_v1 = vld [vmem:[%s7803_s5 + $0xe4] ss:$16 sps:$4 sm:$0xff]   ;;  %v5852_v3 = vld [vmem:[%s7803_s5 + $0xe0] ss:$16 sps:$4 sm:$0xff]   ;;  %v1314_v47 = vld [vmem:[%s7789_s26 + $0x8] sm:$0xff]  ;;  %p5787_p13 = scmp.ne.s32.totalorder %s6654_s14, 7 }
 0x12c   : > { %v5850_v2 = vld [vmem:[%s7803_s5 + $0x2e4] ss:$16 sps:$4 sm:$0xff]   ;;  %4421 = vmatprep.subr.bf16.mxu0 %v5848_v1  ;;  %v5853_v4 = vld [vmem:[%s7803_s5 + $0x2e0] ss:$16 sps:$4 sm:$0xff]   ;;  %v7855_v50 = vpack.c.bf16 %v1314_v47, %v1314_v47  ;;  %v1316_v51 = vld [vmem:[%s7789_s26 + $0x18] sm:$0xff] }
 0x12d   : > { %4462 = vmatprep.subr.bf16.mxu1 %v5850_v2  ;;  %v5854_v5 = vld [vmem:[%s7803_s5 + $0xc4] ss:$16 sps:$4 sm:$0xff]   ;;  %4422 = vmatpush1.bf16.msra.mxu0 %v5852_v3  ;;  %v5858_v7 = vld [vmem:[%s7803_s5 + $0xc0] ss:$16 sps:$4 sm:$0xff]   ;;  %v7859_v53 = vpack.c.bf16 %v1316_v51, %v1316_v51 }
 0x12e   : > { %4463 = vmatpush1.bf16.msra.mxu1 %v5853_v4  ;;  %v5856_v6 = vld [vmem:[%s7803_s5 + $0x2c4] ss:$16 sps:$4 sm:$0xff]   ;;  %4423 = vmatprep.subr.bf16.mxu0 %v5854_v5  ;;  %v5859_v8 = vld [vmem:[%s7803_s5 + $0x2c0] ss:$16 sps:$4 sm:$0xff]  }
 0x12f   : > { %4464 = vmatprep.subr.bf16.mxu1 %v5856_v6  ;;  %v5860_v9 = vld [vmem:[%s7803_s5 + $0xa4] ss:$16 sps:$4 sm:$0xff]   ;;  %v5864_v11 = vld [vmem:[%s7803_s5 + $0xa0] ss:$16 sps:$4 sm:$0xff]   ;;  %4453 = vmatprep.mubr.bf16.mxu0 %v7855_v50 }
 0x130   : > { %v5862_v10 = vld [vmem:[%s7803_s5 + $0x2a4] ss:$16 sps:$4 sm:$0xff]   ;;  %v5865_v12 = vld [vmem:[%s7803_s5 + $0x2a0] ss:$16 sps:$4 sm:$0xff]   ;;  %4494 = vmatprep.mubr.bf16.mxu1 %v7859_v53 }
 0x131   : > { %4424 = vmatpush1.bf16.msra.mxu0 %v5858_v7  ;;  %v5866_v13 = vld [vmem:[%s7803_s5 + $0x84] ss:$16 sps:$4 sm:$0xff]   ;;  %v5870_v15 = vld [vmem:[%s7803_s5 + $0x80] ss:$16 sps:$4 sm:$0xff]  }
 0x132   : > { %4465 = vmatpush1.bf16.msra.mxu1 %v5859_v8  ;;  %4425 = vmatprep.subr.bf16.mxu0 %v5860_v9  ;;  %v5868_v14 = vld [vmem:[%s7803_s5 + $0x284] ss:$16 sps:$4 sm:$0xff]   ;;  %v5871_v16 = vld [vmem:[%s7803_s5 + $0x280] ss:$16 sps:$4 sm:$0xff]  }
 0x133   : > { %4466 = vmatprep.subr.bf16.mxu1 %v5862_v10  ;;  %v5872_v17 = vld [vmem:[%s7803_s5 + $0x64] ss:$16 sps:$4 sm:$0xff]   ;;  %v5876_v19 = vld [vmem:[%s7803_s5 + $0x60] ss:$16 sps:$4 sm:$0xff]  }
 0x134   : > { %v5874_v18 = vld [vmem:[%s7803_s5 + $0x264] ss:$16 sps:$4 sm:$0xff]   ;;  %v5877_v20 = vld [vmem:[%s7803_s5 + $0x260] ss:$16 sps:$4 sm:$0xff]  }
 0x135   : > { %4426 = vmatpush1.bf16.msra.mxu0 %v5864_v11  ;;  %v5878_v21 = vld [vmem:[%s7803_s5 + $0x44] ss:$16 sps:$4 sm:$0xff]   ;;  %v5882_v23 = vld [vmem:[%s7803_s5 + $0x40] ss:$16 sps:$4 sm:$0xff]  }
 0x136   : > { %4467 = vmatpush1.bf16.msra.mxu1 %v5865_v12  ;;  %4427 = vmatprep.subr.bf16.mxu0 %v5866_v13  ;;  %v5880_v22 = vld [vmem:[%s7803_s5 + $0x244] ss:$16 sps:$4 sm:$0xff]   ;;  %v5883_v24 = vld [vmem:[%s7803_s5 + $0x240] ss:$16 sps:$4 sm:$0xff]  }
 0x137   : > { %4468 = vmatprep.subr.bf16.mxu1 %v5868_v14  ;;  %v5884_v25 = vld [vmem:[%s7803_s5 + $0x24] ss:$16 sps:$4 sm:$0xff]   ;;  %v5888_v27 = vld [vmem:[%s7803_s5 + $0x20] ss:$16 sps:$4 sm:$0xff]  }
 0x138   : > { %v5886_v26 = vld [vmem:[%s7803_s5 + $0x224] ss:$16 sps:$4 sm:$0xff]   ;;  %v5889_v28 = vld [vmem:[%s7803_s5 + $0x220] ss:$16 sps:$4 sm:$0xff]  }
 0x139   : > { %4428 = vmatpush1.bf16.msra.mxu0 %v5870_v15  ;;  %v5890_v29 = vld [vmem:[%s7803_s5 + $0x4] ss:$16 sps:$4 sm:$0xff]   ;;  %v5894_v31 = vld [vmem:[%s7803_s5] ss:$16 sps:$4 sm:$0xff]  }
 0x13a   : > { %4469 = vmatpush1.bf16.msra.mxu1 %v5871_v16  ;;  %4429 = vmatprep.subr.bf16.mxu0 %v5872_v17  ;;  %v5892_v30 = vld [vmem:[%s7803_s5 + $0x204] ss:$16 sps:$4 sm:$0xff]   ;;  %v5895_v32 = vld [vmem:[%s7803_s5 + $0x200] ss:$16 sps:$4 sm:$0xff]  }
 0x13b   : > { %4470 = vmatprep.subr.bf16.mxu1 %v5874_v18  ;;  %v5896_v33 = vld [vmem:[%s7803_s5 + $0x1e4] ss:$16 sps:$4 sm:$0xff]   ;;  %v5900_v35 = vld [vmem:[%s7803_s5 + $0x1e0] ss:$16 sps:$4 sm:$0xff]  }
 0x13c   : > { %v5898_v34 = vld [vmem:[%s7803_s5 + $0x3e4] ss:$16 sps:$4 sm:$0xff]   ;;  %v5901_v36 = vld [vmem:[%s7803_s5 + $0x3e0] ss:$16 sps:$4 sm:$0xff]  }
 0x13d   : > { %4430 = vmatpush1.bf16.msra.mxu0 %v5876_v19  ;;  %v5902_v37 = vld [vmem:[%s7803_s5 + $0x1c4] ss:$16 sps:$4 sm:$0xff]   ;;  %v5906_v39 = vld [vmem:[%s7803_s5 + $0x1c0] ss:$16 sps:$4 sm:$0xff]  }
 0x13e   : > { %4471 = vmatpush1.bf16.msra.mxu1 %v5877_v20  ;;  %4431 = vmatprep.subr.bf16.mxu0 %v5878_v21  ;;  %v5904_v38 = vld [vmem:[%s7803_s5 + $0x3c4] ss:$16 sps:$4 sm:$0xff]   ;;  %v5907_v40 = vld [vmem:[%s7803_s5 + $0x3c0] ss:$16 sps:$4 sm:$0xff]  }
 0x13f   : > { %4472 = vmatprep.subr.bf16.mxu1 %v5880_v22  ;;  %v5908_v41 = vld [vmem:[%s7803_s5 + $0x1a4] ss:$16 sps:$4 sm:$0xff]   ;;  %v5912_v43 = vld [vmem:[%s7803_s5 + $0x1a0] ss:$16 sps:$4 sm:$0xff]  }
 0x140   : > { %v5910_v42 = vld [vmem:[%s7803_s5 + $0x3a4] ss:$16 sps:$4 sm:$0xff]   ;;  %v5913_v44 = vld [vmem:[%s7803_s5 + $0x3a0] ss:$16 sps:$4 sm:$0xff]  }
 0x141   : > { %4432 = vmatpush1.bf16.msra.mxu0 %v5882_v23  ;;  %v5914_v45 = vld [vmem:[%s7803_s5 + $0x184] ss:$16 sps:$4 sm:$0xff]   ;;  %v5918_v48 = vld [vmem:[%s7803_s5 + $0x180] ss:$16 sps:$4 sm:$0xff]  }
 0x142   : > { %4473 = vmatpush1.bf16.msra.mxu1 %v5883_v24  ;;  %4433 = vmatprep.subr.bf16.mxu0 %v5884_v25  ;;  %v5916_v46 = vld [vmem:[%s7803_s5 + $0x384] ss:$16 sps:$4 sm:$0xff]   ;;  %v5919_v49 = vld [vmem:[%s7803_s5 + $0x380] ss:$16 sps:$4 sm:$0xff]  }
 0x143   : > { %4474 = vmatprep.subr.bf16.mxu1 %v5886_v26  ;;  %v5920_v52 = vld [vmem:[%s7803_s5 + $0x164] ss:$16 sps:$4 sm:$0xff]   ;;  %v5924_v55 = vld [vmem:[%s7803_s5 + $0x160] ss:$16 sps:$4 sm:$0xff]  }
 0x144   : > { %v5922_v54 = vld [vmem:[%s7803_s5 + $0x364] ss:$16 sps:$4 sm:$0xff]   ;;  %v5925_v56 = vld [vmem:[%s7803_s5 + $0x360] ss:$16 sps:$4 sm:$0xff]  }
 0x145   : > { %4434 = vmatpush1.bf16.msra.mxu0 %v5888_v27  ;;  %v5926_v57 = vld [vmem:[%s7803_s5 + $0x144] ss:$16 sps:$4 sm:$0xff]   ;;  %v5930_v59 = vld [vmem:[%s7803_s5 + $0x140] ss:$16 sps:$4 sm:$0xff]  }
 0x146   : > { %4475 = vmatpush1.bf16.msra.mxu1 %v5889_v28  ;;  %4435 = vmatprep.subr.bf16.mxu0 %v5890_v29  ;;  %v5928_v58 = vld [vmem:[%s7803_s5 + $0x344] ss:$16 sps:$4 sm:$0xff]   ;;  %v5931_v60 = vld [vmem:[%s7803_s5 + $0x340] ss:$16 sps:$4 sm:$0xff]  }
 0x147   : > { %4476 = vmatprep.subr.bf16.mxu1 %v5892_v30  ;;  %v5932_v61 = vld [vmem:[%s7803_s5 + $0x124] ss:$16 sps:$4 sm:$0xff]   ;;  %v5936_v63 = vld [vmem:[%s7803_s5 + $0x120] ss:$16 sps:$4 sm:$0xff]  }
 0x148   : > { %v5934_v62 = vld [vmem:[%s7803_s5 + $0x324] ss:$16 sps:$4 sm:$0xff]   ;;  %v5937_v0 = vld [vmem:[%s7803_s5 + $0x320] ss:$16 sps:$4 sm:$0xff]  }
 0x149   : > { %4436 = vmatpush1.bf16.msra.mxu0 %v5894_v31  ;;  %v5938_v1 = vld [vmem:[%s7803_s5 + $0x104] ss:$16 sps:$4 sm:$0xff]   ;;  %v5942_v3 = vld [vmem:[%s7803_s5 + $0x100] ss:$16 sps:$4 sm:$0xff]  }
 0x14a   : > { %4477 = vmatpush1.bf16.msra.mxu1 %v5895_v32  ;;  %4437 = vmatprep.subr.bf16.mxu0 %v5896_v33  ;;  %v5940_v2 = vld [vmem:[%s7803_s5 + $0x304] ss:$16 sps:$4 sm:$0xff]   ;;  %v5943_v4 = vld [vmem:[%s7803_s5 + $0x300] ss:$16 sps:$4 sm:$0xff]  }
 0x14b   : > { %4478 = vmatprep.subr.bf16.mxu1 %v5898_v34  ;;  %v1313_v5 = vld [vmem:[%s7789_s26] sm:$0xff]  ;;  %v1315_v6 = vld [vmem:[%s7789_s26 + $0x10] sm:$0xff] }
 0x14c   : > { %v5946_v7 = vld [vmem:[%s7803_s5 + $0x4e4] ss:$16 sps:$4 sm:$0xff]   ;;  %v7882_v9 = vpack.c.bf16 %v1313_v5, %v1313_v5  ;;  %v7884_v10 = vpack.c.bf16 %v1315_v6, %v1315_v6  ;;  %v5944_v11 = vld [vmem:[%s7803_s5 + $0x4e0] ss:$16 sps:$4 sm:$0xff]  }
 0x14d   : > { %4438 = vmatpush2.bf16.msra.mxu0 %v5900_v35  ;;  %v5949_v8 = vld [vmem:[%s7803_s5 + $0x6e4] ss:$16 sps:$4 sm:$0xff]   ;;  %v5947_v12 = vld [vmem:[%s7803_s5 + $0x6e0] ss:$16 sps:$4 sm:$0xff]   ;;  %v1318_v35 = vld [vmem:[%s7789_s26 + $0x28] sm:$0xff] }
 0x14e   : > { %4479 = vmatpush2.bf16.msra.mxu1 %v5901_v36  ;;  %4439 = vmatprep.subr.bf16.mxu0 %v5902_v37  ;;  %v5952_v13 = vld [vmem:[%s7803_s5 + $0x4c4] ss:$16 sps:$4 sm:$0xff]   ;;  %v5950_v15 = vld [vmem:[%s7803_s5 + $0x4c0] ss:$16 sps:$4 sm:$0xff]  }
 0x14f   : > { %4480 = vmatprep.subr.bf16.mxu1 %v5904_v38  ;;  %v5955_v14 = vld [vmem:[%s7803_s5 + $0x6c4] ss:$16 sps:$4 sm:$0xff]   ;;  %v5953_v16 = vld [vmem:[%s7803_s5 + $0x6c0] ss:$16 sps:$4 sm:$0xff]   ;;  %v7915_v38 = vpack.c.bf16 %v1318_v35, %v1318_v35 }
 0x150   : > { %v5958_v17 = vld [vmem:[%s7803_s5 + $0x4a4] ss:$16 sps:$4 sm:$0xff]   ;;  %v5956_v19 = vld [vmem:[%s7803_s5 + $0x4a0] ss:$16 sps:$4 sm:$0xff]  }
 0x151   : > { %4440 = vmatpush2.bf16.msra.mxu0 %v5906_v39  ;;  %v5961_v18 = vld [vmem:[%s7803_s5 + $0x6a4] ss:$16 sps:$4 sm:$0xff]   ;;  %v5959_v20 = vld [vmem:[%s7803_s5 + $0x6a0] ss:$16 sps:$4 sm:$0xff]   ;;  %v1320_v39 = vld [vmem:[%s7789_s26 + $0x38] sm:$0xff] }
 0x152   : > { %4481 = vmatpush2.bf16.msra.mxu1 %v5907_v40  ;;  %4441 = vmatprep.subr.bf16.mxu0 %v5908_v41  ;;  %v5964_v21 = vld [vmem:[%s7803_s5 + $0x484] ss:$16 sps:$4 sm:$0xff]   ;;  %v5962_v23 = vld [vmem:[%s7803_s5 + $0x480] ss:$16 sps:$4 sm:$0xff]   ;;  %v7919_v41 = vpack.c.bf16 %v1320_v39, %v1320_v39 }
 0x153   : > { %4482 = vmatprep.subr.bf16.mxu1 %v5910_v42  ;;  %v5967_v22 = vld [vmem:[%s7803_s5 + $0x684] ss:$16 sps:$4 sm:$0xff]   ;;  %v5965_v24 = vld [vmem:[%s7803_s5 + $0x680] ss:$16 sps:$4 sm:$0xff]  }
 0x154   : > { %v5970_v25 = vld [vmem:[%s7803_s5 + $0x464] ss:$16 sps:$4 sm:$0xff]   ;;  %v5968_v27 = vld [vmem:[%s7803_s5 + $0x460] ss:$16 sps:$4 sm:$0xff]  }
 0x155   : > { %4442 = vmatpush2.bf16.msra.mxu0 %v5912_v43  ;;  %v5973_v26 = vld [vmem:[%s7803_s5 + $0x664] ss:$16 sps:$4 sm:$0xff]   ;;  %v5971_v28 = vld [vmem:[%s7803_s5 + $0x660] ss:$16 sps:$4 sm:$0xff]  }
 0x156   : > { %4483 = vmatpush2.bf16.msra.mxu1 %v5913_v44  ;;  %4443 = vmatprep.subr.bf16.mxu0 %v5914_v45  ;;  %v5976_v29 = vld [vmem:[%s7803_s5 + $0x444] ss:$16 sps:$4 sm:$0xff]   ;;  %v5974_v31 = vld [vmem:[%s7803_s5 + $0x440] ss:$16 sps:$4 sm:$0xff]  }
 0x157   : > { %4484 = vmatprep.subr.bf16.mxu1 %v5916_v46  ;;  %v5979_v30 = vld [vmem:[%s7803_s5 + $0x644] ss:$16 sps:$4 sm:$0xff]   ;;  %v5977_v32 = vld [vmem:[%s7803_s5 + $0x640] ss:$16 sps:$4 sm:$0xff]  }
 0x158   : > { %v5982_v33 = vld [vmem:[%s7803_s5 + $0x424] ss:$16 sps:$4 sm:$0xff]   ;;  %v5980_v36 = vld [vmem:[%s7803_s5 + $0x420] ss:$16 sps:$4 sm:$0xff]  }
 0x159   : > { %4444 = vmatpush2.bf16.msra.mxu0 %v5918_v48  ;;  %v5985_v34 = vld [vmem:[%s7803_s5 + $0x624] ss:$16 sps:$4 sm:$0xff]   ;;  %v5983_v37 = vld [vmem:[%s7803_s5 + $0x620] ss:$16 sps:$4 sm:$0xff]  }
 0x15a   : > { %4485 = vmatpush2.bf16.msra.mxu1 %v5919_v49  ;;  %4445 = vmatprep.subr.bf16.mxu0 %v5920_v52  ;;  %v5988_v40 = vld [vmem:[%s7803_s5 + $0x404] ss:$16 sps:$4 sm:$0xff]   ;;  %v5986_v43 = vld [vmem:[%s7803_s5 + $0x400] ss:$16 sps:$4 sm:$0xff]  }
 0x15b   : > { %4486 = vmatprep.subr.bf16.mxu1 %v5922_v54  ;;  %v5991_v42 = vld [vmem:[%s7803_s5 + $0x604] ss:$16 sps:$4 sm:$0xff]   ;;  %v5989_v44 = vld [vmem:[%s7803_s5 + $0x600] ss:$16 sps:$4 sm:$0xff]  }
 0x15c   : > { %v5994_v45 = vld [vmem:[%s7803_s5 + $0x5e4] ss:$16 sps:$4 sm:$0xff]   ;;  %v5992_v47 = vld [vmem:[%s7803_s5 + $0x5e0] ss:$16 sps:$4 sm:$0xff]  }
 0x15d   : > { %4446 = vmatpush2.bf16.msra.mxu0 %v5924_v55  ;;  %v5997_v46 = vld [vmem:[%s7803_s5 + $0x7e4] ss:$16 sps:$4 sm:$0xff]   ;;  %v5995_v48 = vld [vmem:[%s7803_s5 + $0x7e0] ss:$16 sps:$4 sm:$0xff]  }
 0x15e   : > { %4487 = vmatpush2.bf16.msra.mxu1 %v5925_v56  ;;  %4447 = vmatprep.subr.bf16.mxu0 %v5926_v57  ;;  %v6000_v49 = vld [vmem:[%s7803_s5 + $0x5c4] ss:$16 sps:$4 sm:$0xff]   ;;  %v5998_v52 = vld [vmem:[%s7803_s5 + $0x5c0] ss:$16 sps:$4 sm:$0xff]  }
 0x15f   : > { %4488 = vmatprep.subr.bf16.mxu1 %v5928_v58  ;;  %v6003_v51 = vld [vmem:[%s7803_s5 + $0x7c4] ss:$16 sps:$4 sm:$0xff]   ;;  %v6001_v54 = vld [vmem:[%s7803_s5 + $0x7c0] ss:$16 sps:$4 sm:$0xff]  }
 0x160   : > { %v6006_v55 = vld [vmem:[%s7803_s5 + $0x5a4] ss:$16 sps:$4 sm:$0xff]   ;;  %v6004_v57 = vld [vmem:[%s7803_s5 + $0x5a0] ss:$16 sps:$4 sm:$0xff]  }
 0x161   : > { %4448 = vmatpush2.bf16.msra.mxu0 %v5930_v59  ;;  %v6009_v56 = vld [vmem:[%s7803_s5 + $0x7a4] ss:$16 sps:$4 sm:$0xff]   ;;  %v6007_v58 = vld [vmem:[%s7803_s5 + $0x7a0] ss:$16 sps:$4 sm:$0xff]  }
 0x162   : > { %4489 = vmatpush2.bf16.msra.mxu1 %v5931_v60  ;;  %4449 = vmatprep.subr.bf16.mxu0 %v5932_v61  ;;  %v6012_v59 = vld [vmem:[%s7803_s5 + $0x584] ss:$16 sps:$4 sm:$0xff]   ;;  %v6010_v61 = vld [vmem:[%s7803_s5 + $0x580] ss:$16 sps:$4 sm:$0xff]  }
 0x163   : > { %4490 = vmatprep.subr.bf16.mxu1 %v5934_v62  ;;  %v6015_v60 = vld [vmem:[%s7803_s5 + $0x784] ss:$16 sps:$4 sm:$0xff]   ;;  %v6013_v62 = vld [vmem:[%s7803_s5 + $0x780] ss:$16 sps:$4 sm:$0xff]  }
 0x164   : > { %v6022_v5 = vld [vmem:[%s7803_s5 + $0x540] ss:$16 sps:$4 sm:$0xff]   ;;  %v6063_v39 = vld [vmem:[%s7803_s5 + $0xa84] ss:$16 sps:$4 sm:$0xff]  }
 0x165   : > { %4450 = vmatpush2.bf16.msra.mxu0 %v5936_v63  ;;  %v6018_v63 = vld [vmem:[%s7803_s5 + $0x564] ss:$16 sps:$4 sm:$0xff]   ;;  %v6025_v6 = vld [vmem:[%s7803_s5 + $0x740] ss:$16 sps:$4 sm:$0xff]  }
 0x166   : > { %4491 = vmatpush2.bf16.msra.mxu1 %v5937_v0  ;;  %4451 = vmatprep.subr.bf16.mxu0 %v5938_v1  ;;  %v6021_v0 = vld [vmem:[%s7803_s5 + $0x764] ss:$16 sps:$4 sm:$0xff]   ;;  %v6016_v1 = vld [vmem:[%s7803_s5 + $0x560] ss:$16 sps:$4 sm:$0xff]  }
 0x167   : > { %4492 = vmatprep.subr.bf16.mxu1 %v5940_v2  ;;  %v6019_v2 = vld [vmem:[%s7803_s5 + $0x760] ss:$16 sps:$4 sm:$0xff]  }
 0x168   : > { %v6052_v35 = vld [vmem:[%s7803_s5 + $0x8a0] ss:$16 sps:$4 sm:$0xff]  }
 0x169   : > { %4452 = vmatpush2.bf16.msra.mxu0 %v5942_v3  ;;  %v6024_v3 = vld [vmem:[%s7803_s5 + $0x544] ss:$16 sps:$4 sm:$0xff]  }
 0x16a   : > { %4493 = vmatpush2.bf16.msra.mxu1 %v5943_v4  ;;  %4503 = vmatprep.subr.bf16.mxu0 %v5946_v7  ;;  %v6027_v4 = vld [vmem:[%s7803_s5 + $0x744] ss:$16 sps:$4 sm:$0xff]  }
 0x16b   : > { %4544 = vmatprep.subr.bf16.mxu1 %v5949_v8  ;;  %v6030_v7 = vld [vmem:[%s7803_s5 + $0x524] ss:$16 sps:$4 sm:$0xff]  }
 0x16c   : > { %4454 = vmatmul.mubr.bf16.vlgmr.msra.gmra.mxu0 %v7882_v9  ;;  %v6033_v8 = vld [vmem:[%s7803_s5 + $0x724] ss:$16 sps:$4 sm:$0xff]  }
 0x16d   : > { %4495 = vmatmul.mubr.bf16.vlgmr.msra.gmra.mxu1 %v7884_v10  ;;  %4504 = vmatpush1.bf16.msra.mxu0 %v5944_v11  ;;  %v6028_v11 = vld [vmem:[%s7803_s5 + $0x520] ss:$16 sps:$4 sm:$0xff]  }
 0x16e   : > { %4545 = vmatpush1.bf16.msra.mxu1 %v5947_v12  ;;  %4505 = vmatprep.subr.bf16.mxu0 %v5952_v13  ;;  %v6031_v12 = vld [vmem:[%s7803_s5 + $0x720] ss:$16 sps:$4 sm:$0xff]   ;;  %v6036_v13 = vld [vmem:[%s7803_s5 + $0x504] ss:$16 sps:$4 sm:$0xff]  }
 0x16f   : > { %4546 = vmatprep.subr.bf16.mxu1 %v5955_v14  ;;  %4535 = vmatprep.mubr.bf16.mxu0 %v7915_v38  ;;  %v6039_v14 = vld [vmem:[%s7803_s5 + $0x704] ss:$16 sps:$4 sm:$0xff]  }
 0x170   : > { %4576 = vmatprep.mubr.bf16.mxu1 %v7919_v41 }
 0x171   : > { %4506 = vmatpush1.bf16.msra.mxu0 %v5950_v15  ;;  %v6034_v15 = vld [vmem:[%s7803_s5 + $0x500] ss:$16 sps:$4 sm:$0xff]  }
 0x172   : > { %4547 = vmatpush1.bf16.msra.mxu1 %v5953_v16  ;;  %4507 = vmatprep.subr.bf16.mxu0 %v5958_v17  ;;  %v6037_v16 = vld [vmem:[%s7803_s5 + $0x700] ss:$16 sps:$4 sm:$0xff]  }
 0x173   : > { %4548 = vmatprep.subr.bf16.mxu1 %v5961_v18  ;;  %v1317_v17 = vld [vmem:[%s7789_s26 + $0x20] sm:$0xff]  ;;  %v1319_v18 = vld [vmem:[%s7789_s26 + $0x30] sm:$0xff] }
 0x175   : > { %4508 = vmatpush1.bf16.msra.mxu0 %v5956_v19  ;;  %v6042_v19 = vld [vmem:[%s7803_s5 + $0x8e4] ss:$16 sps:$4 sm:$0xff]  }
 0x176   : > { %4549 = vmatpush1.bf16.msra.mxu1 %v5959_v20  ;;  %4509 = vmatprep.subr.bf16.mxu0 %v5964_v21  ;;  %v6045_v20 = vld [vmem:[%s7803_s5 + $0xae4] ss:$16 sps:$4 sm:$0xff]   ;;  %v7962_v21 = vpack.c.bf16 %v1317_v17, %v1317_v17  ;;  %v6112_v17 = vld [vmem:[%s7803_s5 + $0x960] ss:$16 sps:$4 sm:$0xff]  }
 0x177   : > { %4550 = vmatprep.subr.bf16.mxu1 %v5967_v22  ;;  %v7964_v22 = vpack.c.bf16 %v1319_v18, %v1319_v18  ;;  %v6115_v18 = vld [vmem:[%s7803_s5 + $0xb60] ss:$16 sps:$4 sm:$0xff]  }
 0x179   : > { %4510 = vmatpush1.bf16.msra.mxu0 %v5962_v23  ;;  %v6040_v23 = vld [vmem:[%s7803_s5 + $0x8e0] ss:$16 sps:$4 sm:$0xff]  }
 0x17a   : > { %4551 = vmatpush1.bf16.msra.mxu1 %v5965_v24  ;;  %4511 = vmatprep.subr.bf16.mxu0 %v5970_v25  ;;  %v6043_v24 = vld [vmem:[%s7803_s5 + $0xae0] ss:$16 sps:$4 sm:$0xff]   ;;  %v6048_v25 = vld [vmem:[%s7803_s5 + $0x8c4] ss:$16 sps:$4 sm:$0xff]  }
 0x17b   : > { %4552 = vmatprep.subr.bf16.mxu1 %v5973_v26  ;;  %v6051_v26 = vld [vmem:[%s7803_s5 + $0xac4] ss:$16 sps:$4 sm:$0xff]  }
 0x17d   : > { %4512 = vmatpush1.bf16.msra.mxu0 %v5968_v27  ;;  %v1322_v27 = vld [vmem:[%s7789_s26 + $0x48] sm:$0xff] }
 0x17e   : > { %4553 = vmatpush1.bf16.msra.mxu1 %v5971_v28  ;;  %4513 = vmatprep.subr.bf16.mxu0 %v5976_v29  ;;  %v6046_v28 = vld [vmem:[%s7803_s5 + $0x8c0] ss:$16 sps:$4 sm:$0xff]  }
 0x17f   : > { %4554 = vmatprep.subr.bf16.mxu1 %v5979_v30  ;;  %v6049_v29 = vld [vmem:[%s7803_s5 + $0xac0] ss:$16 sps:$4 sm:$0xff]   ;;  %v7975_v30 = vpack.c.bf16 %v1322_v27, %v1322_v27 }
 0x180   : > { %v6124_v27 = vld [vmem:[%s7803_s5 + $0x920] ss:$16 sps:$4 sm:$0xff]  }
 0x181   : > { %4514 = vmatpush1.bf16.msra.mxu0 %v5974_v31  ;;  %v1324_v31 = vld [vmem:[%s7789_s26 + $0x58] sm:$0xff] }
 0x182   : > { %4555 = vmatpush1.bf16.msra.mxu1 %v5977_v32  ;;  %4515 = vmatprep.subr.bf16.mxu0 %v5982_v33  ;;  %v6054_v32 = vld [vmem:[%s7803_s5 + $0x8a4] ss:$16 sps:$4 sm:$0xff]   ;;  %v7979_v33 = vpack.c.bf16 %v1324_v31, %v1324_v31 }
 0x183   : > { %4556 = vmatprep.subr.bf16.mxu1 %v5985_v34  ;;  %v6057_v34 = vld [vmem:[%s7803_s5 + $0xaa4] ss:$16 sps:$4 sm:$0xff]  }
 0x184   : > { %v6135_v31 = vld [vmem:[%s7803_s5 + $0xb04] ss:$16 sps:$4 sm:$0xff]  }
 0x185   : > { %4516 = vmatpush1.bf16.msra.mxu0 %v5980_v36  ;;  %v6055_v36 = vld [vmem:[%s7803_s5 + $0xaa0] ss:$16 sps:$4 sm:$0xff]  }
 0x186   : > { %4557 = vmatpush1.bf16.msra.mxu1 %v5983_v37  ;;  %4517 = vmatprep.subr.bf16.mxu0 %v5988_v40  ;;  %v6060_v37 = vld [vmem:[%s7803_s5 + $0x884] ss:$16 sps:$4 sm:$0xff]   ;;  %v6058_v40 = vld [vmem:[%s7803_s5 + $0x880] ss:$16 sps:$4 sm:$0xff]  }
 0x187   : > { %4558 = vmatprep.subr.bf16.mxu1 %v5991_v42  ;;  %v6061_v42 = vld [vmem:[%s7803_s5 + $0xa80] ss:$16 sps:$4 sm:$0xff]  }
 0x189   : > { %4518 = vmatpush1.bf16.msra.mxu0 %v5986_v43  ;;  %v6066_v43 = vld [vmem:[%s7803_s5 + $0x864] ss:$16 sps:$4 sm:$0xff]  }
 0x18a   : > { %4559 = vmatpush1.bf16.msra.mxu1 %v5989_v44  ;;  %4519 = vmatprep.subr.bf16.mxu0 %v5994_v45  ;;  %v6069_v44 = vld [vmem:[%s7803_s5 + $0xa64] ss:$16 sps:$4 sm:$0xff]   ;;  %v6064_v45 = vld [vmem:[%s7803_s5 + $0x860] ss:$16 sps:$4 sm:$0xff]  }
 0x18b   : > { %4560 = vmatprep.subr.bf16.mxu1 %v5997_v46  ;;  %v6067_v46 = vld [vmem:[%s7803_s5 + $0xa60] ss:$16 sps:$4 sm:$0xff]  }
 0x18d   : > { %4520 = vmatpush2.bf16.msra.mxu0 %v5992_v47  ;;  %v6072_v47 = vld [vmem:[%s7803_s5 + $0x844] ss:$16 sps:$4 sm:$0xff]  }
 0x18e   : > { %4561 = vmatpush2.bf16.msra.mxu1 %v5995_v48  ;;  %4521 = vmatprep.subr.bf16.mxu0 %v6000_v49  ;;  %v6075_v48 = vld [vmem:[%s7803_s5 + $0xa44] ss:$16 sps:$4 sm:$0xff]   ;;  %v6070_v49 = vld [vmem:[%s7803_s5 + $0x840] ss:$16 sps:$4 sm:$0xff]  }
 0x18f   : > { %4562 = vmatprep.subr.bf16.mxu1 %v6003_v51  ;;  %v6073_v51 = vld [vmem:[%s7803_s5 + $0xa40] ss:$16 sps:$4 sm:$0xff]  }
 0x191   : > { %4522 = vmatpush2.bf16.msra.mxu0 %v5998_v52  ;;  %v6078_v52 = vld [vmem:[%s7803_s5 + $0x824] ss:$16 sps:$4 sm:$0xff]  }
 0x192   : > { %4563 = vmatpush2.bf16.msra.mxu1 %v6001_v54  ;;  %4523 = vmatprep.subr.bf16.mxu0 %v6006_v55  ;;  %v6081_v54 = vld [vmem:[%s7803_s5 + $0xa24] ss:$16 sps:$4 sm:$0xff]   ;;  %v6076_v55 = vld [vmem:[%s7803_s5 + $0x820] ss:$16 sps:$4 sm:$0xff]  }
 0x193   : > { %4564 = vmatprep.subr.bf16.mxu1 %v6009_v56  ;;  %v6079_v56 = vld [vmem:[%s7803_s5 + $0xa20] ss:$16 sps:$4 sm:$0xff]  }
 0x195   : > { %4524 = vmatpush2.bf16.msra.mxu0 %v6004_v57  ;;  %v6084_v57 = vld [vmem:[%s7803_s5 + $0x804] ss:$16 sps:$4 sm:$0xff]  }
 0x196   : > { %4565 = vmatpush2.bf16.msra.mxu1 %v6007_v58  ;;  %4525 = vmatprep.subr.bf16.mxu0 %v6012_v59  ;;  %v6087_v58 = vld [vmem:[%s7803_s5 + $0xa04] ss:$16 sps:$4 sm:$0xff]   ;;  %v6082_v59 = vld [vmem:[%s7803_s5 + $0x800] ss:$16 sps:$4 sm:$0xff]  }
 0x197   : > { %4566 = vmatprep.subr.bf16.mxu1 %v6015_v60  ;;  %v6085_v60 = vld [vmem:[%s7803_s5 + $0xa00] ss:$16 sps:$4 sm:$0xff]  }
 0x199   : > { %4526 = vmatpush2.bf16.msra.mxu0 %v6010_v61  ;;  %v6090_v61 = vld [vmem:[%s7803_s5 + $0x9e4] ss:$16 sps:$4 sm:$0xff]  }
 0x19a   : > { %4567 = vmatpush2.bf16.msra.mxu1 %v6013_v62  ;;  %4527 = vmatprep.subr.bf16.mxu0 %v6018_v63  ;;  %v6093_v62 = vld [vmem:[%s7803_s5 + $0xbe4] ss:$16 sps:$4 sm:$0xff]   ;;  %v6088_v63 = vld [vmem:[%s7803_s5 + $0x9e0] ss:$16 sps:$4 sm:$0xff]  }
 0x19b   : > { %4568 = vmatprep.subr.bf16.mxu1 %v6021_v0  ;;  %v6091_v0 = vld [vmem:[%s7803_s5 + $0xbe0] ss:$16 sps:$4 sm:$0xff]  }
 0x19d   : > { %4528 = vmatpush2.bf16.msra.mxu0 %v6016_v1  ;;  %v6096_v1 = vld [vmem:[%s7803_s5 + $0x9c4] ss:$16 sps:$4 sm:$0xff]  }
 0x19e   : > { %4569 = vmatpush2.bf16.msra.mxu1 %v6019_v2  ;;  %4529 = vmatprep.subr.bf16.mxu0 %v6024_v3  ;;  %v6099_v2 = vld [vmem:[%s7803_s5 + $0xbc4] ss:$16 sps:$4 sm:$0xff]   ;;  %v6094_v3 = vld [vmem:[%s7803_s5 + $0x9c0] ss:$16 sps:$4 sm:$0xff]  }
 0x19f   : > { %4570 = vmatprep.subr.bf16.mxu1 %v6027_v4  ;;  %v6097_v4 = vld [vmem:[%s7803_s5 + $0xbc0] ss:$16 sps:$4 sm:$0xff]  }
 0x1a1   : > { %4530 = vmatpush2.bf16.msra.mxu0 %v6022_v5  ;;  %v6102_v5 = vld [vmem:[%s7803_s5 + $0x9a4] ss:$16 sps:$4 sm:$0xff]  }
 0x1a2   : > { %4571 = vmatpush2.bf16.msra.mxu1 %v6025_v6  ;;  %4531 = vmatprep.subr.bf16.mxu0 %v6030_v7  ;;  %v6105_v6 = vld [vmem:[%s7803_s5 + $0xba4] ss:$16 sps:$4 sm:$0xff]   ;;  %v6100_v7 = vld [vmem:[%s7803_s5 + $0x9a0] ss:$16 sps:$4 sm:$0xff]  }
 0x1a3   : > { %4572 = vmatprep.subr.bf16.mxu1 %v6033_v8  ;;  %v6103_v8 = vld [vmem:[%s7803_s5 + $0xba0] ss:$16 sps:$4 sm:$0xff]  }
 0x1a5   : > { %4532 = vmatpush2.bf16.msra.mxu0 %v6028_v11  ;;  %v6108_v11 = vld [vmem:[%s7803_s5 + $0x984] ss:$16 sps:$4 sm:$0xff]  }
 0x1a6   : > { %4573 = vmatpush2.bf16.msra.mxu1 %v6031_v12  ;;  %4533 = vmatprep.subr.bf16.mxu0 %v6036_v13  ;;  %v6111_v12 = vld [vmem:[%s7803_s5 + $0xb84] ss:$16 sps:$4 sm:$0xff]   ;;  %v6106_v13 = vld [vmem:[%s7803_s5 + $0x980] ss:$16 sps:$4 sm:$0xff]  }
 0x1a7   : > { %4574 = vmatprep.subr.bf16.mxu1 %v6039_v14  ;;  %v6109_v14 = vld [vmem:[%s7803_s5 + $0xb80] ss:$16 sps:$4 sm:$0xff]  }
 0x1a9   : > { %4534 = vmatpush2.bf16.msra.mxu0 %v6034_v15  ;;  %v6114_v15 = vld [vmem:[%s7803_s5 + $0x964] ss:$16 sps:$4 sm:$0xff]  }
 0x1aa   : > { %4575 = vmatpush2.bf16.msra.mxu1 %v6037_v16  ;;  %4585 = vmatprep.subr.bf16.mxu0 %v6042_v19  ;;  %v6117_v16 = vld [vmem:[%s7803_s5 + $0xb64] ss:$16 sps:$4 sm:$0xff]  }
 0x1ab   : > { %4626 = vmatprep.subr.bf16.mxu1 %v6045_v20  ;;  %v6120_v19 = vld [vmem:[%s7803_s5 + $0x944] ss:$16 sps:$4 sm:$0xff]  }
 0x1ac   : > { %4536 = vmatmul.mubr.bf16.vlgmr.msra.gmra.mxu0 %v7962_v21  ;;  %v6123_v20 = vld [vmem:[%s7803_s5 + $0xb44] ss:$16 sps:$4 sm:$0xff]  }
 0x1ad   : > { %4577 = vmatmul.mubr.bf16.vlgmr.msra.gmra.mxu1 %v7964_v22  ;;  %4586 = vmatpush1.bf16.msra.mxu0 %v6040_v23  ;;  %v6118_v23 = vld [vmem:[%s7803_s5 + $0x940] ss:$16 sps:$4 sm:$0xff]  }
 0x1ae   : > { %4627 = vmatpush1.bf16.msra.mxu1 %v6043_v24  ;;  %4587 = vmatprep.subr.bf16.mxu0 %v6048_v25  ;;  %v6121_v24 = vld [vmem:[%s7803_s5 + $0xb40] ss:$16 sps:$4 sm:$0xff]   ;;  %v6126_v25 = vld [vmem:[%s7803_s5 + $0x924] ss:$16 sps:$4 sm:$0xff]  }
 0x1af   : > { %4628 = vmatprep.subr.bf16.mxu1 %v6051_v26  ;;  %4617 = vmatprep.mubr.bf16.mxu0 %v7975_v30  ;;  %v6129_v26 = vld [vmem:[%s7803_s5 + $0xb24] ss:$16 sps:$4 sm:$0xff]  }
 0x1b0   : > { %4658 = vmatprep.mubr.bf16.mxu1 %v7979_v33 }
 0x1b1   : > { %4588 = vmatpush1.bf16.msra.mxu0 %v6046_v28  ;;  %v6127_v28 = vld [vmem:[%s7803_s5 + $0xb20] ss:$16 sps:$4 sm:$0xff]  }
 0x1b2   : > { %4629 = vmatpush1.bf16.msra.mxu1 %v6049_v29  ;;  %4589 = vmatprep.subr.bf16.mxu0 %v6054_v32  ;;  %v6132_v29 = vld [vmem:[%s7803_s5 + $0x904] ss:$16 sps:$4 sm:$0xff]   ;;  %v6130_v32 = vld [vmem:[%s7803_s5 + $0x900] ss:$16 sps:$4 sm:$0xff]  }
 0x1b3   : > { %4630 = vmatprep.subr.bf16.mxu1 %v6057_v34  ;;  %v6133_v34 = vld [vmem:[%s7803_s5 + $0xb00] ss:$16 sps:$4 sm:$0xff]  }
 0x1b5   : > { %4590 = vmatpush1.bf16.msra.mxu0 %v6052_v35  ;;  %v1321_v35 = vld [vmem:[%s7789_s26 + $0x40] sm:$0xff] }
 0x1b6   : > { %4631 = vmatpush1.bf16.msra.mxu1 %v6055_v36  ;;  %4591 = vmatprep.subr.bf16.mxu0 %v6060_v37  ;;  %v1323_v36 = vld [vmem:[%s7789_s26 + $0x50] sm:$0xff] }
 0x1b7   : > { %4632 = vmatprep.subr.bf16.mxu1 %v6063_v39  ;;  %v6138_v37 = vld [vmem:[%s7803_s5 + $0xce4] ss:$16 sps:$4 sm:$0xff]  }
 0x1b8   : > { %v6141_v39 = vld [vmem:[%s7803_s5 + $0xee4] ss:$16 sps:$4 sm:$0xff]  }
 0x1b9   : > { %4592 = vmatpush1.bf16.msra.mxu0 %v6058_v40  ;;  %v6136_v40 = vld [vmem:[%s7803_s5 + $0xce0] ss:$16 sps:$4 sm:$0xff]  }
 0x1ba   : > { %4633 = vmatpush1.bf16.msra.mxu1 %v6061_v42  ;;  %4593 = vmatprep.subr.bf16.mxu0 %v6066_v43  ;;  %v6139_v42 = vld [vmem:[%s7803_s5 + $0xee0] ss:$16 sps:$4 sm:$0xff]   ;;  %v8044_v43 = vpack.c.bf16 %v1321_v35, %v1321_v35 }
 0x1bb   : > { %4634 = vmatprep.subr.bf16.mxu1 %v6069_v44  ;;  %v8046_v44 = vpack.c.bf16 %v1323_v36, %v1323_v36  ;;  %v6202_v35 = vld [vmem:[%s7803_s5 + $0xd80] ss:$16 sps:$4 sm:$0xff]  }
 0x1bc   : > { %v6205_v36 = vld [vmem:[%s7803_s5 + $0xf80] ss:$16 sps:$4 sm:$0xff]  }
 0x1bd   : > { %4594 = vmatpush1.bf16.msra.mxu0 %v6064_v45  ;;  %v1326_v45 = vld [vmem:[%s7789_s26 + $0x68] sm:$0xff] }
 0x1be   : > { %4635 = vmatpush1.bf16.msra.mxu1 %v6067_v46  ;;  %4595 = vmatprep.subr.bf16.mxu0 %v6072_v47  ;;  %v1328_v46 = vld [vmem:[%s7789_s26 + $0x78] sm:$0xff]  ;;  %v6144_v47 = vld [vmem:[%s7803_s5 + $0xcc4] ss:$16 sps:$4 sm:$0xff]  }
 0x1bf   : > { %4636 = vmatprep.subr.bf16.mxu1 %v6075_v48  ;;  %v6147_v48 = vld [vmem:[%s7803_s5 + $0xec4] ss:$16 sps:$4 sm:$0xff]  }
 0x1c1   : > { %4596 = vmatpush1.bf16.msra.mxu0 %v6070_v49  ;;  %v8052_v49 = vpack.c.bf16 %v1326_v45, %v1326_v45  ;;  %v6216_v45 = vld [vmem:[%s7803_s5 + $0xd44] ss:$16 sps:$4 sm:$0xff]  }
 0x1c2   : > { %4637 = vmatpush1.bf16.msra.mxu1 %v6073_v51  ;;  %4597 = vmatprep.subr.bf16.mxu0 %v6078_v52  ;;  %v8054_v51 = vpack.c.bf16 %v1328_v46, %v1328_v46  ;;  %v6142_v52 = vld [vmem:[%s7803_s5 + $0xcc0] ss:$16 sps:$4 sm:$0xff]   ;;  %v6219_v46 = vld [vmem:[%s7803_s5 + $0xf44] ss:$16 sps:$4 sm:$0xff]  }
 0x1c3   : > { %4638 = vmatprep.subr.bf16.mxu1 %v6081_v54  ;;  %v6145_v54 = vld [vmem:[%s7803_s5 + $0xec0] ss:$16 sps:$4 sm:$0xff]  }
 0x1c5   : > { %4598 = vmatpush1.bf16.msra.mxu0 %v6076_v55  ;;  %v6150_v55 = vld [vmem:[%s7803_s5 + $0xca4] ss:$16 sps:$4 sm:$0xff]  }
 0x1c6   : > { %4639 = vmatpush1.bf16.msra.mxu1 %v6079_v56  ;;  %4599 = vmatprep.subr.bf16.mxu0 %v6084_v57  ;;  %v6153_v56 = vld [vmem:[%s7803_s5 + $0xea4] ss:$16 sps:$4 sm:$0xff]   ;;  %v6148_v57 = vld [vmem:[%s7803_s5 + $0xca0] ss:$16 sps:$4 sm:$0xff]  }
 0x1c7   : > { %4640 = vmatprep.subr.bf16.mxu1 %v6087_v58  ;;  %v6151_v58 = vld [vmem:[%s7803_s5 + $0xea0] ss:$16 sps:$4 sm:$0xff]  }
 0x1c9   : > { %4600 = vmatpush1.bf16.msra.mxu0 %v6082_v59  ;;  %v6156_v59 = vld [vmem:[%s7803_s5 + $0xc84] ss:$16 sps:$4 sm:$0xff]  }
 0x1ca   : > { %4641 = vmatpush1.bf16.msra.mxu1 %v6085_v60  ;;  %4601 = vmatprep.subr.bf16.mxu0 %v6090_v61  ;;  %v6159_v60 = vld [vmem:[%s7803_s5 + $0xe84] ss:$16 sps:$4 sm:$0xff]   ;;  %v6154_v61 = vld [vmem:[%s7803_s5 + $0xc80] ss:$16 sps:$4 sm:$0xff]  }
 0x1cb   : > { %4642 = vmatprep.subr.bf16.mxu1 %v6093_v62  ;;  %v6157_v62 = vld [vmem:[%s7803_s5 + $0xe80] ss:$16 sps:$4 sm:$0xff]  }
 0x1cd   : > { %4602 = vmatpush2.bf16.msra.mxu0 %v6088_v63  ;;  %v6162_v63 = vld [vmem:[%s7803_s5 + $0xc64] ss:$16 sps:$4 sm:$0xff]  }
 0x1ce   : > { %4643 = vmatpush2.bf16.msra.mxu1 %v6091_v0  ;;  %4603 = vmatprep.subr.bf16.mxu0 %v6096_v1  ;;  %v6165_v0 = vld [vmem:[%s7803_s5 + $0xe64] ss:$16 sps:$4 sm:$0xff]   ;;  %v6160_v1 = vld [vmem:[%s7803_s5 + $0xc60] ss:$16 sps:$4 sm:$0xff]  }
 0x1cf   : > { %4644 = vmatprep.subr.bf16.mxu1 %v6099_v2  ;;  %v6163_v2 = vld [vmem:[%s7803_s5 + $0xe60] ss:$16 sps:$4 sm:$0xff]  }
 0x1d1   : > { %4604 = vmatpush2.bf16.msra.mxu0 %v6094_v3  ;;  %v6168_v3 = vld [vmem:[%s7803_s5 + $0xc44] ss:$16 sps:$4 sm:$0xff]  }
 0x1d2   : > { %4645 = vmatpush2.bf16.msra.mxu1 %v6097_v4  ;;  %4605 = vmatprep.subr.bf16.mxu0 %v6102_v5  ;;  %v6171_v4 = vld [vmem:[%s7803_s5 + $0xe44] ss:$16 sps:$4 sm:$0xff]   ;;  %v6166_v5 = vld [vmem:[%s7803_s5 + $0xc40] ss:$16 sps:$4 sm:$0xff]  }
 0x1d3   : > { %4646 = vmatprep.subr.bf16.mxu1 %v6105_v6  ;;  %v6169_v6 = vld [vmem:[%s7803_s5 + $0xe40] ss:$16 sps:$4 sm:$0xff]  }
 0x1d5   : > { %4606 = vmatpush2.bf16.msra.mxu0 %v6100_v7  ;;  %v6174_v7 = vld [vmem:[%s7803_s5 + $0xc24] ss:$16 sps:$4 sm:$0xff]  }
 0x1d6   : > { %4647 = vmatpush2.bf16.msra.mxu1 %v6103_v8  ;;  %4607 = vmatprep.subr.bf16.mxu0 %v6108_v11  ;;  %v6177_v8 = vld [vmem:[%s7803_s5 + $0xe24] ss:$16 sps:$4 sm:$0xff]   ;;  %v6172_v11 = vld [vmem:[%s7803_s5 + $0xc20] ss:$16 sps:$4 sm:$0xff]  }
 0x1d7   : > { %4648 = vmatprep.subr.bf16.mxu1 %v6111_v12  ;;  %v6175_v12 = vld [vmem:[%s7803_s5 + $0xe20] ss:$16 sps:$4 sm:$0xff]  }
 0x1d9   : > { %4608 = vmatpush2.bf16.msra.mxu0 %v6106_v13  ;;  %v6180_v13 = vld [vmem:[%s7803_s5 + $0xc04] ss:$16 sps:$4 sm:$0xff]  }
 0x1da   : > { %4649 = vmatpush2.bf16.msra.mxu1 %v6109_v14  ;;  %4609 = vmatprep.subr.bf16.mxu0 %v6114_v15  ;;  %v6183_v14 = vld [vmem:[%s7803_s5 + $0xe04] ss:$16 sps:$4 sm:$0xff]   ;;  %v6178_v15 = vld [vmem:[%s7803_s5 + $0xc00] ss:$16 sps:$4 sm:$0xff]  }
 0x1db   : > { %4650 = vmatprep.subr.bf16.mxu1 %v6117_v16  ;;  %v6181_v16 = vld [vmem:[%s7803_s5 + $0xe00] ss:$16 sps:$4 sm:$0xff]  }
 0x1dd   : > { %4610 = vmatpush2.bf16.msra.mxu0 %v6112_v17  ;;  %v6186_v17 = vld [vmem:[%s7803_s5 + $0xde4] ss:$16 sps:$4 sm:$0xff]  }
 0x1de   : > { %4651 = vmatpush2.bf16.msra.mxu1 %v6115_v18  ;;  %4611 = vmatprep.subr.bf16.mxu0 %v6120_v19  ;;  %v6189_v18 = vld [vmem:[%s7803_s5 + $0xfe4] ss:$16 sps:$4 sm:$0xff]   ;;  %v6184_v19 = vld [vmem:[%s7803_s5 + $0xde0] ss:$16 sps:$4 sm:$0xff]  }
 0x1df   : > { %4652 = vmatprep.subr.bf16.mxu1 %v6123_v20  ;;  %v6187_v20 = vld [vmem:[%s7803_s5 + $0xfe0] ss:$16 sps:$4 sm:$0xff]  }
 0x1e1   : > { %4612 = vmatpush2.bf16.msra.mxu0 %v6118_v23  ;;  %v6192_v23 = vld [vmem:[%s7803_s5 + $0xdc4] ss:$16 sps:$4 sm:$0xff]  }
 0x1e2   : > { %4653 = vmatpush2.bf16.msra.mxu1 %v6121_v24  ;;  %4613 = vmatprep.subr.bf16.mxu0 %v6126_v25  ;;  %v6195_v24 = vld [vmem:[%s7803_s5 + $0xfc4] ss:$16 sps:$4 sm:$0xff]   ;;  %v6190_v25 = vld [vmem:[%s7803_s5 + $0xdc0] ss:$16 sps:$4 sm:$0xff]  }
 0x1e3   : > { %4654 = vmatprep.subr.bf16.mxu1 %v6129_v26  ;;  %v6193_v26 = vld [vmem:[%s7803_s5 + $0xfc0] ss:$16 sps:$4 sm:$0xff]  }
 0x1e5   : > { %4614 = vmatpush2.bf16.msra.mxu0 %v6124_v27  ;;  %v6198_v27 = vld [vmem:[%s7803_s5 + $0xda4] ss:$16 sps:$4 sm:$0xff]  }
 0x1e6   : > { %4655 = vmatpush2.bf16.msra.mxu1 %v6127_v28  ;;  %4615 = vmatprep.subr.bf16.mxu0 %v6132_v29  ;;  %v6201_v28 = vld [vmem:[%s7803_s5 + $0xfa4] ss:$16 sps:$4 sm:$0xff]   ;;  %v6196_v29 = vld [vmem:[%s7803_s5 + $0xda0] ss:$16 sps:$4 sm:$0xff]  }
 0x1e7   : > { %4656 = vmatprep.subr.bf16.mxu1 %v6135_v31  ;;  %v6199_v31 = vld [vmem:[%s7803_s5 + $0xfa0] ss:$16 sps:$4 sm:$0xff]  }
 0x1e9   : > { %4616 = vmatpush2.bf16.msra.mxu0 %v6130_v32  ;;  %v6204_v32 = vld [vmem:[%s7803_s5 + $0xd84] ss:$16 sps:$4 sm:$0xff]  }
 0x1ea   : > { %4657 = vmatpush2.bf16.msra.mxu1 %v6133_v34  ;;  %4667 = vmatprep.subr.bf16.mxu0 %v6138_v37  ;;  %v6207_v34 = vld [vmem:[%s7803_s5 + $0xf84] ss:$16 sps:$4 sm:$0xff]  }
 0x1eb   : > { %4708 = vmatprep.subr.bf16.mxu1 %v6141_v39  ;;  %v6210_v37 = vld [vmem:[%s7803_s5 + $0xd64] ss:$16 sps:$4 sm:$0xff]  }
 0x1ec   : > { %4618 = vmatmul.mubr.bf16.vlgmr.msra.gmra.mxu0 %v8044_v43  ;;  %v6213_v39 = vld [vmem:[%s7803_s5 + $0xf64] ss:$16 sps:$4 sm:$0xff]  }
 0x1ed   : > { %4659 = vmatmul.mubr.bf16.vlgmr.msra.gmra.mxu1 %v8046_v44  ;;  %4668 = vmatpush1.bf16.msra.mxu0 %v6136_v40  ;;  %v6208_v40 = vld [vmem:[%s7803_s5 + $0xd60] ss:$16 sps:$4 sm:$0xff]  }
 0x1ee   : > { %4709 = vmatpush1.bf16.msra.mxu1 %v6139_v42  ;;  %4669 = vmatprep.subr.bf16.mxu0 %v6144_v47  ;;  %v6211_v42 = vld [vmem:[%s7803_s5 + $0xf60] ss:$16 sps:$4 sm:$0xff]  }
 0x1ef   : > { %4710 = vmatprep.subr.bf16.mxu1 %v6147_v48  ;;  %4699 = vmatprep.mubr.bf16.mxu0 %v8052_v49  ;;  %v6214_v47 = vld [vmem:[%s7803_s5 + $0xd40] ss:$16 sps:$4 sm:$0xff]  }
 0x1f0   : > { %4740 = vmatprep.mubr.bf16.mxu1 %v8054_v51  ;;  %v6217_v48 = vld [vmem:[%s7803_s5 + $0xf40] ss:$16 sps:$4 sm:$0xff]  }
 0x1f1   : > { %4670 = vmatpush1.bf16.msra.mxu0 %v6142_v52  ;;  %v6222_v52 = vld [vmem:[%s7803_s5 + $0xd24] ss:$16 sps:$4 sm:$0xff]  }
 0x1f2   : > { %4711 = vmatpush1.bf16.msra.mxu1 %v6145_v54  ;;  %4671 = vmatprep.subr.bf16.mxu0 %v6150_v55  ;;  %v6225_v54 = vld [vmem:[%s7803_s5 + $0xf24] ss:$16 sps:$4 sm:$0xff]   ;;  %v6220_v55 = vld [vmem:[%s7803_s5 + $0xd20] ss:$16 sps:$4 sm:$0xff]  }
 0x1f3   : > { %4712 = vmatprep.subr.bf16.mxu1 %v6153_v56  ;;  %v6223_v56 = vld [vmem:[%s7803_s5 + $0xf20] ss:$16 sps:$4 sm:$0xff]  }
 0x1f5   : > { %4672 = vmatpush1.bf16.msra.mxu0 %v6148_v57  ;;  %v6228_v57 = vld [vmem:[%s7803_s5 + $0xd04] ss:$16 sps:$4 sm:$0xff]  }
 0x1f6   : > { %4713 = vmatpush1.bf16.msra.mxu1 %v6151_v58  ;;  %4673 = vmatprep.subr.bf16.mxu0 %v6156_v59  ;;  %v6231_v58 = vld [vmem:[%s7803_s5 + $0xf04] ss:$16 sps:$4 sm:$0xff]   ;;  %v6226_v59 = vld [vmem:[%s7803_s5 + $0xd00] ss:$16 sps:$4 sm:$0xff]  }
 0x1f7   : > { %4714 = vmatprep.subr.bf16.mxu1 %v6159_v60  ;;  %v6229_v60 = vld [vmem:[%s7803_s5 + $0xf00] ss:$16 sps:$4 sm:$0xff]  }
 0x1f9   : > { %4674 = vmatpush1.bf16.msra.mxu0 %v6154_v61  ;;  %v1325_v61 = vld [vmem:[%s7789_s26 + $0x60] sm:$0xff] }
 0x1fa   : > { %4715 = vmatpush1.bf16.msra.mxu1 %v6157_v62  ;;  %4675 = vmatprep.subr.bf16.mxu0 %v6162_v63  ;;  %v1327_v62 = vld [vmem:[%s7789_s26 + $0x70] sm:$0xff]  ;;  %v6234_v63 = vld [vmem:[%s7803_s5 + $0xec] ss:$16 sps:$4 sm:$0xff]  }
 0x1fb   : > { %4716 = vmatprep.subr.bf16.mxu1 %v6165_v0  ;;  %v6237_v0 = vld [vmem:[%s7803_s5 + $0x2ec] ss:$16 sps:$4 sm:$0xff]  }
 0x1fd   : > { %4676 = vmatpush1.bf16.msra.mxu0 %v6160_v1  ;;  %v8122_v1 = vpack.c.bf16 %v1325_v61, %v1325_v61  ;;  %v6286_v61 = vld [vmem:[%s7803_s5 + $0x1c8] ss:$16 sps:$4 sm:$0xff]  }
 0x1fe   : > { %4717 = vmatpush1.bf16.msra.mxu1 %v6163_v2  ;;  %4677 = vmatprep.subr.bf16.mxu0 %v6168_v3  ;;  %v8124_v2 = vpack.c.bf16 %v1327_v62, %v1327_v62  ;;  %v6232_v3 = vld [vmem:[%s7803_s5 + $0xe8] ss:$16 sps:$4 sm:$0xff]  }
 0x1ff   : > { %4718 = vmatprep.subr.bf16.mxu1 %v6171_v4  ;;  %v6235_v4 = vld [vmem:[%s7803_s5 + $0x2e8] ss:$16 sps:$4 sm:$0xff]  }
 0x200   : > { %v6289_v62 = vld [vmem:[%s7803_s5 + $0x3c8] ss:$16 sps:$4 sm:$0xff]  }
 0x201   : > { %4678 = vmatpush1.bf16.msra.mxu0 %v6166_v5  ;;  %v6240_v5 = vld [vmem:[%s7803_s5 + $0xcc] ss:$16 sps:$4 sm:$0xff]  }
 0x202   : > { %4719 = vmatpush1.bf16.msra.mxu1 %v6169_v6  ;;  %4679 = vmatprep.subr.bf16.mxu0 %v6174_v7  ;;  %v6243_v6 = vld [vmem:[%s7803_s5 + $0x2cc] ss:$16 sps:$4 sm:$0xff]  }
 0x203   : > { %4720 = vmatprep.subr.bf16.mxu1 %v6177_v8 }
 0x205   : > { %4680 = vmatpush1.bf16.msra.mxu0 %v6172_v11  ;;  %v6238_v11 = vld [vmem:[%s7803_s5 + $0xc8] ss:$16 sps:$4 sm:$0xff]  }
 0x206   : > { %4721 = vmatpush1.bf16.msra.mxu1 %v6175_v12  ;;  %4681 = vmatprep.subr.bf16.mxu0 %v6180_v13  ;;  %v6241_v12 = vld [vmem:[%s7803_s5 + $0x2c8] ss:$16 sps:$4 sm:$0xff]  }
 0x207   : > { %4722 = vmatprep.subr.bf16.mxu1 %v6183_v14  ;;  %v6246_v14 = vld [vmem:[%s7803_s5 + $0xac] ss:$16 sps:$4 sm:$0xff]  }
 0x209   : > { %4682 = vmatpush1.bf16.msra.mxu0 %v6178_v15 }
 0x20a   : > { %4723 = vmatpush1.bf16.msra.mxu1 %v6181_v16  ;;  %4683 = vmatprep.subr.bf16.mxu0 %v6186_v17  ;;  %v6249_v17 = vld [vmem:[%s7803_s5 + $0x2ac] ss:$16 sps:$4 sm:$0xff]  }
 0x20b   : > { %4724 = vmatprep.subr.bf16.mxu1 %v6189_v18 }
 0x20d   : > { %4684 = vmatpush2.bf16.msra.mxu0 %v6184_v19 }
 0x20e   : > { %4725 = vmatpush2.bf16.msra.mxu1 %v6187_v20  ;;  %4685 = vmatprep.subr.bf16.mxu0 %v6192_v23  ;;  %v6244_v23 = vld [vmem:[%s7803_s5 + $0xa8] ss:$16 sps:$4 sm:$0xff]  }
 0x20f   : > { %4726 = vmatprep.subr.bf16.mxu1 %v6195_v24  ;;  %v6247_v24 = vld [vmem:[%s7803_s5 + $0x2a8] ss:$16 sps:$4 sm:$0xff]  }
 0x211   : > { %4686 = vmatpush2.bf16.msra.mxu0 %v6190_v25  ;;  %v6252_v25 = vld [vmem:[%s7803_s5 + $0x8c] ss:$16 sps:$4 sm:$0xff]  }
 0x212   : > { %4727 = vmatpush2.bf16.msra.mxu1 %v6193_v26  ;;  %4687 = vmatprep.subr.bf16.mxu0 %v6198_v27 }
 0x213   : > { %4728 = vmatprep.subr.bf16.mxu1 %v6201_v28  ;;  %v6255_v28 = vld [vmem:[%s7803_s5 + $0x28c] ss:$16 sps:$4 sm:$0xff]  }
 0x215   : > { %4688 = vmatpush2.bf16.msra.mxu0 %v6196_v29  ;;  %v6258_v29 = vld [vmem:[%s7803_s5 + $0x6c] ss:$16 sps:$4 sm:$0xff]  }
 0x216   : > { %4729 = vmatpush2.bf16.msra.mxu1 %v6199_v31  ;;  %4689 = vmatprep.subr.bf16.mxu0 %v6204_v32  ;;  %v6261_v31 = vld [vmem:[%s7803_s5 + $0x26c] ss:$16 sps:$4 sm:$0xff]   ;;  %v6256_v32 = vld [vmem:[%s7803_s5 + $0x68] ss:$16 sps:$4 sm:$0xff]  }
 0x217   : > { %4730 = vmatprep.subr.bf16.mxu1 %v6207_v34  ;;  %v6259_v34 = vld [vmem:[%s7803_s5 + $0x268] ss:$16 sps:$4 sm:$0xff]  }
 0x219   : > { %4690 = vmatpush2.bf16.msra.mxu0 %v6202_v35  ;;  %v6264_v35 = vld [vmem:[%s7803_s5 + $0x4c] ss:$16 sps:$4 sm:$0xff]  }
 0x21a   : > { %4731 = vmatpush2.bf16.msra.mxu1 %v6205_v36  ;;  %4691 = vmatprep.subr.bf16.mxu0 %v6210_v37  ;;  %v6267_v36 = vld [vmem:[%s7803_s5 + $0x24c] ss:$16 sps:$4 sm:$0xff]   ;;  %v6262_v37 = vld [vmem:[%s7803_s5 + $0x48] ss:$16 sps:$4 sm:$0xff]  }
 0x21b   : > { %4732 = vmatprep.subr.bf16.mxu1 %v6213_v39  ;;  %v6265_v39 = vld [vmem:[%s7803_s5 + $0x248] ss:$16 sps:$4 sm:$0xff]  }
 0x21d   : > { %4692 = vmatpush2.bf16.msra.mxu0 %v6208_v40  ;;  %v6270_v40 = vld [vmem:[%s7803_s5 + $0x2c] ss:$16 sps:$4 sm:$0xff]  }
 0x21e   : > { %4733 = vmatpush2.bf16.msra.mxu1 %v6211_v42  ;;  %4693 = vmatprep.subr.bf16.mxu0 %v6216_v45  ;;  %v6273_v42 = vld [vmem:[%s7803_s5 + $0x22c] ss:$16 sps:$4 sm:$0xff]   ;;  %v6268_v45 = vld [vmem:[%s7803_s5 + $0x28] ss:$16 sps:$4 sm:$0xff]  }
 0x21f   : > { %4734 = vmatprep.subr.bf16.mxu1 %v6219_v46  ;;  %v6271_v46 = vld [vmem:[%s7803_s5 + $0x228] ss:$16 sps:$4 sm:$0xff]  }
 0x221   : > { %4694 = vmatpush2.bf16.msra.mxu0 %v6214_v47  ;;  %v6276_v47 = vld [vmem:[%s7803_s5 + $0xc] ss:$16 sps:$4 sm:$0xff]  }
 0x222   : > { %4735 = vmatpush2.bf16.msra.mxu1 %v6217_v48  ;;  %4695 = vmatprep.subr.bf16.mxu0 %v6222_v52  ;;  %v6279_v48 = vld [vmem:[%s7803_s5 + $0x20c] ss:$16 sps:$4 sm:$0xff]   ;;  %v6274_v52 = vld [vmem:[%s7803_s5 + $0x8] ss:$16 sps:$4 sm:$0xff]  }
 0x223   : > { %4736 = vmatprep.subr.bf16.mxu1 %v6225_v54  ;;  %v6277_v54 = vld [vmem:[%s7803_s5 + $0x208] ss:$16 sps:$4 sm:$0xff]  }
 0x225   : > { %4696 = vmatpush2.bf16.msra.mxu0 %v6220_v55  ;;  %v6282_v55 = vld [vmem:[%s7803_s5 + $0x1ec] ss:$16 sps:$4 sm:$0xff]  }
 0x226   : > { %4737 = vmatpush2.bf16.msra.mxu1 %v6223_v56  ;;  %4697 = vmatprep.subr.bf16.mxu0 %v6228_v57  ;;  %v6285_v56 = vld [vmem:[%s7803_s5 + $0x3ec] ss:$16 sps:$4 sm:$0xff]   ;;  %v6280_v57 = vld [vmem:[%s7803_s5 + $0x1e8] ss:$16 sps:$4 sm:$0xff]  }
 0x227   : > { %4738 = vmatprep.subr.bf16.mxu1 %v6231_v58  ;;  %v6283_v58 = vld [vmem:[%s7803_s5 + $0x3e8] ss:$16 sps:$4 sm:$0xff]  }
 0x229   : > { %4698 = vmatpush2.bf16.msra.mxu0 %v6226_v59  ;;  %v6288_v59 = vld [vmem:[%s7803_s5 + $0x1cc] ss:$16 sps:$4 sm:$0xff]  }
 0x22a   : > { %4739 = vmatpush2.bf16.msra.mxu1 %v6229_v60  ;;  %4749 = vmatprep.subr.bf16.mxu0 %v6234_v63  ;;  %v6291_v60 = vld [vmem:[%s7803_s5 + $0x3cc] ss:$16 sps:$4 sm:$0xff]  }
 0x22b   : > { %4790 = vmatprep.subr.bf16.mxu1 %v6237_v0  ;;  %v6294_v63 = vld [vmem:[%s7803_s5 + $0x1ac] ss:$16 sps:$4 sm:$0xff]  }
 0x22c   : > { %v4455_v7 = vpop.f32.mrf.mxu0  ;;  %4700 = vmatmul.mubr.bf16.vlgmr.msra.gmra.mxu0 %v8122_v1  ;;  %v6297_v0 = vld [vmem:[%s7803_s5 + $0x3ac] ss:$16 sps:$4 sm:$0xff]  }
 0x22d   : > { %v4496_v8 = vpop.f32.mrf.mxu1  ;;  %4741 = vmatmul.mubr.bf16.vlgmr.msra.gmra.mxu1 %v8124_v2  ;;  %4750 = vmatpush1.bf16.msra.mxu0 %v6232_v3  ;;  %v6292_v3 = vld [vmem:[%s7803_s5 + $0x1a8] ss:$16 sps:$4 sm:$0xff]  }
 0x22e   : > { %v8134_v13 = vadd.f32 %v4496_v8, %v4455_v7  ;;  %4791 = vmatpush1.bf16.msra.mxu1 %v6235_v4  ;;  %v4457_v15 = vpop.f32.mrf.mxu0  ;;  %4751 = vmatprep.subr.bf16.mxu0 %v6240_v5  ;;  %v6295_v4 = vld [vmem:[%s7803_s5 + $0x3a8] ss:$16 sps:$4 sm:$0xff]   ;;  %v6300_v5 = vld [vmem:[%s7803_s5 + $0x18c] ss:$16 sps:$4 sm:$0xff]  }
 0x22f   : > { %v4498_v16 = vpop.f32.mrf.mxu1  ;;  %4792 = vmatprep.subr.bf16.mxu1 %v6243_v6  ;;  %4781 = vmatprep.mubr.bf16.mxu0 %v7855_v50  ;;  %v6250_v50 = vld [vmem:[%s7803_s5 + $0x88] ss:$16 sps:$4 sm:$0xff]   ;;  %v6303_v6 = vld [vmem:[%s7803_s5 + $0x38c] ss:$16 sps:$4 sm:$0xff]  }
 0x230   : > { %v8138_v18 = vadd.f32 %v4498_v16, %v4457_v15  ;;  %4822 = vmatprep.mubr.bf16.mxu1 %v7859_v53  ;;  %v4459_v19 = vpop.f32.mrf.mxu0  ;;  %v6253_v53 = vld [vmem:[%s7803_s5 + $0x288] ss:$16 sps:$4 sm:$0xff]   ;;  %v6312_v16 = vld [vmem:[%s7803_s5 + $0x14c] ss:$16 sps:$4 sm:$0xff]  }
 0x231   : > { %v4500_v20 = vpop.f32.mrf.mxu1  ;;  %4752 = vmatpush1.bf16.msra.mxu0 %v6238_v11  ;;  %v6298_v7 = vld [vmem:[%s7803_s5 + $0x188] ss:$16 sps:$4 sm:$0xff]   ;;  %v6306_v11 = vld [vmem:[%s7803_s5 + $0x16c] ss:$16 sps:$4 sm:$0xff]  }
 0x232   : > { %4793 = vmatpush1.bf16.msra.mxu1 %v6241_v12  ;;  %v4460_v26 = vpop.f32.mrf.mxu0  ;;  %4753 = vmatprep.subr.bf16.mxu0 %v6246_v14  ;;  %v6301_v8 = vld [vmem:[%s7803_s5 + $0x388] ss:$16 sps:$4 sm:$0xff]   ;;  %v6309_v12 = vld [vmem:[%s7803_s5 + $0x36c] ss:$16 sps:$4 sm:$0xff]  }
 0x233   : > { %v4501_v27 = vpop.f32.mrf.mxu1  ;;  %4794 = vmatprep.subr.bf16.mxu1 %v6249_v17  ;;  %v6304_v14 = vld [vmem:[%s7803_s5 + $0x168] ss:$16 sps:$4 sm:$0xff]   ;;  %v6315_v17 = vld [vmem:[%s7803_s5 + $0x34c] ss:$16 sps:$4 sm:$0xff]  }
 0x234   : > { %v6307_v15 = vld [vmem:[%s7803_s5 + $0x368] ss:$16 sps:$4 sm:$0xff]   ;;  %v6324_v27 = vld [vmem:[%s7803_s5 + $0x10c] ss:$16 sps:$4 sm:$0xff]  }
 0x235   : > { %4754 = vmatpush1.bf16.msra.mxu0 %v6244_v23  ;;  %v6310_v19 = vld [vmem:[%s7803_s5 + $0x148] ss:$16 sps:$4 sm:$0xff]   ;;  %v6318_v23 = vld [vmem:[%s7803_s5 + $0x12c] ss:$16 sps:$4 sm:$0xff]  }
 0x236   : > { %4795 = vmatpush1.bf16.msra.mxu1 %v6247_v24  ;;  %4755 = vmatprep.subr.bf16.mxu0 %v6252_v25  ;;  %v6313_v20 = vld [vmem:[%s7803_s5 + $0x348] ss:$16 sps:$4 sm:$0xff]   ;;  %v6321_v24 = vld [vmem:[%s7803_s5 + $0x32c] ss:$16 sps:$4 sm:$0xff]  }
 0x237   : > { %4796 = vmatprep.subr.bf16.mxu1 %v6255_v28  ;;  %v6316_v25 = vld [vmem:[%s7803_s5 + $0x128] ss:$16 sps:$4 sm:$0xff]   ;;  %v6327_v28 = vld [vmem:[%s7803_s5 + $0x30c] ss:$16 sps:$4 sm:$0xff]  }
 0x238   : > { %v6319_v26 = vld [vmem:[%s7803_s5 + $0x328] ss:$16 sps:$4 sm:$0xff]  }
 0x239   : > { %4756 = vmatpush1.bf16.msra.mxu0 %v6250_v50  ;;  %v6322_v50 = vld [vmem:[%s7803_s5 + $0x108] ss:$16 sps:$4 sm:$0xff]  }
 0x23a   : > { %4797 = vmatpush1.bf16.msra.mxu1 %v6253_v53  ;;  %4757 = vmatprep.subr.bf16.mxu0 %v6258_v29  ;;  %v6325_v53 = vld [vmem:[%s7803_s5 + $0x308] ss:$16 sps:$4 sm:$0xff]   ;;  %v6330_v29 = vld [vmem:[%s7803_s5 + $0x4ec] ss:$16 sps:$4 sm:$0xff]  }
 0x23b   : > { %4798 = vmatprep.subr.bf16.mxu1 %v6261_v31  ;;  %v6333_v31 = vld [vmem:[%s7803_s5 + $0x6ec] ss:$16 sps:$4 sm:$0xff]  }
 0x23d   : > { %4758 = vmatpush1.bf16.msra.mxu0 %v6256_v32  ;;  %v6328_v32 = vld [vmem:[%s7803_s5 + $0x4e8] ss:$16 sps:$4 sm:$0xff]  }
 0x23e   : > { %4799 = vmatpush1.bf16.msra.mxu1 %v6259_v34  ;;  %4759 = vmatprep.subr.bf16.mxu0 %v6264_v35  ;;  %v6331_v34 = vld [vmem:[%s7803_s5 + $0x6e8] ss:$16 sps:$4 sm:$0xff]   ;;  %v6336_v35 = vld [vmem:[%s7803_s5 + $0x4cc] ss:$16 sps:$4 sm:$0xff]  }
 0x23f   : > { %4800 = vmatprep.subr.bf16.mxu1 %v6267_v36  ;;  %v6339_v36 = vld [vmem:[%s7803_s5 + $0x6cc] ss:$16 sps:$4 sm:$0xff]  }
 0x241   : > { %4760 = vmatpush1.bf16.msra.mxu0 %v6262_v37  ;;  %v6334_v37 = vld [vmem:[%s7803_s5 + $0x4c8] ss:$16 sps:$4 sm:$0xff]  }
 0x242   : > { %4801 = vmatpush1.bf16.msra.mxu1 %v6265_v39  ;;  %4761 = vmatprep.subr.bf16.mxu0 %v6270_v40 }
 0x243   : > { %4802 = vmatprep.subr.bf16.mxu1 %v6273_v42 }
 0x245   : > { %4762 = vmatpush1.bf16.msra.mxu0 %v6268_v45  ;;  %v6337_v45 = vld [vmem:[%s7803_s5 + $0x6c8] ss:$16 sps:$4 sm:$0xff]  }
 0x246   : > { %4803 = vmatpush1.bf16.msra.mxu1 %v6271_v46  ;;  %4763 = vmatprep.subr.bf16.mxu0 %v6276_v47 }
 0x247   : > { %4804 = vmatprep.subr.bf16.mxu1 %v6279_v48  ;;  %v6342_v48 = vld [vmem:[%s7803_s5 + $0x4ac] ss:$16 sps:$4 sm:$0xff]  }
 0x249   : > { %4764 = vmatpush1.bf16.msra.mxu0 %v6274_v52  ;;  %v6345_v52 = vld [vmem:[%s7803_s5 + $0x6ac] ss:$16 sps:$4 sm:$0xff]  }
 0x24a   : > { %4805 = vmatpush1.bf16.msra.mxu1 %v6277_v54  ;;  %4765 = vmatprep.subr.bf16.mxu0 %v6282_v55 }
 0x24b   : > { %4806 = vmatprep.subr.bf16.mxu1 %v6285_v56  ;;  %v6340_v56 = vld [vmem:[%s7803_s5 + $0x4a8] ss:$16 sps:$4 sm:$0xff]  }
 0x24d   : > { %4766 = vmatpush2.bf16.msra.mxu0 %v6280_v57  ;;  %v6343_v57 = vld [vmem:[%s7803_s5 + $0x6a8] ss:$16 sps:$4 sm:$0xff]  }
 0x24e   : > { %4807 = vmatpush2.bf16.msra.mxu1 %v6283_v58  ;;  %4767 = vmatprep.subr.bf16.mxu0 %v6288_v59 }
 0x24f   : > { %4808 = vmatprep.subr.bf16.mxu1 %v6291_v60  ;;  %v6349_v60 = vld [vmem:[%s7803_s5 + $0x688] ss:$16 sps:$4 sm:$0xff]  }
 0x251   : > { %4768 = vmatpush2.bf16.msra.mxu0 %v6286_v61  ;;  %v6354_v61 = vld [vmem:[%s7803_s5 + $0x46c] ss:$16 sps:$4 sm:$0xff]  }
 0x252   : > { %4809 = vmatpush2.bf16.msra.mxu1 %v6289_v62  ;;  %4769 = vmatprep.subr.bf16.mxu0 %v6294_v63  ;;  %v6357_v62 = vld [vmem:[%s7803_s5 + $0x66c] ss:$16 sps:$4 sm:$0xff]   ;;  %v6352_v63 = vld [vmem:[%s7803_s5 + $0x468] ss:$16 sps:$4 sm:$0xff]  }
 0x253   : > { %4810 = vmatprep.subr.bf16.mxu1 %v6297_v0  ;;  %v6355_v0 = vld [vmem:[%s7803_s5 + $0x668] ss:$16 sps:$4 sm:$0xff]  }
 0x255   : > { %4770 = vmatpush2.bf16.msra.mxu0 %v6292_v3  ;;  %v6360_v3 = vld [vmem:[%s7803_s5 + $0x44c] ss:$16 sps:$4 sm:$0xff]  }
 0x256   : > { %4811 = vmatpush2.bf16.msra.mxu1 %v6295_v4  ;;  %4771 = vmatprep.subr.bf16.mxu0 %v6300_v5  ;;  %v6363_v4 = vld [vmem:[%s7803_s5 + $0x64c] ss:$16 sps:$4 sm:$0xff]   ;;  %v6358_v5 = vld [vmem:[%s7803_s5 + $0x448] ss:$16 sps:$4 sm:$0xff]  }
 0x257   : > { %4812 = vmatprep.subr.bf16.mxu1 %v6303_v6  ;;  %v6361_v6 = vld [vmem:[%s7803_s5 + $0x648] ss:$16 sps:$4 sm:$0xff]  }
 0x259   : > { %4772 = vmatpush2.bf16.msra.mxu0 %v6298_v7  ;;  %v6366_v7 = vld [vmem:[%s7803_s5 + $0x42c] ss:$16 sps:$4 sm:$0xff]  }
 0x25a   : > { %4813 = vmatpush2.bf16.msra.mxu1 %v6301_v8  ;;  %4773 = vmatprep.subr.bf16.mxu0 %v6306_v11  ;;  %v6369_v8 = vld [vmem:[%s7803_s5 + $0x62c] ss:$16 sps:$4 sm:$0xff]   ;;  %v6364_v11 = vld [vmem:[%s7803_s5 + $0x428] ss:$16 sps:$4 sm:$0xff]  }
 0x25b   : > { %4814 = vmatprep.subr.bf16.mxu1 %v6309_v12  ;;  %v6367_v12 = vld [vmem:[%s7803_s5 + $0x628] ss:$16 sps:$4 sm:$0xff]  }
 0x25d   : > { %4774 = vmatpush2.bf16.msra.mxu0 %v6304_v14  ;;  %v6372_v14 = vld [vmem:[%s7803_s5 + $0x40c] ss:$16 sps:$4 sm:$0xff]  }
 0x25e   : > { %4815 = vmatpush2.bf16.msra.mxu1 %v6307_v15  ;;  %4775 = vmatprep.subr.bf16.mxu0 %v6312_v16  ;;  %v6375_v15 = vld [vmem:[%s7803_s5 + $0x60c] ss:$16 sps:$4 sm:$0xff]   ;;  %v6370_v16 = vld [vmem:[%s7803_s5 + $0x408] ss:$16 sps:$4 sm:$0xff]  }
 0x25f   : > { %4816 = vmatprep.subr.bf16.mxu1 %v6315_v17  ;;  %v6373_v17 = vld [vmem:[%s7803_s5 + $0x608] ss:$16 sps:$4 sm:$0xff]  }
 0x261   : > { %4776 = vmatpush2.bf16.msra.mxu0 %v6310_v19  ;;  %v6378_v19 = vld [vmem:[%s7803_s5 + $0x5ec] ss:$16 sps:$4 sm:$0xff]  }
 0x262   : > { %4817 = vmatpush2.bf16.msra.mxu1 %v6313_v20  ;;  %4777 = vmatprep.subr.bf16.mxu0 %v6318_v23  ;;  %v6381_v20 = vld [vmem:[%s7803_s5 + $0x7ec] ss:$16 sps:$4 sm:$0xff]   ;;  %v6376_v23 = vld [vmem:[%s7803_s5 + $0x5e8] ss:$16 sps:$4 sm:$0xff]  }
 0x263   : > { %4818 = vmatprep.subr.bf16.mxu1 %v6321_v24  ;;  %v6379_v24 = vld [vmem:[%s7803_s5 + $0x7e8] ss:$16 sps:$4 sm:$0xff]  }
 0x265   : > { %4778 = vmatpush2.bf16.msra.mxu0 %v6316_v25  ;;  %v6384_v25 = vld [vmem:[%s7803_s5 + $0x5cc] ss:$16 sps:$4 sm:$0xff]  }
 0x266   : > { %4819 = vmatpush2.bf16.msra.mxu1 %v6319_v26  ;;  %4779 = vmatprep.subr.bf16.mxu0 %v6324_v27  ;;  %v6387_v26 = vld [vmem:[%s7803_s5 + $0x7cc] ss:$16 sps:$4 sm:$0xff]   ;;  %v6382_v27 = vld [vmem:[%s7803_s5 + $0x5c8] ss:$16 sps:$4 sm:$0xff]  }
 0x267   : > { %4820 = vmatprep.subr.bf16.mxu1 %v6327_v28  ;;  %v6385_v28 = vld [vmem:[%s7803_s5 + $0x7c8] ss:$16 sps:$4 sm:$0xff]  }
 0x269   : > { %4780 = vmatpush2.bf16.msra.mxu0 %v6322_v50  ;;  %v6390_v50 = vld [vmem:[%s7803_s5 + $0x5ac] ss:$16 sps:$4 sm:$0xff]  }
 0x26a   : > { %4821 = vmatpush2.bf16.msra.mxu1 %v6325_v53  ;;  %4831 = vmatprep.subr.bf16.mxu0 %v6330_v29  ;;  %v6393_v53 = vld [vmem:[%s7803_s5 + $0x7ac] ss:$16 sps:$4 sm:$0xff]   ;;  %v6388_v29 = vld [vmem:[%s7803_s5 + $0x5a8] ss:$16 sps:$4 sm:$0xff]  }
 0x26b   : > { %4872 = vmatprep.subr.bf16.mxu1 %v6333_v31  ;;  %v6391_v31 = vld [vmem:[%s7803_s5 + $0x7a8] ss:$16 sps:$4 sm:$0xff]  }
 0x26c   : > { %v4537_v39 = vpop.f32.mrf.mxu0  ;;  %4782 = vmatmul.mubr.bf16.vlgmr.msra.gmra.mxu0 %v7882_v9 }
 0x26d   : > { %v4578_v40 = vpop.f32.mrf.mxu1  ;;  %4823 = vmatmul.mubr.bf16.vlgmr.msra.gmra.mxu1 %v7884_v10  ;;  %v4538_v42 = vadd.f32 %v4537_v39, %v8134_v13  ;;  %4832 = vmatpush1.bf16.msra.mxu0 %v6328_v32  ;;  %v6396_v32 = vld [vmem:[%s7803_s5 + $0x58c] ss:$16 sps:$4 sm:$0xff]  }
 0x26e   : > { %4873 = vmatpush1.bf16.msra.mxu1 %v6331_v34  ;;  %v4539_v46 = vpop.f32.mrf.mxu0  ;;  %4833 = vmatprep.subr.bf16.mxu0 %v6336_v35  ;;  %v6399_v34 = vld [vmem:[%s7803_s5 + $0x78c] ss:$16 sps:$4 sm:$0xff]   ;;  %v6394_v35 = vld [vmem:[%s7803_s5 + $0x588] ss:$16 sps:$4 sm:$0xff]  }
 0x26f   : > { %v4580_v47 = vpop.f32.mrf.mxu1  ;;  %4874 = vmatprep.subr.bf16.mxu1 %v6339_v36  ;;  %v8209_v54 = vadd.f32 %v4578_v40, %v4538_v42  ;;  %v4540_v9 = vadd.f32 %v4539_v46, %v8138_v18  ;;  %4863 = vmatprep.mubr.bf16.mxu0 %v7915_v38  ;;  %v6348_v38 = vld [vmem:[%s7803_s5 + $0x48c] ss:$16 sps:$4 sm:$0xff]   ;;  %v6346_v18 = vld [vmem:[%s7803_s5 + $0x488] ss:$16 sps:$4 sm:$0xff]  }
 0x270   : > { %4904 = vmatprep.mubr.bf16.mxu1 %v7919_v41  ;;  %v4541_v10 = vpop.f32.mrf.mxu0  ;;  %v6351_v41 = vld [vmem:[%s7803_s5 + $0x68c] ss:$16 sps:$4 sm:$0xff]   ;;  %v6397_v36 = vld [vmem:[%s7803_s5 + $0x788] ss:$16 sps:$4 sm:$0xff]  }
 0x271   : > { %v4582_v13 = vpop.f32.mrf.mxu1  ;;  %v8214_v55 = vadd.f32 %v4580_v47, %v4540_v9  ;;  %4834 = vmatpush1.bf16.msra.mxu0 %v6334_v37  ;;  %v6402_v37 = vld [vmem:[%s7803_s5 + $0x56c] ss:$16 sps:$4 sm:$0xff]   ;;  %v6400_v40 = vld [vmem:[%s7803_s5 + $0x568] ss:$16 sps:$4 sm:$0xff]  }
 0x272   : > { %4875 = vmatpush1.bf16.msra.mxu1 %v6337_v45  ;;  %v4542_v58 = vpop.f32.mrf.mxu0  ;;  %4835 = vmatprep.subr.bf16.mxu0 %v6342_v48  ;;  %v6405_v39 = vld [vmem:[%s7803_s5 + $0x76c] ss:$16 sps:$4 sm:$0xff]   ;;  %v6403_v42 = vld [vmem:[%s7803_s5 + $0x768] ss:$16 sps:$4 sm:$0xff]  }
 0x273   : > { %v4583_v59 = vpop.f32.mrf.mxu1  ;;  %4876 = vmatprep.subr.bf16.mxu1 %v6345_v52  ;;  %v6408_v45 = vld [vmem:[%s7803_s5 + $0x54c] ss:$16 sps:$4 sm:$0xff]   ;;  %v6406_v47 = vld [vmem:[%s7803_s5 + $0x548] ss:$16 sps:$4 sm:$0xff]  }
 0x274   : > { %v6411_v46 = vld [vmem:[%s7803_s5 + $0x74c] ss:$16 sps:$4 sm:$0xff]   ;;  %v6409_v48 = vld [vmem:[%s7803_s5 + $0x748] ss:$16 sps:$4 sm:$0xff]  }
 0x275   : > { %4836 = vmatpush1.bf16.msra.mxu0 %v6340_v56  ;;  %v6414_v52 = vld [vmem:[%s7803_s5 + $0x52c] ss:$16 sps:$4 sm:$0xff]   ;;  %v6412_v10 = vld [vmem:[%s7803_s5 + $0x528] ss:$16 sps:$4 sm:$0xff]  }
 0x276   : > { %4877 = vmatpush1.bf16.msra.mxu1 %v6343_v57  ;;  %4837 = vmatprep.subr.bf16.mxu0 %v6348_v38  ;;  %v6417_v9 = vld [vmem:[%s7803_s5 + $0x72c] ss:$16 sps:$4 sm:$0xff]   ;;  %v6415_v13 = vld [vmem:[%s7803_s5 + $0x728] ss:$16 sps:$4 sm:$0xff]  }
 0x277   : > { %4878 = vmatprep.subr.bf16.mxu1 %v6351_v41  ;;  %v6420_v56 = vld [vmem:[%s7803_s5 + $0x50c] ss:$16 sps:$4 sm:$0xff]   ;;  %v6418_v58 = vld [vmem:[%s7803_s5 + $0x508] ss:$16 sps:$4 sm:$0xff]  }
 0x278   : > { %v6423_v57 = vld [vmem:[%s7803_s5 + $0x70c] ss:$16 sps:$4 sm:$0xff]   ;;  %v6421_v59 = vld [vmem:[%s7803_s5 + $0x708] ss:$16 sps:$4 sm:$0xff]  }
 0x279   : > { %4838 = vmatpush1.bf16.msra.mxu0 %v6346_v18  ;;  %v6426_v38 = vld [vmem:[%s7803_s5 + $0x8ec] ss:$16 sps:$4 sm:$0xff]   ;;  %v6424_v18 = vld [vmem:[%s7803_s5 + $0x8e8] ss:$16 sps:$4 sm:$0xff]  }
 0x27a   : > { %4879 = vmatpush1.bf16.msra.mxu1 %v6349_v60  ;;  %4839 = vmatprep.subr.bf16.mxu0 %v6354_v61  ;;  %v6429_v41 = vld [vmem:[%s7803_s5 + $0xaec] ss:$16 sps:$4 sm:$0xff]   ;;  %v6427_v60 = vld [vmem:[%s7803_s5 + $0xae8] ss:$16 sps:$4 sm:$0xff]  }
 0x27b   : > { %4880 = vmatprep.subr.bf16.mxu1 %v6357_v62  ;;  %v6432_v61 = vld [vmem:[%s7803_s5 + $0x8cc] ss:$16 sps:$4 sm:$0xff]  }
 0x27c   : > { %v6435_v62 = vld [vmem:[%s7803_s5 + $0xacc] ss:$16 sps:$4 sm:$0xff]  }
 0x27d   : > { %4840 = vmatpush1.bf16.msra.mxu0 %v6352_v63 }
 0x27e   : > { %4881 = vmatpush1.bf16.msra.mxu1 %v6355_v0  ;;  %4841 = vmatprep.subr.bf16.mxu0 %v6360_v3  ;;  %v6430_v3 = vld [vmem:[%s7803_s5 + $0x8c8] ss:$16 sps:$4 sm:$0xff]  }
 0x27f   : > { %4882 = vmatprep.subr.bf16.mxu1 %v6363_v4  ;;  %v6433_v4 = vld [vmem:[%s7803_s5 + $0xac8] ss:$16 sps:$4 sm:$0xff]  }
 0x281   : > { %4842 = vmatpush1.bf16.msra.mxu0 %v6358_v5 }
 0x282   : > { %4883 = vmatpush1.bf16.msra.mxu1 %v6361_v6  ;;  %4843 = vmatprep.subr.bf16.mxu0 %v6366_v7  ;;  %v6438_v7 = vld [vmem:[%s7803_s5 + $0x8ac] ss:$16 sps:$4 sm:$0xff]  }
 0x283   : > { %4884 = vmatprep.subr.bf16.mxu1 %v6369_v8  ;;  %v6441_v8 = vld [vmem:[%s7803_s5 + $0xaac] ss:$16 sps:$4 sm:$0xff]  }
 0x285   : > { %4844 = vmatpush1.bf16.msra.mxu0 %v6364_v11  ;;  %v6436_v11 = vld [vmem:[%s7803_s5 + $0x8a8] ss:$16 sps:$4 sm:$0xff]  }
 0x286   : > { %4885 = vmatpush1.bf16.msra.mxu1 %v6367_v12  ;;  %4845 = vmatprep.subr.bf16.mxu0 %v6372_v14  ;;  %v6439_v12 = vld [vmem:[%s7803_s5 + $0xaa8] ss:$16 sps:$4 sm:$0xff]  }
 0x287   : > { %4886 = vmatprep.subr.bf16.mxu1 %v6375_v15 }
 0x289   : > { %4846 = vmatpush1.bf16.msra.mxu0 %v6370_v16  ;;  %v6444_v16 = vld [vmem:[%s7803_s5 + $0x88c] ss:$16 sps:$4 sm:$0xff]  }
 0x28a   : > { %4887 = vmatpush1.bf16.msra.mxu1 %v6373_v17  ;;  %4847 = vmatprep.subr.bf16.mxu0 %v6378_v19  ;;  %v6445_v17 = vld [vmem:[%s7803_s5 + $0xa88] ss:$16 sps:$4 sm:$0xff]   ;;  %v6450_v19 = vld [vmem:[%s7803_s5 + $0x86c] ss:$16 sps:$4 sm:$0xff]  }
 0x28b   : > { %4888 = vmatprep.subr.bf16.mxu1 %v6381_v20  ;;  %v6453_v20 = vld [vmem:[%s7803_s5 + $0xa6c] ss:$16 sps:$4 sm:$0xff]  }
 0x28d   : > { %4848 = vmatpush2.bf16.msra.mxu0 %v6376_v23  ;;  %v6448_v23 = vld [vmem:[%s7803_s5 + $0x868] ss:$16 sps:$4 sm:$0xff]  }
 0x28e   : > { %4889 = vmatpush2.bf16.msra.mxu1 %v6379_v24  ;;  %4849 = vmatprep.subr.bf16.mxu0 %v6384_v25  ;;  %v6451_v24 = vld [vmem:[%s7803_s5 + $0xa68] ss:$16 sps:$4 sm:$0xff]   ;;  %v6456_v25 = vld [vmem:[%s7803_s5 + $0x84c] ss:$16 sps:$4 sm:$0xff]  }
 0x28f   : > { %4890 = vmatprep.subr.bf16.mxu1 %v6387_v26  ;;  %v6459_v26 = vld [vmem:[%s7803_s5 + $0xa4c] ss:$16 sps:$4 sm:$0xff]  }
 0x291   : > { %4850 = vmatpush2.bf16.msra.mxu0 %v6382_v27  ;;  %v6454_v27 = vld [vmem:[%s7803_s5 + $0x848] ss:$16 sps:$4 sm:$0xff]  }
 0x292   : > { %4891 = vmatpush2.bf16.msra.mxu1 %v6385_v28  ;;  %4851 = vmatprep.subr.bf16.mxu0 %v6390_v50  ;;  %v6457_v28 = vld [vmem:[%s7803_s5 + $0xa48] ss:$16 sps:$4 sm:$0xff]   ;;  %v6462_v50 = vld [vmem:[%s7803_s5 + $0x82c] ss:$16 sps:$4 sm:$0xff]  }
 0x293   : > { %4892 = vmatprep.subr.bf16.mxu1 %v6393_v53  ;;  %v6465_v53 = vld [vmem:[%s7803_s5 + $0xa2c] ss:$16 sps:$4 sm:$0xff]  }
 0x295   : > { %4852 = vmatpush2.bf16.msra.mxu0 %v6388_v29  ;;  %v6460_v29 = vld [vmem:[%s7803_s5 + $0x828] ss:$16 sps:$4 sm:$0xff]  }
 0x296   : > { %4893 = vmatpush2.bf16.msra.mxu1 %v6391_v31  ;;  %4853 = vmatprep.subr.bf16.mxu0 %v6396_v32  ;;  %v6463_v31 = vld [vmem:[%s7803_s5 + $0xa28] ss:$16 sps:$4 sm:$0xff]   ;;  %v6468_v32 = vld [vmem:[%s7803_s5 + $0x80c] ss:$16 sps:$4 sm:$0xff]  }
 0x297   : > { %4894 = vmatprep.subr.bf16.mxu1 %v6399_v34  ;;  %v6471_v34 = vld [vmem:[%s7803_s5 + $0xa0c] ss:$16 sps:$4 sm:$0xff]  }
 0x299   : > { %4854 = vmatpush2.bf16.msra.mxu0 %v6394_v35  ;;  %v6466_v35 = vld [vmem:[%s7803_s5 + $0x808] ss:$16 sps:$4 sm:$0xff]  }
 0x29a   : > { %4895 = vmatpush2.bf16.msra.mxu1 %v6397_v36  ;;  %4855 = vmatprep.subr.bf16.mxu0 %v6402_v37  ;;  %v6469_v36 = vld [vmem:[%s7803_s5 + $0xa08] ss:$16 sps:$4 sm:$0xff]   ;;  %v6474_v37 = vld [vmem:[%s7803_s5 + $0x9ec] ss:$16 sps:$4 sm:$0xff]  }
 0x29b   : > { %4896 = vmatprep.subr.bf16.mxu1 %v6405_v39  ;;  %v6477_v39 = vld [vmem:[%s7803_s5 + $0xbec] ss:$16 sps:$4 sm:$0xff]  }
 0x29d   : > { %4856 = vmatpush2.bf16.msra.mxu0 %v6400_v40  ;;  %v6472_v40 = vld [vmem:[%s7803_s5 + $0x9e8] ss:$16 sps:$4 sm:$0xff]  }
 0x29e   : > { %4897 = vmatpush2.bf16.msra.mxu1 %v6403_v42  ;;  %4857 = vmatprep.subr.bf16.mxu0 %v6408_v45  ;;  %v6475_v42 = vld [vmem:[%s7803_s5 + $0xbe8] ss:$16 sps:$4 sm:$0xff]   ;;  %v6480_v45 = vld [vmem:[%s7803_s5 + $0x9cc] ss:$16 sps:$4 sm:$0xff]  }
 0x29f   : > { %4898 = vmatprep.subr.bf16.mxu1 %v6411_v46  ;;  %v6483_v46 = vld [vmem:[%s7803_s5 + $0xbcc] ss:$16 sps:$4 sm:$0xff]  }
 0x2a1   : > { %4858 = vmatpush2.bf16.msra.mxu0 %v6406_v47  ;;  %v6478_v47 = vld [vmem:[%s7803_s5 + $0x9c8] ss:$16 sps:$4 sm:$0xff]  }
 0x2a2   : > { %4899 = vmatpush2.bf16.msra.mxu1 %v6409_v48  ;;  %4859 = vmatprep.subr.bf16.mxu0 %v6414_v52  ;;  %v6481_v48 = vld [vmem:[%s7803_s5 + $0xbc8] ss:$16 sps:$4 sm:$0xff]   ;;  %v6486_v52 = vld [vmem:[%s7803_s5 + $0x9ac] ss:$16 sps:$4 sm:$0xff]  }
 0x2a3   : > { %4900 = vmatprep.subr.bf16.mxu1 %v6417_v9  ;;  %v6489_v9 = vld [vmem:[%s7803_s5 + $0xbac] ss:$16 sps:$4 sm:$0xff]  }
 0x2a5   : > { %4860 = vmatpush2.bf16.msra.mxu0 %v6412_v10  ;;  %v6484_v10 = vld [vmem:[%s7803_s5 + $0x9a8] ss:$16 sps:$4 sm:$0xff]  }
 0x2a6   : > { %4901 = vmatpush2.bf16.msra.mxu1 %v6415_v13  ;;  %4861 = vmatprep.subr.bf16.mxu0 %v6420_v56  ;;  %v6487_v13 = vld [vmem:[%s7803_s5 + $0xba8] ss:$16 sps:$4 sm:$0xff]   ;;  %v6492_v56 = vld [vmem:[%s7803_s5 + $0x98c] ss:$16 sps:$4 sm:$0xff]  }
 0x2a7   : > { %4902 = vmatprep.subr.bf16.mxu1 %v6423_v57  ;;  %v6495_v57 = vld [vmem:[%s7803_s5 + $0xb8c] ss:$16 sps:$4 sm:$0xff]  }
 0x2a9   : > { %4862 = vmatpush2.bf16.msra.mxu0 %v6418_v58  ;;  %v6490_v58 = vld [vmem:[%s7803_s5 + $0x988] ss:$16 sps:$4 sm:$0xff]  }
 0x2aa   : > { %4903 = vmatpush2.bf16.msra.mxu1 %v6421_v59  ;;  %4913 = vmatprep.subr.bf16.mxu0 %v6426_v38  ;;  %v6493_v59 = vld [vmem:[%s7803_s5 + $0xb88] ss:$16 sps:$4 sm:$0xff]   ;;  %v6498_v38 = vld [vmem:[%s7803_s5 + $0x96c] ss:$16 sps:$4 sm:$0xff]  }
 0x2ab   : > { %4954 = vmatprep.subr.bf16.mxu1 %v6429_v41  ;;  %v6501_v41 = vld [vmem:[%s7803_s5 + $0xb6c] ss:$16 sps:$4 sm:$0xff]  }
 0x2ac   : > { %v8276_v63 = vpop.f32.mrf.mxu0  ;;  %4864 = vmatmul.mubr.bf16.vlgmr.msra.gmra.mxu0 %v7962_v21 }
 0x2ad   : > { %v8278_v0 = vpop.f32.mrf.mxu1  ;;  %4905 = vmatmul.mubr.bf16.vlgmr.msra.gmra.mxu1 %v7964_v22  ;;  %4914 = vmatpush1.bf16.msra.mxu0 %v6424_v18  ;;  %v6496_v18 = vld [vmem:[%s7803_s5 + $0x968] ss:$16 sps:$4 sm:$0xff]  }
 0x2ae   : > { %4955 = vmatpush1.bf16.msra.mxu1 %v6427_v60  ;;  %v8284_v5 = vpop.f32.mrf.mxu0  ;;  %4915 = vmatprep.subr.bf16.mxu0 %v6432_v61  ;;  %v6499_v60 = vld [vmem:[%s7803_s5 + $0xb68] ss:$16 sps:$4 sm:$0xff]   ;;  %v6504_v61 = vld [vmem:[%s7803_s5 + $0x94c] ss:$16 sps:$4 sm:$0xff]  }
 0x2af   : > { %v8286_v6 = vpop.f32.mrf.mxu1  ;;  %4956 = vmatprep.subr.bf16.mxu1 %v6435_v62  ;;  %4945 = vmatprep.mubr.bf16.mxu0 %v7975_v30  ;;  %v6447_v30 = vld [vmem:[%s7803_s5 + $0xa8c] ss:$16 sps:$4 sm:$0xff]  }
 0x2b0   : > { %4986 = vmatprep.mubr.bf16.mxu1 %v7979_v33  ;;  %v4623_v21 = vpop.f32.mrf.mxu0  ;;  %v6442_v33 = vld [vmem:[%s7803_s5 + $0x888] ss:$16 sps:$4 sm:$0xff]   ;;  %v6507_v62 = vld [vmem:[%s7803_s5 + $0xb4c] ss:$16 sps:$4 sm:$0xff]  }
 0x2b1   : > { %v4664_v22 = vpop.f32.mrf.mxu1  ;;  %4916 = vmatpush1.bf16.msra.mxu0 %v6430_v3  ;;  %v6502_v3 = vld [vmem:[%s7803_s5 + $0x948] ss:$16 sps:$4 sm:$0xff]  }
 0x2b2   : > { %4957 = vmatpush1.bf16.msra.mxu1 %v6433_v4  ;;  %v4624_v14 = vpop.f32.mrf.mxu0  ;;  %4917 = vmatprep.subr.bf16.mxu0 %v6438_v7  ;;  %v6505_v4 = vld [vmem:[%s7803_s5 + $0xb48] ss:$16 sps:$4 sm:$0xff]   ;;  %v6510_v7 = vld [vmem:[%s7803_s5 + $0x92c] ss:$16 sps:$4 sm:$0xff]  }
 0x2b3   : > { %v4665_v15 = vpop.f32.mrf.mxu1  ;;  %4958 = vmatprep.subr.bf16.mxu1 %v6441_v8  ;;  %v6513_v8 = vld [vmem:[%s7803_s5 + $0xb2c] ss:$16 sps:$4 sm:$0xff]   ;;  %v6508_v21 = vld [vmem:[%s7803_s5 + $0x928] ss:$16 sps:$4 sm:$0xff]  }
 0x2b4   : > { %v6511_v22 = vld [vmem:[%s7803_s5 + $0xb28] ss:$16 sps:$4 sm:$0xff]  }
 0x2b5   : > { %4918 = vmatpush1.bf16.msra.mxu0 %v6436_v11  ;;  %v6516_v11 = vld [vmem:[%s7803_s5 + $0x90c] ss:$16 sps:$4 sm:$0xff]   ;;  %v6514_v14 = vld [vmem:[%s7803_s5 + $0x908] ss:$16 sps:$4 sm:$0xff]  }
 0x2b6   : > { %4959 = vmatpush1.bf16.msra.mxu1 %v6439_v12  ;;  %4919 = vmatprep.subr.bf16.mxu0 %v6444_v16  ;;  %v6519_v12 = vld [vmem:[%s7803_s5 + $0xb0c] ss:$16 sps:$4 sm:$0xff]   ;;  %v6517_v15 = vld [vmem:[%s7803_s5 + $0xb08] ss:$16 sps:$4 sm:$0xff]  }
 0x2b7   : > { %4960 = vmatprep.subr.bf16.mxu1 %v6447_v30  ;;  %v6522_v16 = vld [vmem:[%s7803_s5 + $0xcec] ss:$16 sps:$4 sm:$0xff]  }
 0x2b8   : > { %v6525_v30 = vld [vmem:[%s7803_s5 + $0xeec] ss:$16 sps:$4 sm:$0xff]  }
 0x2b9   : > { %4920 = vmatpush1.bf16.msra.mxu0 %v6442_v33  ;;  %v4620_v33 = vadd.f32 %v8276_v63, %v8209_v54  ;;  %v6526_v63 = vld [vmem:[%s7803_s5 + $0xcc8] ss:$16 sps:$4 sm:$0xff]  }
 0x2ba   : > { %4961 = vmatpush1.bf16.msra.mxu1 %v6445_v17  ;;  %4921 = vmatprep.subr.bf16.mxu0 %v6450_v19  ;;  %v4622_v17 = vadd.f32 %v8284_v5, %v8214_v55  ;;  %v6520_v19 = vld [vmem:[%s7803_s5 + $0xce8] ss:$16 sps:$4 sm:$0xff]  }
 0x2bb   : > { %4962 = vmatprep.subr.bf16.mxu1 %v6453_v20  ;;  %v6523_v20 = vld [vmem:[%s7803_s5 + $0xee8] ss:$16 sps:$4 sm:$0xff]  }
 0x2bc   : > { %v4663_v54 = vadd.f32 %v8286_v6, %v4622_v17  ;;  %v6529_v5 = vld [vmem:[%s7803_s5 + $0xec8] ss:$16 sps:$4 sm:$0xff]   ;;  %v6591_v17 = vld [vmem:[%s7803_s5 + $0xf8c] ss:$16 sps:$4 sm:$0xff]  }
 0x2bd   : > { %4922 = vmatpush1.bf16.msra.mxu0 %v6448_v23  ;;  %v6528_v23 = vld [vmem:[%s7803_s5 + $0xccc] ss:$16 sps:$4 sm:$0xff]  }
 0x2be   : > { %4963 = vmatpush1.bf16.msra.mxu1 %v6451_v24  ;;  %4923 = vmatprep.subr.bf16.mxu0 %v6456_v25  ;;  %v6531_v24 = vld [vmem:[%s7803_s5 + $0xecc] ss:$16 sps:$4 sm:$0xff]   ;;  %v4661_v25 = vadd.f32 %v8278_v0, %v4620_v33 }
 0x2bf   : > { %4964 = vmatprep.subr.bf16.mxu1 %v6459_v26  ;;  %v6534_v0 = vld [vmem:[%s7803_s5 + $0xcac] ss:$16 sps:$4 sm:$0xff]  }
 0x2c0   : > { %v6588_v33 = vld [vmem:[%s7803_s5 + $0xd8c] ss:$16 sps:$4 sm:$0xff]  }
 0x2c1   : > { %4924 = vmatpush1.bf16.msra.mxu0 %v6454_v27 }
 0x2c2   : > { %4965 = vmatpush1.bf16.msra.mxu1 %v6457_v28  ;;  %4925 = vmatprep.subr.bf16.mxu0 %v6462_v50  ;;  %v1345_v28 = vld [vmem:[#allocation2 + $0x10] sm:$0xff] }
 0x2c3   : > { %4966 = vmatprep.subr.bf16.mxu1 %v6465_v53 }
 0x2c5   : > { %4926 = vmatpush1.bf16.msra.mxu0 %v6460_v29  ;;  %v6537_v29 = vld [vmem:[%s7803_s5 + $0xeac] ss:$16 sps:$4 sm:$0xff]  }
 0x2c6   : > { %4967 = vmatpush1.bf16.msra.mxu1 %v6463_v31  ;;  %4927 = vmatprep.subr.bf16.mxu0 %v6468_v32 }
 0x2c7   : > { %4968 = vmatprep.subr.bf16.mxu1 %v6471_v34 }
 0x2c9   : > { %4928 = vmatpush1.bf16.msra.mxu0 %v6466_v35 }
 0x2ca   : > { %4969 = vmatpush1.bf16.msra.mxu1 %v6469_v36  ;;  %4929 = vmatprep.subr.bf16.mxu0 %v6474_v37  ;;  %v6532_v36 = vld [vmem:[%s7803_s5 + $0xca8] ss:$16 sps:$4 sm:$0xff]  }
 0x2cb   : > { %4970 = vmatprep.subr.bf16.mxu1 %v6477_v39  ;;  %v6535_v37 = vld [vmem:[%s7803_s5 + $0xea8] ss:$16 sps:$4 sm:$0xff]  }
 0x2cd   : > { %4930 = vmatpush2.bf16.msra.mxu0 %v6472_v40 }
 0x2ce   : > { %4971 = vmatpush2.bf16.msra.mxu1 %v6475_v42  ;;  %4931 = vmatprep.subr.bf16.mxu0 %v6480_v45  ;;  %v6538_v45 = vld [vmem:[%s7803_s5 + $0xc88] ss:$16 sps:$4 sm:$0xff]  }
 0x2cf   : > { %4972 = vmatprep.subr.bf16.mxu1 %v6483_v46  ;;  %v6541_v46 = vld [vmem:[%s7803_s5 + $0xe88] ss:$16 sps:$4 sm:$0xff]  }
 0x2d1   : > { %4932 = vmatpush2.bf16.msra.mxu0 %v6478_v47  ;;  %v6546_v47 = vld [vmem:[%s7803_s5 + $0xc6c] ss:$16 sps:$4 sm:$0xff]  }
 0x2d2   : > { %4973 = vmatpush2.bf16.msra.mxu1 %v6481_v48  ;;  %4933 = vmatprep.subr.bf16.mxu0 %v6486_v52  ;;  %v6549_v48 = vld [vmem:[%s7803_s5 + $0xe6c] ss:$16 sps:$4 sm:$0xff]   ;;  %v6544_v52 = vld [vmem:[%s7803_s5 + $0xc68] ss:$16 sps:$4 sm:$0xff]  }
 0x2d3   : > { %4974 = vmatprep.subr.bf16.mxu1 %v6489_v9  ;;  %v6547_v9 = vld [vmem:[%s7803_s5 + $0xe68] ss:$16 sps:$4 sm:$0xff]  }
 0x2d5   : > { %4934 = vmatpush2.bf16.msra.mxu0 %v6484_v10  ;;  %v6552_v10 = vld [vmem:[%s7803_s5 + $0xc4c] ss:$16 sps:$4 sm:$0xff]  }
 0x2d6   : > { %4975 = vmatpush2.bf16.msra.mxu1 %v6487_v13  ;;  %4935 = vmatprep.subr.bf16.mxu0 %v6492_v56  ;;  %v6555_v13 = vld [vmem:[%s7803_s5 + $0xe4c] ss:$16 sps:$4 sm:$0xff]   ;;  %v6550_v56 = vld [vmem:[%s7803_s5 + $0xc48] ss:$16 sps:$4 sm:$0xff]  }
 0x2d7   : > { %4976 = vmatprep.subr.bf16.mxu1 %v6495_v57  ;;  %v6553_v57 = vld [vmem:[%s7803_s5 + $0xe48] ss:$16 sps:$4 sm:$0xff]  }
 0x2d9   : > { %4936 = vmatpush2.bf16.msra.mxu0 %v6490_v58  ;;  %v6558_v58 = vld [vmem:[%s7803_s5 + $0xc2c] ss:$16 sps:$4 sm:$0xff]  }
 0x2da   : > { %4977 = vmatpush2.bf16.msra.mxu1 %v6493_v59  ;;  %4937 = vmatprep.subr.bf16.mxu0 %v6498_v38  ;;  %v6561_v59 = vld [vmem:[%s7803_s5 + $0xe2c] ss:$16 sps:$4 sm:$0xff]   ;;  %v6556_v38 = vld [vmem:[%s7803_s5 + $0xc28] ss:$16 sps:$4 sm:$0xff]  }
 0x2db   : > { %4978 = vmatprep.subr.bf16.mxu1 %v6501_v41  ;;  %v6559_v41 = vld [vmem:[%s7803_s5 + $0xe28] ss:$16 sps:$4 sm:$0xff]  }
 0x2dd   : > { %4938 = vmatpush2.bf16.msra.mxu0 %v6496_v18  ;;  %v6564_v18 = vld [vmem:[%s7803_s5 + $0xc0c] ss:$16 sps:$4 sm:$0xff]  }
 0x2de   : > { %4979 = vmatpush2.bf16.msra.mxu1 %v6499_v60  ;;  %4939 = vmatprep.subr.bf16.mxu0 %v6504_v61  ;;  %v6567_v60 = vld [vmem:[%s7803_s5 + $0xe0c] ss:$16 sps:$4 sm:$0xff]   ;;  %v6562_v61 = vld [vmem:[%s7803_s5 + $0xc08] ss:$16 sps:$4 sm:$0xff]  }
 0x2df   : > { %4980 = vmatprep.subr.bf16.mxu1 %v6507_v62  ;;  %v6565_v62 = vld [vmem:[%s7803_s5 + $0xe08] ss:$16 sps:$4 sm:$0xff]  }
 0x2e1   : > { %4940 = vmatpush2.bf16.msra.mxu0 %v6502_v3  ;;  %v6570_v3 = vld [vmem:[%s7803_s5 + $0xdec] ss:$16 sps:$4 sm:$0xff]  }
 0x2e2   : > { %4981 = vmatpush2.bf16.msra.mxu1 %v6505_v4  ;;  %4941 = vmatprep.subr.bf16.mxu0 %v6510_v7  ;;  %v6573_v4 = vld [vmem:[%s7803_s5 + $0xfec] ss:$16 sps:$4 sm:$0xff]   ;;  %v6568_v7 = vld [vmem:[%s7803_s5 + $0xde8] ss:$16 sps:$4 sm:$0xff]  }
 0x2e3   : > { %4982 = vmatprep.subr.bf16.mxu1 %v6513_v8  ;;  %v6571_v8 = vld [vmem:[%s7803_s5 + $0xfe8] ss:$16 sps:$4 sm:$0xff]  }
 0x2e5   : > { %4942 = vmatpush2.bf16.msra.mxu0 %v6508_v21  ;;  %v6576_v21 = vld [vmem:[%s7803_s5 + $0xdcc] ss:$16 sps:$4 sm:$0xff]  }
 0x2e6   : > { %4983 = vmatpush2.bf16.msra.mxu1 %v6511_v22  ;;  %4943 = vmatprep.subr.bf16.mxu0 %v6516_v11  ;;  %v6579_v22 = vld [vmem:[%s7803_s5 + $0xfcc] ss:$16 sps:$4 sm:$0xff]   ;;  %v6574_v11 = vld [vmem:[%s7803_s5 + $0xdc8] ss:$16 sps:$4 sm:$0xff]  }
 0x2e7   : > { %4984 = vmatprep.subr.bf16.mxu1 %v6519_v12  ;;  %v6577_v12 = vld [vmem:[%s7803_s5 + $0xfc8] ss:$16 sps:$4 sm:$0xff]  }
 0x2e9   : > { %4944 = vmatpush2.bf16.msra.mxu0 %v6514_v14  ;;  %v6582_v14 = vld [vmem:[%s7803_s5 + $0xdac] ss:$16 sps:$4 sm:$0xff]  }
 0x2ea   : > { %4985 = vmatpush2.bf16.msra.mxu1 %v6517_v15  ;;  %4995 = vmatprep.subr.bf16.mxu0 %v6522_v16  ;;  %v6585_v15 = vld [vmem:[%s7803_s5 + $0xfac] ss:$16 sps:$4 sm:$0xff]   ;;  %v6580_v16 = vld [vmem:[%s7803_s5 + $0xda8] ss:$16 sps:$4 sm:$0xff]  }
 0x2eb   : > { %5036 = vmatprep.subr.bf16.mxu1 %v6525_v30  ;;  %v6583_v30 = vld [vmem:[%s7803_s5 + $0xfa8] ss:$16 sps:$4 sm:$0xff]  }
 0x2ec   : > { %v4701_v26 = vpop.f32.mrf.mxu0  ;;  %4946 = vmatmul.mubr.bf16.vlgmr.msra.gmra.mxu0 %v8044_v43 }
 0x2ed   : > { %v4742_v27 = vpop.f32.mrf.mxu1  ;;  %4987 = vmatmul.mubr.bf16.vlgmr.msra.gmra.mxu1 %v8046_v44  ;;  %v4702_v55 = vadd.f32 %v4701_v26, %v4661_v25  ;;  %4996 = vmatpush1.bf16.msra.mxu0 %v6520_v19  ;;  %v1346_v44 = vld [vmem:[#allocation2] sm:$0xff]  ;;  %v6586_v19 = vld [vmem:[%s7803_s5 + $0xd88] ss:$16 sps:$4 sm:$0xff]  }
 0x2ee   : > { %5037 = vmatpush1.bf16.msra.mxu1 %v6523_v20  ;;  %v4703_v50 = vpop.f32.mrf.mxu0  ;;  %4997 = vmatprep.subr.bf16.mxu0 %v6528_v23  ;;  %v6589_v20 = vld [vmem:[%s7803_s5 + $0xf88] ss:$16 sps:$4 sm:$0xff]   ;;  %v6594_v23 = vld [vmem:[%s7803_s5 + $0xd6c] ss:$16 sps:$4 sm:$0xff]  }
 0x2ef   : > { %v4744_v53 = vpop.f32.mrf.mxu1  ;;  %5038 = vmatprep.subr.bf16.mxu1 %v6531_v24  ;;  %v4743_v31 = vadd.f32 %v4742_v27, %v4702_v55  ;;  %v4704_v43 = vadd.f32 %v4703_v50, %v4663_v54  ;;  %5027 = vmatprep.mubr.bf16.mxu0 %v8052_v49  ;;  %v6540_v49 = vld [vmem:[%s7803_s5 + $0xc8c] ss:$16 sps:$4 sm:$0xff]   ;;  %v6592_v25 = vld [vmem:[%s7803_s5 + $0xd68] ss:$16 sps:$4 sm:$0xff]  }
 0x2f0   : > { %5068 = vmatprep.mubr.bf16.mxu1 %v8054_v51  ;;  %v4705_v6 = vpop.f32.mrf.mxu0  ;;  %v6543_v51 = vld [vmem:[%s7803_s5 + $0xe8c] ss:$16 sps:$4 sm:$0xff]   ;;  %v6595_v26 = vld [vmem:[%s7803_s5 + $0xf68] ss:$16 sps:$4 sm:$0xff]  }
 0x2f1   : > { %v4746_v32 = vpop.f32.mrf.mxu1  ;;  %v5077_v34 = vadd.f32 %v4743_v31, %v1345_v28  ;;  %v4745_v35 = vadd.f32 %v4744_v53, %v4704_v43  ;;  %4998 = vmatpush1.bf16.msra.mxu0 %v6526_v63  ;;  %v6597_v24 = vld [vmem:[%s7803_s5 + $0xf6c] ss:$16 sps:$4 sm:$0xff]   ;;  %v6598_v55 = vld [vmem:[%s7803_s5 + $0xd48] ss:$16 sps:$4 sm:$0xff]  }
 0x2f2   : > { %5039 = vmatpush1.bf16.msra.mxu1 %v6529_v5  ;;  %v4706_v39 = vpop.f32.mrf.mxu0  ;;  %4999 = vmatprep.subr.bf16.mxu0 %v6534_v0  ;;  %v6600_v27 = vld [vmem:[%s7803_s5 + $0xd4c] ss:$16 sps:$4 sm:$0xff]   ;;  %v6601_v63 = vld [vmem:[%s7803_s5 + $0xf48] ss:$16 sps:$4 sm:$0xff]  }
 0x2f3   : > { %v4747_v40 = vpop.f32.mrf.mxu1  ;;  %5040 = vmatprep.subr.bf16.mxu1 %v6537_v29  ;;  %5081 = vst [vmem:[#allocation2 + $0x10] sm:$0xff] %v5077_v34  ;;  %v5078_v42 = vadd.f32 %v4745_v35, %v1346_v44  ;;  %v6603_v54 = vld [vmem:[%s7803_s5 + $0xf4c] ss:$16 sps:$4 sm:$0xff]   ;;  %v6604_v50 = vld [vmem:[%s7803_s5 + $0xd28] ss:$16 sps:$4 sm:$0xff]  }
 0x2f4   : > { %v6606_v5 = vld [vmem:[%s7803_s5 + $0xd2c] ss:$16 sps:$4 sm:$0xff]   ;;  %v6607_v53 = vld [vmem:[%s7803_s5 + $0xf28] ss:$16 sps:$4 sm:$0xff]  }
 0x2f5   : > { %5082 = vst [vmem:[#allocation2] sm:$0xff] %v5078_v42  ;;  %5000 = vmatpush1.bf16.msra.mxu0 %v6532_v36  ;;  %v6609_v28 = vld [vmem:[%s7803_s5 + $0xf2c] ss:$16 sps:$4 sm:$0xff]   ;;  %v6610_v31 = vld [vmem:[%s7803_s5 + $0xd08] ss:$16 sps:$4 sm:$0xff]  }
 0x2f6   : > { %5041 = vmatpush1.bf16.msra.mxu1 %v6535_v37  ;;  %5001 = vmatprep.subr.bf16.mxu0 %v6540_v49  ;;  %v6612_v0 = vld [vmem:[%s7803_s5 + $0xd0c] ss:$16 sps:$4 sm:$0xff]   ;;  %v6613_v43 = vld [vmem:[%s7803_s5 + $0xf08] ss:$16 sps:$4 sm:$0xff]  }
 0x2f7   : > { %5042 = vmatprep.subr.bf16.mxu1 %v6543_v51  ;;  %v6615_v29 = vld [vmem:[%s7803_s5 + $0xf0c] ss:$16 sps:$4 sm:$0xff]  }
 0x2f9   : > { %5002 = vmatpush1.bf16.msra.mxu0 %v6538_v45 }
 0x2fa   : > { %5043 = vmatpush1.bf16.msra.mxu1 %v6541_v46  ;;  %5003 = vmatprep.subr.bf16.mxu0 %v6546_v47 }
 0x2fb   : > { %5044 = vmatprep.subr.bf16.mxu1 %v6549_v48 }
 0x2fd   : > { %5004 = vmatpush1.bf16.msra.mxu0 %v6544_v52 }
 0x2fe   : > { %5045 = vmatpush1.bf16.msra.mxu1 %v6547_v9  ;;  %5005 = vmatprep.subr.bf16.mxu0 %v6552_v10 }
 0x2ff   : > { %5046 = vmatprep.subr.bf16.mxu1 %v6555_v13 }
 0x301   : > { %5006 = vmatpush1.bf16.msra.mxu0 %v6550_v56 }
 0x302   : > { %5047 = vmatpush1.bf16.msra.mxu1 %v6553_v57  ;;  %5007 = vmatprep.subr.bf16.mxu0 %v6558_v58 }
 0x303   : > { %5048 = vmatprep.subr.bf16.mxu1 %v6561_v59 }
 0x305   : > { %5008 = vmatpush1.bf16.msra.mxu0 %v6556_v38 }
 0x306   : > { %5049 = vmatpush1.bf16.msra.mxu1 %v6559_v41  ;;  %5009 = vmatprep.subr.bf16.mxu0 %v6564_v18 }
 0x307   : > { %5050 = vmatprep.subr.bf16.mxu1 %v6567_v60 }
 0x309   : > { %5010 = vmatpush1.bf16.msra.mxu0 %v6562_v61 }
 0x30a   : > { %5051 = vmatpush1.bf16.msra.mxu1 %v6565_v62  ;;  %5011 = vmatprep.subr.bf16.mxu0 %v6570_v3 }
 0x30b   : > { %5052 = vmatprep.subr.bf16.mxu1 %v6573_v4 }
 0x30d   : > { %5012 = vmatpush2.bf16.msra.mxu0 %v6568_v7 }
 0x30e   : > { %5053 = vmatpush2.bf16.msra.mxu1 %v6571_v8  ;;  %5013 = vmatprep.subr.bf16.mxu0 %v6576_v21 }
 0x30f   : > { %5054 = vmatprep.subr.bf16.mxu1 %v6579_v22  ;;  %v1347_v22 = vld [vmem:[#allocation2 + $0x18] sm:$0xff] }
 0x311   : > { %5014 = vmatpush2.bf16.msra.mxu0 %v6574_v11 }
 0x312   : > { %5055 = vmatpush2.bf16.msra.mxu1 %v6577_v12  ;;  %5015 = vmatprep.subr.bf16.mxu0 %v6582_v14 }
 0x313   : > { %5056 = vmatprep.subr.bf16.mxu1 %v6585_v15 }
 0x315   : > { %5016 = vmatpush2.bf16.msra.mxu0 %v6580_v16  ;;  %v1348_v16 = vld [vmem:[#allocation2 + $0x8] sm:$0xff] }
 0x316   : > { %5057 = vmatpush2.bf16.msra.mxu1 %v6583_v30  ;;  %5017 = vmatprep.subr.bf16.mxu0 %v6588_v33 }
 0x317   : > { %5058 = vmatprep.subr.bf16.mxu1 %v6591_v17 }
 0x319   : > { %5018 = vmatpush2.bf16.msra.mxu0 %v6586_v19 }
 0x31a   : > { %5059 = vmatpush2.bf16.msra.mxu1 %v6589_v20  ;;  %5019 = vmatprep.subr.bf16.mxu0 %v6594_v23 }
 0x31b   : > { %5060 = vmatprep.subr.bf16.mxu1 %v6597_v24 }
 0x31d   : > { %5020 = vmatpush2.bf16.msra.mxu0 %v6592_v25 }
 0x31e   : > { %5061 = vmatpush2.bf16.msra.mxu1 %v6595_v26  ;;  %5021 = vmatprep.subr.bf16.mxu0 %v6600_v27 }
 0x31f   : > { %5062 = vmatprep.subr.bf16.mxu1 %v6603_v54 }
 0x321   : > { %5022 = vmatpush2.bf16.msra.mxu0 %v6598_v55 }
 0x322   : > { %5063 = vmatpush2.bf16.msra.mxu1 %v6601_v63  ;;  %5023 = vmatprep.subr.bf16.mxu0 %v6606_v5 }
 0x323   : > { %5064 = vmatprep.subr.bf16.mxu1 %v6609_v28 }
 0x325   : > { %5024 = vmatpush2.bf16.msra.mxu0 %v6604_v50 }
 0x326   : > { %5065 = vmatpush2.bf16.msra.mxu1 %v6607_v53  ;;  %5025 = vmatprep.subr.bf16.mxu0 %v6612_v0 }
 0x327   : > { %5066 = vmatprep.subr.bf16.mxu1 %v6615_v29 }
 0x329   : > { %5026 = vmatpush2.bf16.msra.mxu0 %v6610_v31 }
 0x32a   : > { %5067 = vmatpush2.bf16.msra.mxu1 %v6613_v43 }
 0x32c   : > { %v4783_v44 = vpop.f32.mrf.mxu0  ;;  %5028 = vmatmul.mubr.bf16.vlgmr.msra.gmra.mxu0 %v8122_v1 }
 0x32d   : > { %v4824_v6 = vpop.f32.mrf.mxu1  ;;  %5069 = vmatmul.mubr.bf16.vlgmr.msra.gmra.mxu1 %v8124_v2 }
 0x32e   : > { %v4825_v32 = vadd.f32 %v4824_v6, %v4783_v44  ;;  %v4785_v34 = vpop.f32.mrf.mxu0 }
 0x32f   : > { %v4826_v35 = vpop.f32.mrf.mxu1 }
 0x330   : > { %v4827_v36 = vadd.f32 %v4826_v35, %v4785_v34  ;;  %v4787_v37 = vpop.f32.mrf.mxu0 }
 0x331   : > { %v4828_v39 = vpop.f32.mrf.mxu1 }
 0x332   : > { %v4788_v40 = vpop.f32.mrf.mxu0 }
 0x333   : > { %v4829_v49 = vpop.f32.mrf.mxu1 }
 0x36c   : > { %v4865_v51 = vpop.f32.mrf.mxu0 }
 0x36d   : > { %v4906_v42 = vpop.f32.mrf.mxu1  ;;  %v4866_v45 = vadd.f32 %v4865_v51, %v4825_v32 }
 0x36e   : > { %v4867_v46 = vpop.f32.mrf.mxu0 }
 0x36f   : > { %v4908_v47 = vpop.f32.mrf.mxu1  ;;  %v4907_v48 = vadd.f32 %v4906_v42, %v4866_v45  ;;  %v4868_v52 = vadd.f32 %v4867_v46, %v4827_v36 }
 0x370   : > { %v4869_v9 = vpop.f32.mrf.mxu0 }
 0x371   : > { %v4910_v10 = vpop.f32.mrf.mxu1  ;;  %v4909_v1 = vadd.f32 %v4908_v47, %v4868_v52 }
 0x372   : > { %v4870_v13 = vpop.f32.mrf.mxu0 }
 0x373   : > { %v4911_v2 = vpop.f32.mrf.mxu1 }
 0x3ac   : > { %v4947_v56 = vpop.f32.mrf.mxu0 }
 0x3ad   : > { %v4988_v57 = vpop.f32.mrf.mxu1  ;;  %v4948_v61 = vadd.f32 %v4947_v56, %v4907_v48 }
 0x3ae   : > { %v4949_v58 = vpop.f32.mrf.mxu0 }
 0x3af   : > { %v4990_v59 = vpop.f32.mrf.mxu1  ;;  %v4950_v62 = vadd.f32 %v4949_v58, %v4909_v1  ;;  %v4989_v3 = vadd.f32 %v4988_v57, %v4948_v61 }
 0x3b0   : > { %v4951_v38 = vpop.f32.mrf.mxu0 }
 0x3b1   : > { %v4992_v41 = vpop.f32.mrf.mxu1  ;;  %v4991_v8 = vadd.f32 %v4990_v59, %v4950_v62 }
 0x3b2   : > { %v4952_v18 = vpop.f32.mrf.mxu0 }
 0x3b3   : > { %v4993_v60 = vpop.f32.mrf.mxu1 }
 0x3ec   : > { %v5029_v4 = vpop.f32.mrf.mxu0 }
 0x3ed   : > { %v5070_v7 = vpop.f32.mrf.mxu1  ;;  %v5030_v21 = vadd.f32 %v5029_v4, %v4989_v3 }
 0x3ee   : > { %v5031_v11 = vpop.f32.mrf.mxu0 }
 0x3ef   : > { %v5072_v12 = vpop.f32.mrf.mxu1  ;;  %v5071_v14 = vadd.f32 %v5070_v7, %v5030_v21  ;;  %v5032_v15 = vadd.f32 %v5031_v11, %v4991_v8 }
 0x3f0   : > { %v5033_v30 = vpop.f32.mrf.mxu0 }
 0x3f1   : > { %v5074_v33 = vpop.f32.mrf.mxu1  ;;  %v5079_v17 = vadd.f32 %v5071_v14, %v1347_v22  ;;  %v5073_v19 = vadd.f32 %v5072_v12, %v5032_v15  ;;  %5088 = sbr.rel (%p5787_p13) target bundleno = 1029 (0x405), region = 63 }
 0x3f2   : > { %v5034_v20 = vpop.f32.mrf.mxu0 }
 0x3f3   : > { %v5075_v23 = vpop.f32.mrf.mxu1  ;;  %5083 = vst [vmem:[#allocation2 + $0x18] sm:$0xff] %v5079_v17  ;;  %v5080_v24 = vadd.f32 %v5073_v19, %v1348_v16 }
 0x3f5   : > { %5084 = vst [vmem:[#allocation2 + $0x8] sm:$0xff] %v5080_v24 }
 0x3f6   : > { %v5095_v25 = vlaneseq  ;;  %v5093_v27 = vld [vmem:[%s1293_s12] sm:$0xf]  ;;  %v5089_v54 = vld [vmem:[#allocation2 + $0x10] sm:$0xff] }
 0x3f7   : > { %v5090_v50 = vld [vmem:[#allocation2] sm:$0xff] }
 0x3f8   : > { %v5096_v26 = vshrl.u32 %v5095_v25, 7 }
 0x3fa   : > { %v5097_v55 = vsub.s32 0, %v5096_v26  ;;  %v5101_v63 = vsub.s32 1, %v5096_v26  ;;  %v5105_v5 = vsub.s32 2, %v5096_v26  ;;  %v5109_v28 = vsub.s32 3, %v5096_v26  ;;  %v5091_v53 = vld [vmem:[#allocation2 + $0x18] sm:$0xff] }
 0x3fc   : > { %v5092_v0 = vld [vmem:[#allocation2 + $0x8] sm:$0xff]  ;;  %v5098_v29 = vrot.slane %v5093_v27, %v5097_v55  ;;  %v5102_v31 = vrot.slane %v5093_v27, %v5101_v63  ;;  %v5106_v43 = vrot.slane %v5093_v27, %v5105_v5  ;;  %v5110_v44 = vrot.slane %v5093_v27, %v5109_v28 }
 0x3fe   : > { %v5115_v6 = vadd.f32 %v5098_v29, %v5089_v54  ;;  %v5116_v32 = vadd.f32 %v5102_v31, %v5090_v50  ;;  %v5117_v34 = vadd.f32 %v5106_v43, %v5091_v53  ;;  %v5118_v35 = vadd.f32 %v5110_v44, %v5092_v0 }
 0x400   : > { %vm5119_vm0 = vcmp.ge.f32.partialorder %v5115_v6, 0.0  ;;  %v5123_v36 = vmul.f32 0.01, %v5115_v6  ;;  %vm5120_vm1 = vcmp.ge.f32.partialorder %v5116_v32, 0.0  ;;  %v5124_v37 = vmul.f32 0.01, %v5116_v32 }
 0x401   : > { %vm5121_vm2 = vcmp.ge.f32.partialorder %v5117_v34, 0.0  ;;  %v5125_v39 = vmul.f32 0.01, %v5117_v34  ;;  %vm5122_vm3 = vcmp.ge.f32.partialorder %v5118_v35, 0.0  ;;  %v5126_v40 = vmul.f32 0.01, %v5118_v35 }
 0x402   : > { %v5127_v49 = vsel %vm5119_vm0, %v5115_v6, %v5123_v36  ;;  %v5128_v51 = vsel %vm5120_vm1, %v5116_v32, %v5124_v37 }
 0x403   : > { %5131 = vst [vmem:[%s7801_s15] sm:$0xff] %v5127_v49  ;;  %5132 = vst [vmem:[%s7801_s15 + $0x8] sm:$0xff] %v5128_v51  ;;  %v5129_v42 = vsel %vm5121_vm2, %v5117_v34, %v5125_v39  ;;  %v5130_v45 = vsel %vm5122_vm3, %v5118_v35, %v5126_v40 }
 0x404   : > { %5133 = vst [vmem:[%s7801_s15 + $0x10] sm:$0xff] %v5129_v42  ;;  %5134 = vst [vmem:[%s7801_s15 + $0x18] sm:$0xff] %v5130_v45 }
 0x405 PF: > { %s13_s18 = sadd.s32 1, %s6670_s18   ;;  %s8457_s12 = smov %s6650_s13 }
 0x406   : > { %p10_p0 = scmp.ge.s32.totalorder %s13_s18, 34   ;;  %s8458_s13 = smov %s6744_s25 }
 0x407   : > { %s8459_s14 = smov %s6662_s16  ;;  %s8460_s15 = smov %s6666_s17 }
 0x408   : > { %s8461_s16 = smov %s8464_s19  ;;  %s8462_s17 = smov %s8468_s20 }
 0x409   :  { %12 = sbr.rel (!%p10_p0) target bundleno = 4 (0x4), region = 104 }

</bundles_post_ra>
